<compile_context>
chip_gen: v6e
topology: v6e:2x2x1
jax: 0.10.0
libtpu: 0.0.40
codegen_flags: <defaults>
</compile_context>

<pallas_src>
import functools

import jax
import jax.numpy as jnp
from jax.experimental import pallas as pl
from jax.experimental.pallas import tpu as pltpu

LANES = 128


def _round_up(v, m):
    return (v + m - 1) // m * m


def _cout_tile(c):
    # v6e/v7x MXU is 2x256^2 -> prefer 256-wide output tiles when the padded Cout
    # allows it; 128 is native for v5e's 4x128^2 MXUs and the safe fallback.
    return 256 if c % 256 == 0 else 128


# -----------------------------------------------------------------------------
# Fused kernel: conv1 + bias + ReLU  ->  conv2 + bias + [avg-pool] + shortcut
# -----------------------------------------------------------------------------
def _optimized_block_kernel(x_ref, w1_ref, b1_ref, w2_ref, wsc_ref, bias_ref,
                            out_ref, xp_scr, h1p_scr, *ds_scratch,
                            H, W, downsample):
    """Refs (leading batch dim squeezed away by BlockSpec None):
      x_ref   : (H, W, Cin)        bf16   unpadded input image
      w1_ref  : (9, Cin, Cmid)     bf16   conv1 taps
      b1_ref  : (1, Cmid)          f32
      w2_ref  : (9, Cmid, TC)      bf16   conv2 taps (x0.25 pre-folded if downsample)
      wsc_ref : (Cin, TC)          bf16   1x1 shortcut (x0.25 pre-folded if downsample)
      bias_ref: (1, TC)            f32    b2 + bsc fused
      out_ref : (Ho, Wo, TC)       f32
    Persistent VMEM scratch:
      xp_scr  : (H+2, W+2, Cin)    bf16   zero-halo padded x        (filled at j==0)
      h1p_scr : (H+2, W+2, Cmid)   bf16   zero-halo relu(conv1(x))  (filled at j==0)
    Downsample-only scratch:
      xs_pool_scr : (Ho*Wo, Cin) bf16 ; rowsum_scr : (Ho, W, TC) f32 ;
      xrow_scr    : (Ho, W, Cin) f32
    """
    j = pl.program_id(1)
    cin = x_ref.shape[-1]
    cmid = h1p_scr.shape[-1]
    tc = out_ref.shape[-1]
    Ho, Wo = (H // 2, W // 2) if downsample else (H, W)
    if downsample:
        xs_pool_scr, rowsum_scr, xrow_scr = ds_scratch

    @pl.when(j == 0)
    def _prologue():
        # ---- zero-halo padded x, built entirely in VMEM (4 strips + interior) ----
        zr = jnp.zeros((1, W + 2, cin), xp_scr.dtype)
        zc = jnp.zeros((H, 1, cin), xp_scr.dtype)
        xp_scr[0:1, :, :] = zr
        xp_scr[H + 1:H + 2, :, :] = zr
        xp_scr[1:H + 1, 0:1, :] = zc
        xp_scr[1:H + 1, W + 1:W + 2, :] = zc
        xp_scr[1:H + 1, 1:W + 1, :] = x_ref[...]

        # ---- conv1 + bias + ReLU, register-resident accumulation over 9 taps ----
        acc1 = None
        for kh in range(3):
            for kw in range(3):
                xs = xp_scr[kh:kh + H, kw:kw + W, :].reshape(H * W, cin)
                part = jnp.dot(xs, w1_ref[kh * 3 + kw],
                               preferred_element_type=jnp.float32)
                acc1 = part if acc1 is None else acc1 + part
        h1 = jnp.maximum(acc1 + b1_ref[...], 0.0)

        # ---- zero-halo relu(conv1) in VMEM so conv2 taps read it directly ----
        zrm = jnp.zeros((1, W + 2, cmid), h1p_scr.dtype)
        zcm = jnp.zeros((H, 1, cmid), h1p_scr.dtype)
        h1p_scr[0:1, :, :] = zrm
        h1p_scr[H + 1:H + 2, :, :] = zrm
        h1p_scr[1:H + 1, 0:1, :] = zcm
        h1p_scr[1:H + 1, W + 1:W + 2, :] = zcm
        h1p_scr[1:H + 1, 1:W + 1, :] = h1.reshape(H, W, cmid).astype(h1p_scr.dtype)

        # ---- shortcut pooling of x, computed once per image (not per Cout tile) ----
        if downsample:
            xv = x_ref[...].astype(jnp.float32).reshape(Ho, 2, W, cin)
            xrow_scr[...] = xv[:, 0] + xv[:, 1]
            xpool = (xrow_scr[:, pl.ds(0, Wo, 2), :] +
                     xrow_scr[:, pl.ds(1, Wo, 2), :])
            # 0.25 scale is folded into wsc; store the 2x2 *sum* pool in bf16.
            xs_pool_scr[...] = xpool.reshape(Ho * Wo, cin).astype(xs_pool_scr.dtype)

    # ---- conv2 over the VMEM-resident padded h1, register accumulation ----
    acc2 = None
    for kh in range(3):
        for kw in range(3):
            hs = h1p_scr[kh:kh + H, kw:kw + W, :].reshape(H * W, cmid)
            part = jnp.dot(hs, w2_ref[kh * 3 + kw],
                           preferred_element_type=jnp.float32)
            acc2 = part if acc2 is None else acc2 + part

    if downsample:
        # 2x2 sum-pool of conv2 (weights carry the 0.25): pair rows on the leading
        # dim (free regroup), pair columns via sublane-strided VMEM reads.
        a = acc2.reshape(Ho, 2, W, tc)
        rowsum_scr[...] = a[:, 0] + a[:, 1]
        main = (rowsum_scr[:, pl.ds(0, Wo, 2), :] +
                rowsum_scr[:, pl.ds(1, Wo, 2), :]).reshape(Ho * Wo, tc)
        sc_in = xs_pool_scr[...]
    else:
        main = acc2
        sc_in = x_ref[...].reshape(H * W, cin)

    sc = jnp.dot(sc_in, wsc_ref[...], preferred_element_type=jnp.float32)
    res = main + sc + bias_ref[...]
    out_ref[...] = res.reshape(Ho, Wo, tc).astype(out_ref.dtype)


def optimized_block_pallas(x, params, *, downsample, out_dtype=jnp.float32):
    """x: (N, H, W, Cin_padded) bf16. Returns (N, Ho, Wo, Cout_padded)."""
    N, H, W, Cin = x.shape
    w1, b1, w2 = params["w1"], params["b1"], params["w2"]
    wsc, bias = params["wsc"], params["bias"]
    Cmid = w1.shape[2]
    Cout = w2.shape[2]
    assert Cin % LANES == 0 and Cmid % LANES == 0 and Cout % LANES == 0
    assert W % 8 == 0
    if downsample:
        assert H % 2 == 0 and W % 16 == 0
    Ho, Wo = (H // 2, W // 2) if downsample else (H, W)
    TC = _cout_tile(Cout)

    kernel = functools.partial(_optimized_block_kernel, H=H, W=W,
                               downsample=downsample)

    scratch = [pltpu.VMEM((H + 2, W + 2, Cin), jnp.bfloat16),   # padded x
               pltpu.VMEM((H + 2, W + 2, Cmid), jnp.bfloat16)]  # padded relu(conv1)
    if downsample:
        scratch += [pltpu.VMEM((Ho * Wo, Cin), jnp.bfloat16),   # pooled shortcut x
                    pltpu.VMEM((Ho, W, TC), jnp.float32),       # conv2 row-pair sums
                    pltpu.VMEM((Ho, W, Cin), jnp.float32)]      # x row-pair sums

    return pl.pallas_call(
        kernel,
        out_shape=jax.ShapeDtypeStruct((N, Ho, Wo, Cout), out_dtype),
        grid=(N, Cout // TC),
        in_specs=[
            pl.BlockSpec((None, H, W, Cin), lambda n, j: (n, 0, 0, 0)),
            pl.BlockSpec((9, Cin, Cmid), lambda n, j: (0, 0, 0)),
            pl.BlockSpec((1, Cmid), lambda n, j: (0, 0)),
            pl.BlockSpec((9, Cmid, TC), lambda n, j: (0, 0, j)),
            pl.BlockSpec((Cin, TC), lambda n, j: (0, j)),
            pl.BlockSpec((1, TC), lambda n, j: (0, j)),
        ],
        out_specs=pl.BlockSpec((None, Ho, Wo, TC), lambda n, j: (n, 0, 0, j)),
        scratch_shapes=scratch,
        # batch axis parallel (megacore); Cout-tile axis arbitrary because the
        # conv1/shortcut scratch computed at j==0 is reused across Cout tiles.
        compiler_params=pltpu.CompilerParams(
            dimension_semantics=("parallel", "arbitrary")),
    )(x, w1, b1, w2, wsc, bias)


# -----------------------------------------------------------------------------
# Parameter setup (deterministic synthetic weights + init-time spectral norm)
# -----------------------------------------------------------------------------
def _spectral_normalize(w, key, eps=1e-4):
    out_dim = w.shape[0]
    w_mat = w.reshape(out_dim, -1)
    u = jax.random.normal(key, (out_dim,), jnp.float32)
    u = u / (jnp.linalg.norm(u) + eps)
    v = w_mat.T @ u
    v = v / (jnp.linalg.norm(v) + eps)
    u = w_mat @ v
    u = u / (jnp.linalg.norm(u) + eps)
    sigma = jnp.dot(u, w_mat @ v)
    return w / sigma


def _init_conv(key, cin, cout, k):
    k1, k2, k3 = jax.random.split(key, 3)
    w = 0.1 * jax.random.normal(k1, (cout, cin, k, k), jnp.float32)   # OIHW
    b = 0.01 * jax.random.normal(k2, (cout,), jnp.float32)
    return _spectral_normalize(w, k3), b


def init_reference_params(key, in_ch, out_ch):
    ks = jax.random.split(key, 3)
    w1, b1 = _init_conv(ks[0], in_ch, out_ch, 3)
    w2, b2 = _init_conv(ks[1], out_ch, out_ch, 3)
    wsc, bsc = _init_conv(ks[2], in_ch, out_ch, 1)
    return dict(w1=w1, b1=b1, w2=w2, b2=b2, wsc=wsc, bsc=bsc)


def pack_params(ref, downsample):
    """Pack PyTorch-style OIHW weights into lane-padded Pallas layouts.

    If downsample, the 2x2 avg-pool's 0.25 is folded into w2 and wsc (exact
    power-of-two scale), and b2+bsc are pre-added into a single fused bias.
    """
    out_ch, in_ch = ref["w1"].shape[0], ref["w1"].shape[1]
    cin_p, cout_p = _round_up(in_ch, LANES), _round_up(out_ch, LANES)
    scale = 0.25 if downsample else 1.0

    def pack3x3(w, cin_pad, cout_pad):
        t = jnp.transpose(w, (2, 3, 1, 0)).reshape(9, w.shape[1], w.shape[0])
        t = jnp.pad(t, ((0, 0), (0, cin_pad - t.shape[1]),
                        (0, cout_pad - t.shape[2])))
        return t.astype(jnp.bfloat16)

    w1p = pack3x3(ref["w1"], cin_p, cout_p)
    b1p = jnp.pad(ref["b1"], (0, cout_p - out_ch)).reshape(1, cout_p).astype(jnp.float32)
    w2p = pack3x3(ref["w2"] * scale, cout_p, cout_p)
    wscp = jnp.pad(ref["wsc"][:, :, 0, 0].T * scale,
                   ((0, cin_p - in_ch), (0, cout_p - out_ch))).astype(jnp.bfloat16)
    bias = jnp.pad(ref["b2"] + ref["bsc"],
                   (0, cout_p - out_ch)).reshape(1, cout_p).astype(jnp.float32)
    return dict(w1=w1p, b1=b1p, w2=w2p, wsc=wscp, bias=bias)


# -----------------------------------------------------------------------------
# OptimizedBlock forward (Pallas) and pure-JAX reference
# -----------------------------------------------------------------------------
@functools.partial(jax.jit, static_argnames=("downsample", "out_ch"))
def optimized_block_forward(params, x_nchw, downsample, out_ch):
    x = jnp.transpose(x_nchw, (0, 2, 3, 1))                      # NCHW -> NHWC
    cin_p = params["w1"].shape[1]
    # Lane-pad channels only; the spatial halo is built inside the kernel (VMEM).
    x_p = jnp.pad(x, ((0, 0), (0, 0), (0, 0),
                      (0, cin_p - x.shape[-1]))).astype(jnp.bfloat16)
    out = optimized_block_pallas(x_p, params, downsample=downsample)
    out = out[..., :out_ch]                                      # drop lane pad
    return jnp.transpose(out, (0, 3, 1, 2))                      # back to NCHW


def _avg_pool2(x):
    n, h, w, c = x.shape
    return x.reshape(n, h // 2, 2, w // 2, 2, c).mean(axis=(2, 4))


def optimized_block_reference(params, x_nchw, downsample):
    x = jnp.transpose(x_nchw, (0, 2, 3, 1))

    def conv(v, w, b, pad):
        y = jax.lax.conv_general_dilated(
            v, jnp.transpose(w, (2, 3, 1, 0)), (1, 1),
            [(pad, pad), (pad, pad)],
            dimension_numbers=("NHWC", "HWIO", "NHWC"),
            precision=jax.lax.Precision.HIGHEST)
        return y + b.reshape(1, 1, 1, -1)

    h = jax.nn.relu(conv(x, params["w1"], params["b1"], 1))
    h = conv(h, params["w2"], params["b2"], 1)
    if downsample:
        h = _avg_pool2(h)
    sc = _avg_pool2(x) if downsample else x
    sc = conv(sc, params["wsc"], params["bsc"], 0)
    return jnp.transpose(h + sc, (0, 3, 1, 2))


# -----------------------------------------------------------------------------
if __name__ == "__main__":
    key = jax.random.PRNGKey(0)
    in_ch, out_ch = 16, 32
    N, H, W = 2, 16, 16
    k_par, k_x = jax.random.split(key)

    ref_params = init_reference_params(k_par, in_ch, out_ch)
    params_ds = pack_params(ref_params, downsample=True)
    params_id = pack_params(ref_params, downsample=False)
    x = jax.random.normal(k_x, (N, in_ch, H, W), jnp.float32)    # PyTorch NCHW

    out_ds = optimized_block_forward(params_ds, x, downsample=True, out_ch=out_ch)
    out_id = optimized_block_forward(params_id, x, downsample=False, out_ch=out_ch)
    jax.block_until_ready((out_ds, out_id))

    assert out_ds.shape == (N, out_ch, H // 2, W // 2)
    assert out_id.shape == (N, out_ch, H, W)

    ref_ds = optimized_block_reference(ref_params, x, True)
    ref_id = optimized_block_reference(ref_params, x, False)
    err_ds = float(jnp.max(jnp.abs(out_ds - ref_ds)))
    err_id = float(jnp.max(jnp.abs(out_id - ref_id)))
    assert err_ds < 5e-2 and err_id < 5e-2, (err_ds, err_id)

    print("KERNEL_OK")
</pallas_src>

<mosaic_0001>
module attributes {stable_mosaic.version = 11 : i64} {
  func.func @_optimized_block_kernel(%arg0: i32, %arg1: i32, %arg2: memref<1x16x16x128xbf16, #tpu.memory_space<vmem>>, %arg3: memref<9x128x128xbf16, #tpu.memory_space<vmem>>, %arg4: memref<1x128xf32, #tpu.memory_space<vmem>>, %arg5: memref<9x128x128xbf16, #tpu.memory_space<vmem>>, %arg6: memref<128x128xbf16, #tpu.memory_space<vmem>>, %arg7: memref<1x128xf32, #tpu.memory_space<vmem>>, %arg8: memref<1x8x8x128xf32, #tpu.memory_space<vmem>>, %arg9: memref<18x18x128xbf16, #tpu.memory_space<vmem>>, %arg10: memref<18x18x128xbf16, #tpu.memory_space<vmem>>, %arg11: memref<64x128xbf16, #tpu.memory_space<vmem>>, %arg12: memref<8x16x128xf32, #tpu.memory_space<vmem>>, %arg13: memref<8x16x128xf32, #tpu.memory_space<vmem>>) attributes {dimension_semantics = [#tpu.dimension_semantics<parallel>, #tpu.dimension_semantics<arbitrary>], iteration_bounds = array<i64: 2, 1>, scalar_prefetch = 0 : i64, scratch_operands = 5 : i64, tpu.core_type = #tpu.core_type<tc>, window_params = [{transform_indices = @transform_0, window_bounds = array<i64: 1, 16, 16, 128>}, {pipeline_mode = #tpu.pipeline_mode<synchronous>, transform_indices = @transform_1, window_bounds = array<i64: 9, 128, 128>}, {pipeline_mode = #tpu.pipeline_mode<synchronous>, transform_indices = @transform_2, window_bounds = array<i64: 1, 128>}, {transform_indices = @transform_3, window_bounds = array<i64: 9, 128, 128>}, {transform_indices = @transform_4, window_bounds = array<i64: 128, 128>}, {transform_indices = @transform_5, window_bounds = array<i64: 1, 128>}, {transform_indices = @transform_6, window_bounds = array<i64: 1, 8, 8, 128>}]} {
    %c0_i32 = arith.constant 0 : i32
    %0 = arith.cmpi eq, %arg1, %c0_i32 : i32
    %1 = arith.extui %0 : i1 to i32
    %c0_i32_0 = arith.constant 0 : i32
    %2 = arith.cmpi ne, %1, %c0_i32_0 : i32
    scf.if %2 {
      %cst_74 = arith.constant 0.000000e+00 : bf16
      %78 = vector.broadcast %cst_74 : bf16 to vector<1x18x128xbf16>
      %cst_75 = arith.constant 0.000000e+00 : bf16
      %79 = vector.broadcast %cst_75 : bf16 to vector<16x1x128xbf16>
      %c0_76 = arith.constant 0 : index
      %c0_77 = arith.constant 0 : index
      %c0_78 = arith.constant 0 : index
      %80 = vector.load %arg9[%c0_76, %c0_77, %c0_78] : memref<18x18x128xbf16, #tpu.memory_space<vmem>>, vector<1x18x128xbf16>
      tpu.vector_store %arg9[%c0_76, %c0_77, %c0_78], %78 {strides = array<i32>} : memref<18x18x128xbf16, #tpu.memory_space<vmem>>, vector<1x18x128xbf16>,
      %c17 = arith.constant 17 : index
      %c0_79 = arith.constant 0 : index
      %c0_80 = arith.constant 0 : index
      %81 = vector.load %arg9[%c17, %c0_79, %c0_80] : memref<18x18x128xbf16, #tpu.memory_space<vmem>>, vector<1x18x128xbf16>
      tpu.vector_store %arg9[%c17, %c0_79, %c0_80], %78 {strides = array<i32>} : memref<18x18x128xbf16, #tpu.memory_space<vmem>>, vector<1x18x128xbf16>,
      %c1_81 = arith.constant 1 : index
      %c0_82 = arith.constant 0 : index
      %c0_83 = arith.constant 0 : index
      %82 = vector.load %arg9[%c1_81, %c0_82, %c0_83] : memref<18x18x128xbf16, #tpu.memory_space<vmem>>, vector<16x1x128xbf16>
      tpu.vector_store %arg9[%c1_81, %c0_82, %c0_83], %79 {strides = array<i32>} : memref<18x18x128xbf16, #tpu.memory_space<vmem>>, vector<16x1x128xbf16>,
      %c1_84 = arith.constant 1 : index
      %c17_85 = arith.constant 17 : index
      %c0_86 = arith.constant 0 : index
      %83 = vector.load %arg9[%c1_84, %c17_85, %c0_86] : memref<18x18x128xbf16, #tpu.memory_space<vmem>>, vector<16x1x128xbf16>
      tpu.vector_store %arg9[%c1_84, %c17_85, %c0_86], %79 {strides = array<i32>} : memref<18x18x128xbf16, #tpu.memory_space<vmem>>, vector<16x1x128xbf16>,
      %c0_87 = arith.constant 0 : index
      %c0_88 = arith.constant 0 : index
      %c0_89 = arith.constant 0 : index
      %c0_90 = arith.constant 0 : index
      %84 = vector.load %arg2[%c0_87, %c0_88, %c0_89, %c0_90] : memref<1x16x16x128xbf16, #tpu.memory_space<vmem>>, vector<1x16x16x128xbf16>
      %85 = vector.shape_cast %84 : vector<1x16x16x128xbf16> to vector<16x16x128xbf16>
      %c1_91 = arith.constant 1 : index
      %c1_92 = arith.constant 1 : index
      %c0_93 = arith.constant 0 : index
      %86 = vector.load %arg9[%c1_91, %c1_92, %c0_93] : memref<18x18x128xbf16, #tpu.memory_space<vmem>>, vector<16x16x128xbf16>
      tpu.vector_store %arg9[%c1_91, %c1_92, %c0_93], %85 {strides = array<i32>} : memref<18x18x128xbf16, #tpu.memory_space<vmem>>, vector<16x16x128xbf16>,
      %c0_94 = arith.constant 0 : index
      %c0_95 = arith.constant 0 : index
      %c0_96 = arith.constant 0 : index
      %87 = vector.load %arg9[%c0_94, %c0_95, %c0_96] : memref<18x18x128xbf16, #tpu.memory_space<vmem>>, vector<16x16x128xbf16>
      %88 = vector.shape_cast %87 : vector<16x16x128xbf16> to vector<256x128xbf16>
      %c0_97 = arith.constant 0 : index
      %c0_98 = arith.constant 0 : index
      %c0_99 = arith.constant 0 : index
      %89 = vector.load %arg3[%c0_97, %c0_98, %c0_99] : memref<9x128x128xbf16, #tpu.memory_space<vmem>>, vector<1x128x128xbf16>
      %90 = vector.shape_cast %89 : vector<1x128x128xbf16> to vector<128x128xbf16>
      %cst_100 = arith.constant dense<0.000000e+00> : vector<256x128xf32>
      %91 = tpu.matmul %88, %90, %cst_100 {dimension_numbers = #tpu.dot_dimension_numbers<[1], [0], [0], [1], [0, 0, 1, 1], [], []>} : vector<256x128xbf16>, vector<128x128xbf16>, vector<256x128xf32> -> vector<256x128xf32>
      %c0_101 = arith.constant 0 : index
      %c1_102 = arith.constant 1 : index
      %c0_103 = arith.constant 0 : index
      %92 = vector.load %arg9[%c0_101, %c1_102, %c0_103] : memref<18x18x128xbf16, #tpu.memory_space<vmem>>, vector<16x16x128xbf16>
      %93 = vector.shape_cast %92 : vector<16x16x128xbf16> to vector<256x128xbf16>
      %c1_104 = arith.constant 1 : index
      %c0_105 = arith.constant 0 : index
      %c0_106 = arith.constant 0 : index
      %94 = vector.load %arg3[%c1_104, %c0_105, %c0_106] : memref<9x128x128xbf16, #tpu.memory_space<vmem>>, vector<1x128x128xbf16>
      %95 = vector.shape_cast %94 : vector<1x128x128xbf16> to vector<128x128xbf16>
      %cst_107 = arith.constant dense<0.000000e+00> : vector<256x128xf32>
      %96 = tpu.matmul %93, %95, %cst_107 {dimension_numbers = #tpu.dot_dimension_numbers<[1], [0], [0], [1], [0, 0, 1, 1], [], []>} : vector<256x128xbf16>, vector<128x128xbf16>, vector<256x128xf32> -> vector<256x128xf32>
      %97 = arith.addf %91, %96 : vector<256x128xf32>
      %c0_108 = arith.constant 0 : index
      %c2_109 = arith.constant 2 : index
      %c0_110 = arith.constant 0 : index
      %98 = vector.load %arg9[%c0_108, %c2_109, %c0_110] : memref<18x18x128xbf16, #tpu.memory_space<vmem>>, vector<16x16x128xbf16>
      %99 = vector.shape_cast %98 : vector<16x16x128xbf16> to vector<256x128xbf16>
      %c2_111 = arith.constant 2 : index
      %c0_112 = arith.constant 0 : index
      %c0_113 = arith.constant 0 : index
      %100 = vector.load %arg3[%c2_111, %c0_112, %c0_113] : memref<9x128x128xbf16, #tpu.memory_space<vmem>>, vector<1x128x128xbf16>
      %101 = vector.shape_cast %100 : vector<1x128x128xbf16> to vector<128x128xbf16>
      %cst_114 = arith.constant dense<0.000000e+00> : vector<256x128xf32>
      %102 = tpu.matmul %99, %101, %cst_114 {dimension_numbers = #tpu.dot_dimension_numbers<[1], [0], [0], [1], [0, 0, 1, 1], [], []>} : vector<256x128xbf16>, vector<128x128xbf16>, vector<256x128xf32> -> vector<256x128xf32>
      %103 = arith.addf %97, %102 : vector<256x128xf32>
      %c1_115 = arith.constant 1 : index
      %c0_116 = arith.constant 0 : index
      %c0_117 = arith.constant 0 : index
      %104 = vector.load %arg9[%c1_115, %c0_116, %c0_117] : memref<18x18x128xbf16, #tpu.memory_space<vmem>>, vector<16x16x128xbf16>
      %105 = vector.shape_cast %104 : vector<16x16x128xbf16> to vector<256x128xbf16>
      %c3_118 = arith.constant 3 : index
      %c0_119 = arith.constant 0 : index
      %c0_120 = arith.constant 0 : index
      %106 = vector.load %arg3[%c3_118, %c0_119, %c0_120] : memref<9x128x128xbf16, #tpu.memory_space<vmem>>, vector<1x128x128xbf16>
      %107 = vector.shape_cast %106 : vector<1x128x128xbf16> to vector<128x128xbf16>
      %cst_121 = arith.constant dense<0.000000e+00> : vector<256x128xf32>
      %108 = tpu.matmul %105, %107, %cst_121 {dimension_numbers = #tpu.dot_dimension_numbers<[1], [0], [0], [1], [0, 0, 1, 1], [], []>} : vector<256x128xbf16>, vector<128x128xbf16>, vector<256x128xf32> -> vector<256x128xf32>
      %109 = arith.addf %103, %108 : vector<256x128xf32>
      %c1_122 = arith.constant 1 : index
      %c1_123 = arith.constant 1 : index
      %c0_124 = arith.constant 0 : index
      %110 = vector.load %arg9[%c1_122, %c1_123, %c0_124] : memref<18x18x128xbf16, #tpu.memory_space<vmem>>, vector<16x16x128xbf16>
      %111 = vector.shape_cast %110 : vector<16x16x128xbf16> to vector<256x128xbf16>
      %c4_125 = arith.constant 4 : index
      %c0_126 = arith.constant 0 : index
      %c0_127 = arith.constant 0 : index
      %112 = vector.load %arg3[%c4_125, %c0_126, %c0_127] : memref<9x128x128xbf16, #tpu.memory_space<vmem>>, vector<1x128x128xbf16>
      %113 = vector.shape_cast %112 : vector<1x128x128xbf16> to vector<128x128xbf16>
      %cst_128 = arith.constant dense<0.000000e+00> : vector<256x128xf32>
      %114 = tpu.matmul %111, %113, %cst_128 {dimension_numbers = #tpu.dot_dimension_numbers<[1], [0], [0], [1], [0, 0, 1, 1], [], []>} : vector<256x128xbf16>, vector<128x128xbf16>, vector<256x128xf32> -> vector<256x128xf32>
      %115 = arith.addf %109, %114 : vector<256x128xf32>
      %c1_129 = arith.constant 1 : index
      %c2_130 = arith.constant 2 : index
      %c0_131 = arith.constant 0 : index
      %116 = vector.load %arg9[%c1_129, %c2_130, %c0_131] : memref<18x18x128xbf16, #tpu.memory_space<vmem>>, vector<16x16x128xbf16>
      %117 = vector.shape_cast %116 : vector<16x16x128xbf16> to vector<256x128xbf16>
      %c5_132 = arith.constant 5 : index
      %c0_133 = arith.constant 0 : index
      %c0_134 = arith.constant 0 : index
      %118 = vector.load %arg3[%c5_132, %c0_133, %c0_134] : memref<9x128x128xbf16, #tpu.memory_space<vmem>>, vector<1x128x128xbf16>
      %119 = vector.shape_cast %118 : vector<1x128x128xbf16> to vector<128x128xbf16>
      %cst_135 = arith.constant dense<0.000000e+00> : vector<256x128xf32>
      %120 = tpu.matmul %117, %119, %cst_135 {dimension_numbers = #tpu.dot_dimension_numbers<[1], [0], [0], [1], [0, 0, 1, 1], [], []>} : vector<256x128xbf16>, vector<128x128xbf16>, vector<256x128xf32> -> vector<256x128xf32>
      %121 = arith.addf %115, %120 : vector<256x128xf32>
      %c2_136 = arith.constant 2 : index
      %c0_137 = arith.constant 0 : index
      %c0_138 = arith.constant 0 : index
      %122 = vector.load %arg9[%c2_136, %c0_137, %c0_138] : memref<18x18x128xbf16, #tpu.memory_space<vmem>>, vector<16x16x128xbf16>
      %123 = vector.shape_cast %122 : vector<16x16x128xbf16> to vector<256x128xbf16>
      %c6_139 = arith.constant 6 : index
      %c0_140 = arith.constant 0 : index
      %c0_141 = arith.constant 0 : index
      %124 = vector.load %arg3[%c6_139, %c0_140, %c0_141] : memref<9x128x128xbf16, #tpu.memory_space<vmem>>, vector<1x128x128xbf16>
      %125 = vector.shape_cast %124 : vector<1x128x128xbf16> to vector<128x128xbf16>
      %cst_142 = arith.constant dense<0.000000e+00> : vector<256x128xf32>
      %126 = tpu.matmul %123, %125, %cst_142 {dimension_numbers = #tpu.dot_dimension_numbers<[1], [0], [0], [1], [0, 0, 1, 1], [], []>} : vector<256x128xbf16>, vector<128x128xbf16>, vector<256x128xf32> -> vector<256x128xf32>
      %127 = arith.addf %121, %126 : vector<256x128xf32>
      %c2_143 = arith.constant 2 : index
      %c1_144 = arith.constant 1 : index
      %c0_145 = arith.constant 0 : index
      %128 = vector.load %arg9[%c2_143, %c1_144, %c0_145] : memref<18x18x128xbf16, #tpu.memory_space<vmem>>, vector<16x16x128xbf16>
      %129 = vector.shape_cast %128 : vector<16x16x128xbf16> to vector<256x128xbf16>
      %c7_146 = arith.constant 7 : index
      %c0_147 = arith.constant 0 : index
      %c0_148 = arith.constant 0 : index
      %130 = vector.load %arg3[%c7_146, %c0_147, %c0_148] : memref<9x128x128xbf16, #tpu.memory_space<vmem>>, vector<1x128x128xbf16>
      %131 = vector.shape_cast %130 : vector<1x128x128xbf16> to vector<128x128xbf16>
      %cst_149 = arith.constant dense<0.000000e+00> : vector<256x128xf32>
      %132 = tpu.matmul %129, %131, %cst_149 {dimension_numbers = #tpu.dot_dimension_numbers<[1], [0], [0], [1], [0, 0, 1, 1], [], []>} : vector<256x128xbf16>, vector<128x128xbf16>, vector<256x128xf32> -> vector<256x128xf32>
      %133 = arith.addf %127, %132 : vector<256x128xf32>
      %c2_150 = arith.constant 2 : index
      %c2_151 = arith.constant 2 : index
      %c0_152 = arith.constant 0 : index
      %134 = vector.load %arg9[%c2_150, %c2_151, %c0_152] : memref<18x18x128xbf16, #tpu.memory_space<vmem>>, vector<16x16x128xbf16>
      %135 = vector.shape_cast %134 : vector<16x16x128xbf16> to vector<256x128xbf16>
      %c8_153 = arith.constant 8 : index
      %c0_154 = arith.constant 0 : index
      %c0_155 = arith.constant 0 : index
      %136 = vector.load %arg3[%c8_153, %c0_154, %c0_155] : memref<9x128x128xbf16, #tpu.memory_space<vmem>>, vector<1x128x128xbf16>
      %137 = vector.shape_cast %136 : vector<1x128x128xbf16> to vector<128x128xbf16>
      %cst_156 = arith.constant dense<0.000000e+00> : vector<256x128xf32>
      %138 = tpu.matmul %135, %137, %cst_156 {dimension_numbers = #tpu.dot_dimension_numbers<[1], [0], [0], [1], [0, 0, 1, 1], [], []>} : vector<256x128xbf16>, vector<128x128xbf16>, vector<256x128xf32> -> vector<256x128xf32>
      %139 = arith.addf %133, %138 : vector<256x128xf32>
      %c0_157 = arith.constant 0 : index
      %c0_158 = arith.constant 0 : index
      %140 = vector.load %arg4[%c0_157, %c0_158] : memref<1x128xf32, #tpu.memory_space<vmem>>, vector<1x128xf32>
      %141 = vector.broadcast %140 : vector<1x128xf32> to vector<256x128xf32>
      %142 = arith.addf %139, %141 : vector<256x128xf32>
      %cst_159 = arith.constant 0.000000e+00 : f32
      %143 = vector.broadcast %cst_159 : f32 to vector<256x128xf32>
      %144 = arith.maximumf %142, %143 : vector<256x128xf32>
      %cst_160 = arith.constant 0.000000e+00 : bf16
      %145 = vector.broadcast %cst_160 : bf16 to vector<1x18x128xbf16>
      %cst_161 = arith.constant 0.000000e+00 : bf16
      %146 = vector.broadcast %cst_161 : bf16 to vector<16x1x128xbf16>
      %c0_162 = arith.constant 0 : index
      %c0_163 = arith.constant 0 : index
      %c0_164 = arith.constant 0 : index
      %147 = vector.load %arg10[%c0_162, %c0_163, %c0_164] : memref<18x18x128xbf16, #tpu.memory_space<vmem>>, vector<1x18x128xbf16>
      tpu.vector_store %arg10[%c0_162, %c0_163, %c0_164], %145 {strides = array<i32>} : memref<18x18x128xbf16, #tpu.memory_space<vmem>>, vector<1x18x128xbf16>,
      %c17_165 = arith.constant 17 : index
      %c0_166 = arith.constant 0 : index
      %c0_167 = arith.constant 0 : index
      %148 = vector.load %arg10[%c17_165, %c0_166, %c0_167] : memref<18x18x128xbf16, #tpu.memory_space<vmem>>, vector<1x18x128xbf16>
      tpu.vector_store %arg10[%c17_165, %c0_166, %c0_167], %145 {strides = array<i32>} : memref<18x18x128xbf16, #tpu.memory_space<vmem>>, vector<1x18x128xbf16>,
      %c1_168 = arith.constant 1 : index
      %c0_169 = arith.constant 0 : index
      %c0_170 = arith.constant 0 : index
      %149 = vector.load %arg10[%c1_168, %c0_169, %c0_170] : memref<18x18x128xbf16, #tpu.memory_space<vmem>>, vector<16x1x128xbf16>
      tpu.vector_store %arg10[%c1_168, %c0_169, %c0_170], %146 {strides = array<i32>} : memref<18x18x128xbf16, #tpu.memory_space<vmem>>, vector<16x1x128xbf16>,
      %c1_171 = arith.constant 1 : index
      %c17_172 = arith.constant 17 : index
      %c0_173 = arith.constant 0 : index
      %150 = vector.load %arg10[%c1_171, %c17_172, %c0_173] : memref<18x18x128xbf16, #tpu.memory_space<vmem>>, vector<16x1x128xbf16>
      tpu.vector_store %arg10[%c1_171, %c17_172, %c0_173], %146 {strides = array<i32>} : memref<18x18x128xbf16, #tpu.memory_space<vmem>>, vector<16x1x128xbf16>,
      %151 = vector.shape_cast %144 : vector<256x128xf32> to vector<16x16x128xf32>
      %152 = arith.truncf %151 : vector<16x16x128xf32> to vector<16x16x128xbf16>
      %c1_174 = arith.constant 1 : index
      %c1_175 = arith.constant 1 : index
      %c0_176 = arith.constant 0 : index
      %153 = vector.load %arg10[%c1_174, %c1_175, %c0_176] : memref<18x18x128xbf16, #tpu.memory_space<vmem>>, vector<16x16x128xbf16>
      tpu.vector_store %arg10[%c1_174, %c1_175, %c0_176], %152 {strides = array<i32>} : memref<18x18x128xbf16, #tpu.memory_space<vmem>>, vector<16x16x128xbf16>,
      %c0_177 = arith.constant 0 : index
      %c0_178 = arith.constant 0 : index
      %c0_179 = arith.constant 0 : index
      %c0_180 = arith.constant 0 : index
      %154 = vector.load %arg2[%c0_177, %c0_178, %c0_179, %c0_180] : memref<1x16x16x128xbf16, #tpu.memory_space<vmem>>, vector<1x16x16x128xbf16>
      %155 = vector.shape_cast %154 : vector<1x16x16x128xbf16> to vector<16x16x128xbf16>
      %156 = arith.extf %155 : vector<16x16x128xbf16> to vector<16x16x128xf32>
      %157 = vector.shape_cast %156 : vector<16x16x128xf32> to vector<8x2x16x128xf32>
      %158 = vector.extract_strided_slice %157 {offsets = [0, 0, 0, 0], sizes = [8, 1, 16, 128], strides = [1, 1, 1, 1]} : vector<8x2x16x128xf32> to vector<8x1x16x128xf32>
      %159 = vector.shape_cast %158 : vector<8x1x16x128xf32> to vector<8x16x128xf32>
      %160 = vector.extract_strided_slice %157 {offsets = [0, 1, 0, 0], sizes = [8, 1, 16, 128], strides = [1, 1, 1, 1]} : vector<8x2x16x128xf32> to vector<8x1x16x128xf32>
      %161 = vector.shape_cast %160 : vector<8x1x16x128xf32> to vector<8x16x128xf32>
      %162 = arith.addf %159, %161 : vector<8x16x128xf32>
      %c0_181 = arith.constant 0 : index
      %c0_182 = arith.constant 0 : index
      %c0_183 = arith.constant 0 : index
      %163 = vector.load %arg13[%c0_181, %c0_182, %c0_183] : memref<8x16x128xf32, #tpu.memory_space<vmem>>, vector<8x16x128xf32>
      tpu.vector_store %arg13[%c0_181, %c0_182, %c0_183], %162 {strides = array<i32>} : memref<8x16x128xf32, #tpu.memory_space<vmem>>, vector<8x16x128xf32>,
      %c0_184 = arith.constant 0 : index
      %c0_185 = arith.constant 0 : index
      %c0_186 = arith.constant 0 : index
      %164 = tpu.strided_load %arg13[%c0_184, %c0_185, %c0_186] {strides = array<i32: 1, 2, 1>} : memref<8x16x128xf32, #tpu.memory_space<vmem>>, vector<8x8x128xf32>
      %c0_187 = arith.constant 0 : index
      %c1_188 = arith.constant 1 : index
      %c0_189 = arith.constant 0 : index
      %165 = tpu.strided_load %arg13[%c0_187, %c1_188, %c0_189] {strides = array<i32: 1, 2, 1>} : memref<8x16x128xf32, #tpu.memory_space<vmem>>, vector<8x8x128xf32>
      %166 = arith.addf %164, %165 : vector<8x8x128xf32>
      %167 = vector.shape_cast %166 : vector<8x8x128xf32> to vector<64x128xf32>
      %168 = arith.truncf %167 : vector<64x128xf32> to vector<64x128xbf16>
      %c0_190 = arith.constant 0 : index
      %c0_191 = arith.constant 0 : index
      %169 = vector.load %arg11[%c0_190, %c0_191] : memref<64x128xbf16, #tpu.memory_space<vmem>>, vector<64x128xbf16>
      tpu.vector_store %arg11[%c0_190, %c0_191], %168 {strides = array<i32>} : memref<64x128xbf16, #tpu.memory_space<vmem>>, vector<64x128xbf16>,
    } else {
    }
    %c0 = arith.constant 0 : index
    %c0_1 = arith.constant 0 : index
    %c0_2 = arith.constant 0 : index
    %3 = vector.load %arg10[%c0, %c0_1, %c0_2] : memref<18x18x128xbf16, #tpu.memory_space<vmem>>, vector<16x16x128xbf16>
    %4 = vector.shape_cast %3 : vector<16x16x128xbf16> to vector<256x128xbf16>
    %c0_3 = arith.constant 0 : index
    %c0_4 = arith.constant 0 : index
    %c0_5 = arith.constant 0 : index
    %5 = vector.load %arg5[%c0_3, %c0_4, %c0_5] : memref<9x128x128xbf16, #tpu.memory_space<vmem>>, vector<1x128x128xbf16>
    %6 = vector.shape_cast %5 : vector<1x128x128xbf16> to vector<128x128xbf16>
    %cst = arith.constant dense<0.000000e+00> : vector<256x128xf32>
    %7 = tpu.matmul %4, %6, %cst {dimension_numbers = #tpu.dot_dimension_numbers<[1], [0], [0], [1], [0, 0, 1, 1], [], []>} : vector<256x128xbf16>, vector<128x128xbf16>, vector<256x128xf32> -> vector<256x128xf32>
    %c0_6 = arith.constant 0 : index
    %c1 = arith.constant 1 : index
    %c0_7 = arith.constant 0 : index
    %8 = vector.load %arg10[%c0_6, %c1, %c0_7] : memref<18x18x128xbf16, #tpu.memory_space<vmem>>, vector<16x16x128xbf16>
    %9 = vector.shape_cast %8 : vector<16x16x128xbf16> to vector<256x128xbf16>
    %c1_8 = arith.constant 1 : index
    %c0_9 = arith.constant 0 : index
    %c0_10 = arith.constant 0 : index
    %10 = vector.load %arg5[%c1_8, %c0_9, %c0_10] : memref<9x128x128xbf16, #tpu.memory_space<vmem>>, vector<1x128x128xbf16>
    %11 = vector.shape_cast %10 : vector<1x128x128xbf16> to vector<128x128xbf16>
    %cst_11 = arith.constant dense<0.000000e+00> : vector<256x128xf32>
    %12 = tpu.matmul %9, %11, %cst_11 {dimension_numbers = #tpu.dot_dimension_numbers<[1], [0], [0], [1], [0, 0, 1, 1], [], []>} : vector<256x128xbf16>, vector<128x128xbf16>, vector<256x128xf32> -> vector<256x128xf32>
    %13 = arith.addf %7, %12 : vector<256x128xf32>
    %c0_12 = arith.constant 0 : index
    %c2 = arith.constant 2 : index
    %c0_13 = arith.constant 0 : index
    %14 = vector.load %arg10[%c0_12, %c2, %c0_13] : memref<18x18x128xbf16, #tpu.memory_space<vmem>>, vector<16x16x128xbf16>
    %15 = vector.shape_cast %14 : vector<16x16x128xbf16> to vector<256x128xbf16>
    %c2_14 = arith.constant 2 : index
    %c0_15 = arith.constant 0 : index
    %c0_16 = arith.constant 0 : index
    %16 = vector.load %arg5[%c2_14, %c0_15, %c0_16] : memref<9x128x128xbf16, #tpu.memory_space<vmem>>, vector<1x128x128xbf16>
    %17 = vector.shape_cast %16 : vector<1x128x128xbf16> to vector<128x128xbf16>
    %cst_17 = arith.constant dense<0.000000e+00> : vector<256x128xf32>
    %18 = tpu.matmul %15, %17, %cst_17 {dimension_numbers = #tpu.dot_dimension_numbers<[1], [0], [0], [1], [0, 0, 1, 1], [], []>} : vector<256x128xbf16>, vector<128x128xbf16>, vector<256x128xf32> -> vector<256x128xf32>
    %19 = arith.addf %13, %18 : vector<256x128xf32>
    %c1_18 = arith.constant 1 : index
    %c0_19 = arith.constant 0 : index
    %c0_20 = arith.constant 0 : index
    %20 = vector.load %arg10[%c1_18, %c0_19, %c0_20] : memref<18x18x128xbf16, #tpu.memory_space<vmem>>, vector<16x16x128xbf16>
    %21 = vector.shape_cast %20 : vector<16x16x128xbf16> to vector<256x128xbf16>
    %c3 = arith.constant 3 : index
    %c0_21 = arith.constant 0 : index
    %c0_22 = arith.constant 0 : index
    %22 = vector.load %arg5[%c3, %c0_21, %c0_22] : memref<9x128x128xbf16, #tpu.memory_space<vmem>>, vector<1x128x128xbf16>
    %23 = vector.shape_cast %22 : vector<1x128x128xbf16> to vector<128x128xbf16>
    %cst_23 = arith.constant dense<0.000000e+00> : vector<256x128xf32>
    %24 = tpu.matmul %21, %23, %cst_23 {dimension_numbers = #tpu.dot_dimension_numbers<[1], [0], [0], [1], [0, 0, 1, 1], [], []>} : vector<256x128xbf16>, vector<128x128xbf16>, vector<256x128xf32> -> vector<256x128xf32>
    %25 = arith.addf %19, %24 : vector<256x128xf32>
    %c1_24 = arith.constant 1 : index
    %c1_25 = arith.constant 1 : index
    %c0_26 = arith.constant 0 : index
    %26 = vector.load %arg10[%c1_24, %c1_25, %c0_26] : memref<18x18x128xbf16, #tpu.memory_space<vmem>>, vector<16x16x128xbf16>
    %27 = vector.shape_cast %26 : vector<16x16x128xbf16> to vector<256x128xbf16>
    %c4 = arith.constant 4 : index
    %c0_27 = arith.constant 0 : index
    %c0_28 = arith.constant 0 : index
    %28 = vector.load %arg5[%c4, %c0_27, %c0_28] : memref<9x128x128xbf16, #tpu.memory_space<vmem>>, vector<1x128x128xbf16>
    %29 = vector.shape_cast %28 : vector<1x128x128xbf16> to vector<128x128xbf16>
    %cst_29 = arith.constant dense<0.000000e+00> : vector<256x128xf32>
    %30 = tpu.matmul %27, %29, %cst_29 {dimension_numbers = #tpu.dot_dimension_numbers<[1], [0], [0], [1], [0, 0, 1, 1], [], []>} : vector<256x128xbf16>, vector<128x128xbf16>, vector<256x128xf32> -> vector<256x128xf32>
    %31 = arith.addf %25, %30 : vector<256x128xf32>
    %c1_30 = arith.constant 1 : index
    %c2_31 = arith.constant 2 : index
    %c0_32 = arith.constant 0 : index
    %32 = vector.load %arg10[%c1_30, %c2_31, %c0_32] : memref<18x18x128xbf16, #tpu.memory_space<vmem>>, vector<16x16x128xbf16>
    %33 = vector.shape_cast %32 : vector<16x16x128xbf16> to vector<256x128xbf16>
    %c5 = arith.constant 5 : index
    %c0_33 = arith.constant 0 : index
    %c0_34 = arith.constant 0 : index
    %34 = vector.load %arg5[%c5, %c0_33, %c0_34] : memref<9x128x128xbf16, #tpu.memory_space<vmem>>, vector<1x128x128xbf16>
    %35 = vector.shape_cast %34 : vector<1x128x128xbf16> to vector<128x128xbf16>
    %cst_35 = arith.constant dense<0.000000e+00> : vector<256x128xf32>
    %36 = tpu.matmul %33, %35, %cst_35 {dimension_numbers = #tpu.dot_dimension_numbers<[1], [0], [0], [1], [0, 0, 1, 1], [], []>} : vector<256x128xbf16>, vector<128x128xbf16>, vector<256x128xf32> -> vector<256x128xf32>
    %37 = arith.addf %31, %36 : vector<256x128xf32>
    %c2_36 = arith.constant 2 : index
    %c0_37 = arith.constant 0 : index
    %c0_38 = arith.constant 0 : index
    %38 = vector.load %arg10[%c2_36, %c0_37, %c0_38] : memref<18x18x128xbf16, #tpu.memory_space<vmem>>, vector<16x16x128xbf16>
    %39 = vector.shape_cast %38 : vector<16x16x128xbf16> to vector<256x128xbf16>
    %c6 = arith.constant 6 : index
    %c0_39 = arith.constant 0 : index
    %c0_40 = arith.constant 0 : index
    %40 = vector.load %arg5[%c6, %c0_39, %c0_40] : memref<9x128x128xbf16, #tpu.memory_space<vmem>>, vector<1x128x128xbf16>
    %41 = vector.shape_cast %40 : vector<1x128x128xbf16> to vector<128x128xbf16>
    %cst_41 = arith.constant dense<0.000000e+00> : vector<256x128xf32>
    %42 = tpu.matmul %39, %41, %cst_41 {dimension_numbers = #tpu.dot_dimension_numbers<[1], [0], [0], [1], [0, 0, 1, 1], [], []>} : vector<256x128xbf16>, vector<128x128xbf16>, vector<256x128xf32> -> vector<256x128xf32>
    %43 = arith.addf %37, %42 : vector<256x128xf32>
    %c2_42 = arith.constant 2 : index
    %c1_43 = arith.constant 1 : index
    %c0_44 = arith.constant 0 : index
    %44 = vector.load %arg10[%c2_42, %c1_43, %c0_44] : memref<18x18x128xbf16, #tpu.memory_space<vmem>>, vector<16x16x128xbf16>
    %45 = vector.shape_cast %44 : vector<16x16x128xbf16> to vector<256x128xbf16>
    %c7 = arith.constant 7 : index
    %c0_45 = arith.constant 0 : index
    %c0_46 = arith.constant 0 : index
    %46 = vector.load %arg5[%c7, %c0_45, %c0_46] : memref<9x128x128xbf16, #tpu.memory_space<vmem>>, vector<1x128x128xbf16>
    %47 = vector.shape_cast %46 : vector<1x128x128xbf16> to vector<128x128xbf16>
    %cst_47 = arith.constant dense<0.000000e+00> : vector<256x128xf32>
    %48 = tpu.matmul %45, %47, %cst_47 {dimension_numbers = #tpu.dot_dimension_numbers<[1], [0], [0], [1], [0, 0, 1, 1], [], []>} : vector<256x128xbf16>, vector<128x128xbf16>, vector<256x128xf32> -> vector<256x128xf32>
    %49 = arith.addf %43, %48 : vector<256x128xf32>
    %c2_48 = arith.constant 2 : index
    %c2_49 = arith.constant 2 : index
    %c0_50 = arith.constant 0 : index
    %50 = vector.load %arg10[%c2_48, %c2_49, %c0_50] : memref<18x18x128xbf16, #tpu.memory_space<vmem>>, vector<16x16x128xbf16>
    %51 = vector.shape_cast %50 : vector<16x16x128xbf16> to vector<256x128xbf16>
    %c8 = arith.constant 8 : index
    %c0_51 = arith.constant 0 : index
    %c0_52 = arith.constant 0 : index
    %52 = vector.load %arg5[%c8, %c0_51, %c0_52] : memref<9x128x128xbf16, #tpu.memory_space<vmem>>, vector<1x128x128xbf16>
    %53 = vector.shape_cast %52 : vector<1x128x128xbf16> to vector<128x128xbf16>
    %cst_53 = arith.constant dense<0.000000e+00> : vector<256x128xf32>
    %54 = tpu.matmul %51, %53, %cst_53 {dimension_numbers = #tpu.dot_dimension_numbers<[1], [0], [0], [1], [0, 0, 1, 1], [], []>} : vector<256x128xbf16>, vector<128x128xbf16>, vector<256x128xf32> -> vector<256x128xf32>
    %55 = arith.addf %49, %54 : vector<256x128xf32>
    %56 = vector.shape_cast %55 : vector<256x128xf32> to vector<8x2x16x128xf32>
    %57 = vector.extract_strided_slice %56 {offsets = [0, 0, 0, 0], sizes = [8, 1, 16, 128], strides = [1, 1, 1, 1]} : vector<8x2x16x128xf32> to vector<8x1x16x128xf32>
    %58 = vector.shape_cast %57 : vector<8x1x16x128xf32> to vector<8x16x128xf32>
    %59 = vector.extract_strided_slice %56 {offsets = [0, 1, 0, 0], sizes = [8, 1, 16, 128], strides = [1, 1, 1, 1]} : vector<8x2x16x128xf32> to vector<8x1x16x128xf32>
    %60 = vector.shape_cast %59 : vector<8x1x16x128xf32> to vector<8x16x128xf32>
    %61 = arith.addf %58, %60 : vector<8x16x128xf32>
    %c0_54 = arith.constant 0 : index
    %c0_55 = arith.constant 0 : index
    %c0_56 = arith.constant 0 : index
    %62 = vector.load %arg12[%c0_54, %c0_55, %c0_56] : memref<8x16x128xf32, #tpu.memory_space<vmem>>, vector<8x16x128xf32>
    tpu.vector_store %arg12[%c0_54, %c0_55, %c0_56], %61 {strides = array<i32>} : memref<8x16x128xf32, #tpu.memory_space<vmem>>, vector<8x16x128xf32>,
    %c0_57 = arith.constant 0 : index
    %c0_58 = arith.constant 0 : index
    %c0_59 = arith.constant 0 : index
    %63 = tpu.strided_load %arg12[%c0_57, %c0_58, %c0_59] {strides = array<i32: 1, 2, 1>} : memref<8x16x128xf32, #tpu.memory_space<vmem>>, vector<8x8x128xf32>
    %c0_60 = arith.constant 0 : index
    %c1_61 = arith.constant 1 : index
    %c0_62 = arith.constant 0 : index
    %64 = tpu.strided_load %arg12[%c0_60, %c1_61, %c0_62] {strides = array<i32: 1, 2, 1>} : memref<8x16x128xf32, #tpu.memory_space<vmem>>, vector<8x8x128xf32>
    %65 = arith.addf %63, %64 : vector<8x8x128xf32>
    %66 = vector.shape_cast %65 : vector<8x8x128xf32> to vector<64x128xf32>
    %c0_63 = arith.constant 0 : index
    %c0_64 = arith.constant 0 : index
    %67 = vector.load %arg11[%c0_63, %c0_64] : memref<64x128xbf16, #tpu.memory_space<vmem>>, vector<64x128xbf16>
    %c0_65 = arith.constant 0 : index
    %c0_66 = arith.constant 0 : index
    %68 = vector.load %arg6[%c0_65, %c0_66] : memref<128x128xbf16, #tpu.memory_space<vmem>>, vector<128x128xbf16>
    %cst_67 = arith.constant dense<0.000000e+00> : vector<64x128xf32>
    %69 = tpu.matmul %67, %68, %cst_67 {dimension_numbers = #tpu.dot_dimension_numbers<[1], [0], [0], [1], [0, 0, 1, 1], [], []>} : vector<64x128xbf16>, vector<128x128xbf16>, vector<64x128xf32> -> vector<64x128xf32>
    %70 = arith.addf %66, %69 : vector<64x128xf32>
    %c0_68 = arith.constant 0 : index
    %c0_69 = arith.constant 0 : index
    %71 = vector.load %arg7[%c0_68, %c0_69] : memref<1x128xf32, #tpu.memory_space<vmem>>, vector<1x128xf32>
    %72 = vector.broadcast %71 : vector<1x128xf32> to vector<64x128xf32>
    %73 = arith.addf %70, %72 : vector<64x128xf32>
    %74 = vector.shape_cast %73 : vector<64x128xf32> to vector<8x8x128xf32>
    %c0_70 = arith.constant 0 : index
    %c0_71 = arith.constant 0 : index
    %c0_72 = arith.constant 0 : index
    %c0_73 = arith.constant 0 : index
    %75 = vector.load %arg8[%c0_70, %c0_71, %c0_72, %c0_73] : memref<1x8x8x128xf32, #tpu.memory_space<vmem>>, vector<1x8x8x128xf32>
    %76 = vector.shape_cast %75 : vector<1x8x8x128xf32> to vector<8x8x128xf32>
    %77 = vector.shape_cast %74 : vector<8x8x128xf32> to vector<1x8x8x128xf32>
    tpu.vector_store %arg8[%c0_70, %c0_71, %c0_72, %c0_73], %77 {strides = array<i32>} : memref<1x8x8x128xf32, #tpu.memory_space<vmem>>, vector<1x8x8x128xf32>,
    return
  }
  func.func @transform_0(%arg0: i32, %arg1: i32) -> (i32, i32, i32, i32) {
    %c0_i32 = arith.constant 0 : i32
    %c0_i32_0 = arith.constant 0 : i32
    %c0_i32_1 = arith.constant 0 : i32
    %c0_i32_2 = arith.constant 0 : i32
    return %arg0, %c0_i32, %c0_i32_0, %c0_i32_1 : i32, i32, i32, i32
  }
  func.func @transform_1(%arg0: i32, %arg1: i32) -> (i32, i32, i32) {
    %c0_i32 = arith.constant 0 : i32
    %c0_i32_0 = arith.constant 0 : i32
    %c0_i32_1 = arith.constant 0 : i32
    %c0_i32_2 = arith.constant 0 : i32
    return %c0_i32, %c0_i32_0, %c0_i32_1 : i32, i32, i32
  }
  func.func @transform_2(%arg0: i32, %arg1: i32) -> (i32, i32) {
    %c0_i32 = arith.constant 0 : i32
    %c0_i32_0 = arith.constant 0 : i32
    %c0_i32_1 = arith.constant 0 : i32
    return %c0_i32, %c0_i32_0 : i32, i32
  }
  func.func @transform_3(%arg0: i32, %arg1: i32) -> (i32, i32, i32) {
    %c0_i32 = arith.constant 0 : i32
    %c0_i32_0 = arith.constant 0 : i32
    %c0_i32_1 = arith.constant 0 : i32
    return %c0_i32, %c0_i32_0, %arg1 : i32, i32, i32
  }
  func.func @transform_4(%arg0: i32, %arg1: i32) -> (i32, i32) {
    %c0_i32 = arith.constant 0 : i32
    %c0_i32_0 = arith.constant 0 : i32
    return %c0_i32, %arg1 : i32, i32
  }
  func.func @transform_5(%arg0: i32, %arg1: i32) -> (i32, i32) {
    %c0_i32 = arith.constant 0 : i32
    %c0_i32_0 = arith.constant 0 : i32
    return %c0_i32, %arg1 : i32, i32
  }
  func.func @transform_6(%arg0: i32, %arg1: i32) -> (i32, i32, i32, i32) {
    %c0_i32 = arith.constant 0 : i32
    %c0_i32_0 = arith.constant 0 : i32
    %c0_i32_1 = arith.constant 0 : i32
    return %arg0, %c0_i32, %c0_i32_0, %arg1 : i32, i32, i32, i32
  }
}

</mosaic_0001>

<bundles_post_ra>
// kernel: optimized_block_forward.1
= control target key start
LH: loop header
LB: loop body
LE: loop exit
PB: predicated region body
PF: predicated region fallthrough
CT: control target
= control target key end

     0   :  { %s14501_s21 = smov 0   ;;  %s14503_s22 = smov 0   ;;  %s19620_s0 = inlined_call_operand.vmem [shape: bf16[2,16,16,128], index: 0, kind: input, shape index: {}]   ;;  %s19621_s1 = inlined_call_operand.vmem [shape: bf16[9,128,128], index: 1, kind: input, shape index: {}]   ;;  %s19622_s2 = inlined_call_operand.vmem [shape: f32[1,128], index: 2, kind: input, shape index: {}]   ;;  %s19623_s3 = inlined_call_operand.vmem [shape: bf16[9,128,128], index: 3, kind: input, shape index: {}]   ;;  %s19624_s4 = inlined_call_operand.vmem [shape: bf16[128,128], index: 4, kind: input, shape index: {}]   ;;  %s19625_s5 = inlined_call_operand.vmem [shape: f32[1,128], index: 5, kind: input, shape index: {}]   ;;  %s19626_s6 = inlined_call_operand.vmem [shape: f32[2,8,8,128], index: 6, kind: output, shape index: {}]  }
   0x1   :  { %s14505_s23 = smov 0  }
   0x2 LB: > { %s28_s24 = sadd.s32 1, %s14459_s22  ;;  %p11787_p0 = scmp.ge.s32.totalorder %s14463_s23, 1  ;;  %s14463_s23 = sphi %s14505_s23, %s16_s23   ;;  %s14459_s22 = sphi %s14503_s22, %s20086_s22   ;;  %s14455_s21 = sphi %s14501_s21, %s20085_s21  }
   0x3   : > { %p30_p1 = scmp.ge.s32.totalorder %s28_s24, 2  ;;  %p252_p2 = scmp.lt.s32.totalorder %s14463_s23, 3 }
   0x5   : > { %s20088_s24 = smov (%p30_p1, %s28_s24), 0  ;;  %p253_p3 = pnand %p11787_p0, %p252_p2 }
   0x7   : > { %256 = sbr.rel (%p253_p3) target bundleno = 1217 (0x4c1), region = 44 }
   0xc   : > { %v14149_v0 = vld [vmem:[%s19621_s1 + $0x78] sm:$0xff]   ;;  %v14465_v2 = vmov 0   ;;  %v14151_v3 = vld [vmem:[%s19621_s1 + $0x70] sm:$0xff]   ;;  %v14153_v5 = vld [vmem:[%s19621_s1 + $0x68] sm:$0xff]   ;;  %p296_p4 = scmp.lt.s32.totalorder %s14455_s21, 1  ;;  %vm333_vm0 = vcmask 1040384  }
   0xd   : > { %v14150_v1 = vld [vmem:[%s19621_s1 + $0x38] sm:$0xff]   ;;  %325 = vst [vmem:[#allocation2] sm:$0xf] %v14465_v2  ;;  %326 = vst [vmem:[#allocation2 + $0x4] sm:$0xf] %v14465_v2  ;;  %13220 = vmatprep.subr.bf16.mxu0 %v14149_v0  ;;  %v14152_v4 = vld [vmem:[%s19621_s1 + $0x30] sm:$0xff]  }
   0xe   : > { %327 = vst [vmem:[#allocation2 + $0x8] sm:$0x1] %v14465_v2  ;;  %329 = vst [vmem:[#allocation2 + $0xcc] sm:$0xf] %v14465_v2  ;;  %13268 = vmatprep.subr.bf16.mxu1 %v14150_v1  ;;  %13221 = vmatpush3.bf16.msra.mxu0 %v14149_v0  ;;  %v14154_v6 = vld [vmem:[%s19621_s1 + $0x28] sm:$0xff]   ;;  %v14155_v7 = vld [vmem:[%s19621_s1 + $0x60] sm:$0xff]  }
   0xf   : > { %330 = vst [vmem:[#allocation2 + $0xd0] sm:$0xf] %v14465_v2  ;;  %331 = vst [vmem:[#allocation2 + $0xd4] sm:$0x1] %v14465_v2  ;;  %13269 = vmatpush3.bf16.msra.mxu1 %v14150_v1  ;;  %13222 = vmatprep.subr.bf16.mxu0 %v14151_v3  ;;  %v14156_v8 = vld [vmem:[%s19621_s1 + $0x20] sm:$0xff]   ;;  %s20090_s21 = smov (!%p296_p4, %s14455_s21), 1 }
  0x10   : > { %5781 = vst [vmem:[#allocation3] sm:$0xf] %v14465_v2  ;;  %5782 = vst [vmem:[#allocation3 + $0x4] sm:$0xf] %v14465_v2  ;;  %13270 = vmatprep.subr.bf16.mxu1 %v14152_v4  ;;  %v14157_v9 = vld [vmem:[%s19621_s1 + $0x58] sm:$0xff]   ;;  %v14159_v11 = vld [vmem:[%s19621_s1 + $0x50] sm:$0xff]  }
  0x11   : > { %5783 = vst [vmem:[#allocation3 + $0x8] sm:$0x1] %v14465_v2  ;;  %5785 = vst [vmem:[#allocation3 + $0xcc] sm:$0xf] %v14465_v2  ;;  %v14158_v10 = vld [vmem:[%s19621_s1 + $0x18] sm:$0xff]   ;;  %v14160_v12 = vld [vmem:[%s19621_s1 + $0x10] sm:$0xff]  }
  0x12   : > { %5786 = vst [vmem:[#allocation3 + $0xd0] sm:$0xf] %v14465_v2  ;;  %5787 = vst [vmem:[#allocation3 + $0xd4] sm:$0x1] %v14465_v2  ;;  %13223 = vmatpush3.bf16.msra.mxu0 %v14151_v3  ;;  %s12632_s29 = sshll.u32 %s20090_s21, 7  ;;  %vm788_vm3 = vcmask 1043456  }
  0x13   : > { %13271 = vmatpush3.bf16.msra.mxu1 %v14152_v4  ;;  %13224 = vmatprep.subr.bf16.mxu0 %v14153_v5  ;;  %vm966_vm1 = vsmask.f32 3328  ;;  %vm967_vm2 = vsmask.f32 7440  ;;  %s14565_s8 = scalar_lea.vmem %s19620_s0, %s12632_s29  ;;  %v336_v21 = vld [vmem:[#allocation2 + $0xc] sm:$0x1] }
  0x14   : > { %13272 = vmatprep.subr.bf16.mxu1 %v14154_v6  ;;  %v902_v13 = vld [vmem:[#allocation2] sm:$0xf]  ;;  %v903_v14 = vld [vmem:[#allocation2 + $0x4] sm:$0xf]  ;;  %vm334_vm4 = vsmask.f32 256  ;;  %vm14596_vm8 = vmor %vm966_vm1, %vm967_vm2 }
  0x15   : > { %v950_v15 = vld [vmem:[#allocation2 + $0x8] sm:$0x1]  ;;  %v970_v16 = vshrl.u32 %v902_v13, 16  ;;  %v973_v17 = vshll.u32 %v902_v13, 16  ;;  %v979_v18 = vshll.u32 %v903_v14, 16  ;;  %v983_v19 = vshrl.u32 %v903_v14, 16  ;;  %vm14575_vm5 = vmand %vm333_vm0, %vm334_vm4 }
  0x16   : > { %13225 = vmatpush3.bf16.msra.mxu0 %v14153_v5  ;;  %v989_v20 = vshll.u32 %v950_v15, 16  ;;  %v11832_v24 = vcombine.low %v902_v13, %v903_v14  ;;  %v386_v25 = vld [vmem:[#allocation2 + $0x14] sm:$0x1]  ;;  %v14161_v26 = vld [vmem:[%s19621_s1 + $0x48] sm:$0xff]   ;;  %v19670_v30 = vmov 0  ;;  %v337_v33 = vsel %vm14575_vm5, 0, %v336_v21 }
  0x17   : > { %13273 = vmatpush3.bf16.msra.mxu1 %v14154_v6  ;;  %13226 = vmatprep.subr.bf16.mxu0 %v14155_v7  ;;  %v972_v22 = vrot.slane %v970_v16, 4  ;;  %v975_v23 = vrot.slane %v973_v17, 5  ;;  %v14162_v27 = vld [vmem:[%s19621_s1 + $0x8] sm:$0xff]   ;;  %v981_v28 = vrot.slane %v979_v18, 5  ;;  %v985_v29 = vrot.slane %v983_v19, 4  ;;  %v14592_v37 = vld [vmem:[%s19621_s1 + $0x40] sm:$0xff]  }
  0x18   : > { %13274 = vmatprep.subr.bf16.mxu1 %v14156_v8  ;;  %v19671_v30 = vsel %vm14575_vm5, 4294967295, %v19670_v30  ;;  %vm384_vm6 = vsmask.f32 7938  ;;  %v991_v32 = vrot.slane %v989_v20, 5  ;;  %13284 = vmatprep.mubr.bf16.mxu1 %v11832_v24  ;;  %v19673_v34 = vmov 0  ;;  %v14164_v50 = vld [vmem:[%s19621_s1] sm:$0xff]  }
  0x19   : > { %19672 = vst [vmem:[#allocation7_spill] sm:$0xff] %v19671_v30  ;;  %v976_v31 = vor.u32 %v975_v23, %v972_v22  ;;  %vm14583_vm7 = vmand %vm333_vm0, %vm384_vm6  ;;  %v434_v35 = vld [vmem:[%s14565_s8] sm:$0xf]  ;;  %v435_v36 = vld [vmem:[%s14565_s8 + $0x4] sm:$0xf]  ;;  %v19676_v38 = vmov 0  ;;  %v986_v39 = vor.u32 %v985_v29, %v981_v28 }
  0x1a   : > { %13227 = vmatpush3.bf16.msra.mxu0 %v14155_v7  ;;  %v19674_v34 = vsel %vm14583_vm7, 4294967295, %v19673_v34  ;;  %v19677_v38 = vsel %vm14596_vm8, 4294967295, %v19676_v38  ;;  %338 = vst [vmem:[#allocation2 + $0xc] sm:$0x1] %v337_v33  ;;  %v387_v40 = vsel %vm14583_vm7, 0, %v386_v25  ;;  %v469_v41 = vshrl.u32 %v434_v35, 16  ;;  %vm14628_vm11 = vmand %vm788_vm3, %vm384_vm6 }
  0x1b   : > { %13275 = vmatpush3.bf16.msra.mxu1 %v14156_v8  ;;  %13228 = vmatprep.subr.bf16.mxu0 %v14157_v9  ;;  %19675 = vst [vmem:[#allocation8_spill] sm:$0xff] %v19674_v34  ;;  %19678 = vst [vmem:[#allocation9_spill] sm:$0xff] %v19677_v38  ;;  %vm466_vm9 = vsmask.f32 4368  ;;  %v977_v42 = vrot.slane %v976_v31, 4  ;;  %v472_v43 = vshll.u32 %v434_v35, 16 }
  0x1c   : > { %13276 = vmatprep.subr.bf16.mxu1 %v14158_v10  ;;  %388 = vst [vmem:[#allocation2 + $0x14] sm:$0x1] %v387_v40  ;;  %v477_v44 = vshrl.u32 %v435_v36, 16  ;;  %v480_v45 = vshll.u32 %v435_v36, 16  ;;  %v987_v46 = vrot.slane %v986_v39, 4  ;;  %v471_v47 = vrot.slane %v469_v41, 7  ;;  %vm14616_vm10 = vmor %vm334_vm4, %vm466_vm9 }
  0x1d   : > { %v339_v48 = vld [vmem:[#allocation2 + $0x18] sm:$0x1]  ;;  %v389_v49 = vld [vmem:[#allocation2 + $0x20] sm:$0x1]  ;;  %v982_v51 = vsel %vm14596_vm8, %v977_v42, %v981_v28  ;;  %v436_v55 = vld [vmem:[%s14565_s8 + $0x8] sm:$0xf] }
  0x1e   : > { %13229 = vmatpush3.bf16.msra.mxu0 %v14157_v9  ;;  %v479_v52 = vrot.slane %v477_v44, 7  ;;  %v340_v53 = vsel %vm14575_vm5, 0, %v339_v48  ;;  %v390_v54 = vsel %vm14583_vm7, 0, %v389_v49  ;;  %v992_v56 = vsel %vm14596_vm8, %v987_v46, %v991_v32  ;;  %v14623_v60 = vld [vmem:[%s19621_s1 + $0xb8] sm:$0xff]   ;;  %v437_v61 = vld [vmem:[%s14565_s8 + $0xc] sm:$0xf] }
  0x1f   : > { %13277 = vmatpush3.bf16.msra.mxu1 %v14158_v10  ;;  %13230 = vmatprep.subr.bf16.mxu0 %v14159_v11  ;;  %v19679_v57 = vmov 0  ;;  %v474_v58 = vor.u32 %v472_v43, %v471_v47  ;;  %v475_v59 = vrot.slane %v471_v47, 4  ;;  %341 = vst [vmem:[#allocation2 + $0x18] sm:$0x1] %v340_v53  ;;  %391 = vst [vmem:[#allocation2 + $0x20] sm:$0x1] %v390_v54  ;;  %v11808_v0 = vcombine.low %v982_v51, %v992_v56 }
  0x20   : > { %13278 = vmatprep.subr.bf16.mxu1 %v14160_v12  ;;  %v19680_v57 = vsel %vm14616_vm10, 4294967295, %v19679_v57  ;;  %v486_v62 = vshrl.u32 %v436_v55, 16  ;;  %v342_v63 = vld [vmem:[#allocation2 + $0x24] sm:$0x1]  ;;  %v482_v1 = vor.u32 %v480_v45, %v479_v52  ;;  %v484_v2 = vrot.slane %v479_v52, 4  ;;  %v14180_v44 = vld [vmem:[%s19621_s1 + $0xf8] sm:$0xff]  }
  0x21   : > { %19681 = vst [vmem:[#allocation10_spill] sm:$0xff] %v19680_v57  ;;  %v19682_v3 = vmov 0  ;;  %v489_v4 = vshll.u32 %v436_v55, 16  ;;  %v392_v5 = vld [vmem:[#allocation2 + $0x2c] sm:$0x1]  ;;  %v494_v8 = vshrl.u32 %v437_v61, 16  ;;  %13236 = vmatprep.mubr.bf16.mxu0 %v11808_v0 }
  0x22   : > { %13231 = vmatpush3.bf16.msra.mxu0 %v14159_v11  ;;  %v19683_v3 = vsel %vm14628_vm11, 4294967295, %v19682_v3  ;;  %v438_v6 = vld [vmem:[%s14565_s8 + $0x10] sm:$0xf]  ;;  %v488_v7 = vrot.slane %v486_v62, 7  ;;  %v497_v9 = vshll.u32 %v437_v61, 16  ;;  %v343_v10 = vsel %vm14575_vm5, 0, %v342_v63 }
  0x23   : > { %13279 = vmatpush3.bf16.msra.mxu1 %v14160_v12  ;;  %13232 = vmatprep.subr.bf16.mxu0 %v14161_v26  ;;  %19684 = vst [vmem:[#allocation11_spill] sm:$0xff] %v19683_v3  ;;  %v439_v11 = vld [vmem:[%s14565_s8 + $0x14] sm:$0xf]  ;;  %v483_v12 = vsel %vm14616_vm10, %v475_v59, %v482_v1  ;;  %v790_v13 = vld [vmem:[#allocation2 + $0xc] sm:$0xf]  ;;  %v393_v14 = vsel %vm14583_vm7, 0, %v392_v5 }
  0x24   : > { %13280 = vmatprep.subr.bf16.mxu1 %v14162_v27  ;;  %344 = vst [vmem:[#allocation2 + $0x24] sm:$0x1] %v343_v10  ;;  %v503_v15 = vshrl.u32 %v438_v6, 16  ;;  %v506_v16 = vshll.u32 %v438_v6, 16  ;;  %v791_v17 = vsel %vm14628_vm11, %v474_v58, %v790_v13  ;;  %793 = vst [vmem:[#allocation2 + $0x10] sm:$0xf] %v483_v12  ;;  %v491_v19 = vor.u32 %v489_v4, %v488_v7 }
  0x25   : > { %v794_v18 = vld [vmem:[#allocation2 + $0x14] sm:$0x1]  ;;  %v492_v20 = vrot.slane %v488_v7, 4  ;;  %v496_v21 = vrot.slane %v494_v8, 7  ;;  %394 = vst [vmem:[#allocation2 + $0x2c] sm:$0x1] %v393_v14 }
  0x26   : > { %13233 = vmatpush3.bf16.msra.mxu0 %v14161_v26  ;;  %792 = vst [vmem:[#allocation2 + $0xc] sm:$0xf] %v791_v17  ;;  %v795_v22 = vsel %vm14575_vm5, %v484_v2, %v794_v18  ;;  %v505_v23 = vrot.slane %v503_v15, 7  ;;  %v511_v24 = vshrl.u32 %v439_v11, 16  ;;  %v514_v25 = vshll.u32 %v439_v11, 16  ;;  %v14181_v8 = vld [vmem:[%s19621_s1 + $0xf0] sm:$0xff]  }
  0x27   : > { %13281 = vmatpush3.bf16.msra.mxu1 %v14162_v27  ;;  %13234 = vmatprep.subr.bf16.mxu0 %v14592_v37  ;;  %796 = vst [vmem:[#allocation2 + $0x14] sm:$0x1] %v795_v22  ;;  %v499_v26 = vor.u32 %v497_v9, %v496_v21  ;;  %v501_v27 = vrot.slane %v496_v21, 4  ;;  %v345_v28 = vld [vmem:[#allocation2 + $0x30] sm:$0x1]  ;;  %vm1996_vm12 = vcmask 1042432  }
  0x28   : > { %13282 = vmatprep.subr.bf16.mxu1 %v14164_v50  ;;  %v395_v29 = vld [vmem:[#allocation2 + $0x38] sm:$0x1]  ;;  %v801_v32 = vld [vmem:[#allocation2 + $0x20] sm:$0x1]  ;;  %v508_v33 = vor.u32 %v506_v16, %v505_v23  ;;  %v509_v35 = vrot.slane %v505_v23, 4  ;;  %v513_v36 = vrot.slane %v511_v24, 7 }
  0x29   : > { %v797_v31 = vld [vmem:[#allocation2 + $0x18] sm:$0xf]  ;;  %v802_v40 = vsel %vm14575_vm5, %v501_v27, %v801_v32  ;;  %v346_v41 = vsel %vm14575_vm5, 0, %v345_v28  ;;  %v441_v43 = vld [vmem:[%s14565_s8 + $0x1c] sm:$0xf]  ;;  %v396_v47 = vsel %vm14583_vm7, 0, %v395_v29 }
  0x2a   : > { %13235 = vmatpush3.bf16.msra.mxu0 %v14592_v37  ;;  %v500_v37 = vsel %vm14616_vm10, %v492_v20, %v499_v26  ;;  %v798_v39 = vsel %vm14628_vm11, %v491_v19, %v797_v31  ;;  %v440_v42 = vld [vmem:[%s14565_s8 + $0x18] sm:$0xf]  ;;  %803 = vst [vmem:[#allocation2 + $0x20] sm:$0x1] %v802_v40  ;;  %v516_v45 = vor.u32 %v514_v25, %v513_v36  ;;  %v518_v46 = vrot.slane %v513_v36, 4  ;;  %v14185_v27 = vld [vmem:[%s19621_s1 + $0xe8] sm:$0xff]  }
  0x2b   : > { %13283 = vmatpush3.bf16.msra.mxu1 %v14164_v50  ;;  %13316 = vmatprep.subr.bf16.mxu0 %v14623_v60  ;;  %799 = vst [vmem:[#allocation2 + $0x18] sm:$0xf] %v798_v39  ;;  %800 = vst [vmem:[#allocation2 + $0x1c] sm:$0xf] %v500_v37  ;;  %v520_v48 = vshrl.u32 %v440_v42, 16  ;;  %v523_v51 = vshll.u32 %v440_v42, 16 }
  0x2c   : > { %347 = vst [vmem:[#allocation2 + $0x30] sm:$0x1] %v346_v41  ;;  %v348_v49 = vld [vmem:[#allocation2 + $0x3c] sm:$0x1]  ;;  %v804_v50 = vld [vmem:[#allocation2 + $0x24] sm:$0xf]  ;;  %13364 = vmatprep.subr.bf16.mxu1 %v14180_v44  ;;  %v517_v55 = vsel %vm14616_vm10, %v509_v35, %v516_v45 }
  0x2d   : > { %397 = vst [vmem:[#allocation2 + $0x38] sm:$0x1] %v396_v47  ;;  %v528_v52 = vshrl.u32 %v441_v43, 16  ;;  %v349_v53 = vsel %vm14575_vm5, 0, %v348_v49  ;;  %v905_v54 = vld [vmem:[#allocation2 + $0x10] sm:$0xf]  ;;  %v805_v56 = vsel %vm14628_vm11, %v508_v33, %v804_v50 }
  0x2e   : > { %v808_v58 = vld [vmem:[#allocation2 + $0x2c] sm:$0x1]  ;;  %v522_v59 = vrot.slane %v520_v48, 7  ;;  %v531_v61 = vshll.u32 %v441_v43, 16  ;;  %350 = vst [vmem:[#allocation2 + $0x3c] sm:$0x1] %v349_v53 }
  0x2f   : > { %v904_v62 = vld [vmem:[#allocation2 + $0xc] sm:$0xf]  ;;  %v1003_v63 = vshll.u32 %v905_v54, 16  ;;  %v1007_v0 = vshrl.u32 %v905_v54, 16  ;;  %806 = vst [vmem:[#allocation2 + $0x24] sm:$0xf] %v805_v56  ;;  %v809_v1 = vsel %vm14575_vm5, %v518_v46, %v808_v58 }
  0x30   : > { %807 = vst [vmem:[#allocation2 + $0x28] sm:$0xf] %v517_v55  ;;  %v14670_v2 = vrot.slane %v528_v52, 7  ;;  %v951_v4 = vld [vmem:[#allocation2 + $0x14] sm:$0x1]  ;;  %v994_v5 = vshrl.u32 %v904_v62, 16  ;;  %v11833_v7 = vcombine.low %v904_v62, %v905_v54  ;;  %v14675_v14 = vor.u32 %v523_v51, %v522_v59 }
  0x31   : > { %v997_v6 = vshll.u32 %v904_v62, 16  ;;  %810 = vst [vmem:[#allocation2 + $0x2c] sm:$0x1] %v809_v1  ;;  %v1005_v9 = vrot.slane %v1003_v63, 5  ;;  %v1009_v10 = vrot.slane %v1007_v0, 4  ;;  %v1013_v11 = vshll.u32 %v951_v4, 16 }
  0x32   : > { %v996_v12 = vrot.slane %v994_v5, 4  ;;  %13285 = vmatmul.mubr.bf16.vlgmr.msra.gmra.mxu1 %v11833_v7  ;;  %v526_v15 = vrot.slane %v522_v59, 4  ;;  %v906_v18 = vld [vmem:[#allocation2 + $0x18] sm:$0xf]  ;;  %v907_v19 = vld [vmem:[#allocation2 + $0x1c] sm:$0xf]  ;;  %v533_v20 = vor.u32 %v531_v61, %v14670_v2 }
  0x33   : > { %v999_v13 = vrot.slane %v997_v6, 5  ;;  %v1010_v16 = vor.u32 %v1009_v10, %v1005_v9  ;;  %v1015_v17 = vrot.slane %v1013_v11, 5  ;;  %v535_v21 = vrot.slane %v14670_v2, 4  ;;  %13365 = vmatpush3.bf16.msra.mxu1 %v14180_v44  ;;  %v952_v23 = vld [vmem:[#allocation2 + $0x20] sm:$0x1]  ;;  %v14170_v50 = vld [vmem:[%s19621_s1 + $0xb0] sm:$0xff]  }
  0x34   : > { %v1018_v24 = vshrl.u32 %v906_v18, 16  ;;  %v1021_v25 = vshll.u32 %v906_v18, 16  ;;  %v1027_v26 = vshll.u32 %v907_v19, 16  ;;  %13366 = vmatprep.subr.bf16.mxu1 %v14181_v8  ;;  %v1031_v29 = vshrl.u32 %v907_v19, 16  ;;  %v811_v51 = vld [vmem:[#allocation2 + $0x30] sm:$0xf] }
  0x35   : > { %v1000_v22 = vor.u32 %v999_v13, %v996_v12  ;;  %v1011_v28 = vrot.slane %v1010_v16, 4  ;;  %v1037_v31 = vshll.u32 %v952_v23, 16  ;;  %v11834_v32 = vcombine.low %v906_v18, %v907_v19  ;;  %v398_v52 = vld [vmem:[#allocation2 + $0x44] sm:$0x1]  ;;  %v815_v0 = vld [vmem:[#allocation2 + $0x38] sm:$0x1] }
  0x36   : > { %v1020_v35 = vrot.slane %v1018_v24, 4  ;;  %v1023_v36 = vrot.slane %v1021_v25, 5  ;;  %v1029_v37 = vrot.slane %v1027_v26, 5  ;;  %v908_v39 = vld [vmem:[#allocation2 + $0x24] sm:$0xf]  ;;  %v1033_v41 = vrot.slane %v1031_v29, 4 }
  0x37   : > { %v1001_v33 = vrot.slane %v1000_v22, 4  ;;  %v1016_v40 = vsel %vm14596_vm8, %v1011_v28, %v1015_v17  ;;  %v1039_v42 = vrot.slane %v1037_v31, 5  ;;  %13288 = vmatprep.mubr.bf16.mxu1 %v11834_v32  ;;  %v909_v43 = vld [vmem:[#allocation2 + $0x28] sm:$0xf]  ;;  %v534_v45 = vsel %vm14616_vm10, %v526_v15, %v533_v20  ;;  %13367 = vmatpush3.bf16.msra.mxu1 %v14181_v8  ;;  %v14186_v53 = vld [vmem:[%s19621_s1 + $0xe0] sm:$0xff]   ;;  %v14190_v19 = vld [vmem:[%s19621_s1 + $0xd8] sm:$0xff]  }
  0x38   : > { %v953_v44 = vld [vmem:[#allocation2 + $0x2c] sm:$0x1]  ;;  %v1024_v47 = vor.u32 %v1023_v36, %v1020_v35  ;;  %v1042_v48 = vshrl.u32 %v908_v39, 16  ;;  %v1045_v49 = vshll.u32 %v908_v39, 16  ;;  %814 = vst [vmem:[#allocation2 + $0x34] sm:$0xf] %v534_v45  ;;  %13368 = vmatprep.subr.bf16.mxu1 %v14185_v27  ;;  %v1034_v55 = vor.u32 %v1033_v41, %v1029_v37 }
  0x39   : > { %v1006_v46 = vsel %vm14596_vm8, %v1001_v33, %v1005_v9  ;;  %v1051_v56 = vshll.u32 %v909_v43, 16  ;;  %v1055_v58 = vshrl.u32 %v909_v43, 16  ;;  %v1061_v63 = vshll.u32 %v953_v44, 16  ;;  %v442_v7 = vld [vmem:[%s14565_s8 + $0x20] sm:$0xf] }
  0x3a   : > { %v11809_v54 = vcombine.low %v1006_v46, %v1016_v40  ;;  %v1025_v59 = vrot.slane %v1024_v47, 4  ;;  %v1044_v61 = vrot.slane %v1042_v48, 4  ;;  %v1047_v62 = vrot.slane %v1045_v49, 5  ;;  %v443_v12 = vld [vmem:[%s14565_s8 + $0x24] sm:$0xf] }
  0x3b   : > { %v1035_v1 = vrot.slane %v1034_v55, 4  ;;  %v1053_v4 = vrot.slane %v1051_v56, 5  ;;  %v1057_v5 = vrot.slane %v1055_v58, 4  ;;  %v11835_v6 = vcombine.low %v908_v39, %v909_v43  ;;  %13369 = vmatpush3.bf16.msra.mxu1 %v14185_v27  ;;  %v351_v13 = vld [vmem:[#allocation2 + $0x48] sm:$0x1]  ;;  %v14176_v47 = vld [vmem:[%s19621_s1 + $0xa0] sm:$0xff]  }
  0x3c   : > { %13237 = vmatmul.mubr.bf16.vlgmr.msra.gmra.mxu0 %v11809_v54  ;;  %v1030_v8 = vsel %vm14596_vm8, %v1025_v59, %v1029_v37  ;;  %v1048_v9 = vor.u32 %v1047_v62, %v1044_v61  ;;  %v1063_v10 = vrot.slane %v1061_v63, 5  ;;  %v812_v11 = vsel %vm14628_vm11, %v14675_v14, %v811_v51  ;;  %13370 = vmatprep.subr.bf16.mxu1 %v14186_v53  ;;  %v14173_v14 = vld [vmem:[%s19621_s1 + $0xa8] sm:$0xff]   ;;  %v401_v18 = vld [vmem:[#allocation2 + $0x50] sm:$0x1]  ;;  %v818_v28 = vld [vmem:[#allocation2 + $0x3c] sm:$0xf] }
  0x3d   : > { %13317 = vmatpush3.bf16.msra.mxu0 %v14623_v60  ;;  %v1040_v15 = vsel %vm14596_vm8, %v1035_v1, %v1039_v42  ;;  %v1058_v16 = vor.u32 %v1057_v5, %v1053_v4  ;;  %13289 = vmatmul.mubr.bf16.gmra.mxu1 %v11835_v6  ;;  %813 = vst [vmem:[#allocation2 + $0x30] sm:$0xf] %v812_v11  ;;  %v399_v17 = vsel %vm14583_vm7, 0, %v398_v52  ;;  %v537_v2 = vshrl.u32 %v442_v7, 16  ;;  %v14722_v36 = vld [vmem:[%s14565_s8 + $0x2c] sm:$0xf] }
  0x3e   : > { %13318 = vmatprep.subr.bf16.mxu0 %v14170_v50  ;;  %v816_v60 = vsel %vm14575_vm5, %v535_v21, %v815_v0  ;;  %v11810_v20 = vcombine.low %v1030_v8, %v1040_v15  ;;  %v1049_v22 = vrot.slane %v1048_v9, 4  ;;  %400 = vst [vmem:[#allocation2 + $0x44] sm:$0x1] %v399_v17  ;;  %v540_v23 = vshll.u32 %v442_v7, 16  ;;  %v444_v21 = vld [vmem:[%s14565_s8 + $0x28] sm:$0xf] }
  0x3f   : > { %817 = vst [vmem:[#allocation2 + $0x38] sm:$0x1] %v816_v60  ;;  %v1059_v24 = vrot.slane %v1058_v16, 4  ;;  %v911_v25 = vld [vmem:[#allocation2 + $0x34] sm:$0xf]  ;;  %v545_v26 = vshrl.u32 %v443_v12, 16  ;;  %13371 = vmatpush3.bf16.msra.mxu1 %v14186_v53 }
  0x40   : > { %v548_v27 = vshll.u32 %v443_v12, 16  ;;  %v352_v29 = vsel %vm14575_vm5, 0, %v351_v13  ;;  %13240 = vmatprep.mubr.bf16.mxu0 %v11810_v20  ;;  %v1054_v31 = vsel %vm14596_vm8, %v1049_v22, %v1053_v4  ;;  %v1075_v32 = vshll.u32 %v911_v25, 16  ;;  %v14191_v37 = vld [vmem:[%s19621_s1 + $0xd0] sm:$0xff]   ;;  %13372 = vmatprep.subr.bf16.mxu1 %v14190_v19  ;;  %v404_v59 = vld [vmem:[#allocation2 + $0x5c] sm:$0x1] }
  0x41   : > { %13319 = vmatpush3.bf16.msra.mxu0 %v14170_v50  ;;  %v1079_v33 = vshrl.u32 %v911_v25, 16  ;;  %v539_v35 = vrot.slane %v537_v2, 7  ;;  %353 = vst [vmem:[#allocation2 + $0x48] sm:$0x1] %v352_v29  ;;  %v1064_v39 = vsel %vm14596_vm8, %v1059_v24, %v1063_v10  ;;  %v547_v40 = vrot.slane %v545_v26, 7  ;;  %v14745_v61 = vld [vmem:[%s19621_s1 + $0x98] sm:$0xff]  }
  0x42   : > { %13320 = vmatprep.subr.bf16.mxu0 %v14173_v14  ;;  %v402_v41 = vsel %vm14583_vm7, 0, %v401_v18  ;;  %v554_v42 = vshrl.u32 %v444_v21, 16  ;;  %v11811_v43 = vcombine.low %v1054_v31, %v1064_v39  ;;  %v14731_v44 = vrot.slane %v1075_v32, 5  ;;  %v354_v52 = vld [vmem:[#allocation2 + $0x54] sm:$0x1]  ;;  %v14195_v62 = vld [vmem:[%s19621_s1 + $0xc8] sm:$0xff]  }
  0x43   : > { %v1081_v45 = vrot.slane %v1079_v33, 4  ;;  %v542_v46 = vor.u32 %v540_v23, %v539_v35  ;;  %403 = vst [vmem:[#allocation2 + $0x50] sm:$0x1] %v402_v41  ;;  %v543_v48 = vrot.slane %v539_v35, 4  ;;  %v550_v49 = vor.u32 %v548_v27, %v547_v40  ;;  %13373 = vmatpush3.bf16.msra.mxu1 %v14190_v19  ;;  %v446_v11 = vld [vmem:[%s14565_s8 + $0x30] sm:$0xf] }
  0x44   : > { %v552_v50 = vrot.slane %v547_v40, 4  ;;  %v14736_v51 = vrot.slane %v554_v42, 7  ;;  %13241 = vmatmul.mubr.bf16.gmra.mxu0 %v11811_v43  ;;  %v910_v53 = vld [vmem:[#allocation2 + $0x30] sm:$0xf]  ;;  %v557_v56 = vshll.u32 %v444_v21, 16  ;;  %v562_v58 = vshrl.u32 %v14722_v36, 16  ;;  %13374 = vmatprep.subr.bf16.mxu1 %v14191_v37 }
  0x45   : > { %v1082_v54 = vor.u32 %v1081_v45, %v14731_v44  ;;  %v819_v55 = vsel %vm14628_vm11, %v542_v46, %v818_v28  ;;  %v1066_v0 = vshrl.u32 %v910_v53, 16  ;;  %v1069_v1 = vshll.u32 %v910_v53, 16  ;;  %v822_v6 = vld [vmem:[#allocation2 + $0x44] sm:$0x1]  ;;  %13321 = vmatpush3.bf16.msra.mxu0 %v14173_v14  ;;  %v14759_v12 = vld [vmem:[%s14565_s8 + $0x34] sm:$0xf] }
  0x46   : > { %v954_v63 = vld [vmem:[#allocation2 + $0x38] sm:$0x1]  ;;  %v11836_v4 = vcombine.low %v910_v53, %v911_v25  ;;  %v551_v5 = vsel %vm14616_vm10, %v543_v48, %v550_v49  ;;  %820 = vst [vmem:[#allocation2 + $0x3c] sm:$0xf] %v819_v55  ;;  %v823_v9 = vsel %vm14575_vm5, %v552_v50, %v822_v6  ;;  %v559_v10 = vor.u32 %v557_v56, %v14736_v51  ;;  %v357_v14 = vld [vmem:[#allocation2 + $0x60] sm:$0x1] }
  0x47   : > { %v14752_v7 = vrot.slane %v1082_v54, 4  ;;  %v1085_v8 = vshll.u32 %v954_v63, 16  ;;  %821 = vst [vmem:[#allocation2 + $0x40] sm:$0xf] %v551_v5  ;;  %13322 = vmatprep.subr.bf16.mxu0 %v14176_v47  ;;  %v1068_v13 = vrot.slane %v1066_v0, 4  ;;  %v1071_v15 = vrot.slane %v1069_v1, 5  ;;  %13375 = vmatpush3.bf16.msra.mxu1 %v14191_v37 }
  0x48   : > { %13292 = vmatprep.mubr.bf16.mxu1 %v11836_v4  ;;  %824 = vst [vmem:[#allocation2 + $0x44] sm:$0x1] %v823_v9  ;;  %v560_v16 = vrot.slane %v14736_v51, 4  ;;  %v564_v60 = vrot.slane %v562_v58, 7  ;;  %v825_v17 = vld [vmem:[#allocation2 + $0x48] sm:$0xf]  ;;  %13376 = vmatprep.subr.bf16.mxu1 %v14195_v62 }
  0x49   : > { %v1087_v18 = vrot.slane %v1085_v8, 5  ;;  %v565_v19 = vshll.u32 %v14722_v36, 16  ;;  %v826_v20 = vsel %vm14628_vm11, %v559_v10, %v825_v17  ;;  %v355_v22 = vsel %vm14575_vm5, 0, %v354_v52  ;;  %v407_v2 = vld [vmem:[#allocation2 + $0x68] sm:$0x1]  ;;  %v14196_v23 = vld [vmem:[%s19621_s1 + $0xc0] sm:$0xff]   ;;  %13323 = vmatpush3.bf16.msra.mxu0 %v14176_v47 }
  0x4a   : > { %v1072_v21 = vor.u32 %v1071_v15, %v1068_v13  ;;  %v569_v24 = vrot.slane %v564_v60, 4  ;;  %827 = vst [vmem:[#allocation2 + $0x48] sm:$0xf] %v826_v20  ;;  %v829_v25 = vld [vmem:[#allocation2 + $0x50] sm:$0x1]  ;;  %v405_v26 = vsel %vm14583_vm7, 0, %v404_v59  ;;  %13324 = vmatprep.subr.bf16.mxu0 %v14745_v61 }
  0x4b   : > { %356 = vst [vmem:[#allocation2 + $0x54] sm:$0x1] %v355_v22  ;;  %v571_v27 = vshrl.u32 %v446_v11, 16  ;;  %v1088_v28 = vsel %vm14596_vm8, %v14752_v7, %v1087_v18  ;;  %v567_v29 = vor.u32 %v565_v19, %v564_v60  ;;  %406 = vst [vmem:[#allocation2 + $0x5c] sm:$0x1] %v405_v26  ;;  %v574_v31 = vshll.u32 %v446_v11, 16  ;;  %13377 = vmatpush3.bf16.msra.mxu1 %v14195_v62 }
  0x4c   : > { %v579_v32 = vshrl.u32 %v14759_v12, 16  ;;  %v14184_v33 = vld [vmem:[%s19621_s1 + $0x90] sm:$0xff]   ;;  %v1073_v35 = vrot.slane %v1072_v21, 4  ;;  %v830_v36 = vsel %vm14575_vm5, %v569_v24, %v829_v25  ;;  %v582_v39 = vshll.u32 %v14759_v12, 16  ;;  %v14189_v46 = vld [vmem:[%s19621_s1 + $0x88] sm:$0xff]   ;;  %13378 = vmatprep.subr.bf16.mxu1 %v14196_v23  ;;  %v14194_v60 = vld [vmem:[%s19621_s1 + $0x80] sm:$0xff]  }
  0x4d   : > { %v573_v37 = vrot.slane %v571_v27, 7  ;;  %v912_v40 = vld [vmem:[#allocation2 + $0x3c] sm:$0xf]  ;;  %v568_v41 = vsel %vm14616_vm10, %v560_v16, %v567_v29  ;;  %831 = vst [vmem:[#allocation2 + $0x50] sm:$0x1] %v830_v36  ;;  %v358_v43 = vsel %vm14575_vm5, 0, %v357_v14  ;;  %13325 = vmatpush3.bf16.msra.mxu0 %v14745_v61 }
  0x4e   : > { %v581_v42 = vrot.slane %v579_v32, 7  ;;  %v408_v45 = vsel %vm14583_vm7, 0, %v407_v2  ;;  %v1078_v47 = vsel %vm14596_vm8, %v1073_v35, %v14731_v44  ;;  %v913_v48 = vld [vmem:[#allocation2 + $0x40] sm:$0xf]  ;;  %v1090_v49 = vshrl.u32 %v912_v40, 16  ;;  %13326 = vmatprep.subr.bf16.mxu0 %v14184_v33 }
  0x4f   : > { %v1093_v50 = vshll.u32 %v912_v40, 16  ;;  %828 = vst [vmem:[#allocation2 + $0x4c] sm:$0xf] %v568_v41  ;;  %v576_v51 = vor.u32 %v574_v31, %v573_v37  ;;  %359 = vst [vmem:[#allocation2 + $0x60] sm:$0x1] %v358_v43  ;;  %v11812_v53 = vcombine.low %v1078_v47, %v1088_v28  ;;  %v1099_v55 = vshll.u32 %v913_v48, 16  ;;  %13379 = vmatpush3.bf16.msra.mxu1 %v14196_v23 }
  0x50   : > { %409 = vst [vmem:[#allocation2 + $0x68] sm:$0x1] %v408_v45  ;;  %v448_v52 = vld [vmem:[%s14565_s8 + $0x38] sm:$0xf]  ;;  %v955_v54 = vld [vmem:[#allocation2 + $0x44] sm:$0x1]  ;;  %v11837_v58 = vcombine.low %v912_v40, %v913_v48  ;;  %v584_v5 = vor.u32 %v582_v39, %v581_v42 }
  0x51   : > { %v1103_v56 = vshrl.u32 %v913_v48, 16  ;;  %v1092_v59 = vrot.slane %v1090_v49, 4  ;;  %v1095_v62 = vrot.slane %v1093_v50, 5  ;;  %v1109_v63 = vshll.u32 %v955_v54, 16  ;;  %13244 = vmatprep.mubr.bf16.mxu0 %v11812_v53  ;;  %v914_v4 = vld [vmem:[#allocation2 + $0x48] sm:$0xf]  ;;  %13327 = vmatpush3.bf16.msra.mxu0 %v14184_v33 }
  0x52   : > { %v577_v44 = vrot.slane %v573_v37, 4  ;;  %v1101_v0 = vrot.slane %v1099_v55, 5  ;;  %13293 = vmatmul.mubr.bf16.gmra.mxu1 %v11837_v58  ;;  %v586_v6 = vrot.slane %v581_v42, 4  ;;  %v1114_v8 = vshrl.u32 %v914_v4, 16  ;;  %v832_v10 = vld [vmem:[#allocation2 + $0x54] sm:$0xf]  ;;  %13328 = vmatprep.subr.bf16.mxu0 %v14189_v46 }
  0x53   : > { %v1105_v1 = vrot.slane %v1103_v56, 4  ;;  %v1096_v7 = vor.u32 %v1095_v62, %v1092_v59  ;;  %v1111_v61 = vrot.slane %v1109_v63, 5  ;;  %v1117_v9 = vshll.u32 %v914_v4, 16  ;;  %v836_v15 = vld [vmem:[#allocation2 + $0x5c] sm:$0x1] }
  0x54   : > { %v585_v12 = vsel %vm14616_vm10, %v577_v44, %v584_v5  ;;  %v833_v13 = vsel %vm14628_vm11, %v576_v51, %v832_v10  ;;  %v588_v16 = vshrl.u32 %v448_v52, 16  ;;  %v956_v14 = vld [vmem:[#allocation2 + $0x50] sm:$0x1]  ;;  %v1116_v18 = vrot.slane %v1114_v8, 4  ;;  %v449_v29 = vld [vmem:[%s14565_s8 + $0x3c] sm:$0xf] }
  0x55   : > { %v1106_v11 = vor.u32 %v1105_v1, %v1101_v0  ;;  %v1097_v17 = vrot.slane %v1096_v7, 4  ;;  %v1119_v19 = vrot.slane %v1117_v9, 5  ;;  %834 = vst [vmem:[#allocation2 + $0x54] sm:$0xf] %v833_v13  ;;  %835 = vst [vmem:[#allocation2 + $0x58] sm:$0xf] %v585_v12  ;;  %v837_v20 = vsel %vm14575_vm5, %v586_v6, %v836_v15  ;;  %13329 = vmatpush3.bf16.msra.mxu0 %v14189_v46 }
  0x56   : > { %v915_v2 = vld [vmem:[#allocation2 + $0x4c] sm:$0xf]  ;;  %v1133_v23 = vshll.u32 %v956_v14, 16  ;;  %838 = vst [vmem:[#allocation2 + $0x5c] sm:$0x1] %v837_v20  ;;  %v14806_v21 = vrot.slane %v588_v16, 7  ;;  %13330 = vmatprep.subr.bf16.mxu0 %v14194_v60 }
  0x57   : > { %v1107_v22 = vrot.slane %v1106_v11, 4  ;;  %v591_v24 = vshll.u32 %v448_v52, 16  ;;  %v1102_v25 = vsel %vm14596_vm8, %v1097_v17, %v1101_v0  ;;  %v1120_v26 = vor.u32 %v1119_v19, %v1116_v18  ;;  %v839_v31 = vld [vmem:[#allocation2 + $0x60] sm:$0xf]  ;;  %v360_v36 = vld [vmem:[#allocation2 + $0x6c] sm:$0x1] }
  0x58   : > { %v1123_v27 = vshll.u32 %v915_v2, 16  ;;  %v1127_v28 = vshrl.u32 %v915_v2, 16  ;;  %v11838_v33 = vcombine.low %v914_v4, %v915_v2  ;;  %v410_v37 = vld [vmem:[#allocation2 + $0x74] sm:$0x1]  ;;  %v14815_v43 = vld [vmem:[%s14565_s8 + $0x40] sm:$0xf] }
  0x59   : > { %v1112_v32 = vsel %vm14596_vm8, %v1107_v22, %v1111_v61  ;;  %v593_v35 = vor.u32 %v591_v24, %v14806_v21  ;;  %v1121_v40 = vrot.slane %v1120_v26, 4  ;;  %v14197_v45 = vld [vmem:[%s19621_s1 + $0x138] sm:$0xff]   ;;  %v1135_v46 = vrot.slane %v1133_v23, 5  ;;  %13331 = vmatpush3.bf16.msra.mxu0 %v14194_v60  ;;  %v843_v8 = vld [vmem:[#allocation2 + $0x68] sm:$0x1] }
  0x5a   : > { %v11813_v39 = vcombine.low %v1102_v25, %v1112_v32  ;;  %v1125_v41 = vrot.slane %v1123_v27, 5  ;;  %v1129_v42 = vrot.slane %v1127_v28, 4  ;;  %13296 = vmatprep.mubr.bf16.mxu1 %v11838_v33  ;;  %v596_v47 = vshrl.u32 %v449_v29, 16  ;;  %v14212_v50 = vld [vmem:[%s19621_s1 + $0x178] sm:$0xff]   ;;  %13412 = vmatprep.subr.bf16.mxu0 %v14197_v45  ;;  %v451_v9 = vld [vmem:[%s14565_s8 + $0x44] sm:$0xf] }
  0x5b   : > { %v599_v48 = vshll.u32 %v449_v29, 16  ;;  %v840_v49 = vsel %vm14628_vm11, %v593_v35, %v839_v31  ;;  %v594_v52 = vrot.slane %v14806_v21, 4  ;;  %v361_v53 = vsel %vm14575_vm5, 0, %v360_v36  ;;  %13460 = vmatprep.subr.bf16.mxu1 %v14212_v50  ;;  %v363_v15 = vld [vmem:[#allocation2 + $0x78] sm:$0x1] }
  0x5c   : > { %13245 = vmatmul.mubr.bf16.gmra.mxu0 %v11813_v39  ;;  %v1130_v51 = vor.u32 %v1129_v42, %v1125_v41  ;;  %841 = vst [vmem:[#allocation2 + $0x60] sm:$0xf] %v840_v49  ;;  %v411_v54 = vsel %vm14583_vm7, 0, %v410_v37  ;;  %v1126_v55 = vsel %vm14596_vm8, %v1121_v40, %v1125_v41  ;;  %v916_v56 = vld [vmem:[#allocation2 + $0x54] sm:$0xf]  ;;  %v598_v59 = vrot.slane %v596_v47, 7 }
  0x5d   : > { %v14832_v58 = vld [vmem:[#allocation2 + $0x58] sm:$0xf]  ;;  %362 = vst [vmem:[#allocation2 + $0x6c] sm:$0x1] %v361_v53  ;;  %412 = vst [vmem:[#allocation2 + $0x74] sm:$0x1] %v411_v54 }
  0x5e   : > { %v605_v62 = vshrl.u32 %v14815_v43, 16  ;;  %v1131_v63 = vrot.slane %v1130_v51, 4  ;;  %v14835_v44 = vld [vmem:[#allocation2 + $0x5c] sm:$0x1]  ;;  %v1138_v0 = vshrl.u32 %v916_v56, 16  ;;  %v1141_v1 = vshll.u32 %v916_v56, 16 }
  0x5f   : > { %v1147_v4 = vshll.u32 %v14832_v58, 16  ;;  %v1151_v5 = vshrl.u32 %v14832_v58, 16  ;;  %v1157_v6 = vshll.u32 %v14835_v44, 16  ;;  %v11839_v7 = vcombine.low %v916_v56, %v14832_v58  ;;  %v413_v18 = vld [vmem:[#allocation2 + $0x80] sm:$0x1] }
  0x60   : > { %v601_v61 = vor.u32 %v599_v48, %v598_v59  ;;  %v1136_v10 = vsel %vm14596_vm8, %v1131_v63, %v1135_v46  ;;  %v1140_v11 = vrot.slane %v1138_v0, 4  ;;  %v1143_v12 = vrot.slane %v1141_v1, 5  ;;  %v452_v27 = vld [vmem:[%s14565_s8 + $0x48] sm:$0xf]  ;;  %v453_v35 = vld [vmem:[%s14565_s8 + $0x4c] sm:$0xf] }
  0x61   : > { %v1149_v13 = vrot.slane %v1147_v4, 5  ;;  %v11814_v16 = vcombine.low %v1126_v55, %v1136_v10  ;;  %v1153_v60 = vrot.slane %v1151_v5, 4  ;;  %v1159_v17 = vrot.slane %v1157_v6, 5  ;;  %13297 = vmatmul.mubr.bf16.gmra.mxu1 %v11839_v7  ;;  %v366_v55 = vld [vmem:[#allocation2 + $0x84] sm:$0x1] }
  0x62   : > { %v602_v14 = vsel %vm14616_vm10, %v594_v52, %v601_v61  ;;  %v1144_v19 = vor.u32 %v1143_v12, %v1140_v11  ;;  %v603_v20 = vrot.slane %v598_v59, 4  ;;  %v607_v22 = vrot.slane %v605_v62, 7  ;;  %v416_v56 = vld [vmem:[#allocation2 + $0x8c] sm:$0x1]  ;;  %v454_v4 = vld [vmem:[%s14565_s8 + $0x50] sm:$0xf] }
  0x63   : > { %842 = vst [vmem:[#allocation2 + $0x64] sm:$0xf] %v602_v14  ;;  %v608_v2 = vshll.u32 %v14815_v43, 16  ;;  %13248 = vmatprep.mubr.bf16.mxu0 %v11814_v16  ;;  %v1154_v23 = vor.u32 %v1153_v60, %v1149_v13  ;;  %v918_v21 = vld [vmem:[#allocation2 + $0x60] sm:$0xf]  ;;  %v613_v24 = vshrl.u32 %v451_v9, 16 }
  0x64   : > { %v616_v25 = vshll.u32 %v451_v9, 16  ;;  %v364_v26 = vsel %vm14575_vm5, 0, %v363_v15  ;;  %v1145_v28 = vrot.slane %v1144_v19, 4  ;;  %v844_v29 = vsel %vm14575_vm5, %v603_v20, %v843_v8  ;;  %v846_v33 = vld [vmem:[#allocation2 + $0x6c] sm:$0xf] }
  0x65   : > { %v1162_v31 = vshrl.u32 %v918_v21, 16  ;;  %v1165_v32 = vshll.u32 %v918_v21, 16  ;;  %365 = vst [vmem:[#allocation2 + $0x78] sm:$0x1] %v364_v26  ;;  %v1155_v36 = vrot.slane %v1154_v23, 4  ;;  %v610_v37 = vor.u32 %v608_v2, %v607_v22 }
  0x66   : > { %845 = vst [vmem:[#allocation2 + $0x68] sm:$0x1] %v844_v29  ;;  %v611_v39 = vrot.slane %v607_v22, 4  ;;  %v615_v40 = vrot.slane %v613_v24, 7  ;;  %v850_v41 = vld [vmem:[#allocation2 + $0x74] sm:$0x1]  ;;  %v1150_v42 = vsel %vm14596_vm8, %v1145_v28, %v1149_v13 }
  0x67   : > { %v1164_v43 = vrot.slane %v1162_v31, 4  ;;  %v1167_v45 = vrot.slane %v1165_v32, 5  ;;  %v414_v46 = vsel %vm14583_vm7, 0, %v413_v18  ;;  %v1160_v47 = vsel %vm14596_vm8, %v1155_v36, %v1159_v17  ;;  %v14872_v8 = vld [vmem:[%s14565_s8 + $0x54] sm:$0xf] }
  0x68   : > { %v618_v48 = vor.u32 %v616_v25, %v615_v40  ;;  %v620_v49 = vrot.slane %v615_v40, 4  ;;  %v847_v50 = vsel %vm14628_vm11, %v610_v37, %v846_v33  ;;  %415 = vst [vmem:[#allocation2 + $0x80] sm:$0x1] %v414_v46  ;;  %v11815_v51 = vcombine.low %v1150_v42, %v1160_v47  ;;  %v369_v37 = vld [vmem:[#allocation2 + $0x90] sm:$0x1] }
  0x69   : > { %v1168_v52 = vor.u32 %v1167_v45, %v1164_v43  ;;  %848 = vst [vmem:[#allocation2 + $0x6c] sm:$0xf] %v847_v50  ;;  %v622_v53 = vshrl.u32 %v452_v27, 16  ;;  %v625_v54 = vshll.u32 %v452_v27, 16  ;;  %v630_v0 = vshrl.u32 %v453_v35, 16 }
  0x6a   : > { %v14861_v59 = vld [vmem:[#allocation2 + $0x64] sm:$0xf]  ;;  %v619_v62 = vsel %vm14616_vm10, %v611_v39, %v618_v48  ;;  %v851_v63 = vsel %vm14575_vm5, %v620_v49, %v850_v41  ;;  %v633_v1 = vshll.u32 %v453_v35, 16  ;;  %13249 = vmatmul.mubr.bf16.gmra.mxu0 %v11815_v51  ;;  %v367_v12 = vsel %vm14575_vm5, 0, %v366_v55  ;;  %v419_v45 = vld [vmem:[#allocation2 + $0x98] sm:$0x1] }
  0x6b   : > { %v1169_v5 = vrot.slane %v1168_v52, 4  ;;  %v1171_v6 = vshll.u32 %v14861_v59, 16  ;;  %v1175_v7 = vshrl.u32 %v14861_v59, 16  ;;  %v11840_v61 = vcombine.low %v918_v21, %v14861_v59  ;;  %849 = vst [vmem:[#allocation2 + $0x70] sm:$0xf] %v619_v62 }
  0x6c   : > { %852 = vst [vmem:[#allocation2 + $0x74] sm:$0x1] %v851_v63  ;;  %v624_v9 = vrot.slane %v622_v53, 7  ;;  %v632_v10 = vrot.slane %v630_v0, 7  ;;  %v853_v11 = vld [vmem:[#allocation2 + $0x78] sm:$0xf] }
  0x6d   : > { %v417_v13 = vsel %vm14583_vm7, 0, %v416_v56  ;;  %v14878_v15 = vld [vmem:[#allocation2 + $0x68] sm:$0x1]  ;;  %v1173_v16 = vrot.slane %v1171_v6, 5  ;;  %v1177_v60 = vrot.slane %v1175_v7, 4  ;;  %13300 = vmatprep.mubr.bf16.mxu1 %v11840_v61  ;;  %v639_v17 = vshrl.u32 %v454_v4, 16 }
  0x6e   : > { %368 = vst [vmem:[#allocation2 + $0x84] sm:$0x1] %v367_v12  ;;  %418 = vst [vmem:[#allocation2 + $0x8c] sm:$0x1] %v417_v13  ;;  %v642_v14 = vshll.u32 %v454_v4, 16  ;;  %v1181_v18 = vshll.u32 %v14878_v15, 16  ;;  %v627_v19 = vor.u32 %v625_v54, %v624_v9  ;;  %v635_v22 = vor.u32 %v633_v1, %v632_v10 }
  0x6f   : > { %v628_v20 = vrot.slane %v624_v9, 4  ;;  %v1174_v2 = vsel %vm14596_vm8, %v1169_v5, %v1173_v16  ;;  %v1178_v23 = vor.u32 %v1177_v60, %v1173_v16  ;;  %v637_v21 = vrot.slane %v632_v10, 4  ;;  %v857_v24 = vld [vmem:[#allocation2 + $0x80] sm:$0x1]  ;;  %v456_v50 = vld [vmem:[%s14565_s8 + $0x58] sm:$0xf] }
  0x70   : > { %v14883_v25 = vrot.slane %v639_v17, 7  ;;  %v1183_v26 = vrot.slane %v1181_v18, 5  ;;  %v920_v27 = vld [vmem:[#allocation2 + $0x6c] sm:$0xf]  ;;  %v854_v29 = vsel %vm14628_vm11, %v627_v19, %v853_v11  ;;  %v647_v31 = vshrl.u32 %v14872_v8, 16 }
  0x71   : > { %v636_v28 = vsel %vm14616_vm10, %v628_v20, %v635_v22  ;;  %v1179_v32 = vrot.slane %v1178_v23, 4  ;;  %v1186_v33 = vshrl.u32 %v920_v27, 16  ;;  %v1189_v35 = vshll.u32 %v920_v27, 16  ;;  %855 = vst [vmem:[#allocation2 + $0x78] sm:$0xf] %v854_v29 }
  0x72   : > { %856 = vst [vmem:[#allocation2 + $0x7c] sm:$0xf] %v636_v28  ;;  %v858_v36 = vsel %vm14575_vm5, %v637_v21, %v857_v24  ;;  %v14892_v39 = vld [vmem:[#allocation2 + $0x70] sm:$0xf]  ;;  %v644_v41 = vor.u32 %v642_v14, %v14883_v25  ;;  %v645_v42 = vrot.slane %v14883_v25, 4  ;;  %v649_v43 = vrot.slane %v647_v31, 7 }
  0x73   : > { %v14894_v40 = vld [vmem:[#allocation2 + $0x74] sm:$0x1]  ;;  %859 = vst [vmem:[#allocation2 + $0x80] sm:$0x1] %v858_v36  ;;  %v1184_v46 = vsel %vm14596_vm8, %v1179_v32, %v1183_v26  ;;  %v1188_v47 = vrot.slane %v1186_v33, 4  ;;  %v1191_v48 = vrot.slane %v1189_v35, 5  ;;  %v11841_v54 = vcombine.low %v920_v27, %v14892_v39 }
  0x74   : > { %v1195_v49 = vshll.u32 %v14892_v39, 16  ;;  %v11816_v51 = vcombine.low %v1174_v2, %v1184_v46  ;;  %v1199_v52 = vshrl.u32 %v14892_v39, 16  ;;  %v1205_v53 = vshll.u32 %v14894_v40, 16  ;;  %v457_v24 = vld [vmem:[%s14565_s8 + $0x5c] sm:$0xf] }
  0x75   : > { %v860_v55 = vld [vmem:[#allocation2 + $0x84] sm:$0xf]  ;;  %v864_v56 = vld [vmem:[#allocation2 + $0x8c] sm:$0x1]  ;;  %v1192_v62 = vor.u32 %v1191_v48, %v1188_v47  ;;  %v650_v0 = vshll.u32 %v14872_v8, 16  ;;  %v654_v1 = vrot.slane %v649_v43, 4  ;;  %13301 = vmatmul.mubr.bf16.gmra.mxu1 %v11841_v54 }
  0x76   : > { %v1197_v63 = vrot.slane %v1195_v49, 5  ;;  %13252 = vmatprep.mubr.bf16.mxu0 %v11816_v51  ;;  %v1201_v4 = vrot.slane %v1199_v52, 4  ;;  %v1207_v5 = vrot.slane %v1205_v53, 5  ;;  %v861_v6 = vsel %vm14628_vm11, %v644_v41, %v860_v55  ;;  %v372_v29 = vld [vmem:[#allocation2 + $0x9c] sm:$0x1] }
  0x77   : > { %v370_v7 = vsel %vm14575_vm5, 0, %v369_v37  ;;  %v1193_v61 = vrot.slane %v1192_v62, 4  ;;  %v652_v9 = vor.u32 %v650_v0, %v649_v43  ;;  %862 = vst [vmem:[#allocation2 + $0x84] sm:$0xf] %v861_v6  ;;  %v865_v10 = vsel %vm14575_vm5, %v654_v1, %v864_v56  ;;  %v458_v46 = vld [vmem:[%s14565_s8 + $0x60] sm:$0xf] }
  0x78   : > { %371 = vst [vmem:[#allocation2 + $0x90] sm:$0x1] %v370_v7  ;;  %v420_v8 = vsel %vm14583_vm7, 0, %v419_v45  ;;  %v1202_v11 = vor.u32 %v1201_v4, %v1197_v63  ;;  %v922_v12 = vld [vmem:[#allocation2 + $0x78] sm:$0xf]  ;;  %v656_v16 = vshrl.u32 %v456_v50, 16 }
  0x79   : > { %v14914_v13 = vld [vmem:[#allocation2 + $0x7c] sm:$0xf]  ;;  %866 = vst [vmem:[#allocation2 + $0x8c] sm:$0x1] %v865_v10  ;;  %421 = vst [vmem:[#allocation2 + $0x98] sm:$0x1] %v420_v8  ;;  %v1198_v17 = vsel %vm14596_vm8, %v1193_v61, %v1197_v63  ;;  %v653_v28 = vsel %vm14616_vm10, %v645_v42, %v652_v9 }
  0x7a   : > { %v659_v60 = vshll.u32 %v456_v50, 16  ;;  %v14918_v14 = vld [vmem:[#allocation2 + $0x80] sm:$0x1]  ;;  %v1210_v18 = vshrl.u32 %v922_v12, 16  ;;  %v1213_v19 = vshll.u32 %v922_v12, 16  ;;  %v1219_v20 = vshll.u32 %v14914_v13, 16 }
  0x7b   : > { %v1203_v22 = vrot.slane %v1202_v11, 4  ;;  %v1223_v2 = vshrl.u32 %v14914_v13, 16  ;;  %v1229_v23 = vshll.u32 %v14918_v14, 16  ;;  %v11842_v21 = vcombine.low %v922_v12, %v14914_v13  ;;  %863 = vst [vmem:[#allocation2 + $0x88] sm:$0xf] %v653_v28 }
  0x7c   : > { %v1212_v25 = vrot.slane %v1210_v18, 4  ;;  %v1215_v26 = vrot.slane %v1213_v19, 5  ;;  %v1221_v27 = vrot.slane %v1219_v20, 5  ;;  %v658_v35 = vrot.slane %v656_v16, 7  ;;  %v422_v45 = vld [vmem:[#allocation2 + $0xa4] sm:$0x1] }
  0x7d   : > { %v1208_v31 = vsel %vm14596_vm8, %v1203_v22, %v1207_v5  ;;  %v1225_v32 = vrot.slane %v1223_v2, 4  ;;  %v1231_v33 = vrot.slane %v1229_v23, 5  ;;  %13304 = vmatprep.mubr.bf16.mxu1 %v11842_v21  ;;  %v664_v41 = vshrl.u32 %v457_v24, 16  ;;  %v459_v4 = vld [vmem:[%s14565_s8 + $0x64] sm:$0xf] }
  0x7e   : > { %v11817_v36 = vcombine.low %v1198_v17, %v1208_v31  ;;  %v1216_v37 = vor.u32 %v1215_v26, %v1212_v25  ;;  %v667_v43 = vshll.u32 %v457_v24, 16  ;;  %v924_v48 = vld [vmem:[#allocation2 + $0x84] sm:$0xf]  ;;  %v661_v49 = vor.u32 %v659_v60, %v658_v35  ;;  %v375_v10 = vld [vmem:[#allocation2 + $0xa8] sm:$0x1] }
  0x7f   : > { %v1226_v47 = vor.u32 %v1225_v32, %v1221_v27  ;;  %v662_v42 = vrot.slane %v658_v35, 4  ;;  %v867_v50 = vld [vmem:[#allocation2 + $0x90] sm:$0xf]  ;;  %v373_v51 = vsel %vm14575_vm5, 0, %v372_v29  ;;  %v1234_v54 = vshrl.u32 %v924_v48, 16 }
  0x80   : > { %13253 = vmatmul.mubr.bf16.gmra.mxu0 %v11817_v36  ;;  %v1217_v52 = vrot.slane %v1216_v37, 4  ;;  %v14932_v53 = vld [vmem:[#allocation2 + $0x8c] sm:$0x1]  ;;  %v1237_v55 = vshll.u32 %v924_v48, 16  ;;  %v666_v56 = vrot.slane %v664_v41, 7  ;;  %v868_v0 = vsel %vm14628_vm11, %v661_v49, %v867_v50 }
  0x81   : > { %374 = vst [vmem:[#allocation2 + $0x9c] sm:$0x1] %v373_v51  ;;  %v1227_v62 = vrot.slane %v1226_v47, 4  ;;  %v1253_v63 = vshll.u32 %v14932_v53, 16  ;;  %v423_v1 = vsel %vm14583_vm7, 0, %v422_v45  ;;  %v1236_v6 = vrot.slane %v1234_v54, 4 }
  0x82   : > { %v1222_v5 = vsel %vm14596_vm8, %v1217_v52, %v1221_v27  ;;  %v1239_v7 = vrot.slane %v1237_v55, 5  ;;  %v669_v61 = vor.u32 %v667_v43, %v666_v56  ;;  %869 = vst [vmem:[#allocation2 + $0x90] sm:$0xf] %v868_v0  ;;  %v871_v9 = vld [vmem:[#allocation2 + $0x98] sm:$0x1]  ;;  %v671_v16 = vrot.slane %v666_v56, 4 }
  0x83   : > { %424 = vst [vmem:[#allocation2 + $0xa4] sm:$0x1] %v423_v1  ;;  %v425_v8 = vld [vmem:[#allocation2 + $0xb0] sm:$0x1]  ;;  %v1232_v11 = vsel %vm14596_vm8, %v1227_v62, %v1231_v33  ;;  %v14944_v12 = vrot.slane %v1253_v63, 5  ;;  %v673_v60 = vshrl.u32 %v458_v46, 16 }
  0x84   : > { %v14947_v17 = vld [vmem:[%s14565_s8 + $0x68] sm:$0xf]  ;;  %v11818_v18 = vcombine.low %v1222_v5, %v1232_v11  ;;  %v1240_v20 = vor.u32 %v1239_v7, %v1236_v6  ;;  %v670_v22 = vsel %vm14616_vm10, %v662_v42, %v669_v61  ;;  %v676_v2 = vshll.u32 %v458_v46, 16  ;;  %v14954_v23 = vld [vmem:[%s14565_s8 + $0x6c] sm:$0xf] }
  0x85   : > { %v14949_v19 = vld [vmem:[#allocation2 + $0x88] sm:$0xf]  ;;  %870 = vst [vmem:[#allocation2 + $0x94] sm:$0xf] %v670_v22  ;;  %v872_v26 = vsel %vm14575_vm5, %v671_v16, %v871_v9  ;;  %v675_v28 = vrot.slane %v673_v60, 7  ;;  %v681_v29 = vshrl.u32 %v459_v4, 16 }
  0x86   : > { %v1243_v21 = vshll.u32 %v14949_v19, 16  ;;  %v1247_v24 = vshrl.u32 %v14949_v19, 16  ;;  %v11843_v25 = vcombine.low %v924_v48, %v14949_v19  ;;  %13256 = vmatprep.mubr.bf16.mxu0 %v11818_v18  ;;  %v1241_v27 = vrot.slane %v1240_v20, 4  ;;  %873 = vst [vmem:[#allocation2 + $0x98] sm:$0x1] %v872_v26 }
  0x87   : > { %v684_v31 = vshll.u32 %v459_v4, 16  ;;  %v376_v36 = vsel %vm14575_vm5, 0, %v375_v10  ;;  %v426_v37 = vsel %vm14583_vm7, 0, %v425_v8  ;;  %v678_v41 = vor.u32 %v676_v2, %v675_v28  ;;  %v378_v9 = vld [vmem:[#allocation2 + $0xb4] sm:$0x1] }
  0x88   : > { %v1245_v32 = vrot.slane %v1243_v21, 5  ;;  %v1249_v33 = vrot.slane %v1247_v24, 4  ;;  %13305 = vmatmul.mubr.bf16.gmra.mxu1 %v11843_v25  ;;  %v874_v35 = vld [vmem:[#allocation2 + $0x9c] sm:$0xf]  ;;  %v679_v43 = vrot.slane %v675_v28, 4  ;;  %v683_v45 = vrot.slane %v681_v29, 7 }
  0x89   : > { %377 = vst [vmem:[#allocation2 + $0xa8] sm:$0x1] %v376_v36  ;;  %427 = vst [vmem:[#allocation2 + $0xb0] sm:$0x1] %v426_v37  ;;  %v690_v46 = vshrl.u32 %v14947_v17, 16  ;;  %v693_v50 = vshll.u32 %v14947_v17, 16  ;;  %v875_v63 = vsel %vm14628_vm11, %v678_v41, %v874_v35 }
  0x8a   : > { %v1246_v47 = vsel %vm14596_vm8, %v1241_v27, %v1245_v32  ;;  %v1250_v48 = vor.u32 %v1249_v33, %v1245_v32  ;;  %v926_v49 = vld [vmem:[#allocation2 + $0x90] sm:$0xf]  ;;  %v878_v42 = vld [vmem:[#allocation2 + $0xa4] sm:$0x1]  ;;  %v698_v51 = vshrl.u32 %v14954_v23, 16  ;;  %v686_v55 = vor.u32 %v684_v31, %v683_v45 }
  0x8b   : > { %v1258_v52 = vshrl.u32 %v926_v49, 16  ;;  %v1261_v54 = vshll.u32 %v926_v49, 16  ;;  %v688_v56 = vrot.slane %v683_v45, 4  ;;  %v692_v0 = vrot.slane %v690_v46, 7  ;;  %876 = vst [vmem:[#allocation2 + $0x9c] sm:$0xf] %v875_v63 }
  0x8c   : > { %v1251_v62 = vrot.slane %v1250_v48, 4  ;;  %v700_v1 = vrot.slane %v698_v51, 7  ;;  %v14972_v4 = vld [vmem:[#allocation2 + $0x94] sm:$0xf]  ;;  %v687_v7 = vsel %vm14616_vm10, %v679_v43, %v686_v55  ;;  %v428_v10 = vld [vmem:[#allocation2 + $0xbc] sm:$0x1] }
  0x8d   : > { %v1260_v5 = vrot.slane %v1258_v52, 4  ;;  %v1263_v6 = vrot.slane %v1261_v54, 5  ;;  %v879_v61 = vsel %vm14575_vm5, %v688_v56, %v878_v42  ;;  %v14981_v11 = vld [vmem:[#allocation2 + $0x98] sm:$0x1]  ;;  %v1267_v16 = vshll.u32 %v14972_v4, 16 }
  0x8e   : > { %v1256_v8 = vsel %vm14596_vm8, %v1251_v62, %v14944_v12  ;;  %v1271_v60 = vshrl.u32 %v14972_v4, 16  ;;  %v11844_v17 = vcombine.low %v926_v49, %v14972_v4  ;;  %877 = vst [vmem:[#allocation2 + $0xa0] sm:$0xf] %v687_v7  ;;  %880 = vst [vmem:[#allocation2 + $0xa4] sm:$0x1] %v879_v61  ;;  %v1277_v2 = vshll.u32 %v14981_v11, 16 }
  0x8f   : > { %v462_v18 = vld [vmem:[%s14565_s8 + $0x70] sm:$0xf]  ;;  %v11819_v20 = vcombine.low %v1246_v47, %v1256_v8  ;;  %v1264_v22 = vor.u32 %v1263_v6, %v1260_v5  ;;  %v695_v21 = vor.u32 %v693_v50, %v692_v0  ;;  %v463_v24 = vld [vmem:[%s14565_s8 + $0x74] sm:$0xf]  ;;  %v1269_v25 = vrot.slane %v1267_v16, 5 }
  0x90   : > { %v1273_v26 = vrot.slane %v1271_v60, 4  ;;  %13308 = vmatprep.mubr.bf16.mxu1 %v11844_v17  ;;  %v696_v12 = vrot.slane %v692_v0, 4  ;;  %v701_v27 = vshll.u32 %v14954_v23, 16  ;;  %v881_v28 = vld [vmem:[#allocation2 + $0xa8] sm:$0xf]  ;;  %v1279_v31 = vrot.slane %v1277_v2, 5 }
  0x91   : > { %13257 = vmatmul.mubr.bf16.gmra.mxu0 %v11819_v20  ;;  %v1265_v29 = vrot.slane %v1264_v22, 4  ;;  %v705_v32 = vrot.slane %v700_v1, 4  ;;  %v882_v33 = vsel %vm14628_vm11, %v695_v21, %v881_v28  ;;  %v885_v35 = vld [vmem:[#allocation2 + $0xb0] sm:$0x1]  ;;  %v379_v41 = vsel %vm14575_vm5, 0, %v378_v9 }
  0x92   : > { %v1274_v36 = vor.u32 %v1273_v26, %v1269_v25  ;;  %v703_v37 = vor.u32 %v701_v27, %v700_v1  ;;  %883 = vst [vmem:[#allocation2 + $0xa8] sm:$0xf] %v882_v33  ;;  %v429_v43 = vsel %vm14583_vm7, 0, %v428_v10  ;;  %380 = vst [vmem:[#allocation2 + $0xb4] sm:$0x1] %v379_v41  ;;  %v707_v46 = vshrl.u32 %v462_v18, 16 }
  0x93   : > { %v1270_v23 = vsel %vm14596_vm8, %v1265_v29, %v1269_v25  ;;  %v886_v45 = vsel %vm14575_vm5, %v705_v32, %v885_v35  ;;  %430 = vst [vmem:[#allocation2 + $0xbc] sm:$0x1] %v429_v43  ;;  %v710_v47 = vshll.u32 %v462_v18, 16  ;;  %v928_v49 = vld [vmem:[#allocation2 + $0x9c] sm:$0xf]  ;;  %v715_v50 = vshrl.u32 %v463_v24, 16 }
  0x94   : > { %v1275_v48 = vrot.slane %v1274_v36, 4  ;;  %v704_v42 = vsel %vm14616_vm10, %v696_v12, %v703_v37  ;;  %887 = vst [vmem:[#allocation2 + $0xb0] sm:$0x1] %v886_v45  ;;  %v718_v51 = vshll.u32 %v463_v24, 16  ;;  %v1282_v55 = vshrl.u32 %v928_v49, 16 }
  0x95   : > { %v15002_v52 = vld [vmem:[#allocation2 + $0xa0] sm:$0xf]  ;;  %v15004_v54 = vld [vmem:[#allocation2 + $0xa4] sm:$0x1]  ;;  %v1285_v56 = vshll.u32 %v928_v49, 16  ;;  %v709_v8 = vrot.slane %v707_v46, 7 }
  0x96   : > { %884 = vst [vmem:[#allocation2 + $0xac] sm:$0xf] %v704_v42  ;;  %v1280_v62 = vsel %vm14596_vm8, %v1275_v48, %v1279_v31  ;;  %v1291_v63 = vshll.u32 %v15002_v52, 16  ;;  %v1295_v0 = vshrl.u32 %v15002_v52, 16  ;;  %v1301_v1 = vshll.u32 %v15004_v54, 16 }
  0x97   : > { %v11820_v5 = vcombine.low %v1270_v23, %v1280_v62  ;;  %v1284_v6 = vrot.slane %v1282_v55, 4  ;;  %v1287_v7 = vrot.slane %v1285_v56, 5  ;;  %v11845_v61 = vcombine.low %v928_v49, %v15002_v52  ;;  %v14401_v62 = vld [vmem:[#allocation2 + $0x4] sm:$0xf] }
  0x98   : > { %v1293_v9 = vrot.slane %v1291_v63, 5  ;;  %v1297_v10 = vrot.slane %v1295_v0, 4  ;;  %v1303_v60 = vrot.slane %v1301_v1, 5  ;;  %v717_v18 = vrot.slane %v715_v50, 7  ;;  %v1949_v0 = vld [vmem:[#allocation2 + $0xc] sm:$0xe] }
  0x99   : > { %13260 = vmatprep.mubr.bf16.mxu0 %v11820_v5  ;;  %v1288_v16 = vor.u32 %v1287_v7, %v1284_v6  ;;  %13309 = vmatmul.mubr.bf16.gmra.mxu1 %v11845_v61  ;;  %v930_v17 = vld [vmem:[#allocation2 + $0xa8] sm:$0xf]  ;;  %v712_v21 = vor.u32 %v710_v47, %v709_v8  ;;  %v888_v24 = vld [vmem:[#allocation2 + $0xb4] sm:$0xf]  ;;  %v713_v12 = vrot.slane %v709_v8, 4  ;;  %v2001_v63 = vrot.slane %v14401_v62, 5 }
  0x9a   : > { %v1298_v20 = vor.u32 %v1297_v10, %v1293_v9  ;;  %v1306_v22 = vshrl.u32 %v930_v17, 16  ;;  %v1309_v2 = vshll.u32 %v930_v17, 16  ;;  %v720_v27 = vor.u32 %v718_v51, %v717_v18  ;;  %v892_v29 = vld [vmem:[#allocation2 + $0xbc] sm:$0x1]  ;;  %v1948_v51 = vld [vmem:[#allocation2] sm:$0xe] }
  0x9b   : > { %v1289_v25 = vrot.slane %v1288_v16, 4  ;;  %v15012_v26 = vld [vmem:[#allocation2 + $0xb0] sm:$0x1]  ;;  %v722_v28 = vrot.slane %v717_v18, 4  ;;  %v889_v50 = vsel %vm14628_vm11, %v712_v21, %v888_v24  ;;  %v15030_v1 = vld [vmem:[#allocation2 + $0x18] sm:$0xe] }
  0x9c   : > { %v1299_v31 = vrot.slane %v1298_v20, 4  ;;  %v1308_v33 = vrot.slane %v1306_v22, 4  ;;  %v1311_v35 = vrot.slane %v1309_v2, 5  ;;  %v1325_v36 = vshll.u32 %v15012_v26, 16  ;;  %890 = vst [vmem:[#allocation2 + $0xb4] sm:$0xf] %v889_v50 }
  0x9d   : > { %v15014_v32 = vld [vmem:[#allocation2 + $0xac] sm:$0xf]  ;;  %v1294_v37 = vsel %vm14596_vm8, %v1289_v25, %v1293_v9  ;;  %v721_v47 = vsel %vm14616_vm10, %v713_v12, %v720_v27  ;;  %v893_v56 = vsel %vm14575_vm5, %v722_v28, %v892_v29  ;;  %vm1997_vm13 = vcmask 1046532   ;;  %v14402_v7 = vld [vmem:[#allocation2 + $0x10] sm:$0xf] }
  0x9e   : > { %v1315_v41 = vshll.u32 %v15014_v32, 16  ;;  %v1319_v43 = vshrl.u32 %v15014_v32, 16  ;;  %v11846_v23 = vcombine.low %v930_v17, %v15014_v32  ;;  %v1304_v45 = vsel %vm14596_vm8, %v1299_v31, %v1303_v60  ;;  %891 = vst [vmem:[#allocation2 + $0xb8] sm:$0xf] %v721_v47  ;;  %894 = vst [vmem:[#allocation2 + $0xbc] sm:$0x1] %v893_v56 }
  0x9f   : > { %v1312_v46 = vor.u32 %v1311_v35, %v1308_v33  ;;  %v11821_v48 = vcombine.low %v1294_v37, %v1304_v45  ;;  %v1327_v6 = vrot.slane %v1325_v36, 5  ;;  %v2008_v61 = vrot.slane %v14402_v7, 5  ;;  %v14403_v16 = vld [vmem:[#allocation2 + $0x8] sm:$0x1]  ;;  %v15034_v17 = vld [vmem:[#allocation2 + $0x14] sm:$0x1]  ;;  %vm15037_vm14 = vmor %vm1996_vm12, %vm1997_vm13 }
  0xa0   : > { %v1317_v49 = vrot.slane %v1315_v41, 5  ;;  %v1321_v42 = vrot.slane %v1319_v43, 4  ;;  %13312 = vmatprep.mubr.bf16.mxu1 %v11846_v23  ;;  %v11856_v8 = vrot.slane %v1948_v51, 9  ;;  %v2004_v60 = vrot.slane %v14403_v16, 5  ;;  %v14198_v24 = vld [vmem:[#allocation2 + $0xc] sm:$0xff]  }
  0xa1   : > { %v1313_v55 = vrot.slane %v1312_v46, 4  ;;  %13261 = vmatmul.mubr.bf16.gmra.mxu0 %v11821_v48  ;;  %v2011_v18 = vrot.slane %v15034_v17, 5  ;;  %v19685_v20 = vmov 0  ;;  %v2003_v22 = vrot.slane %v2001_v63, 4  ;;  %v14405_v29 = vld [vmem:[#allocation2 + $0x1c] sm:$0xf] }
  0xa2   : > { %v1322_v5 = vor.u32 %v1321_v42, %v1317_v49  ;;  %v19686_v20 = vsel %vm15037_vm14, 4294967295, %v19685_v20  ;;  %v11857_v21 = vrot.slane %v1949_v0, 9  ;;  %v11858_v25 = vrot.slane %v15030_v1, 9  ;;  %v15046_v33 = vld [vmem:[#allocation2 + $0x24] sm:$0xe] }
  0xa3   : > { %v1318_v9 = vsel %vm14596_vm8, %v1313_v55, %v1317_v49  ;;  %19687 = vst [vmem:[#allocation12_spill] sm:$0xff] %v19686_v20  ;;  %v2010_v28 = vrot.slane %v2008_v61, 4  ;;  %v2015_v31 = vrot.slane %v14405_v29, 5  ;;  %v932_v35 = vld [vmem:[#allocation2 + $0xb4] sm:$0xf]  ;;  %v15052_v41 = vsel %vm15037_vm14, %v11856_v8, %v2001_v63 }
  0xa4   : > { %v1323_v10 = vrot.slane %v1322_v5, 4  ;;  %v1330_v23 = vshrl.u32 %v932_v35, 16  ;;  %v1333_v45 = vshll.u32 %v932_v35, 16  ;;  %v15059_v47 = vsel %vm15037_vm14, %v2003_v22, %v2004_v60  ;;  %v15061_v48 = vld [vmem:[#allocation2 + $0x30] sm:$0xe] }
  0xa5   : > { %v15044_v27 = vld [vmem:[#allocation2 + $0xb8] sm:$0xf]  ;;  %v15054_v43 = vld [vmem:[#allocation2 + $0xbc] sm:$0x1]  ;;  %v15064_v51 = vld [vmem:[#allocation2 + $0x28] sm:$0xf]  ;;  %v11888_v60 = vcombine.low %v15052_v41, %v15059_v47  ;;  %v15077_v22 = vsel %vm15037_vm14, %v11857_v21, %v2008_v61 }
  0xa6   : > { %v1328_v2 = vsel %vm14596_vm8, %v1323_v10, %v1327_v6  ;;  %v1339_v36 = vshll.u32 %v15044_v27, 16  ;;  %v1343_v37 = vshrl.u32 %v15044_v27, 16  ;;  %v11847_v46 = vcombine.low %v932_v35, %v15044_v27  ;;  %v14407_v0 = vld [vmem:[#allocation2 + $0x20] sm:$0x1]  ;;  %v15071_v8 = vld [vmem:[#allocation2 + $0x3c] sm:$0xe] }
  0xa7   : > { %v11822_v12 = vcombine.low %v1318_v9, %v1328_v2  ;;  %v1349_v50 = vshll.u32 %v15054_v43, 16  ;;  %v2022_v55 = vrot.slane %v15064_v51, 5  ;;  %v1332_v56 = vrot.slane %v1330_v23, 4  ;;  %v15068_v9 = vld [vmem:[#allocation2 + $0x34] sm:$0xf]  ;;  %v14199_v2 = vld [vmem:[#allocation2 + $0x18] sm:$0xff]  }
  0xa8   : > { %v1341_v49 = vrot.slane %v1339_v36, 5  ;;  %v1345_v42 = vrot.slane %v1343_v37, 4  ;;  %v1335_v62 = vrot.slane %v1333_v45, 5  ;;  %13313 = vmatmul.mubr.bf16.gmra.mxu1 %v11847_v46  ;;  %v2017_v63 = vrot.slane %v2015_v31, 4  ;;  %v14409_v35 = vld [vmem:[#allocation2 + $0x2c] sm:$0x1] }
  0xa9   : > { %13264 = vmatprep.mubr.bf16.mxu0 %v11822_v12  ;;  %v2018_v1 = vrot.slane %v14407_v0, 5  ;;  %v1351_v6 = vrot.slane %v1349_v50, 5  ;;  %13380 = vmatprep.mubr.bf16.mxu1 %v14198_v24  ;;  %v11859_v7 = vrot.slane %v15046_v33, 9  ;;  %v2029_v10 = vrot.slane %v15068_v9, 5  ;;  %v15083_v12 = vld [vmem:[#allocation2 + $0x48] sm:$0xe] }
  0xaa   : > { %v1346_v5 = vor.u32 %v1345_v42, %v1341_v49  ;;  %v1336_v16 = vor.u32 %v1335_v62, %v1332_v56  ;;  %v15081_v24 = vsel %vm15037_vm14, %v11858_v25, %v2015_v31  ;;  %v2024_v33 = vrot.slane %v2022_v55, 4  ;;  %v14201_v37 = vld [vmem:[#allocation2 + $0x24] sm:$0xff]   ;;  %v15088_v23 = vld [vmem:[#allocation2 + $0x54] sm:$0xe]  ;;  %v14410_v21 = vld [vmem:[#allocation2 + $0x38] sm:$0x1] }
  0xab   : > { %v2025_v36 = vrot.slane %v14409_v35, 5  ;;  %v11860_v41 = vrot.slane %v15061_v48, 9  ;;  %v2032_v45 = vrot.slane %v14410_v21, 5  ;;  %v15090_v46 = vld [vmem:[#allocation2 + $0x40] sm:$0xf]  ;;  %v15104_v48 = vsel %vm15037_vm14, %v2010_v28, %v2011_v18 }
  0xac   : > { %v1347_v29 = vrot.slane %v1346_v5, 4  ;;  %v1337_v61 = vrot.slane %v1336_v16, 4  ;;  %v2036_v25 = vrot.slane %v15090_v46, 5  ;;  %v15093_v31 = vld [vmem:[#allocation2 + $0x4c] sm:$0xf]  ;;  %v2031_v56 = vrot.slane %v2029_v10, 4 }
  0xad   : > { %v19627_v47 = vrot.slane %v15093_v31, 5  ;;  %v15096_v42 = vld [vmem:[#allocation2 + $0x60] sm:$0xe]  ;;  %v1957_v0 = vld [vmem:[#allocation2 + $0x6c] sm:$0xe]  ;;  %v14213_v5 = vld [vmem:[%s19621_s1 + $0x170] sm:$0xff]   ;;  %v15116_v17 = vsel %vm15037_vm14, %v2017_v63, %v2018_v1 }
  0xae   : > { %v1352_v50 = vsel %vm14596_vm8, %v1347_v29, %v1351_v6  ;;  %v1342_v16 = vsel %vm14596_vm8, %v1337_v61, %v1341_v49  ;;  %v15118_v6 = vld [vmem:[#allocation2 + $0x44] sm:$0x1]  ;;  %v15122_v35 = vld [vmem:[#allocation2 + $0x50] sm:$0x1]  ;;  %v2050_v62 = vrot.slane %v14832_v58, 5  ;;  %v15128_v49 = vrot.slane %v2036_v25, 4 }
  0xaf   : > { %v2039_v18 = vrot.slane %v15118_v6, 5  ;;  %v11823_v29 = vcombine.low %v1342_v16, %v1352_v50  ;;  %v15132_v63 = vrot.slane %v19627_v47, 4  ;;  %v11863_v1 = vrot.slane %v15088_v23, 9  ;;  %v1958_v50 = vld [vmem:[#allocation2 + $0x78] sm:$0xe]  ;;  %v14217_v47 = vld [vmem:[%s19621_s1 + $0x168] sm:$0xff]  }
  0xb0   : > { %13381 = vmatmul.mubr.bf16.vlgmr.msra.gmra.mxu1 %v14199_v2  ;;  %v2053_v61 = vrot.slane %v14835_v44, 5  ;;  %v11889_v16 = vcombine.low %v15077_v22, %v15104_v48  ;;  %v11890_v2 = vcombine.low %v15081_v24, %v15116_v17  ;;  %v2057_v28 = vrot.slane %v14861_v59, 5  ;;  %v14202_v24 = vld [vmem:[#allocation2 + $0x30] sm:$0xff]   ;;  %v14415_v17 = vld [vmem:[%s19621_s1 + $0x178] sm:$0xff]   ;;  %v5837_v20 = vld [vmem:[#allocation3 + $0x14] sm:$0x1] }
  0xb1   : > { %13265 = vmatmul.mubr.bf16.gmra.mxu0 %v11823_v29  ;;  %13384 = vmatprep.mubr.bf16.mxu1 %v14201_v37  ;;  %v15149_v29 = vsel %vm15037_vm14, %v11859_v7, %v2022_v55  ;;  %v15153_v22 = vsel %vm15037_vm14, %v2024_v33, %v2025_v36  ;;  %v11865_v37 = vrot.slane %v1957_v0, 9  ;;  %v2064_v48 = vrot.slane %v14892_v39, 5  ;;  %v14204_v21 = vld [vmem:[#allocation2 + $0x3c] sm:$0xff]   ;;  %v15361_v59 = vld [vmem:[#allocation2 + $0x10] sm:$0xf] }
  0xb2   : > { %13332 = vmatprep.mubr.bf16.mxu0 %v11888_v60  ;;  %13461 = vmatpush3.bf16.msra.mxu1 %v14415_v17  ;;  %v1959_v60 = vld [vmem:[#allocation2 + $0x84] sm:$0xe]  ;;  %v15161_v51 = vrot.slane %v2050_v62, 4  ;;  %v2067_v55 = vrot.slane %v14894_v40, 5  ;;  %v11866_v7 = vrot.slane %v1958_v50, 9  ;;  %v2071_v33 = vrot.slane %v14914_v13, 5 }
  0xb3   : > { %13462 = vmatprep.subr.bf16.mxu1 %v14213_v5  ;;  %v15169_v39 = vsel %vm15037_vm14, %v11860_v41, %v2029_v10  ;;  %v15174_v0 = vsel %vm15037_vm14, %v11865_v37, %v2064_v48  ;;  %v2066_v17 = vrot.slane %v2064_v48, 4  ;;  %v14200_v40 = vld [vmem:[%s19621_s1 + $0x130] sm:$0xff]   ;;  %v15181_v13 = vsel %vm15037_vm14, %v2031_v56, %v2032_v45  ;;  %v14218_v45 = vld [vmem:[%s19621_s1 + $0x160] sm:$0xff]   ;;  %v465_v44 = vld [vmem:[%s14565_s8 + $0x7c] sm:$0xf] }
  0xb4   : > { %v15185_v9 = vsel %vm15037_vm14, %v11866_v7, %v2071_v33  ;;  %v2073_v10 = vrot.slane %v2071_v33, 4  ;;  %v2074_v41 = vrot.slane %v14918_v14, 5  ;;  %v11867_v37 = vrot.slane %v1959_v60, 9 }
  0xb5   : > { %v15190_v50 = vsel %vm15037_vm14, %v2066_v17, %v2067_v55  ;;  %v2078_v48 = vrot.slane %v14949_v19, 5  ;;  %v2081_v36 = vrot.slane %v14932_v53, 5  ;;  %v1960_v55 = vld [vmem:[#allocation2 + $0x90] sm:$0xe]  ;;  %v2088_v60 = vrot.slane %v14981_v11, 5 }
  0xb6   : > { %13463 = vmatpush3.bf16.msra.mxu1 %v14213_v5  ;;  %v11897_v56 = vcombine.low %v15174_v0, %v15190_v50  ;;  %v15201_v14 = vsel %vm15037_vm14, %v2073_v10, %v2074_v41  ;;  %v2085_v5 = vrot.slane %v14972_v4, 5  ;;  %v11868_v33 = vrot.slane %v1960_v55, 9  ;;  %v1961_v17 = vld [vmem:[#allocation2 + $0x9c] sm:$0xe]  ;;  %v14203_v10 = vld [vmem:[%s19621_s1 + $0x128] sm:$0xff]  }
  0xb7   : > { %13464 = vmatprep.subr.bf16.mxu1 %v14217_v47  ;;  %v11898_v53 = vcombine.low %v15185_v9, %v15201_v14  ;;  %v15209_v19 = vsel %vm15037_vm14, %v11867_v37, %v2078_v48  ;;  %v2080_v7 = vrot.slane %v2078_v48, 4  ;;  %v11869_v41 = vrot.slane %v1961_v17, 9  ;;  %v14416_v37 = vld [vmem:[%s19621_s1 + $0x138] sm:$0xff]   ;;  %v14205_v48 = vld [vmem:[#allocation2 + $0x48] sm:$0xff]   ;;  %v14223_v17 = vld [vmem:[%s19621_s1 + $0x150] sm:$0xff]  }
  0xb8   : > { %13385 = vmatmul.mubr.bf16.gmra.mxu1 %v14202_v24  ;;  %v2087_v4 = vrot.slane %v2085_v5, 4  ;;  %v2092_v11 = vrot.slane %v15002_v52, 5  ;;  %v2095_v24 = vrot.slane %v15004_v54, 5  ;;  %v14207_v52 = vld [vmem:[#allocation2 + $0x54] sm:$0xff]   ;;  %v19690_v46 = vrot.slane %v15083_v12, 9 }
  0xb9   : > { %13333 = vmatmul.mubr.bf16.vlgmr.msra.gmra.mxu0 %v11889_v16  ;;  %13388 = vmatprep.mubr.bf16.mxu1 %v14204_v21  ;;  %v11891_v16 = vcombine.low %v15149_v29, %v15153_v22  ;;  %v15223_v55 = vsel %vm15037_vm14, %v2080_v7, %v2081_v36  ;;  %v15227_v21 = vsel %vm15037_vm14, %v11868_v33, %v2085_v5  ;;  %v14222_v36 = vld [vmem:[%s19621_s1 + $0x158] sm:$0xff]  }
  0xba   : > { %13413 = vmatpush3.bf16.msra.mxu0 %v14416_v37  ;;  %13336 = vmatprep.mubr.bf16.mxu0 %v11890_v2  ;;  %v11899_v54 = vcombine.low %v15209_v19, %v15223_v55  ;;  %v15233_v2 = vsel %vm15037_vm14, %v2087_v4, %v2088_v60  ;;  %v15237_v29 = vsel %vm15037_vm14, %v11869_v41, %v2092_v11  ;;  %v2094_v22 = vrot.slane %v2092_v11, 4 }
  0xbb   : > { %13414 = vmatprep.subr.bf16.mxu0 %v14200_v40  ;;  %13465 = vmatpush3.bf16.msra.mxu1 %v14217_v47  ;;  %v11892_v5 = vcombine.low %v15169_v39, %v15181_v13  ;;  %v19688_v47 = vrot.slane %v15071_v8, 9  ;;  %v15257_v7 = vsel %vm15037_vm14, %v15128_v49, %v2039_v18  ;;  %v11900_v33 = vcombine.low %v15227_v21, %v15233_v2  ;;  %v1962_v18 = vld [vmem:[#allocation2 + $0xa8] sm:$0xe] }
  0xbc   : > { %13466 = vmatprep.subr.bf16.mxu1 %v14218_v45  ;;  %v19689_v39 = vrot.slane %v15093_v31, 5  ;;  %v15274_v6 = vsel %vm15037_vm14, %v2094_v22, %v2095_v24  ;;  %v2099_v49 = vrot.slane %v15014_v32, 5  ;;  %v2102_v13 = vrot.slane %v15012_v26, 5  ;;  %v1963_v31 = vld [vmem:[#allocation2 + $0xb4] sm:$0xe] }
  0xbd   : > { %v15250_v60 = vsel %vm15037_vm14, %v19688_v47, %v2036_v25  ;;  %v14206_v25 = vld [vmem:[%s19621_s1 + $0x120] sm:$0xff]   ;;  %v11901_v12 = vcombine.low %v15237_v29, %v15274_v6  ;;  %v11870_v4 = vrot.slane %v1962_v18, 9  ;;  %v11871_v41 = vrot.slane %v1963_v31, 9 }
  0xbe   : > { %v15267_v8 = vsel %vm15037_vm14, %v19690_v46, %v19689_v39  ;;  %13415 = vmatpush3.bf16.msra.mxu0 %v14200_v40  ;;  %v2106_v11 = vrot.slane %v15044_v27, 5  ;;  %v11893_v24 = vcombine.low %v15250_v60, %v15257_v7  ;;  %v19691_v32 = vrot.slane %v15122_v35, 5  ;;  %v14210_v46 = vld [vmem:[#allocation2 + $0x6c] sm:$0xff]  }
  0xbf   : > { %13416 = vmatprep.subr.bf16.mxu0 %v14203_v10  ;;  %13467 = vmatpush3.bf16.msra.mxu1 %v14218_v45  ;;  %v2101_v40 = vrot.slane %v2099_v49, 4  ;;  %v2109_v37 = vrot.slane %v15054_v43, 5  ;;  %v2059_v27 = vrot.slane %v2057_v28, 4  ;;  %v15298_v22 = vsel %vm15037_vm14, %v11870_v4, %v2099_v49  ;;  %v381_v45 = vld [vmem:[#allocation2 + $0xc0] sm:$0x1] }
  0xc0   : > { %v15291_v26 = vsel %vm15037_vm14, %v15132_v63, %v19691_v32  ;;  %13389 = vmatmul.mubr.bf16.gmra.mxu1 %v14205_v48  ;;  %13468 = vmatprep.subr.bf16.mxu1 %v14222_v36  ;;  %v15302_v35 = vsel %vm15037_vm14, %v11871_v41, %v2106_v11  ;;  %v2108_v63 = vrot.slane %v2106_v11, 4  ;;  %v15310_v43 = vsel %vm15037_vm14, %v11863_v1, %v2050_v62  ;;  %v464_v62 = vld [vmem:[%s14565_s8 + $0x78] sm:$0xf]  ;;  %v14208_v1 = vld [vmem:[#allocation2 + $0x60] sm:$0xff]   ;;  %v14227_v41 = vld [vmem:[%s19621_s1 + $0x148] sm:$0xff]  }
  0xc1   : > { %13337 = vmatmul.mubr.bf16.gmra.mxu0 %v11891_v16  ;;  %v15317_v48 = vsel %vm15037_vm14, %v15161_v51, %v2053_v61  ;;  %13392 = vmatprep.mubr.bf16.mxu1 %v14207_v52  ;;  %v15322_v16 = vld [vmem:[%s19621_s1 + $0x118] sm:$0xff]   ;;  %v15326_v58 = vsel %vm15037_vm14, %v2101_v40, %v2102_v13  ;;  %v382_v23 = vsel %vm14575_vm5, 0, %v381_v45  ;;  %v724_v52 = vshrl.u32 %v464_v62, 16  ;;  %v2819_v11 = vld [vmem:[#allocation2 + $0xc] sm:$0xf] }
  0xc2   : > { %13340 = vmatprep.mubr.bf16.mxu0 %v11892_v5  ;;  %13417 = vmatpush3.bf16.msra.mxu0 %v14203_v10  ;;  %v11902_v61 = vcombine.low %v15298_v22, %v15326_v58  ;;  %v15336_v51 = vsel %vm15037_vm14, %v2108_v63, %v2109_v37  ;;  %383 = vst [vmem:[#allocation2 + $0xc0] sm:$0x1] %v382_v23  ;;  %v727_v47 = vshll.u32 %v464_v62, 16  ;;  %v732_v5 = vshrl.u32 %v465_v44, 16  ;;  %v15365_v32 = vld [vmem:[#allocation2 + $0x14] sm:$0x1] }
  0xc3   : > { %v11894_v39 = vcombine.low %v15267_v8, %v15291_v26  ;;  %13418 = vmatprep.subr.bf16.mxu0 %v14206_v25  ;;  %13469 = vmatpush3.bf16.msra.mxu1 %v14222_v36  ;;  %v735_v18 = vshll.u32 %v465_v44, 16  ;;  %v11895_v49 = vcombine.low %v15310_v43, %v15317_v48  ;;  %v19692_v13 = vrot.slane %v15096_v42, 9  ;;  %v2822_v45 = vld [vmem:[#allocation2 + $0x18] sm:$0xf]  ;;  %v14214_v62 = vld [vmem:[%s19621_s1 + $0x110] sm:$0xff]  }
  0xc4   : > { %v19693_v8 = vrot.slane %v14878_v15, 5  ;;  %13470 = vmatprep.subr.bf16.mxu1 %v14223_v17  ;;  %v726_v4 = vrot.slane %v724_v52, 7  ;;  %v15363_v42 = vrot.slane %v732_v5, 7  ;;  %v2871_v26 = vshll.u32 %v2819_v11, 16  ;;  %v15380_v5 = vld [vmem:[#allocation2 + $0x1c] sm:$0xf] }
  0xc5   : > { %v15350_v31 = vsel %vm15037_vm14, %v19692_v13, %v2057_v28  ;;  %v2868_v28 = vshrl.u32 %v2819_v11, 16  ;;  %v2877_v15 = vshll.u32 %v15361_v59, 16  ;;  %v2887_v63 = vshll.u32 %v15365_v32, 16  ;;  %v15386_v11 = vld [vmem:[#allocation2 + $0x20] sm:$0x1]  ;;  %v14211_v10 = vld [vmem:[#allocation2 + $0x78] sm:$0xff]  }
  0xc6   : > { %v15356_v36 = vsel %vm15037_vm14, %v2059_v27, %v19693_v8  ;;  %13419 = vmatpush3.bf16.msra.mxu0 %v14206_v25  ;;  %v729_v40 = vor.u32 %v727_v47, %v726_v4  ;;  %v730_v37 = vrot.slane %v726_v4, 4  ;;  %v2881_v27 = vshrl.u32 %v15361_v59, 16  ;;  %v14228_v25 = vld [vmem:[%s19621_s1 + $0x140] sm:$0xff]  }
  0xc7   : > { %v11896_v23 = vcombine.low %v15350_v31, %v15356_v36  ;;  %13420 = vmatprep.subr.bf16.mxu0 %v15322_v16  ;;  %13471 = vmatpush3.bf16.msra.mxu1 %v14223_v17  ;;  %v737_v44 = vor.u32 %v735_v18, %v15363_v42  ;;  %v2870_v52 = vrot.slane %v2868_v28, 4  ;;  %v2873_v47 = vrot.slane %v2871_v26, 5  ;;  %v15394_v18 = vld [vmem:[%s19621_s1 + $0x108] sm:$0xff]  }
  0xc8   : > { %13393 = vmatmul.mubr.bf16.gmra.mxu1 %v14208_v1  ;;  %13472 = vmatprep.subr.bf16.mxu1 %v14227_v41  ;;  %v15382_v13 = vrot.slane %v2877_v15, 5  ;;  %v2883_v8 = vrot.slane %v2881_v27, 4  ;;  %v15384_v4 = vrot.slane %v2887_v63, 5  ;;  %v2892_v17 = vshrl.u32 %v2822_v45, 16  ;;  %v3573_v63 = vld [vmem:[#allocation2 + $0xc] sm:$0xe] }
  0xc9   : > { %13341 = vmatmul.mubr.bf16.gmra.mxu0 %v11893_v24  ;;  %13396 = vmatprep.mubr.bf16.mxu1 %v14210_v46  ;;  %v738_v1 = vsel %vm14616_vm10, %v730_v37, %v737_v44  ;;  %v895_v28 = vld [vmem:[#allocation2 + $0xc0] sm:$0xf]  ;;  %v2874_v26 = vor.u32 %v2873_v47, %v2870_v52  ;;  %v2895_v15 = vshll.u32 %v2822_v45, 16  ;;  %v2901_v27 = vshll.u32 %v15380_v5, 16 }
  0xca   : > { %13344 = vmatprep.mubr.bf16.mxu0 %v11894_v39  ;;  %13421 = vmatpush3.bf16.msra.mxu0 %v15322_v16  ;;  %v896_v60 = vsel %vm14628_vm11, %v729_v40, %v895_v28  ;;  %898 = vst [vmem:[#allocation2 + $0xc4] sm:$0xf] %v738_v1  ;;  %v2884_v7 = vor.u32 %v2883_v8, %v15382_v13  ;;  %v2894_v24 = vrot.slane %v2892_v17, 4  ;;  %v2905_v46 = vshrl.u32 %v15380_v5, 16  ;;  %v15408_v16 = vld [vmem:[%s19621_s1 + $0x1f8] sm:$0xff]   ;;  %v14215_v1 = vld [vmem:[#allocation2 + $0x84] sm:$0xff]  }
  0xcb   : > { %13422 = vmatprep.subr.bf16.mxu0 %v14214_v62  ;;  %897 = vst [vmem:[#allocation2 + $0xc0] sm:$0xf] %v896_v60  ;;  %13473 = vmatpush3.bf16.msra.mxu1 %v14227_v41  ;;  %v2875_v37 = vrot.slane %v2874_v26, 4  ;;  %v2897_v45 = vrot.slane %v2895_v15, 5  ;;  %v2903_v44 = vrot.slane %v2901_v27, 5  ;;  %v2911_v39 = vshll.u32 %v15386_v11, 16 }
  0xcc   : > { %13474 = vmatprep.subr.bf16.mxu1 %v14228_v25  ;;  %v2885_v40 = vrot.slane %v2884_v7, 4  ;;  %v2907_v52 = vrot.slane %v2905_v46, 4  ;;  %v11992_v47 = vrot.slane %v3573_v63, 9  ;;  %v3639_v8 = vrot.slane %v15361_v59, 5  ;;  %v3574_v17 = vld [vmem:[#allocation2 + $0x18] sm:$0xe] }
  0xcd   : > { %v2880_v41 = vsel %vm14596_vm8, %v2875_v37, %v15382_v13  ;;  %v2898_v28 = vor.u32 %v2897_v45, %v2894_v24  ;;  %v2913_v26 = vrot.slane %v2911_v39, 5  ;;  %v3642_v15 = vrot.slane %v15365_v32, 5  ;;  %v2825_v27 = vld [vmem:[#allocation2 + $0x24] sm:$0xf]  ;;  %v15425_v24 = vld [vmem:[#allocation2 + $0x28] sm:$0xf] }
  0xce   : > { %13423 = vmatpush3.bf16.msra.mxu0 %v14214_v62  ;;  %v14224_v60 = vld [vmem:[%s19621_s1 + $0x100] sm:$0xff]   ;;  %v2890_v59 = vsel %vm14596_vm8, %v2885_v40, %v15384_v4  ;;  %v2908_v7 = vor.u32 %v2907_v52, %v2903_v44  ;;  %v15423_v46 = vsel %vm15037_vm14, %v11992_v47, %v3639_v8  ;;  %v3641_v13 = vrot.slane %v3639_v8, 4  ;;  %v15427_v63 = vld [vmem:[#allocation2 + $0x2c] sm:$0x1]  ;;  %v2828_v4 = vld [vmem:[#allocation2 + $0x30] sm:$0xf] }
  0xcf   : > { %13424 = vmatprep.subr.bf16.mxu0 %v15394_v18  ;;  %v739_v32 = vrot.slane %v15363_v42, 4  ;;  %13475 = vmatpush3.bf16.msra.mxu1 %v14228_v25  ;;  %v2899_v62 = vrot.slane %v2898_v28, 4  ;;  %v11993_v37 = vrot.slane %v3574_v17, 9  ;;  %v3646_v45 = vrot.slane %v15380_v5, 5  ;;  %v15437_v8 = vld [vmem:[#allocation2 + $0x34] sm:$0xf] }
  0xd0   : > { %13397 = vmatmul.mubr.bf16.gmra.mxu1 %v14211_v10  ;;  %v2909_v39 = vrot.slane %v2908_v7, 4  ;;  %v15434_v40 = vsel %vm15037_vm14, %v3641_v13, %v3642_v15  ;;  %v3649_v52 = vrot.slane %v15386_v11, 5  ;;  %v2916_v47 = vshrl.u32 %v2825_v27, 16  ;;  %13556 = vmatprep.subr.bf16.mxu1 %v15408_v16  ;;  %v14220_v7 = vld [vmem:[#allocation2 + $0x9c] sm:$0xff]   ;;  %v15967_v42 = vld [vmem:[#allocation2 + $0x2c] sm:$0x1] }
  0xd1   : > { %13345 = vmatmul.mubr.bf16.gmra.mxu0 %v11895_v49  ;;  %13400 = vmatprep.mubr.bf16.mxu1 %v14215_v1  ;;  %v15443_v25 = vcombine.low %v2880_v41, %v2890_v59  ;;  %v2904_v10 = vsel %vm14596_vm8, %v2899_v62, %v2903_v44  ;;  %v12024_v5 = vcombine.low %v15423_v46, %v15434_v40  ;;  %v3648_v17 = vrot.slane %v3646_v45, 4  ;;  %v15461_v44 = vld [vmem:[%s19621_s1 + $0x1b8] sm:$0xff]   ;;  %v14216_v41 = vld [vmem:[#allocation2 + $0x90] sm:$0xff]   ;;  %v3575_v59 = vld [vmem:[#allocation2 + $0x24] sm:$0xe] }
  0xd2   : > { %13348 = vmatprep.mubr.bf16.mxu0 %v11896_v23  ;;  %13425 = vmatpush3.bf16.msra.mxu0 %v15394_v18  ;;  %v2914_v43 = vsel %vm14596_vm8, %v2909_v39, %v2913_v26  ;;  %v2918_v48 = vrot.slane %v2916_v47, 4  ;;  %v2919_v49 = vshll.u32 %v2825_v27, 16  ;;  %v2925_v11 = vshll.u32 %v15425_v24, 16  ;;  %v15469_v18 = vld [vmem:[#allocation2 + $0x38] sm:$0x1] }
  0xd3   : > { %13426 = vmatprep.subr.bf16.mxu0 %v14224_v60  ;;  %v15456_v1 = vcombine.low %v2904_v10, %v2914_v43  ;;  %v15465_v31 = vsel %vm15037_vm14, %v11993_v37, %v3646_v45  ;;  %v2929_v36 = vshrl.u32 %v15425_v24, 16  ;;  %v2935_v23 = vshll.u32 %v15427_v63, 16  ;;  %v3579_v40 = vld [vmem:[#allocation2 + $0x54] sm:$0xe] }
  0xd4   : > { %v15473_v28 = vsel %vm15037_vm14, %v3648_v17, %v3649_v52  ;;  %v2921_v26 = vrot.slane %v2919_v49, 5  ;;  %v2927_v15 = vrot.slane %v2925_v11, 5  ;;  %v2940_v27 = vshrl.u32 %v2828_v4, 16 }
  0xd5   : > { %v2931_v13 = vrot.slane %v2929_v36, 4  ;;  %v2937_v62 = vrot.slane %v2935_v23, 5  ;;  %v2943_v37 = vshll.u32 %v2828_v4, 16  ;;  %v2949_v45 = vshll.u32 %v15437_v8, 16 }
  0xd6   : > { %13427 = vmatpush3.bf16.msra.mxu0 %v14224_v60  ;;  %v2922_v39 = vor.u32 %v2921_v26, %v2918_v48  ;;  %v2942_v47 = vrot.slane %v2940_v27, 4  ;;  %v2953_v10 = vshrl.u32 %v15437_v8, 16  ;;  %v2959_v43 = vshll.u32 %v15469_v18, 16  ;;  %v3576_v48 = vld [vmem:[#allocation2 + $0x30] sm:$0xe] }
  0xd7   : > { %13508 = vmatprep.subr.bf16.mxu0 %v15461_v44  ;;  %v2932_v52 = vor.u32 %v2931_v13, %v2927_v15  ;;  %v2945_v17 = vrot.slane %v2943_v37, 5  ;;  %v2951_v49 = vrot.slane %v2949_v45, 5  ;;  %v11994_v11 = vrot.slane %v3575_v59, 9  ;;  %v2831_v59 = vld [vmem:[#allocation2 + $0x3c] sm:$0xf] }
  0xd8   : > { %13401 = vmatmul.mubr.bf16.gmra.mxu1 %v14216_v41  ;;  %v12025_v36 = vcombine.low %v15465_v31, %v15473_v28  ;;  %v2923_v4 = vrot.slane %v2922_v39, 4  ;;  %v2955_v23 = vrot.slane %v2953_v10, 4  ;;  %v3653_v60 = vrot.slane %v15425_v24, 5  ;;  %v2832_v39 = vld [vmem:[#allocation2 + $0x40] sm:$0xf] }
  0xd9   : > { %13349 = vmatmul.mubr.bf16.gmra.mxu0 %v11897_v56  ;;  %13404 = vmatprep.mubr.bf16.mxu1 %v14220_v7  ;;  %v2933_v26 = vrot.slane %v2932_v52, 4  ;;  %v2946_v27 = vor.u32 %v2945_v17, %v2942_v47  ;;  %v2961_v13 = vrot.slane %v2959_v43, 5  ;;  %v3656_v37 = vrot.slane %v15427_v63, 5  ;;  %v14221_v47 = vld [vmem:[#allocation2 + $0xa8] sm:$0xff]   ;;  %v14225_v43 = vld [vmem:[#allocation2 + $0xb4] sm:$0xff]  }
  0xda   : > { %13352 = vmatprep.mubr.bf16.mxu0 %v11898_v53  ;;  %v2928_v41 = vsel %vm14596_vm8, %v2923_v4, %v2927_v15  ;;  %v2956_v24 = vor.u32 %v2955_v23, %v2951_v49  ;;  %v15493_v45 = vsel %vm15037_vm14, %v11994_v11, %v3653_v60  ;;  %v3655_v0 = vrot.slane %v3653_v60, 4  ;;  %v15503_v15 = vld [vmem:[#allocation2 + $0x44] sm:$0x1]  ;;  %v2834_v11 = vld [vmem:[#allocation2 + $0x48] sm:$0xf] }
  0xdb   : > { %v2938_v50 = vsel %vm14596_vm8, %v2933_v26, %v2937_v62  ;;  %v2947_v56 = vrot.slane %v2946_v27, 4  ;;  %v11995_v7 = vrot.slane %v3576_v48, 9  ;;  %v3660_v63 = vrot.slane %v15437_v8, 5  ;;  %v15513_v48 = vld [vmem:[#allocation2 + $0x4c] sm:$0xf] }
  0xdc   : > { %v2957_v9 = vrot.slane %v2956_v24, 4  ;;  %v15500_v14 = vsel %vm15037_vm14, %v3655_v0, %v3656_v37  ;;  %v3663_v53 = vrot.slane %v15469_v18, 5  ;;  %v2964_v10 = vshrl.u32 %v2831_v59, 16  ;;  %v3577_v24 = vld [vmem:[#allocation2 + $0x3c] sm:$0xe] }
  0xdd   : > { %v15505_v52 = vcombine.low %v2928_v41, %v2938_v50  ;;  %v2952_v62 = vsel %vm14596_vm8, %v2947_v56, %v2951_v49  ;;  %v12026_v8 = vcombine.low %v15493_v45, %v15500_v14  ;;  %v3662_v17 = vrot.slane %v3660_v63, 4  ;;  %v15522_v41 = vld [vmem:[#allocation2 + $0x50] sm:$0x1]  ;;  %v15620_v45 = vld [vmem:[#allocation2 + $0x74] sm:$0x1] }
  0xde   : > { %v2962_v4 = vsel %vm14596_vm8, %v2957_v9, %v2961_v13  ;;  %v2966_v23 = vrot.slane %v2964_v10, 4  ;;  %v2967_v60 = vshll.u32 %v2831_v59, 16  ;;  %v2973_v18 = vshll.u32 %v2832_v39, 16 }
  0xdf   : > { %v15515_v26 = vcombine.low %v2952_v62, %v2962_v4  ;;  %v15519_v27 = vsel %vm15037_vm14, %v11995_v7, %v3660_v63  ;;  %v2977_v49 = vshrl.u32 %v2832_v39, 16  ;;  %v2983_v37 = vshll.u32 %v15503_v15, 16 }
  0xe0   : > { %13405 = vmatmul.mubr.bf16.gmra.mxu1 %v14221_v47  ;;  %v15526_v13 = vsel %vm15037_vm14, %v3662_v17, %v3663_v53  ;;  %v2969_v59 = vrot.slane %v2967_v60, 5  ;;  %v2975_v0 = vrot.slane %v2973_v18, 5  ;;  %v2988_v50 = vshrl.u32 %v2834_v11, 16 }
  0xe1   : > { %13353 = vmatmul.mubr.bf16.gmra.mxu0 %v11899_v54  ;;  %13408 = vmatprep.mubr.bf16.mxu1 %v14225_v43  ;;  %v2979_v56 = vrot.slane %v2977_v49, 4  ;;  %v2985_v7 = vrot.slane %v2983_v37, 5  ;;  %v2991_v63 = vshll.u32 %v2834_v11, 16  ;;  %v2997_v9 = vshll.u32 %v15513_v48, 16  ;;  %v14226_v54 = vld [vmem:[#allocation2 + $0xc0] sm:$0xff]  }
  0xe2   : > { %13356 = vmatprep.mubr.bf16.mxu0 %v11900_v33  ;;  %v2970_v47 = vor.u32 %v2969_v59, %v2966_v23  ;;  %v2990_v53 = vrot.slane %v2988_v50, 4  ;;  %v3001_v10 = vshrl.u32 %v15513_v48, 16  ;;  %v3007_v62 = vshll.u32 %v15522_v41, 16  ;;  %v3578_v49 = vld [vmem:[#allocation2 + $0x48] sm:$0xe] }
  0xe3   : > { %v2980_v17 = vor.u32 %v2979_v56, %v2975_v0  ;;  %v2993_v4 = vrot.slane %v2991_v63, 5  ;;  %v2999_v19 = vrot.slane %v2997_v9, 5  ;;  %v11996_v55 = vrot.slane %v3577_v24, 9  ;;  %v2837_v37 = vld [vmem:[#allocation2 + $0x54] sm:$0xf] }
  0xe4   : > { %v12027_v43 = vcombine.low %v15519_v27, %v15526_v13  ;;  %v2971_v11 = vrot.slane %v2970_v47, 4  ;;  %v3003_v60 = vrot.slane %v3001_v10, 4  ;;  %v3667_v18 = vrot.slane %v2832_v39, 5  ;;  %v15546_v63 = vld [vmem:[#allocation2 + $0x58] sm:$0xf] }
  0xe5   : > { %v2981_v21 = vrot.slane %v2980_v17, 4  ;;  %v2994_v2 = vor.u32 %v2993_v4, %v2990_v53  ;;  %v3009_v33 = vrot.slane %v3007_v62, 5  ;;  %v3670_v23 = vrot.slane %v15503_v15, 5  ;;  %v15548_v9 = vld [vmem:[#allocation2 + $0x5c] sm:$0x1] }
  0xe6   : > { %v2976_v59 = vsel %vm14596_vm8, %v2971_v11, %v2975_v0  ;;  %v3004_v50 = vor.u32 %v3003_v60, %v2999_v19  ;;  %v15544_v24 = vsel %vm15037_vm14, %v11996_v55, %v3667_v18  ;;  %v3669_v56 = vrot.slane %v3667_v18, 4  ;;  %v2840_v10 = vld [vmem:[#allocation2 + $0x60] sm:$0xf]  ;;  %v15558_v55 = vld [vmem:[#allocation2 + $0x64] sm:$0xf] }
  0xe7   : > { %v2986_v39 = vsel %vm14596_vm8, %v2981_v21, %v2985_v7  ;;  %v2995_v47 = vrot.slane %v2994_v2, 4  ;;  %v11997_v53 = vrot.slane %v3578_v49, 9  ;;  %v3674_v15 = vrot.slane %v15513_v48, 5  ;;  %v15572_v11 = vld [vmem:[#allocation2 + $0x68] sm:$0x1] }
  0xe8   : > { %13409 = vmatmul.mubr.bf16.gmra.mxu1 %v14226_v54  ;;  %v3005_v0 = vrot.slane %v3004_v50, 4  ;;  %v15555_v62 = vsel %vm15037_vm14, %v3669_v56, %v3670_v23  ;;  %v3677_v17 = vrot.slane %v15522_v41, 5  ;;  %v3012_v4 = vshrl.u32 %v2837_v37, 16 }
  0xe9   : > { %13357 = vmatmul.mubr.bf16.gmra.mxu0 %v11901_v12  ;;  %13476 = vmatprep.mubr.bf16.mxu1 %v12024_v5  ;;  %v15566_v48 = vcombine.low %v2976_v59, %v2986_v39  ;;  %v3000_v7 = vsel %vm14596_vm8, %v2995_v47, %v2999_v19  ;;  %v12028_v54 = vcombine.low %v15544_v24, %v15555_v62  ;;  %v3676_v41 = vrot.slane %v3674_v15, 4 }
  0xea   : > { %13360 = vmatprep.mubr.bf16.mxu0 %v11902_v61  ;;  %v3010_v29 = vsel %vm14596_vm8, %v3005_v0, %v3009_v33  ;;  %v3014_v6 = vrot.slane %v3012_v4, 4  ;;  %v3015_v12 = vshll.u32 %v2837_v37, 16  ;;  %v3021_v46 = vshll.u32 %v15546_v63, 16  ;;  %v14235_v0 = vld [vmem:[%s19621_s1 + $0x1f0] sm:$0xff]  }
  0xeb   : > { %v15580_v5 = vcombine.low %v3000_v7, %v3010_v29  ;;  %v15584_v19 = vsel %vm15037_vm14, %v11997_v53, %v3674_v15  ;;  %v3025_v60 = vshrl.u32 %v15546_v63, 16  ;;  %v3031_v18 = vshll.u32 %v15548_v9, 16 }
  0xec   : > { %v15590_v22 = vsel %vm15037_vm14, %v3676_v41, %v3677_v17  ;;  %v3017_v58 = vrot.slane %v3015_v12, 5  ;;  %v3023_v61 = vrot.slane %v3021_v46, 5  ;;  %v3036_v49 = vshrl.u32 %v2840_v10, 16  ;;  %v3580_v41 = vld [vmem:[#allocation2 + $0x60] sm:$0xe] }
  0xed   : > { %v3027_v21 = vrot.slane %v3025_v60, 4  ;;  %v3033_v2 = vrot.slane %v3031_v18, 5  ;;  %v3039_v33 = vshll.u32 %v2840_v10, 16  ;;  %v3045_v23 = vshll.u32 %v15558_v55, 16  ;;  %v2846_v60 = vld [vmem:[#allocation2 + $0x78] sm:$0xf] }
  0xee   : > { %v3018_v37 = vor.u32 %v3017_v58, %v3014_v6  ;;  %v3038_v59 = vrot.slane %v3036_v49, 4  ;;  %v3049_v50 = vshrl.u32 %v15558_v55, 16  ;;  %v3055_v56 = vshll.u32 %v15572_v11, 16  ;;  %v14237_v18 = vld [vmem:[%s19621_s1 + $0x1e8] sm:$0xff]  }
  0xef   : > { %v3028_v39 = vor.u32 %v3027_v21, %v3023_v61  ;;  %v3041_v47 = vrot.slane %v3039_v33, 5  ;;  %v3047_v53 = vrot.slane %v3045_v23, 5  ;;  %v11998_v15 = vrot.slane %v3579_v40, 9  ;;  %v15618_v40 = vld [vmem:[#allocation2 + $0x70] sm:$0xf] }
  0xf0   : > { %13477 = vmatmul.mubr.bf16.vlgmr.msra.gmra.mxu1 %v12025_v36  ;;  %v12029_v10 = vcombine.low %v15584_v19, %v15590_v22  ;;  %v3019_v17 = vrot.slane %v3018_v37, 4  ;;  %v3051_v4 = vrot.slane %v3049_v50, 4  ;;  %v3681_v7 = vrot.slane %v15546_v63, 5  ;;  %v2843_v36 = vld [vmem:[#allocation2 + $0x6c] sm:$0xf] }
  0xf1   : > { %v19694_v29 = vcombine.low %v15302_v35, %v15336_v51  ;;  %13480 = vmatprep.mubr.bf16.mxu1 %v12026_v8  ;;  %v3029_v6 = vrot.slane %v3028_v39, 4  ;;  %v3042_v12 = vor.u32 %v3041_v47, %v3038_v59  ;;  %v3057_v31 = vrot.slane %v3055_v56, 5  ;;  %13557 = vmatpush3.bf16.msra.mxu1 %v15408_v16  ;;  %v15634_v21 = vld [vmem:[#allocation2 + $0x7c] sm:$0xf]  ;;  %v15642_v37 = vld [vmem:[#allocation2 + $0x80] sm:$0x1] }
  0xf2   : > { %v3684_v28 = vrot.slane %v15548_v9, 5  ;;  %v3024_v63 = vsel %vm14596_vm8, %v3019_v17, %v3023_v61  ;;  %v3052_v46 = vor.u32 %v3051_v4, %v3047_v53  ;;  %v15616_v35 = vsel %vm15037_vm14, %v11998_v15, %v3681_v7  ;;  %13558 = vmatprep.subr.bf16.mxu1 %v14235_v0  ;;  %v14230_v59 = vld [vmem:[%s19621_s1 + $0x1b0] sm:$0xff]  }
  0xf3   : > { %13361 = vmatmul.mubr.bf16.gmra.mxu0 %v19694_v29  ;;  %v3683_v51 = vrot.slane %v3681_v7, 4  ;;  %v3034_v14 = vsel %vm14596_vm8, %v3029_v6, %v3033_v2  ;;  %v3043_v8 = vrot.slane %v3042_v12, 4  ;;  %v3688_v9 = vrot.slane %v15558_v55, 5  ;;  %v3581_v29 = vld [vmem:[#allocation2 + $0x6c] sm:$0xe]  ;;  %v14238_v6 = vld [vmem:[%s19621_s1 + $0x1e0] sm:$0xff]   ;;  %v15670_v12 = vpop.f32.mrf.mxu1 }
  0xf4   : > { %13428 = vmatprep.mubr.bf16.mxu0 %v15443_v25  ;;  %v11999_v25 = vrot.slane %v3580_v41, 9  ;;  %v3053_v58 = vrot.slane %v3052_v46, 4  ;;  %v3691_v16 = vrot.slane %v15572_v11, 5  ;;  %v3060_v49 = vshrl.u32 %v2843_v36, 16 }
  0xf5   : > { %v15631_v61 = vsel %vm15037_vm14, %v3683_v51, %v3684_v28  ;;  %v15636_v2 = vcombine.low %v3024_v63, %v3034_v14  ;;  %v3048_v55 = vsel %vm14596_vm8, %v3043_v8, %v3047_v53  ;;  %v3690_v23 = vrot.slane %v3688_v9, 4  ;;  %13559 = vmatpush3.bf16.msra.mxu1 %v14235_v0  ;;  %v3582_v14 = vld [vmem:[#allocation2 + $0x78] sm:$0xe] }
  0xf6   : > { %v12030_v33 = vcombine.low %v15616_v35, %v15631_v61  ;;  %v3058_v11 = vsel %vm14596_vm8, %v3053_v58, %v3057_v31  ;;  %v3062_v50 = vrot.slane %v3060_v49, 4  ;;  %v3063_v56 = vshll.u32 %v2843_v36, 16  ;;  %13560 = vmatprep.subr.bf16.mxu1 %v14237_v18  ;;  %v15691_v58 = vpop.f32.mrf.mxu1 }
  0xf7   : > { %v3069_v39 = vshll.u32 %v15618_v40, 16  ;;  %v15650_v47 = vcombine.low %v3048_v55, %v3058_v11  ;;  %v15654_v53 = vsel %vm15037_vm14, %v11999_v25, %v3688_v9  ;;  %v3073_v15 = vshrl.u32 %v15618_v40, 16  ;;  %v2849_v9 = vld [vmem:[#allocation2 + $0x84] sm:$0xf] }
  0xf8   : > { %v3079_v17 = vshll.u32 %v15620_v45, 16  ;;  %13481 = vmatmul.mubr.bf16.gmra.mxu1 %v12027_v43  ;;  %v15663_v4 = vsel %vm15037_vm14, %v3690_v23, %v3691_v16  ;;  %v3065_v0 = vrot.slane %v3063_v56, 5  ;;  %v3084_v41 = vshrl.u32 %v2846_v60, 16  ;;  %v15694_v23 = vld [vmem:[#allocation2 + $0x88] sm:$0xf] }
  0xf9   : > { %v15665_v7 = vrot.slane %v3069_v39, 5  ;;  %13484 = vmatprep.mubr.bf16.mxu1 %v12028_v54  ;;  %v3075_v27 = vrot.slane %v3073_v15, 4  ;;  %v3087_v43 = vshll.u32 %v2846_v60, 16  ;;  %v3093_v31 = vshll.u32 %v15634_v21, 16  ;;  %13561 = vmatpush3.bf16.msra.mxu1 %v14237_v18  ;;  %v14240_v60 = vld [vmem:[%s19621_s1 + $0x1d8] sm:$0xff]  }
  0xfa   : > { %v3081_v13 = vrot.slane %v3079_v17, 5  ;;  %v3066_v28 = vor.u32 %v3065_v0, %v3062_v50  ;;  %v3086_v36 = vrot.slane %v3084_v41, 4  ;;  %v3097_v63 = vshrl.u32 %v15634_v21, 16  ;;  %13562 = vmatprep.subr.bf16.mxu1 %v14238_v6  ;;  %v15703_v39 = vld [vmem:[#allocation2 + $0x8c] sm:$0x1] }
  0xfb   : > { %13429 = vmatmul.mubr.bf16.vlgmr.msra.gmra.mxu0 %v15456_v1  ;;  %v3103_v46 = vshll.u32 %v15642_v37, 16  ;;  %v14231_v1 = vld [vmem:[%s19621_s1 + $0x1a8] sm:$0xff]   ;;  %v3076_v24 = vor.u32 %v3075_v27, %v15665_v7  ;;  %v3089_v62 = vrot.slane %v3087_v43, 5  ;;  %v3095_v54 = vrot.slane %v3093_v31, 5  ;;  %v15721_v31 = vld [vmem:[#allocation2 + $0x94] sm:$0xf] }
  0xfc   : > { %13509 = vmatpush3.bf16.msra.mxu0 %v15461_v44  ;;  %13432 = vmatprep.mubr.bf16.mxu0 %v15505_v52  ;;  %v12000_v51 = vrot.slane %v3581_v29, 9  ;;  %v12031_v44 = vcombine.low %v15654_v53, %v15663_v4  ;;  %v3067_v52 = vrot.slane %v3066_v28, 4  ;;  %v3099_v8 = vrot.slane %v3097_v63, 4  ;;  %v15711_v41 = vpop.f32.mrf.mxu0 }
  0xfd   : > { %13510 = vmatprep.subr.bf16.mxu0 %v14230_v59  ;;  %v3695_v25 = vrot.slane %v15618_v40, 5  ;;  %v3077_v16 = vrot.slane %v3076_v24, 4  ;;  %v3090_v49 = vor.u32 %v3089_v62, %v3086_v36  ;;  %v3105_v55 = vrot.slane %v3103_v46, 5  ;;  %13563 = vmatpush3.bf16.msra.mxu1 %v14238_v6  ;;  %v15726_v6 = vpop.f32.mrf.mxu1 }
  0xfe   : > { %v3698_v18 = vrot.slane %v15620_v45, 5  ;;  %v3072_v40 = vsel %vm14596_vm8, %v3067_v52, %v15665_v7  ;;  %v3100_v11 = vor.u32 %v3099_v8, %v3095_v54  ;;  %v14232_v45 = vld [vmem:[%s19621_s1 + $0x1a0] sm:$0xff]   ;;  %v12001_v17 = vrot.slane %v3582_v14, 9  ;;  %v2852_v7 = vld [vmem:[#allocation2 + $0x90] sm:$0xf]  ;;  %13564 = vmatprep.subr.bf16.mxu1 %v14240_v60  ;;  %v15755_v24 = vpop.f32.mrf.mxu0  ;;  %v14243_v8 = vld [vmem:[%s19621_s1 + $0x1c8] sm:$0xff]  }
  0xff   : > { %v15701_v50 = vsel %vm15037_vm14, %v12000_v51, %v3695_v25  ;;  %v3697_v56 = vrot.slane %v3695_v25, 4  ;;  %v3091_v15 = vrot.slane %v3090_v49, 4  ;;  %v3702_v0 = vrot.slane %v15634_v21, 5  ;;  %v14241_v21 = vld [vmem:[%s19621_s1 + $0x1d0] sm:$0xff]   ;;  %v3583_v52 = vld [vmem:[#allocation2 + $0x84] sm:$0xe]  ;;  %v15766_v25 = vpop.f32.mrf.mxu1 }
 0x100   : > { %13511 = vmatpush3.bf16.msra.mxu0 %v14230_v59  ;;  %v3082_v59 = vsel %vm14596_vm8, %v3077_v16, %v3081_v13  ;;  %13485 = vmatmul.mubr.bf16.gmra.mxu1 %v12029_v10  ;;  %v3101_v29 = vrot.slane %v3100_v11, 4  ;;  %v3705_v43 = vrot.slane %v15642_v37, 5  ;;  %v3108_v13 = vshrl.u32 %v2849_v9, 16  ;;  %19695 = vst [vmem:[#allocation13_spill] sm:$0xff] %v15766_v25 }
 0x101   : > { %13512 = vmatprep.subr.bf16.mxu0 %v14231_v1  ;;  %v15718_v27 = vsel %vm15037_vm14, %v3697_v56, %v3698_v18  ;;  %13488 = vmatprep.mubr.bf16.mxu1 %v12030_v33  ;;  %v15732_v19 = vcombine.low %v3072_v40, %v3082_v59  ;;  %v3096_v22 = vsel %vm14596_vm8, %v3091_v15, %v3095_v54  ;;  %v3704_v37 = vrot.slane %v3702_v0, 4  ;;  %v14233_v33 = vld [vmem:[%s19621_s1 + $0x198] sm:$0xff]   ;;  %v3584_v56 = vld [vmem:[#allocation2 + $0x90] sm:$0xe] }
 0x102   : > { %v12032_v10 = vcombine.low %v15701_v50, %v15718_v27  ;;  %v3106_v28 = vsel %vm14596_vm8, %v3101_v29, %v3105_v55  ;;  %v3111_v36 = vshll.u32 %v2849_v9, 16  ;;  %v3117_v35 = vshll.u32 %v15694_v23, 16  ;;  %13565 = vmatpush3.bf16.msra.mxu1 %v14240_v60  ;;  %v14236_v50 = vld [vmem:[%s19621_s1 + $0x190] sm:$0xff]   ;;  %v15780_v29 = vpop.f32.mrf.mxu0 }
 0x103   : > { %13433 = vmatmul.mubr.bf16.gmra.mxu0 %v15515_v26  ;;  %v3110_v26 = vrot.slane %v3108_v13, 4  ;;  %v15742_v61 = vcombine.low %v3096_v22, %v3106_v28  ;;  %v15749_v63 = vsel %vm15037_vm14, %v12001_v17, %v3702_v0  ;;  %v3127_v46 = vshll.u32 %v15703_v39, 16  ;;  %13566 = vmatprep.subr.bf16.mxu1 %v14241_v21 }
 0x104   : > { %13436 = vmatprep.mubr.bf16.mxu0 %v15566_v48  ;;  %13513 = vmatpush3.bf16.msra.mxu0 %v14231_v1  ;;  %v3121_v48 = vshrl.u32 %v15694_v23, 16  ;;  %v15753_v1 = vld [vmem:[#allocation2 + $0x98] sm:$0x1]  ;;  %v15759_v62 = vsel %vm15037_vm14, %v3704_v37, %v3705_v43  ;;  %v3113_v54 = vrot.slane %v3111_v36, 5  ;;  %v15761_v51 = vrot.slane %v3117_v35, 5  ;;  %v15788_v37 = vpop.f32.mrf.mxu1 }
 0x105   : > { %13514 = vmatprep.subr.bf16.mxu0 %v14232_v45  ;;  %v3132_v14 = vshrl.u32 %v2852_v7, 16  ;;  %v3129_v60 = vrot.slane %v3127_v46, 5  ;;  %v3135_v16 = vshll.u32 %v2852_v7, 16  ;;  %v3141_v49 = vshll.u32 %v15721_v31, 16  ;;  %v2855_v7 = vld [vmem:[#allocation2 + $0x9c] sm:$0xf] }
 0x106   : > { %v3123_v9 = vrot.slane %v3121_v48, 4  ;;  %v3114_v55 = vor.u32 %v3113_v54, %v3110_v26  ;;  %v3145_v40 = vshrl.u32 %v15721_v31, 16  ;;  %v3151_v11 = vshll.u32 %v15753_v1, 16  ;;  %13567 = vmatpush3.bf16.msra.mxu1 %v14241_v21  ;;  %v2858_v48 = vld [vmem:[#allocation2 + $0xa8] sm:$0xf]  ;;  %v15812_v54 = vpop.f32.mrf.mxu0 }
 0x107   : > { %v3134_v18 = vrot.slane %v3132_v14, 4  ;;  %v3137_v15 = vrot.slane %v3135_v16, 5  ;;  %v15775_v17 = vrot.slane %v3141_v49, 5  ;;  %v12002_v0 = vrot.slane %v3583_v52, 9  ;;  %13568 = vmatprep.subr.bf16.mxu1 %v14243_v8  ;;  %v14239_v46 = vld [vmem:[%s19621_s1 + $0x188] sm:$0xff]   ;;  %19696 = vst [vmem:[#allocation14_spill] sm:$0xff] %v15812_v54 }
 0x108   : > { %13515 = vmatpush3.bf16.msra.mxu0 %v14232_v45  ;;  %v3124_v59 = vor.u32 %v3123_v9, %v15761_v51  ;;  %v14244_v45 = vld [vmem:[%s19621_s1 + $0x1c0] sm:$0xff]   ;;  %13489 = vmatmul.mubr.bf16.gmra.mxu1 %v12031_v44  ;;  %v3115_v27 = vrot.slane %v3114_v55, 4  ;;  %v3147_v43 = vrot.slane %v3145_v40, 4  ;;  %v15785_v13 = vrot.slane %v3151_v11, 5  ;;  %v3585_v11 = vld [vmem:[#allocation2 + $0x9c] sm:$0xe] }
 0x109   : > { %13516 = vmatprep.subr.bf16.mxu0 %v14233_v33  ;;  %v3709_v22 = vrot.slane %v15694_v23, 5  ;;  %13492 = vmatprep.mubr.bf16.mxu1 %v12032_v10  ;;  %v3138_v28 = vor.u32 %v3137_v15, %v3134_v18  ;;  %v3712_v26 = vrot.slane %v15703_v39, 5  ;;  %v12003_v36 = vrot.slane %v3584_v56, 9  ;;  %v15801_v10 = vld [vmem:[#allocation2 + $0xa4] sm:$0x1] }
 0x10a   : > { %v3125_v21 = vrot.slane %v3124_v59, 4  ;;  %v3120_v53 = vsel %vm14596_vm8, %v3115_v27, %v15761_v51  ;;  %v3148_v4 = vor.u32 %v3147_v43, %v15775_v17  ;;  %13569 = vmatpush3.bf16.msra.mxu1 %v14243_v8  ;;  %v12033_v51 = vcombine.low %v15749_v63, %v15759_v62  ;;  %v15830_v63 = vld [vmem:[#allocation2 + $0xb0] sm:$0x1]  ;;  %v14242_v56 = vld [vmem:[%s19621_s1 + $0x180] sm:$0xff]  }
 0x10b   : > { %13437 = vmatmul.mubr.bf16.gmra.mxu0 %v15580_v5  ;;  %v3710_v44 = vsel %vm15037_vm14, %v12002_v0, %v3709_v22  ;;  %v3711_v23 = vrot.slane %v3709_v22, 4  ;;  %v15799_v5 = vld [vmem:[#allocation2 + $0xa0] sm:$0xf]  ;;  %v15805_v35 = vrot.slane %v3138_v28, 4  ;;  %v3156_v9 = vshrl.u32 %v2855_v7, 16  ;;  %13570 = vmatprep.subr.bf16.mxu1 %v14244_v45 }
 0x10c   : > { %13440 = vmatprep.mubr.bf16.mxu0 %v15636_v2  ;;  %13517 = vmatpush3.bf16.msra.mxu0 %v14233_v33  ;;  %v3130_v39 = vsel %vm14596_vm8, %v3125_v21, %v3129_v60  ;;  %v3716_v2 = vrot.slane %v15721_v31, 5  ;;  %v3719_v33 = vrot.slane %v15753_v1, 5  ;;  %v15816_v14 = vrot.slane %v3148_v4, 4  ;;  %v15820_v31 = vld [vmem:[#allocation2 + $0xac] sm:$0xf]  ;;  %v15822_v1 = vpop.f32.mrf.mxu1 }
 0x10d   : > { %13518 = vmatprep.subr.bf16.mxu0 %v14236_v50  ;;  %v3713_v52 = vsel %vm15037_vm14, %v3711_v23, %v3712_v26  ;;  %v15824_v60 = vcombine.low %v3120_v53, %v3130_v39  ;;  %v3144_v62 = vsel %vm14596_vm8, %v15805_v35, %v15775_v17  ;;  %v3158_v55 = vrot.slane %v3156_v9, 4  ;;  %v3586_v39 = vld [vmem:[#allocation2 + $0xa8] sm:$0xe] }
 0x10e   : > { %v12034_v16 = vcombine.low %v3710_v44, %v3713_v52  ;;  %v15828_v8 = vsel %vm15037_vm14, %v12003_v36, %v3716_v2  ;;  %v3718_v49 = vrot.slane %v3716_v2, 4  ;;  %v3159_v18 = vshll.u32 %v2855_v7, 16  ;;  %13571 = vmatpush3.bf16.msra.mxu1 %v14244_v45  ;;  %v15848_v7 = vpop.f32.mrf.mxu0  ;;  %v15851_v28 = vpop.f32.mrf.mxu1 }
 0x10f   : > { %v3165_v40 = vshll.u32 %v15799_v5, 16  ;;  %v3154_v59 = vsel %vm14596_vm8, %v15816_v14, %v15785_v13  ;;  %v3169_v0 = vshrl.u32 %v15799_v5, 16  ;;  %v3180_v21 = vshrl.u32 %v2858_v48, 16 }
 0x110   : > { %13519 = vmatpush3.bf16.msra.mxu0 %v14236_v50  ;;  %v3720_v15 = vsel %vm15037_vm14, %v3718_v49, %v3719_v33  ;;  %v3175_v50 = vshll.u32 %v15801_v10, 16  ;;  %13493 = vmatmul.mubr.bf16.gmra.mxu1 %v12033_v51  ;;  %v3161_v43 = vrot.slane %v3159_v18, 5  ;;  %v3183_v36 = vshll.u32 %v2858_v48, 16  ;;  %v15863_v48 = vld [vmem:[%s19621_s1 + $0x238] sm:$0xff]  }
 0x111   : > { %13520 = vmatprep.subr.bf16.mxu0 %v14239_v46  ;;  %v12035_v27 = vcombine.low %v15828_v8, %v3720_v15  ;;  %v3167_v22 = vrot.slane %v3165_v40, 5  ;;  %13496 = vmatprep.mubr.bf16.mxu1 %v12034_v16  ;;  %v3171_v13 = vrot.slane %v3169_v0, 4  ;;  %v3189_v53 = vshll.u32 %v15820_v31, 16  ;;  %v15870_v16 = vpop.f32.mrf.mxu1  ;;  %v2861_v40 = vld [vmem:[#allocation2 + $0xb4] sm:$0xf] }
 0x112   : > { %v3177_v26 = vrot.slane %v3175_v50, 5  ;;  %v3162_v45 = vor.u32 %v3161_v43, %v3158_v55  ;;  %v3182_v4 = vrot.slane %v3180_v21, 4  ;;  %v3193_v44 = vshrl.u32 %v15820_v31, 16  ;;  %19697 = vst [vmem:[#allocation15_spill] sm:$0xff] %v15870_v16  ;;  %v15878_v43 = vld [vmem:[#allocation2 + $0xb8] sm:$0xf] }
 0x113   : > { %13441 = vmatmul.mubr.bf16.gmra.mxu0 %v15650_v47  ;;  %v3199_v23 = vshll.u32 %v15830_v63, 16  ;;  %v3172_v2 = vor.u32 %v3171_v13, %v3167_v22  ;;  %v3185_v33 = vrot.slane %v3183_v36, 5  ;;  %v15858_v51 = vrot.slane %v3189_v53, 5  ;;  %v431_v36 = vld [vmem:[#allocation2 + $0xc8] sm:$0x1]  ;;  %v14254_v16 = vld [vmem:[#allocation2 + $0x60] sm:$0xff]  }
 0x114   : > { %13444 = vmatprep.mubr.bf16.mxu0 %v15732_v19  ;;  %13521 = vmatpush3.bf16.msra.mxu0 %v14239_v46  ;;  %v12004_v47 = vrot.slane %v3585_v11, 9  ;;  %v15865_v19 = vpop.f32.mrf.mxu0  ;;  %v3163_v14 = vrot.slane %v3162_v45, 4  ;;  %v3195_v52 = vrot.slane %v3193_v44, 4  ;;  %v3723_v46 = vrot.slane %v15799_v5, 5  ;;  %v15880_v5 = vld [vmem:[#allocation2 + $0xbc] sm:$0x1]  ;;  %v15898_v44 = vpop.f32.mrf.mxu1 }
 0x115   : > { %13522 = vmatprep.subr.bf16.mxu0 %v14242_v56  ;;  %v15867_v9 = vrot.slane %v3199_v23, 5  ;;  %v3173_v8 = vrot.slane %v3172_v2, 4  ;;  %v3186_v49 = vor.u32 %v3185_v33, %v3182_v4  ;;  %v3726_v55 = vrot.slane %v15801_v10, 5 }
 0x116   : > { %v12005_v18 = vrot.slane %v3586_v39, 9  ;;  %v3168_v11 = vsel %vm14596_vm8, %v3163_v14, %v3167_v22  ;;  %v3196_v15 = vor.u32 %v3195_v52, %v15858_v51  ;;  %v3724_v0 = vsel %vm15037_vm14, %v12004_v47, %v3723_v46  ;;  %v15889_v53 = vpop.f32.mrf.mxu0  ;;  %v15916_v47 = vld [vmem:[#allocation2 + $0xc4] sm:$0xf]  ;;  %v3587_v14 = vld [vmem:[#allocation2 + $0xb4] sm:$0xe] }
 0x117   : > { %v3725_v50 = vrot.slane %v3723_v46, 4  ;;  %v3178_v21 = vsel %vm14596_vm8, %v3173_v8, %v3177_v26  ;;  %v15884_v10 = vrot.slane %v3186_v49, 4  ;;  %v3730_v13 = vrot.slane %v15820_v31, 5  ;;  %v2864_v31 = vld [vmem:[#allocation2 + $0xc0] sm:$0xf] }
 0x118   : > { %13523 = vmatpush3.bf16.msra.mxu0 %v14242_v56  ;;  %v3733_v22 = vrot.slane %v15830_v63, 5  ;;  %v11979_v56 = vcombine.low %v3144_v62, %v3154_v59  ;;  %13497 = vmatmul.mubr.bf16.gmra.mxu1 %v12035_v27  ;;  %v3197_v45 = vrot.slane %v3196_v15, 4  ;;  %v3204_v4 = vshrl.u32 %v2861_v40, 16 }
 0x119   : > { %13604 = vmatprep.subr.bf16.mxu0 %v15863_v48  ;;  %v3727_v26 = vsel %vm15037_vm14, %v3725_v50, %v3726_v55  ;;  %v11980_v63 = vcombine.low %v3168_v11, %v3178_v21  ;;  %v3731_v39 = vsel %vm15037_vm14, %v12005_v18, %v3730_v13  ;;  %v3732_v2 = vrot.slane %v3730_v13, 4 }
 0x11a   : > { %v12036_v23 = vcombine.low %v3724_v0, %v3727_v26  ;;  %v3192_v17 = vsel %vm14596_vm8, %v15884_v10, %v15858_v51  ;;  %v3206_v35 = vrot.slane %v3204_v4, 4  ;;  %v3207_v62 = vshll.u32 %v2861_v40, 16  ;;  %v15918_v51 = vpop.f32.mrf.mxu0  ;;  %v15927_v26 = vld [vmem:[#allocation2 + $0xc0] sm:$0xe] }
 0x11b   : > { %13445 = vmatmul.mubr.bf16.gmra.mxu0 %v15742_v61  ;;  %v3213_v59 = vshll.u32 %v15878_v43, 16  ;;  %v3202_v61 = vsel %vm14596_vm8, %v3197_v45, %v15867_v9  ;;  %v3734_v27 = vsel %vm15037_vm14, %v3732_v2, %v3733_v22  ;;  %v3217_v33 = vshrl.u32 %v15878_v43, 16  ;;  %19698 = vst [vmem:[#allocation16_spill] sm:$0xff] %v15918_v51  ;;  %v15922_v9 = vpop.f32.mrf.mxu1 }
 0x11c   : > { %13448 = vmatprep.mubr.bf16.mxu0 %v15824_v60  ;;  %13500 = vmatprep.mubr.bf16.mxu1 %v12036_v23  ;;  %v3223_v60 = vshll.u32 %v15880_v5, 16  ;;  %v12037_v52 = vcombine.low %v3731_v39, %v3734_v27  ;;  %v3209_v46 = vrot.slane %v3207_v62, 5  ;;  %v432_v49 = vsel %vm14583_vm7, 0, %v431_v36  ;;  %v15929_v36 = vpop.f32.mrf.mxu0 }
 0x11d   : > { %v3215_v8 = vrot.slane %v3213_v59, 5  ;;  %v3219_v55 = vrot.slane %v3217_v33, 4  ;;  %433 = vst [vmem:[#allocation2 + $0xc8] sm:$0x1] %v432_v49  ;;  %v3228_v40 = vshrl.u32 %v2864_v31, 16  ;;  %v3231_v11 = vshll.u32 %v2864_v31, 16  ;;  %v15934_v2 = vpop.f32.mrf.mxu1 }
 0x11e   : > { %v3225_v18 = vrot.slane %v3223_v60, 5  ;;  %v3210_v15 = vor.u32 %v3209_v46, %v3206_v35  ;;  %v3237_v0 = vshll.u32 %v15916_v47, 16  ;;  %v3241_v50 = vshrl.u32 %v15916_v47, 16  ;;  %v4458_v33 = vld [vmem:[#allocation2 + $0x18] sm:$0xf]  ;;  %v15948_v49 = vpop.f32.mrf.mxu0 }
 0x11f   : > { %v12006_v21 = vrot.slane %v3587_v14, 9  ;;  %v3220_v10 = vor.u32 %v3219_v55, %v3215_v8  ;;  %v3230_v13 = vrot.slane %v3228_v40, 4  ;;  %v3233_v22 = vrot.slane %v3231_v11, 5  ;;  %v4460_v46 = vld [vmem:[#allocation2 + $0x20] sm:$0x1]  ;;  %v15953_v40 = vpop.f32.mrf.mxu1 }
 0x120   : > { %v3737_v45 = vrot.slane %v15878_v43, 5  ;;  %13501 = vmatmul.mubr.bf16.gmra.mxu1 %v12037_v52  ;;  %v3211_v4 = vrot.slane %v3210_v15, 4  ;;  %v15931_v23 = vrot.slane %v3237_v0, 5  ;;  %v3243_v31 = vrot.slane %v3241_v50, 4  ;;  %v4459_v52 = vld [vmem:[#allocation2 + $0x1c] sm:$0xf] }
 0x121   : > { %v3740_v39 = vrot.slane %v15880_v5, 5  ;;  %v3221_v35 = vrot.slane %v3220_v10, 4  ;;  %v3234_v62 = vor.u32 %v3233_v22, %v3230_v13  ;;  %v11981_v60 = vcombine.low %v3192_v17, %v3202_v61  ;;  %19699 = vst [vmem:[#allocation17_spill] sm:$0xff] %v15953_v40  ;;  %v15961_v13 = vld [vmem:[#allocation2 + $0x28] sm:$0xf] }
 0x122   : > { %v3738_v59 = vsel %vm15037_vm14, %v12006_v21, %v3737_v45  ;;  %v3739_v43 = vrot.slane %v3737_v45, 4  ;;  %v3216_v27 = vsel %vm14596_vm8, %v3211_v4, %v3215_v8  ;;  %v3244_v55 = vor.u32 %v3243_v31, %v15931_v23 }
 0x123   : > { %13449 = vmatmul.mubr.bf16.gmra.mxu0 %v11979_v56  ;;  %v3226_v14 = vsel %vm14596_vm8, %v3221_v35, %v3225_v18  ;;  %v15946_v56 = vadd.f32 %v15670_v12, %v15711_v41  ;;  %v12007_v17 = vrot.slane %v15927_v26, 9  ;;  %v3744_v61 = vrot.slane %v15916_v47, 5  ;;  %v4461_v18 = vld [vmem:[#allocation2 + $0x24] sm:$0xf]  ;;  %v15969_v26 = vpop.f32.mrf.mxu0 }
 0x124   : > { %13452 = vmatprep.mubr.bf16.mxu0 %v11980_v63  ;;  %v3741_v5 = vsel %vm15037_vm14, %v3739_v43, %v3740_v39  ;;  %v899_v63 = vld [vmem:[#allocation2 + $0xc8] sm:$0x1]  ;;  %v11982_v11 = vcombine.low %v3216_v27, %v3226_v14  ;;  %v15959_v41 = vrot.slane %v3234_v62, 4  ;;  %v4507_v15 = vshrl.u32 %v4458_v33, 16  ;;  %v15971_v62 = vpop.f32.mrf.mxu1 }
 0x125   : > { %v12038_v8 = vcombine.low %v3738_v59, %v3741_v5  ;;  %v900_v12 = vsel %vm14575_vm5, %v739_v32, %v899_v63  ;;  %v4510_v0 = vshll.u32 %v4458_v33, 16  ;;  %v4516_v50 = vshll.u32 %v4459_v52, 16 }
 0x126   : > { %901 = vst [vmem:[#allocation2 + $0xc8] sm:$0x1] %v900_v12  ;;  %v4520_v21 = vshrl.u32 %v4459_v52, 16  ;;  %v4526_v10 = vshll.u32 %v4460_v46, 16  ;;  %v4509_v47 = vrot.slane %v4507_v15, 4  ;;  %v15965_v22 = vadd.f32 %v15691_v58, %v15755_v24 }
 0x127   : > { %13504 = vmatprep.mubr.bf16.mxu1 %v12038_v8  ;;  %v4531_v45 = vshrl.u32 %v4461_v18, 16  ;;  %v4534_v32 = vshll.u32 %v4461_v18, 16  ;;  %v3245_v4 = vrot.slane %v3244_v55, 4  ;;  %v4512_v31 = vrot.slane %v4510_v0, 5  ;;  %v15980_v8 = vpop.f32.mrf.mxu0  ;;  %v15986_v0 = vpop.f32.mrf.mxu1 }
 0x128   : > { %v4518_v39 = vrot.slane %v4516_v50, 5  ;;  %v4522_v35 = vrot.slane %v4520_v21, 4  ;;  %v4540_v27 = vshll.u32 %v15961_v13, 16  ;;  %v4544_v58 = vshrl.u32 %v15961_v13, 16  ;;  %19700 = vst [vmem:[#allocation18_spill] sm:$0xff] %v15980_v8 }
 0x129   : > { %v4533_v59 = vrot.slane %v4531_v45, 4  ;;  %v4536_v43 = vrot.slane %v4534_v32, 5  ;;  %v4513_v24 = vor.u32 %v4512_v31, %v4509_v47  ;;  %v4528_v14 = vrot.slane %v4526_v10, 5  ;;  %v15993_v45 = vld [vmem:[#allocation2 + $0x34] sm:$0xf] }
 0x12a   : > { %v4523_v33 = vor.u32 %v4522_v35, %v4518_v39  ;;  %v4550_v5 = vshll.u32 %v15967_v42, 16  ;;  %v3745_v52 = vsel %vm15037_vm14, %v12007_v17, %v3744_v61  ;;  %v15978_v63 = vrot.slane %v4540_v27, 5  ;;  %v4468_v27 = vld [vmem:[#allocation2 + $0x40] sm:$0xf] }
 0x12b   : > { %13453 = vmatmul.mubr.bf16.gmra.mxu0 %v11981_v60  ;;  %v4537_v46 = vor.u32 %v4536_v43, %v4533_v59  ;;  %v4546_v55 = vrot.slane %v4544_v58, 4  ;;  %v4464_v60 = vld [vmem:[#allocation2 + $0x30] sm:$0xf]  ;;  %v3746_v18 = vrot.slane %v3744_v61, 4  ;;  %v4514_v12 = vrot.slane %v4513_v24, 4  ;;  %v16003_v58 = vpop.f32.mrf.mxu0 }
 0x12c   : > { %13456 = vmatprep.mubr.bf16.mxu0 %v11982_v11  ;;  %v4524_v15 = vrot.slane %v4523_v33, 4  ;;  %v15984_v11 = vadd.f32 %v15726_v6, %v15780_v29  ;;  %v4552_v10 = vrot.slane %v4550_v5, 5  ;;  %v15991_v47 = vadd.f32 %v15788_v37, %v15848_v7  ;;  %v4466_v29 = vld [vmem:[#allocation2 + $0x38] sm:$0x1]  ;;  %v4467_v7 = vld [vmem:[#allocation2 + $0x3c] sm:$0xf] }
 0x12d   : > { %v2866_v50 = vld [vmem:[#allocation2 + $0xc8] sm:$0x1]  ;;  %v4538_v21 = vrot.slane %v4537_v46, 4  ;;  %v4547_v17 = vor.u32 %v4546_v55, %v15978_v63  ;;  %v4519_v31 = vsel %vm14596_vm8, %v4514_v12, %v4518_v39  ;;  %v3240_v35 = vsel %vm14596_vm8, %v15959_v41, %v15931_v23  ;;  %v14245_v33 = vld [vmem:[#allocation2 + $0x18] sm:$0xff]   ;;  %v16008_v46 = vld [vmem:[#allocation2 + $0x44] sm:$0x1]  ;;  %v16010_v55 = vpop.f32.mrf.mxu1 }
 0x12e   : > { %v3247_v61 = vshll.u32 %v2866_v50, 16  ;;  %v3747_v32 = vrot.slane %v2866_v50, 5  ;;  %v4529_v6 = vsel %vm14596_vm8, %v4524_v15, %v4528_v14  ;;  %v4555_v37 = vshrl.u32 %v4464_v60, 16 }
 0x12f   : > { %v12104_v59 = vcombine.low %v4519_v31, %v4529_v6  ;;  %v4548_v43 = vrot.slane %v4547_v17, 4  ;;  %v4558_v5 = vshll.u32 %v4464_v60, 16  ;;  %v4564_v14 = vshll.u32 %v15993_v45, 16 }
 0x130   : > { %v3249_v24 = vrot.slane %v3247_v61, 5  ;;  %v3748_v39 = vsel %vm15037_vm14, %v3746_v18, %v3747_v32  ;;  %v4543_v41 = vsel %vm14596_vm8, %v4538_v21, %v15978_v63  ;;  %v4557_v12 = vrot.slane %v4555_v37, 4  ;;  %v16024_v63 = vpop.f32.mrf.mxu0 }
 0x131   : > { %v12039_v23 = vcombine.low %v3745_v52, %v3748_v39  ;;  %v4568_v15 = vshrl.u32 %v15993_v45, 16  ;;  %v4553_v60 = vsel %vm14596_vm8, %v4548_v43, %v4552_v10  ;;  %v4560_v18 = vrot.slane %v4558_v5, 5 }
 0x132   : > { %v3250_v50 = vsel %vm14596_vm8, %v3245_v4, %v3249_v24  ;;  %v4566_v17 = vrot.slane %v4564_v14, 5  ;;  %v4574_v31 = vshll.u32 %v4466_v29, 16  ;;  %v16022_v52 = vadd.f32 %v15822_v1, %v15865_v19  ;;  %v16026_v24 = vpop.f32.mrf.mxu1  ;;  %v4470_v14 = vld [vmem:[#allocation2 + $0x48] sm:$0xf] }
 0x133   : > { %v11983_v61 = vcombine.low %v3240_v35, %v3250_v50  ;;  %13505 = vmatmul.mubr.bf16.gmra.mxu1 %v12039_v23  ;;  %v4570_v32 = vrot.slane %v4568_v15, 4  ;;  %v4561_v21 = vor.u32 %v4560_v18, %v4557_v12  ;;  %v4579_v6 = vshrl.u32 %v4467_v7, 16  ;;  %19701 = vst [vmem:[#allocation19_spill] sm:$0xff] %v16026_v24  ;;  %v16029_v15 = vld [vmem:[#allocation2 + $0x4c] sm:$0xf]  ;;  %v16033_v50 = vpop.f32.mrf.mxu0  ;;  %v14246_v18 = vld [vmem:[#allocation2 + $0x24] sm:$0xff]  }
 0x134   : > { %13572 = vmatprep.mubr.bf16.mxu1 %v12104_v59  ;;  %v4582_v37 = vshll.u32 %v4467_v7, 16  ;;  %v4588_v4 = vshll.u32 %v4468_v27, 16  ;;  %v4576_v43 = vrot.slane %v4574_v31, 5  ;;  %v4592_v35 = vshrl.u32 %v4468_v27, 16  ;;  %v16031_v7 = vld [vmem:[#allocation2 + $0x50] sm:$0x1] }
 0x135   : > { %13457 = vmatmul.mubr.bf16.gmra.mxu0 %v11983_v61  ;;  %v4571_v10 = vor.u32 %v4570_v32, %v4566_v17  ;;  %v4598_v39 = vshll.u32 %v16008_v46, 16  ;;  %v4562_v29 = vrot.slane %v4561_v21, 4  ;;  %v4581_v5 = vrot.slane %v4579_v6, 4  ;;  %v4473_v31 = vld [vmem:[#allocation2 + $0x54] sm:$0xf] }
 0x136   : > { %13524 = vmatprep.mubr.bf16.mxu0 %v14245_v33  ;;  %v4584_v1 = vrot.slane %v4582_v37, 5  ;;  %v4590_v19 = vrot.slane %v4588_v4, 5  ;;  %v12105_v23 = vcombine.low %v4543_v41, %v4553_v60  ;;  %v4594_v12 = vrot.slane %v4592_v35, 4  ;;  %v16041_v41 = vpop.f32.mrf.mxu1  ;;  %v14248_v60 = vld [vmem:[#allocation2 + $0x30] sm:$0xff]  }
 0x137   : > { %v4572_v59 = vrot.slane %v4571_v10, 4  ;;  %v4567_v27 = vsel %vm14596_vm8, %v4562_v29, %v4566_v17  ;;  %v4600_v33 = vrot.slane %v4598_v39, 5  ;;  %v16039_v32 = vadd.f32 %v15851_v28, %v15889_v53  ;;  %v16049_v17 = vld [vmem:[#allocation2 + $0x58] sm:$0xf]  ;;  %v14250_v28 = vld [vmem:[%s19621_s1 + $0x230] sm:$0xff]  }
 0x138   : > { %v4585_v61 = vor.u32 %v4584_v1, %v4581_v5  ;;  %v4595_v6 = vor.u32 %v4594_v12, %v4590_v19  ;;  %v16047_v37 = vadd.f32 %v15898_v44, %v15929_v36  ;;  %v4603_v4 = vshrl.u32 %v4470_v14, 16  ;;  %v16057_v36 = vpop.f32.mrf.mxu0 }
 0x139   : > { %v4577_v21 = vsel %vm14596_vm8, %v4572_v59, %v4576_v43  ;;  %v4606_v35 = vshll.u32 %v4470_v14, 16  ;;  %v4612_v39 = vshll.u32 %v16029_v15, 16  ;;  %v4616_v5 = vshrl.u32 %v16029_v15, 16  ;;  %19702 = vst [vmem:[#allocation20_spill] sm:$0xff] %v16057_v36 }
 0x13a   : > { %v12106_v53 = vcombine.low %v4567_v27, %v4577_v21  ;;  %v4586_v10 = vrot.slane %v4585_v61, 4  ;;  %v4596_v29 = vrot.slane %v4595_v6, 4  ;;  %v4605_v43 = vrot.slane %v4603_v4, 4  ;;  %v16065_v27 = vld [vmem:[#allocation2 + $0x5c] sm:$0x1] }
 0x13b   : > { %13573 = vmatmul.mubr.bf16.vlgmr.msra.gmra.mxu1 %v12105_v23  ;;  %v4622_v44 = vshll.u32 %v16031_v7, 16  ;;  %v4608_v59 = vrot.slane %v4606_v35, 5  ;;  %v4614_v12 = vrot.slane %v4612_v39, 5  ;;  %v16063_v14 = vadd.f32 %v15922_v9, %v15948_v49  ;;  %v16067_v23 = vpop.f32.mrf.mxu1  ;;  %v4476_v49 = vld [vmem:[#allocation2 + $0x60] sm:$0xf] }
 0x13c   : > { %13576 = vmatprep.mubr.bf16.mxu1 %v12106_v53  ;;  %v4591_v1 = vsel %vm14596_vm8, %v4586_v10, %v4590_v19  ;;  %v4601_v61 = vsel %vm14596_vm8, %v4596_v29, %v4600_v33  ;;  %v4618_v21 = vrot.slane %v4616_v5, 4  ;;  %v4627_v4 = vshrl.u32 %v4473_v31, 16  ;;  %v16078_v5 = vld [vmem:[#allocation2 + $0x64] sm:$0xf] }
 0x13d   : > { %13525 = vmatmul.mubr.bf16.vlgmr.msra.gmra.mxu0 %v14246_v18  ;;  %v4624_v6 = vrot.slane %v4622_v44, 5  ;;  %v12107_v19 = vcombine.low %v4591_v1, %v4601_v61  ;;  %v4609_v53 = vor.u32 %v4608_v59, %v4605_v43  ;;  %v4630_v10 = vshll.u32 %v4473_v31, 16  ;;  %v14253_v18 = vld [vmem:[%s19621_s1 + $0x228] sm:$0xff]   ;;  %v16084_v59 = vpop.f32.mrf.mxu1 }
 0x13e   : > { %13605 = vmatpush3.bf16.msra.mxu0 %v15863_v48  ;;  %13528 = vmatprep.mubr.bf16.mxu0 %v14248_v60  ;;  %v4636_v9 = vshll.u32 %v16049_v17, 16  ;;  %v4619_v35 = vor.u32 %v4618_v21, %v4614_v12  ;;  %v4629_v39 = vrot.slane %v4627_v4, 4  ;;  %v4640_v33 = vshrl.u32 %v16049_v17, 16  ;;  %v14249_v60 = vld [vmem:[#allocation2 + $0x3c] sm:$0xff]   ;;  %v16082_v1 = vld [vmem:[#allocation2 + $0x68] sm:$0x1] }
 0x13f   : > { %13606 = vmatprep.subr.bf16.mxu0 %v14250_v28  ;;  %v4646_v29 = vshll.u32 %v16065_v27, 16  ;;  %v4610_v31 = vrot.slane %v4609_v53, 4  ;;  %v4632_v43 = vrot.slane %v4630_v10, 5  ;;  %v14251_v61 = vld [vmem:[#allocation2 + $0x48] sm:$0xff]   ;;  %v16088_v3 = vadd.f32 %v15934_v2, %v15969_v26 }
 0x140   : > { %v16080_v48 = vpop.f32.mrf.mxu0  ;;  %v4638_v44 = vrot.slane %v4636_v9, 5  ;;  %v4620_v57 = vrot.slane %v4619_v35, 4  ;;  %v4642_v21 = vrot.slane %v4640_v33, 4  ;;  %v16094_v53 = vadd.f32 %v15971_v62, %v16003_v58  ;;  %v4479_v58 = vld [vmem:[#allocation2 + $0x6c] sm:$0xf] }
 0x141   : > { %v4648_v4 = vrot.slane %v4646_v29, 5  ;;  %v4615_v40 = vsel %vm14596_vm8, %v4610_v31, %v4614_v12  ;;  %v4633_v8 = vor.u32 %v4632_v43, %v4629_v39  ;;  %v4651_v35 = vshrl.u32 %v4476_v49, 16  ;;  %v16108_v31 = vld [vmem:[#allocation2 + $0x70] sm:$0xf] }
 0x142   : > { %13607 = vmatpush3.bf16.msra.mxu0 %v14250_v28  ;;  %19703 = vst [vmem:[#allocation21_spill] sm:$0xff] %v16094_v53  ;;  %v4625_v10 = vsel %vm14596_vm8, %v4620_v57, %v4624_v6  ;;  %v4643_v9 = vor.u32 %v4642_v21, %v4638_v44  ;;  %v4654_v33 = vshll.u32 %v4476_v49, 16  ;;  %v16098_v29 = vpop.f32.mrf.mxu0  ;;  %v14256_v28 = vld [vmem:[%s19621_s1 + $0x220] sm:$0xff]   ;;  %v4660_v12 = vshll.u32 %v16078_v5, 16 }
 0x143   : > { %13577 = vmatmul.mubr.bf16.gmra.mxu1 %v12107_v19  ;;  %13608 = vmatprep.subr.bf16.mxu0 %v14253_v18  ;;  %v12108_v2 = vcombine.low %v4615_v40, %v4625_v10  ;;  %v4634_v26 = vrot.slane %v4633_v8, 4  ;;  %v4664_v62 = vshrl.u32 %v16078_v5, 16  ;;  %v16105_v19 = vpop.f32.mrf.mxu1  ;;  %v4653_v6 = vrot.slane %v4651_v35, 4  ;;  %v16116_v10 = vld [vmem:[#allocation2 + $0x74] sm:$0x1] }
 0x144   : > { %19704 = vst [vmem:[#allocation22_spill] sm:$0xff] %v16105_v19  ;;  %v4644_v57 = vrot.slane %v4643_v9, 4  ;;  %v4656_v39 = vrot.slane %v4654_v33, 5  ;;  %v4670_v49 = vshll.u32 %v16082_v1, 16  ;;  %v4662_v8 = vrot.slane %v4660_v12, 5 }
 0x145   : > { %13529 = vmatmul.mubr.bf16.gmra.mxu0 %v14249_v60  ;;  %13580 = vmatprep.mubr.bf16.mxu1 %v12108_v2  ;;  %v4639_v40 = vsel %vm14596_vm8, %v4634_v26, %v4638_v44  ;;  %v4666_v43 = vrot.slane %v4664_v62, 4  ;;  %v16114_v21 = vadd.f32 %v15986_v0, %v16024_v63  ;;  %v14252_v60 = vld [vmem:[#allocation2 + $0x54] sm:$0xff]   ;;  %v16123_v2 = vpop.f32.mrf.mxu0  ;;  %v4678_v63 = vshll.u32 %v4479_v58, 16 }
 0x146   : > { %13532 = vmatprep.mubr.bf16.mxu0 %v14251_v61  ;;  %13609 = vmatpush3.bf16.msra.mxu0 %v14253_v18  ;;  %v4649_v9 = vsel %vm14596_vm8, %v4644_v57, %v4648_v4  ;;  %v4657_v35 = vor.u32 %v4656_v39, %v4653_v6  ;;  %v4672_v33 = vrot.slane %v4670_v49, 5  ;;  %v4675_v61 = vshrl.u32 %v4479_v58, 16  ;;  %v14259_v44 = vld [vmem:[%s19621_s1 + $0x218] sm:$0xff]   ;;  %v16132_v49 = vld [vmem:[#allocation2 + $0x80] sm:$0x1] }
 0x147   : > { %19705 = vst [vmem:[#allocation23_spill] sm:$0xff] %v16114_v21  ;;  %v12109_v26 = vcombine.low %v4639_v40, %v4649_v9  ;;  %13610 = vmatprep.subr.bf16.mxu0 %v14256_v28  ;;  %v4667_v0 = vor.u32 %v4666_v43, %v4662_v8  ;;  %v4684_v12 = vshll.u32 %v16108_v31, 16  ;;  %v4482_v62 = vld [vmem:[#allocation2 + $0x78] sm:$0xf]  ;;  %v4688_v57 = vshrl.u32 %v16108_v31, 16 }
 0x148   : > { %v16126_v18 = vpop.f32.mrf.mxu1  ;;  %v4658_v19 = vrot.slane %v4657_v35, 4  ;;  %v4677_v4 = vrot.slane %v4675_v61, 4  ;;  %v4694_v6 = vshll.u32 %v16116_v10, 16  ;;  %v16130_v39 = vld [vmem:[#allocation2 + $0x7c] sm:$0xf]  ;;  %v4680_v9 = vrot.slane %v4678_v63, 5  ;;  %v16140_v61 = vpop.f32.mrf.mxu0 }
 0x149   : > { %v4668_v40 = vrot.slane %v4667_v0, 4  ;;  %v4686_v43 = vrot.slane %v4684_v12, 5  ;;  %v4690_v51 = vrot.slane %v4688_v57, 4  ;;  %v16138_v35 = vadd.f32 %v16010_v55, %v16033_v50  ;;  %19707 = vst [vmem:[#allocation25_spill] sm:$0xff] %v16140_v61  ;;  %v16244_v21 = vld [vmem:[#allocation2 + $0xc4] sm:$0xf] }
 0x14a   : > { %v4663_v58 = vsel %vm14596_vm8, %v4658_v19, %v4662_v8  ;;  %13611 = vmatpush3.bf16.msra.mxu0 %v14256_v28  ;;  %v4681_v54 = vor.u32 %v4680_v9, %v4677_v4  ;;  %v4696_v34 = vrot.slane %v4694_v6, 5  ;;  %v16146_v0 = vadd.f32 %v16041_v41, %v16080_v48  ;;  %v14262_v28 = vld [vmem:[%s19621_s1 + $0x210] sm:$0xff]   ;;  %v16151_v19 = vpop.f32.mrf.mxu1  ;;  %v4485_v48 = vld [vmem:[#allocation2 + $0x84] sm:$0xf]  ;;  %v16164_v9 = vld [vmem:[#allocation2 + $0x8c] sm:$0x1] }
 0x14b   : > { %13581 = vmatmul.mubr.bf16.gmra.mxu1 %v12109_v26  ;;  %19706 = vst [vmem:[#allocation24_spill] sm:$0xff] %v16138_v35  ;;  %v4673_v25 = vsel %vm14596_vm8, %v4668_v40, %v4672_v33  ;;  %13612 = vmatprep.subr.bf16.mxu0 %v14259_v44  ;;  %v4691_v50 = vor.u32 %v4690_v51, %v4686_v43  ;;  %v4699_v8 = vshrl.u32 %v4482_v62, 16  ;;  %v4702_v26 = vshll.u32 %v4482_v62, 16  ;;  %v16160_v51 = vld [vmem:[#allocation2 + $0x88] sm:$0xf] }
 0x14c   : > { %19708 = vst [vmem:[#allocation26_spill] sm:$0xff] %v16146_v0  ;;  %v12110_v55 = vcombine.low %v4663_v58, %v4673_v25  ;;  %v4682_v33 = vrot.slane %v4681_v54, 4  ;;  %v4708_v63 = vshll.u32 %v16130_v39, 16  ;;  %v4712_v12 = vshrl.u32 %v16130_v39, 16  ;;  %v16166_v58 = vpop.f32.mrf.mxu1  ;;  %v4488_v0 = vld [vmem:[#allocation2 + $0x90] sm:$0xf] }
 0x14d   : > { %13533 = vmatmul.mubr.bf16.gmra.mxu0 %v14252_v60  ;;  %v4718_v41 = vshll.u32 %v16132_v49, 16  ;;  %v4692_v4 = vrot.slane %v4691_v50, 4  ;;  %v4701_v57 = vrot.slane %v4699_v8, 4  ;;  %v4704_v6 = vrot.slane %v4702_v26, 5  ;;  %v14257_v26 = vld [vmem:[#allocation2 + $0x78] sm:$0xff]   ;;  %19723 = vst [vmem:[#allocation41_spill] sm:$0xff] %v16244_v21 }
 0x14e   : > { %13536 = vmatprep.mubr.bf16.mxu0 %v14254_v16  ;;  %13584 = vmatprep.mubr.bf16.mxu1 %v12110_v55  ;;  %v16158_v25 = vadd.f32 %v16067_v23, %v16098_v29  ;;  %v4687_v54 = vsel %vm14596_vm8, %v4682_v33, %v4686_v43  ;;  %v4710_v60 = vrot.slane %v4708_v63, 5  ;;  %v4714_v62 = vrot.slane %v4712_v12, 4  ;;  %v14255_v23 = vld [vmem:[#allocation2 + $0x6c] sm:$0xff]  }
 0x14f   : > { %13613 = vmatpush3.bf16.msra.mxu0 %v14259_v44  ;;  %v4720_v40 = vrot.slane %v4718_v41, 5  ;;  %v14265_v44 = vld [vmem:[%s19621_s1 + $0x208] sm:$0xff]   ;;  %v4697_v29 = vsel %vm14596_vm8, %v4692_v4, %v4696_v34  ;;  %v4705_v55 = vor.u32 %v4704_v6, %v4701_v57  ;;  %v4723_v50 = vshrl.u32 %v4485_v48, 16  ;;  %v16180_v6 = vld [vmem:[#allocation2 + $0x94] sm:$0xf] }
 0x150   : > { %19709 = vst [vmem:[#allocation27_spill] sm:$0xff] %v16158_v25  ;;  %13614 = vmatprep.subr.bf16.mxu0 %v14262_v28  ;;  %v4726_v8 = vshll.u32 %v4485_v48, 16  ;;  %v12111_v43 = vcombine.low %v4687_v54, %v4697_v29  ;;  %v4715_v33 = vor.u32 %v4714_v62, %v4710_v60  ;;  %v4732_v63 = vshll.u32 %v16160_v51, 16  ;;  %v16182_v54 = vpop.f32.mrf.mxu1  ;;  %v14268_v62 = vld [vmem:[%s19621_s1 + $0x200] sm:$0xff]  }
 0x151   : > { %v13258_v16 = vpop.f32.mrf.mxu0  ;;  %v4736_v12 = vshrl.u32 %v16160_v51, 16  ;;  %v4706_v41 = vrot.slane %v4705_v55, 4  ;;  %v4725_v61 = vrot.slane %v4723_v50, 4  ;;  %v4742_v25 = vshll.u32 %v16164_v9, 16  ;;  %19711 = vst [vmem:[#allocation29_spill] sm:$0xff] %v16182_v54 }
 0x152   : > { %v4728_v30 = vrot.slane %v4726_v8, 5  ;;  %v4716_v34 = vrot.slane %v4715_v33, 4  ;;  %v4734_v4 = vrot.slane %v4732_v63, 5  ;;  %v16178_v48 = vadd.f32 %v16084_v59, %v16123_v2  ;;  %v16189_v50 = vld [vmem:[#allocation2 + $0x98] sm:$0x1] }
 0x153   : > { %13615 = vmatpush3.bf16.msra.mxu0 %v14262_v28  ;;  %v1596_v35 = vpop.f32.mrf.mxu0  ;;  %13585 = vmatmul.mubr.bf16.gmra.mxu1 %v12111_v43  ;;  %v4738_v57 = vrot.slane %v4736_v12, 4  ;;  %v4711_v28 = vsel %vm14596_vm8, %v4706_v41, %v4710_v60  ;;  %v4744_v55 = vrot.slane %v4742_v25, 5  ;;  %19712 = vst [vmem:[#allocation30_spill] sm:$0xff] %v16189_v50  ;;  %v16194_v8 = vadd.f32 %v16126_v18, %v13258_v16  ;;  %v4491_v54 = vld [vmem:[#allocation2 + $0x9c] sm:$0xf]  ;;  %v14258_v18 = vld [vmem:[#allocation2 + $0x84] sm:$0xff]  }
 0x154   : > { %19710 = vst [vmem:[#allocation28_spill] sm:$0xff] %v16178_v48  ;;  %13616 = vmatprep.subr.bf16.mxu0 %v14265_v44  ;;  %v4729_v29 = vor.u32 %v4728_v30, %v4725_v61  ;;  %v4721_v59 = vsel %vm14596_vm8, %v4716_v34, %v4720_v40  ;;  %v4747_v43 = vshrl.u32 %v4488_v0, 16  ;;  %v4750_v12 = vshll.u32 %v4488_v0, 16  ;;  %v16199_v40 = vld [vmem:[#allocation2 + $0xa0] sm:$0xf] }
 0x155   : > { %13537 = vmatmul.mubr.bf16.gmra.mxu0 %v14255_v23  ;;  %v4739_v2 = vor.u32 %v4738_v57, %v4734_v4  ;;  %19713 = vst [vmem:[#allocation31_spill] sm:$0xff] %v16194_v8  ;;  %v12112_v33 = vcombine.low %v4711_v28, %v4721_v59  ;;  %v4756_v23 = vshll.u32 %v16180_v6, 16  ;;  %v13259_v60 = vpop.f32.mrf.mxu0  ;;  %v4760_v25 = vshrl.u32 %v16180_v6, 16  ;;  %v4494_v8 = vld [vmem:[#allocation2 + $0xa8] sm:$0xf] }
 0x156   : > { %13540 = vmatprep.mubr.bf16.mxu0 %v14257_v26  ;;  %v4730_v63 = vrot.slane %v4729_v29, 4  ;;  %v4749_v61 = vrot.slane %v4747_v43, 4  ;;  %v4766_v26 = vshll.u32 %v16189_v50, 16  ;;  %v4752_v16 = vrot.slane %v4750_v12, 5  ;;  %v14260_v29 = vld [vmem:[#allocation2 + $0x90] sm:$0xff]  }
 0x157   : > { %13617 = vmatpush3.bf16.msra.mxu0 %v14265_v44  ;;  %v4740_v30 = vrot.slane %v4739_v2, 4  ;;  %13588 = vmatprep.mubr.bf16.mxu1 %v12112_v33  ;;  %v4758_v34 = vrot.slane %v4756_v23, 5  ;;  %v16204_v57 = vadd.f32 %v16151_v19, %v1596_v35  ;;  %v16206_v44 = vld [vmem:[#allocation2 + $0xa4] sm:$0x1]  ;;  %v4762_v59 = vrot.slane %v4760_v25, 4 }
 0x158   : > { %13618 = vmatprep.subr.bf16.mxu0 %v14268_v62  ;;  %v4735_v0 = vsel %vm14596_vm8, %v4730_v63, %v4734_v4  ;;  %v4768_v2 = vrot.slane %v4766_v26, 5  ;;  %v4771_v43 = vshrl.u32 %v4491_v54, 16  ;;  %v4753_v33 = vor.u32 %v4752_v16, %v4749_v61  ;;  %v16211_v63 = vpop.f32.mrf.mxu0  ;;  %v16213_v12 = vld [vmem:[#allocation2 + $0xac] sm:$0xf]  ;;  %v5212_v50 = vld [vmem:[#allocation2 + $0x18] sm:$0xe] }
 0x159   : > { %v13310_v41 = vpop.f32.mrf.mxu1  ;;  %19714 = vst [vmem:[#allocation32_spill] sm:$0xff] %v16204_v57  ;;  %v4745_v28 = vsel %vm14596_vm8, %v4740_v30, %v4744_v55  ;;  %v4774_v24 = vshll.u32 %v4491_v54, 16  ;;  %v4780_v4 = vshll.u32 %v16199_v40, 16  ;;  %19715 = vst [vmem:[#allocation33_spill] sm:$0xff] %v16211_v63  ;;  %v4763_v35 = vor.u32 %v4762_v59, %v4758_v34  ;;  %v14263_v57 = vld [vmem:[#allocation2 + $0xa8] sm:$0xff]  }
 0x15a   : > { %v12113_v48 = vcombine.low %v4735_v0, %v4745_v28  ;;  %v4773_v19 = vrot.slane %v4771_v43, 4  ;;  %v4784_v23 = vshrl.u32 %v16199_v40, 16  ;;  %v4790_v55 = vshll.u32 %v16206_v44, 16  ;;  %v16220_v0 = vld [vmem:[#allocation2 + $0xb0] sm:$0x1] }
 0x15b   : > { %13619 = vmatpush3.bf16.msra.mxu0 %v14268_v62  ;;  %v1917_v30 = vpop.f32.mrf.mxu1  ;;  %v4754_v25 = vrot.slane %v4753_v33, 4  ;;  %v4776_v26 = vrot.slane %v4774_v24, 5  ;;  %v4782_v61 = vrot.slane %v4780_v4, 5  ;;  %v16218_v54 = vadd.f32 %v16166_v58, %v13259_v60  ;;  %19717 = vst [vmem:[#allocation35_spill] sm:$0xff] %v16220_v0  ;;  %v4497_v43 = vld [vmem:[#allocation2 + $0xb4] sm:$0xf] }
 0x15c   : > { %13589 = vmatmul.mubr.bf16.gmra.mxu1 %v12113_v48  ;;  %v4764_v62 = vrot.slane %v4763_v35, 4  ;;  %v4786_v28 = vrot.slane %v4784_v23, 4  ;;  %v4792_v59 = vrot.slane %v4790_v55, 5  ;;  %v4795_v33 = vshrl.u32 %v4494_v8, 16  ;;  %v14261_v4 = vld [vmem:[#allocation2 + $0x9c] sm:$0xff]  }
 0x15d   : > { %13541 = vmatmul.mubr.bf16.gmra.mxu0 %v14258_v18  ;;  %19716 = vst [vmem:[#allocation34_spill] sm:$0xff] %v16218_v54  ;;  %v4759_v63 = vsel %vm14596_vm8, %v4754_v25, %v4758_v34  ;;  %v4777_v18 = vor.u32 %v4776_v26, %v4773_v19  ;;  %v4798_v24 = vshll.u32 %v4494_v8, 16  ;;  %v16230_v35 = vld [vmem:[#allocation2 + $0xb8] sm:$0xf]  ;;  %v13311_v23 = vpop.f32.mrf.mxu1  ;;  %v16232_v26 = vld [vmem:[#allocation2 + $0xbc] sm:$0x1] }
 0x15e   : > { %13544 = vmatprep.mubr.bf16.mxu0 %v14260_v29  ;;  %v4769_v58 = vsel %vm14596_vm8, %v4764_v62, %v4768_v2  ;;  %v4787_v60 = vor.u32 %v4786_v28, %v4782_v61  ;;  %v4804_v29 = vshll.u32 %v16213_v12, 16  ;;  %19719 = vst [vmem:[#allocation37_spill] sm:$0xff] %v16230_v35  ;;  %v4797_v34 = vrot.slane %v4795_v33, 4  ;;  %19720 = vst [vmem:[#allocation38_spill] sm:$0xff] %v16232_v26 }
 0x15f   : > { %v12114_v55 = vcombine.low %v4759_v63, %v4769_v58  ;;  %v4778_v16 = vrot.slane %v4777_v18, 4  ;;  %v4800_v19 = vrot.slane %v4798_v24, 5  ;;  %v4808_v2 = vshrl.u32 %v16213_v12, 16 }
 0x160   : > { %v4788_v8 = vrot.slane %v4787_v60, 4  ;;  %v4806_v36 = vrot.slane %v4804_v29, 5  ;;  %v4819_v63 = vshrl.u32 %v4497_v43, 16  ;;  %v4822_v58 = vshll.u32 %v4497_v43, 16  ;;  %v16242_v29 = vpop.f32.mrf.mxu1 }
 0x161   : > { %v13262_v48 = vpop.f32.mrf.mxu0  ;;  %13592 = vmatprep.mubr.bf16.mxu1 %v12114_v55  ;;  %v4783_v62 = vsel %vm14596_vm8, %v4778_v16, %v4782_v61  ;;  %v4801_v28 = vor.u32 %v4800_v19, %v4797_v34  ;;  %v4810_v33 = vrot.slane %v4808_v2, 4  ;;  %19722 = vst [vmem:[#allocation40_spill] sm:$0xff] %v16242_v29  ;;  %v16247_v16 = vld [vmem:[#allocation2 + $0xc8] sm:$0x1]  ;;  %v4832_v19 = vshrl.u32 %v16230_v35, 16 }
 0x162   : > { %v16227_v54 = vadd.f32 %v13310_v41, %v13262_v48  ;;  %v4814_v41 = vshll.u32 %v16220_v0, 16  ;;  %v4793_v18 = vsel %vm14596_vm8, %v4788_v8, %v4792_v59  ;;  %v4821_v61 = vrot.slane %v4819_v63, 4  ;;  %19724 = vst [vmem:[#allocation42_spill] sm:$0xff] %v16247_v16  ;;  %v14264_v8 = vld [vmem:[#allocation2 + $0xb4] sm:$0xff]   ;;  %v16256_v29 = vld [vmem:[#allocation2 + $0xd0] sm:$0xf] }
 0x163   : > { %v1612_v25 = vpop.f32.mrf.mxu0  ;;  %v12115_v55 = vcombine.low %v4783_v62, %v4793_v18  ;;  %v4802_v53 = vrot.slane %v4801_v28, 4  ;;  %v4811_v34 = vor.u32 %v4810_v33, %v4806_v36  ;;  %v4824_v59 = vrot.slane %v4822_v58, 5  ;;  %v14266_v18 = vld [vmem:[#allocation2 + $0xc0] sm:$0xff]   ;;  %v4503_v58 = vld [vmem:[#allocation2 + $0xcc] sm:$0xf] }
 0x164   : > { %19718 = vst [vmem:[#allocation36_spill] sm:$0xff] %v16227_v54  ;;  %v16238_v48 = vadd.f32 %v1917_v30, %v1612_v25  ;;  %v4816_v24 = vrot.slane %v4814_v41, 5  ;;  %v4500_v54 = vld [vmem:[#allocation2 + $0xc0] sm:$0xf]  ;;  %v4828_v30 = vshll.u32 %v16230_v35, 16  ;;  %v4838_v43 = vshll.u32 %v16232_v26, 16 }
 0x165   : > { %v13263_v60 = vpop.f32.mrf.mxu0  ;;  %13545 = vmatmul.mubr.bf16.gmra.mxu0 %v14261_v4  ;;  %13593 = vmatmul.mubr.bf16.gmra.mxu1 %v12115_v55  ;;  %v4807_v4 = vsel %vm14596_vm8, %v4802_v53, %v4806_v36  ;;  %v4812_v62 = vrot.slane %v4811_v34, 4  ;;  %v4825_v28 = vor.u32 %v4824_v59, %v4821_v61  ;;  %v4834_v63 = vrot.slane %v4832_v19, 4  ;;  %v16260_v0 = vld [vmem:[#allocation2 + $0xd4] sm:$0x1] }
 0x166   : > { %19721 = vst [vmem:[#allocation39_spill] sm:$0xff] %v16238_v48  ;;  %13548 = vmatprep.mubr.bf16.mxu0 %v14263_v57  ;;  %v4830_v2 = vrot.slane %v4828_v30, 5  ;;  %v16254_v41 = vadd.f32 %v13311_v23, %v13263_v60  ;;  %v4840_v57 = vrot.slane %v4838_v43, 5  ;;  %v4843_v48 = vshrl.u32 %v4500_v54, 16  ;;  %19726 = vst [vmem:[#allocation44_spill] sm:$0xff] %v16260_v0 }
 0x167   : > { %v4846_v26 = vshll.u32 %v4500_v54, 16  ;;  %v4852_v55 = vshll.u32 %v16244_v21, 16  ;;  %v4856_v25 = vshrl.u32 %v16244_v21, 16  ;;  %v4817_v36 = vsel %vm14596_vm8, %v4812_v62, %v4816_v24  ;;  %v16267_v24 = vpop.f32.mrf.mxu0 }
 0x168   : > { %19725 = vst [vmem:[#allocation43_spill] sm:$0xff] %v16254_v41  ;;  %v13314_v33 = vpop.f32.mrf.mxu1  ;;  %v4826_v53 = vrot.slane %v4825_v28, 4  ;;  %v4835_v23 = vor.u32 %v4834_v63, %v4830_v2  ;;  %v4862_v60 = vshll.u32 %v16247_v16, 16  ;;  %v12116_v30 = vcombine.low %v4807_v4, %v4817_v36  ;;  %19727 = vst [vmem:[#allocation45_spill] sm:$0xff] %v16267_v24  ;;  %v14267_v36 = vld [vmem:[#allocation2 + $0xcc] sm:$0xff]  }
 0x169   : > { %v4845_v34 = vrot.slane %v4843_v48, 4  ;;  %v4848_v59 = vrot.slane %v4846_v26, 5  ;;  %v4854_v19 = vrot.slane %v4852_v55, 5  ;;  %v4858_v41 = vrot.slane %v4856_v25, 4 }
 0x16a   : > { %v1933_v61 = vpop.f32.mrf.mxu1  ;;  %v4831_v54 = vsel %vm14596_vm8, %v4826_v53, %v4830_v2  ;;  %v4836_v43 = vrot.slane %v4835_v23, 4  ;;  %v4864_v21 = vrot.slane %v4862_v60, 5  ;;  %13596 = vmatprep.mubr.bf16.mxu1 %v12116_v30  ;;  %v4867_v28 = vshrl.u32 %v4503_v58, 16  ;;  %v5213_v30 = vld [vmem:[#allocation2 + $0x24] sm:$0xe] }
 0x16b   : > { %v4849_v62 = vor.u32 %v4848_v59, %v4845_v34  ;;  %v4870_v63 = vshll.u32 %v4503_v58, 16  ;;  %v4876_v4 = vshll.u32 %v16256_v29, 16  ;;  %v4859_v48 = vor.u32 %v4858_v41, %v4854_v19 }
 0x16c   : > { %v13315_v35 = vpop.f32.mrf.mxu1  ;;  %v4841_v26 = vsel %vm14596_vm8, %v4836_v43, %v4840_v57  ;;  %v4880_v2 = vshrl.u32 %v16256_v29, 16  ;;  %v4886_v25 = vshll.u32 %v16260_v0, 16  ;;  %v4869_v23 = vrot.slane %v4867_v28, 4  ;;  %v5214_v57 = vld [vmem:[#allocation2 + $0x30] sm:$0xe] }
 0x16d   : > { %13549 = vmatmul.mubr.bf16.gmra.mxu0 %v14264_v8  ;;  %v12117_v8 = vcombine.low %v4831_v54, %v4841_v26  ;;  %v4850_v53 = vrot.slane %v4849_v62, 4  ;;  %v4872_v60 = vrot.slane %v4870_v63, 5  ;;  %v4860_v58 = vrot.slane %v4859_v48, 4  ;;  %v14417_v54 = vld [vmem:[#allocation2 + $0x1c] sm:$0xf] }
 0x16e   : > { %13552 = vmatprep.mubr.bf16.mxu0 %v14266_v18  ;;  %v16274_v55 = vpop.f32.mrf.mxu1  ;;  %v4878_v34 = vrot.slane %v4876_v4, 5  ;;  %v4882_v59 = vrot.slane %v4880_v2, 4  ;;  %v4888_v24 = vrot.slane %v4886_v25, 5  ;;  %v5278_v26 = vrot.slane %v14417_v54, 5  ;;  %v14418_v4 = vld [vmem:[#allocation2 + $0x20] sm:$0x1] }
 0x16f   : > { %19728 = vst [vmem:[#allocation46_spill] sm:$0xff] %v16274_v55  ;;  %13597 = vmatmul.mubr.bf16.gmra.mxu1 %v12117_v8  ;;  %v4855_v18 = vsel %vm14596_vm8, %v4850_v53, %v4854_v19  ;;  %v4873_v43 = vor.u32 %v4872_v60, %v4869_v23  ;;  %v12128_v55 = vrot.slane %v5212_v50, 9  ;;  %v4865_v28 = vsel %vm14596_vm8, %v4860_v58, %v4864_v21  ;;  %v5215_v50 = vld [vmem:[#allocation2 + $0x3c] sm:$0xe] }
 0x170   : > { %v16276_v16 = vpop.f32.mrf.mxu1  ;;  %v4883_v63 = vor.u32 %v4882_v59, %v4878_v34  ;;  %v5281_v48 = vrot.slane %v14418_v4, 5  ;;  %v12118_v25 = vcombine.low %v4855_v18, %v4865_v28  ;;  %v5280_v53 = vrot.slane %v5278_v26, 4  ;;  %v5216_v59 = vld [vmem:[#allocation2 + $0x48] sm:$0xe] }
 0x171   : > { %v13266_v41 = vpop.f32.mrf.mxu0  ;;  %v4874_v0 = vrot.slane %v4873_v43, 4  ;;  %v5279_v19 = vsel %vm15037_vm14, %v12128_v55, %v5278_v26  ;;  %v12129_v60 = vrot.slane %v5213_v30, 9  ;;  %v12130_v54 = vrot.slane %v5214_v57, 9  ;;  %v5217_v26 = vld [vmem:[#allocation2 + $0x54] sm:$0xe] }
 0x172   : > { %v16280_v62 = vadd.f32 %v13314_v33, %v13266_v41  ;;  %v16284_v2 = vpop.f32.mrf.mxu1  ;;  %v4884_v33 = vrot.slane %v4883_v63, 4  ;;  %v19729_v41 = vrot.slane %v15961_v13, 5  ;;  %13600 = vmatprep.mubr.bf16.mxu1 %v12118_v25  ;;  %v5282_v55 = vsel %vm15037_vm14, %v5280_v53, %v5281_v48 }
 0x173   : > { %v1628_v8 = vpop.f32.mrf.mxu0  ;;  %v4879_v18 = vsel %vm14596_vm8, %v4874_v0, %v4878_v34  ;;  %v12160_v63 = vcombine.low %v5279_v19, %v5282_v55  ;;  %v5302_v34 = vrot.slane %v16008_v46, 5  ;;  %v12131_v53 = vrot.slane %v5215_v50, 9 }
 0x174   : > { %v16288_v23 = vadd.f32 %v1933_v61, %v1628_v8  ;;  %v5287_v21 = vrot.slane %v19729_v41, 4  ;;  %v16292_v58 = vpop.f32.mrf.mxu1  ;;  %v5292_v61 = vrot.slane %v15993_v45, 5  ;;  %v4889_v30 = vsel %vm14596_vm8, %v4884_v33, %v4888_v24  ;;  %v14419_v8 = vld [vmem:[#allocation2 + $0x38] sm:$0x1] }
 0x175   : > { %13553 = vmatmul.mubr.bf16.gmra.mxu0 %v14267_v36  ;;  %v13267_v43 = vpop.f32.mrf.mxu0  ;;  %v19730_v36 = vmov %v19729_v41  ;;  %v12119_v48 = vcombine.low %v4879_v18, %v4889_v30  ;;  %v19732_v45 = vrot.slane %v15967_v42, 5  ;;  %v5295_v19 = vrot.slane %v14419_v8, 5  ;;  %v14420_v41 = vld [vmem:[#allocation2 + $0x40] sm:$0xf] }
 0x176   : > { %v16301_v28 = vadd.f32 %v13315_v35, %v13267_v43  ;;  %v5286_v4 = vsel %vm15037_vm14, %v12129_v60, %v19730_v36  ;;  %v16307_v0 = vpop.f32.mrf.mxu1  ;;  %v5294_v35 = vrot.slane %v5292_v61, 4  ;;  %13620 = vmatprep.mubr.bf16.mxu0 %v12160_v63  ;;  %v5293_v13 = vsel %vm15037_vm14, %v12130_v54, %v5292_v61  ;;  %v5218_v60 = vld [vmem:[#allocation2 + $0x60] sm:$0xe] }
 0x177   : > { %19731 = vst [vmem:[#allocation47_spill] sm:$0xff] %v16307_v0  ;;  %v16310_v57 = vpop.f32.mrf.mxu0  ;;  %v5289_v24 = vsel %vm15037_vm14, %v5287_v21, %v19732_v45  ;;  %13601 = vmatmul.mubr.bf16.gmra.mxu1 %v12119_v48  ;;  %v5299_v18 = vrot.slane %v14420_v41, 5  ;;  %v12132_v43 = vrot.slane %v5216_v59, 9  ;;  %v5306_v42 = vrot.slane %v16029_v15, 5 }
 0x178   : > { %v12161_v25 = vcombine.low %v5286_v4, %v5289_v24  ;;  %v13386_v33 = vpop.f32.mrf.mxu1  ;;  %v5309_v21 = vrot.slane %v16031_v7, 5  ;;  %v5296_v30 = vsel %vm15037_vm14, %v5294_v35, %v5295_v19  ;;  %v12133_v61 = vrot.slane %v5217_v26, 9  ;;  %v5219_v24 = vld [vmem:[#allocation2 + $0x6c] sm:$0xe] }
 0x179   : > { %v13334_v46 = vpop.f32.mrf.mxu0  ;;  %v5313_v50 = vrot.slane %v16049_v17, 5  ;;  %v5316_v63 = vrot.slane %v16065_v27, 5  ;;  %v12162_v4 = vcombine.low %v5293_v13, %v5296_v30  ;;  %v5300_v59 = vsel %vm15037_vm14, %v12131_v53, %v5299_v18 }
 0x17a   : > { %v2403_v55 = vadd.f32 %v13334_v46, %v15946_v56  ;;  %v2676_v54 = vpop.f32.mrf.mxu1  ;;  %v5301_v48 = vrot.slane %v5299_v18, 4  ;;  %v5307_v45 = vsel %vm15037_vm14, %v12132_v43, %v5306_v42  ;;  %v5308_v26 = vrot.slane %v5306_v42, 4 }
 0x17b   : > { %v2274_v36 = vpop.f32.mrf.mxu0  ;;  %v16335_v27 = vsel %vm15037_vm14, %v12133_v61, %v5313_v50  ;;  %v5315_v35 = vrot.slane %v5313_v50, 4  ;;  %v12134_v13 = vrot.slane %v5218_v60, 9  ;;  %v5320_v8 = vrot.slane %v16078_v5, 5  ;;  %v5221_v61 = vld [vmem:[#allocation2 + $0x84] sm:$0xe] }
 0x17c   : > { %v2401_v15 = vadd.f32 %v2274_v36, %v15965_v22  ;;  %v16329_v7 = vadd.f32 %v16276_v16, %v2403_v55  ;;  %v13387_v56 = vpop.f32.mrf.mxu1  ;;  %v5303_v19 = vsel %vm15037_vm14, %v5301_v48, %v5302_v34  ;;  %v5330_v46 = vrot.slane %v16116_v10, 5 }
 0x17d   : > { %13621 = vmatmul.mubr.bf16.vlgmr.msra.gmra.mxu0 %v12161_v25  ;;  %v13335_v17 = vpop.f32.mrf.mxu0  ;;  %v5310_v25 = vsel %vm15037_vm14, %v5308_v26, %v5309_v21  ;;  %v5322_v5 = vrot.slane %v5320_v8, 4  ;;  %v16359_v43 = vsel %vm15037_vm14, %v12134_v13, %v5320_v8  ;;  %v5323_v42 = vrot.slane %v16082_v1, 5 }
 0x17e   : > { %v2404_v22 = vadd.f32 %v13335_v17, %v15984_v11  ;;  %v16340_v16 = vadd.f32 %v16284_v2, %v2401_v15  ;;  %13624 = vmatprep.mubr.bf16.mxu0 %v12162_v4  ;;  %v16346_v53 = vpop.f32.mrf.mxu1  ;;  %v12164_v60 = vcombine.low %v5307_v45, %v5310_v25  ;;  %v5317_v11 = vsel %vm15037_vm14, %v5315_v35, %v5316_v63  ;;  %v5220_v15 = vld [vmem:[#allocation2 + $0x78] sm:$0xe] }
 0x17f   : > { %19733 = vst [vmem:[#allocation48_spill] sm:$0xff] %v16346_v53  ;;  %v16349_v41 = vpop.f32.mrf.mxu0  ;;  %v12165_v18 = vcombine.low %v16335_v27, %v5317_v11  ;;  %v12163_v21 = vcombine.low %v5300_v59, %v5303_v19  ;;  %v12135_v55 = vrot.slane %v5219_v24, 9  ;;  %v5327_v30 = vrot.slane %v16108_v31, 5  ;;  %v5223_v59 = vld [vmem:[#allocation2 + $0x9c] sm:$0xe] }
 0x180   : > { %v16354_v2 = vadd.f32 %v16292_v58, %v2404_v22  ;;  %v13390_v34 = vpop.f32.mrf.mxu1  ;;  %v5324_v58 = vsel %vm15037_vm14, %v5322_v5, %v5323_v42  ;;  %v5334_v27 = vrot.slane %v16130_v39, 5  ;;  %v5341_v35 = vrot.slane %v16160_v51, 5  ;;  %v19747_v53 = vld [vmem:[#allocation24_spill] sm:$0xff] }
 0x181   : > { %v13338_v10 = vpop.f32.mrf.mxu0  ;;  %v12166_v4 = vcombine.low %v16359_v43, %v5324_v58  ;;  %v16369_v48 = vsel %vm15037_vm14, %v12135_v55, %v5327_v30  ;;  %v5329_v1 = vrot.slane %v5327_v30, 4  ;;  %v5344_v13 = vrot.slane %v16164_v9, 5 }
 0x182   : > { %v2407_v50 = vadd.f32 %v13338_v10, %v15991_v47  ;;  %v2692_v63 = vpop.f32.mrf.mxu1  ;;  %v12137_v47 = vrot.slane %v5221_v61, 9  ;;  %v5343_v39 = vrot.slane %v5341_v35, 4  ;;  %v5337_v11 = vrot.slane %v16132_v49, 5 }
 0x183   : > { %v2290_v36 = vpop.f32.mrf.mxu0  ;;  %v16376_v17 = vsel %vm15037_vm14, %v5329_v1, %v5330_v46  ;;  %v12136_v46 = vrot.slane %v5220_v15, 9  ;;  %v5355_v43 = vrot.slane %v16199_v40, 5  ;;  %v5358_v55 = vrot.slane %v16206_v44, 5 }
 0x184   : > { %v2405_v45 = vadd.f32 %v2290_v36, %v16022_v52  ;;  %v16372_v31 = vadd.f32 %v13386_v33, %v2407_v50  ;;  %v13391_v26 = vpop.f32.mrf.mxu1  ;;  %v16392_v25 = vsel %vm15037_vm14, %v12137_v47, %v5341_v35  ;;  %v16401_v5 = vsel %vm15037_vm14, %v5343_v39, %v5344_v13  ;;  %v16416_v36 = vld [vmem:[#allocation2 + $0xa8] sm:$0xe]  ;;  %v19743_v33 = vld [vmem:[#allocation23_spill] sm:$0xff] }
 0x185   : > { %13625 = vmatmul.mubr.bf16.gmra.mxu0 %v12163_v21  ;;  %v13339_v24 = vpop.f32.mrf.mxu0  ;;  %v5336_v21 = vrot.slane %v5334_v27, 4  ;;  %v5348_v61 = vrot.slane %v16180_v6, 5  ;;  %v5357_v50 = vrot.slane %v5355_v43, 4  ;;  %v5335_v44 = vsel %vm15037_vm14, %v12136_v46, %v5334_v27  ;;  %v16437_v27 = vld [vmem:[#allocation2 + $0xc0] sm:$0xe] }
 0x186   : > { %v2408_v8 = vadd.f32 %v13339_v24, %v16039_v32  ;;  %v16382_v22 = vadd.f32 %v2676_v54, %v2405_v45  ;;  %13628 = vmatprep.mubr.bf16.mxu0 %v12164_v60  ;;  %v16384_v52 = vpop.f32.mrf.mxu1  ;;  %v16396_v32 = vld [vmem:[#allocation2 + $0x90] sm:$0xe]  ;;  %v12139_v54 = vrot.slane %v5223_v59, 9  ;;  %v19645_v59 = vrot.slane %v16213_v12, 5  ;;  %v16426_v45 = vld [vmem:[#allocation2 + $0xb4] sm:$0xe] }
 0x187   : > { %19734 = vst [vmem:[#allocation49_spill] sm:$0xff] %v16384_v52  ;;  %v16388_v19 = vpop.f32.mrf.mxu0  ;;  %v12138_v15 = vrot.slane %v16396_v32, 9  ;;  %v16423_v6 = vsel %vm15037_vm14, %v5357_v50, %v5358_v55  ;;  %v5350_v13 = vrot.slane %v5348_v61, 4  ;;  %v19739_v55 = vld [vmem:[#allocation41_spill] sm:$0xff]  ;;  %v19742_v24 = vld [vmem:[#allocation42_spill] sm:$0xff] }
 0x188   : > { %v16394_v51 = vadd.f32 %v13387_v56, %v2408_v8  ;;  %v13394_v9 = vpop.f32.mrf.mxu1  ;;  %v16411_v49 = vsel %vm15037_vm14, %v12139_v54, %v5355_v43  ;;  %v19736_v8 = vld [vmem:[#allocation30_spill] sm:$0xff]  ;;  %v19738_v54 = vld [vmem:[#allocation35_spill] sm:$0xff]  ;;  %v19740_v50 = vld [vmem:[#allocation21_spill] sm:$0xff]  ;;  %v5379_v56 = vrot.slane %v19742_v24, 5 }
 0x189   : > { %v13342_v60 = vpop.f32.mrf.mxu0  ;;  %v5351_v39 = vrot.slane %v19736_v8, 5  ;;  %v16448_v43 = vld [vmem:[#allocation2 + $0xcc] sm:$0xe] }
 0x18a   : > { %v2411_v42 = vadd.f32 %v13342_v60, %v16047_v37  ;;  %v2708_v10 = vpop.f32.mrf.mxu1  ;;  %v5365_v60 = vrot.slane %v19738_v54, 5 }
 0x18b   : > { %v2306_v30 = vpop.f32.mrf.mxu0 }
 0x18c   : > { %v2409_v58 = vadd.f32 %v2306_v30, %v16063_v14  ;;  %v16414_v40 = vadd.f32 %v13390_v34, %v2411_v42  ;;  %v13395_v37 = vpop.f32.mrf.mxu1  ;;  %v19647_v30 = vrot.slane %v19739_v55, 5 }
 0x18d   : > { %13629 = vmatmul.mubr.bf16.gmra.mxu0 %v12165_v18  ;;  %v13343_v1 = vpop.f32.mrf.mxu0  ;;  %v5338_v18 = vsel %vm15037_vm14, %v5336_v21, %v5337_v11  ;;  %v12141_v11 = vrot.slane %v16426_v45, 9  ;;  %v5364_v21 = vrot.slane %v19645_v59, 4  ;;  %v12142_v45 = vrot.slane %v16437_v27, 9 }
 0x18e   : > { %v2412_v14 = vadd.f32 %v13343_v1, %v16088_v3  ;;  %v16429_v34 = vadd.f32 %v2692_v63, %v2409_v58  ;;  %13632 = vmatprep.mubr.bf16.mxu0 %v12166_v4  ;;  %v16433_v47 = vpop.f32.mrf.mxu1  ;;  %v12140_v3 = vrot.slane %v16416_v36, 9  ;;  %v19737_v63 = vld [vmem:[#allocation37_spill] sm:$0xff]  ;;  %v12168_v36 = vcombine.low %v5335_v44, %v5338_v18 }
 0x18f   : > { %19735 = vst [vmem:[#allocation50_spill] sm:$0xff] %v16433_v47  ;;  %v16439_v35 = vpop.f32.mrf.mxu0  ;;  %v19646_v46 = vrot.slane %v19737_v63, 5  ;;  %v5378_v18 = vrot.slane %v19647_v30, 4 }
 0x190   : > { %v16444_v4 = vadd.f32 %v13391_v26, %v2412_v14  ;;  %v13398_v32 = vpop.f32.mrf.mxu1  ;;  %v19741_v14 = vld [vmem:[#allocation38_spill] sm:$0xff] }
 0x191   : > { %v13346_v42 = vpop.f32.mrf.mxu0  ;;  %v5371_v26 = vrot.slane %v19646_v46, 4  ;;  %v5372_v54 = vrot.slane %v19741_v14, 5  ;;  %v19745_v14 = vld [vmem:[#allocation20_spill] sm:$0xff]  ;;  %v19746_v46 = vld [vmem:[#allocation19_spill] sm:$0xff] }
 0x192   : > { %v2415_v58 = vadd.f32 %v13346_v42, %v19740_v50  ;;  %v2724_v1 = vpop.f32.mrf.mxu1  ;;  %v19744_v42 = vcombine.low %v16369_v48, %v16376_v17  ;;  %v1873_v27 = vadd.f32 %v19746_v46, %v19745_v14  ;;  %v5349_v48 = vsel %vm15037_vm14, %v12138_v15, %v5348_v61  ;;  %v19749_v14 = vld [vmem:[#allocation26_spill] sm:$0xff] }
 0x193   : > { %v2322_v8 = vpop.f32.mrf.mxu0  ;;  %v5352_v17 = vsel %vm15037_vm14, %v5350_v13, %v5351_v39  ;;  %v19751_v61 = vcombine.low %v16392_v25, %v16401_v5  ;;  %v19752_v13 = vld [vmem:[#allocation28_spill] sm:$0xff] }
 0x194   : > { %v2413_v47 = vadd.f32 %v2322_v8, %v19743_v33  ;;  %v16460_v52 = vadd.f32 %v13394_v9, %v2415_v58  ;;  %v13399_v59 = vpop.f32.mrf.mxu1 }
 0x195   : > { %13633 = vmatmul.mubr.bf16.gmra.mxu0 %v19744_v42  ;;  %v13347_v44 = vpop.f32.mrf.mxu0 }
 0x196   : > { %v2416_v24 = vadd.f32 %v13347_v44, %v19747_v53  ;;  %v16471_v0 = vadd.f32 %v2708_v10, %v2413_v47  ;;  %13636 = vmatprep.mubr.bf16.mxu0 %v12168_v36  ;;  %v16473_v33 = vpop.f32.mrf.mxu1  ;;  %v12170_v10 = vcombine.low %v5349_v48, %v5352_v17  ;;  %v19750_v44 = vld [vmem:[#allocation27_spill] sm:$0xff]  ;;  %v5366_v48 = vsel %vm15037_vm14, %v5364_v21, %v5365_v60  ;;  %v19758_v21 = vld [vmem:[#allocation34_spill] sm:$0xff] }
 0x197   : > { %19748 = vst [vmem:[#allocation30_spill] sm:$0xff] %v16473_v33  ;;  %v2325_v9 = vpop.f32.mrf.mxu0 }
 0x198   : > { %v16479_v58 = vadd.f32 %v2325_v9, %v1873_v27  ;;  %v16481_v8 = vadd.f32 %v13395_v37, %v2416_v24  ;;  %v13402_v42 = vpop.f32.mrf.mxu1  ;;  %v19753_v9 = vrot.slane %v16213_v12, 5 }
 0x199   : > { %v13350_v46 = vpop.f32.mrf.mxu0 }
 0x19a   : > { %v2419_v53 = vadd.f32 %v13350_v46, %v19749_v14  ;;  %v2740_v47 = vpop.f32.mrf.mxu1  ;;  %v19754_v46 = vld [vmem:[#allocation31_spill] sm:$0xff] }
 0x19b   : > { %v2338_v36 = vpop.f32.mrf.mxu0 }
 0x19c   : > { %v2417_v50 = vadd.f32 %v2338_v36, %v19750_v44  ;;  %v16485_v30 = vadd.f32 %v13398_v32, %v2419_v53  ;;  %v13403_v33 = vpop.f32.mrf.mxu1  ;;  %v5363_v32 = vsel %vm15037_vm14, %v12140_v3, %v19753_v9  ;;  %v19756_v3 = vcombine.low %v16411_v49, %v16423_v6  ;;  %v14269_v49 = vld [vmem:[%s19623_s3 + $0x78] sm:$0xff]  }
 0x19d   : > { %13637 = vmatmul.mubr.bf16.gmra.mxu0 %v19751_v61  ;;  %v13351_v15 = vpop.f32.mrf.mxu0  ;;  %v5383_v9 = vrot.slane %v16256_v29, 5  ;;  %13652 = vmatprep.subr.bf16.mxu1 %v14269_v49 }
 0x19e   : > { %v2420_v37 = vadd.f32 %v13351_v15, %v19752_v13  ;;  %v16491_v39 = vadd.f32 %v2724_v1, %v2417_v50  ;;  %13640 = vmatprep.mubr.bf16.mxu0 %v12170_v10  ;;  %v16493_v27 = vpop.f32.mrf.mxu1  ;;  %v12172_v50 = vcombine.low %v5363_v32, %v5366_v48  ;;  %v19755_v10 = vld [vmem:[#allocation32_spill] sm:$0xff]  ;;  %13653 = vmatpush3.bf16.msra.mxu1 %v14269_v49 }
 0x19f   : > { %v16495_v24 = vpop.f32.mrf.mxu0  ;;  %v19760_v48 = vld [vmem:[#allocation36_spill] sm:$0xff] }
 0x1a0   : > { %v16503_v25 = vadd.f32 %v13399_v59, %v2420_v37  ;;  %v13406_v5 = vpop.f32.mrf.mxu1  ;;  %v19757_v59 = vrot.slane %v19737_v63, 5  ;;  %v19759_v63 = vrot.slane %v19739_v55, 5 }
 0x1a1   : > { %v13354_v17 = vpop.f32.mrf.mxu0 }
 0x1a2   : > { %v2423_v1 = vadd.f32 %v13354_v17, %v19754_v46  ;;  %v2756_v14 = vpop.f32.mrf.mxu1  ;;  %v5370_v60 = vsel %vm15037_vm14, %v12141_v11, %v19757_v59  ;;  %v5377_v11 = vsel %vm15037_vm14, %v12142_v45, %v19759_v63 }
 0x1a3   : > { %v2354_v53 = vpop.f32.mrf.mxu0 }
 0x1a4   : > { %v2421_v36 = vadd.f32 %v2354_v53, %v19755_v10  ;;  %v16507_v44 = vadd.f32 %v13402_v42, %v2423_v1  ;;  %v13407_v12 = vpop.f32.mrf.mxu1  ;;  %v5373_v42 = vsel %vm15037_vm14, %v5371_v26, %v5372_v54  ;;  %v5385_v1 = vrot.slane %v5383_v9, 4 }
 0x1a5   : > { %13641 = vmatmul.mubr.bf16.gmra.mxu0 %v19756_v3  ;;  %v13355_v61 = vpop.f32.mrf.mxu0  ;;  %v12173_v29 = vcombine.low %v5370_v60, %v5373_v42  ;;  %v19764_v60 = vrot.slane %v16448_v43, 9 }
 0x1a6   : > { %v2424_v15 = vadd.f32 %v13355_v61, %v19758_v21  ;;  %v16517_v13 = vadd.f32 %v2740_v47, %v2421_v36  ;;  %13644 = vmatprep.mubr.bf16.mxu0 %v12172_v50  ;;  %v16521_v37 = vpop.f32.mrf.mxu1  ;;  %v5380_v47 = vsel %vm15037_vm14, %v5378_v18, %v5379_v56  ;;  %v19761_v50 = vld [vmem:[#allocation44_spill] sm:$0xff]  ;;  %v19762_v36 = vld [vmem:[#allocation39_spill] sm:$0xff] }
 0x1a7   : > { %v16527_v6 = vpop.f32.mrf.mxu0  ;;  %v12174_v46 = vcombine.low %v5377_v11, %v5380_v47  ;;  %v5386_v53 = vrot.slane %v19761_v50, 5  ;;  %v5384_v21 = vsel %vm15037_vm14, %v19764_v60, %v5383_v9 }
 0x1a8   : > { %v16535_v32 = vadd.f32 %v13403_v33, %v2424_v15  ;;  %v13410_v26 = vpop.f32.mrf.mxu1  ;;  %v19763_v33 = vld [vmem:[#allocation43_spill] sm:$0xff] }
 0x1a9   : > { %v13358_v54 = vpop.f32.mrf.mxu0  ;;  %v5387_v15 = vsel %vm15037_vm14, %v5385_v1, %v5386_v53 }
 0x1aa   : > { %v2427_v17 = vadd.f32 %v13358_v54, %v19760_v48  ;;  %v2772_v55 = vpop.f32.mrf.mxu1  ;;  %v12175_v11 = vcombine.low %v5384_v21, %v5387_v15 }
 0x1ab   : > { %v2370_v10 = vpop.f32.mrf.mxu0 }
 0x1ac   : > { %v2425_v45 = vadd.f32 %v2370_v10, %v19762_v36  ;;  %v16540_v3 = vadd.f32 %v13406_v5, %v2427_v17  ;;  %v13411_v56 = vpop.f32.mrf.mxu1  ;;  %v14270_v5 = vld [vmem:[%s19623_s3 + $0x70] sm:$0xff]  }
 0x1ad   : > { %13645 = vmatmul.mubr.bf16.gmra.mxu0 %v12173_v29  ;;  %v13359_v18 = vpop.f32.mrf.mxu0  ;;  %13654 = vmatprep.subr.bf16.mxu1 %v14270_v5 }
 0x1ae   : > { %v2428_v61 = vadd.f32 %v13359_v18, %v19763_v33  ;;  %v16543_v59 = vadd.f32 %v2756_v14, %v2425_v45  ;;  %13648 = vmatprep.mubr.bf16.mxu0 %v12174_v46  ;;  %v16551_v42 = vpop.f32.mrf.mxu1  ;;  %13655 = vmatpush3.bf16.msra.mxu1 %v14270_v5  ;;  %v14272_v33 = vld [vmem:[%s19623_s3 + $0x38] sm:$0xff]  }
 0x1af   : > { %v16556_v49 = vpop.f32.mrf.mxu0  ;;  %13700 = vmatprep.subr.bf16.mxu0 %v14272_v33 }
 0x1b0   : > { %v16558_v63 = vadd.f32 %v13407_v12, %v2428_v61  ;;  %v16560_v14 = vpop.f32.mrf.mxu1  ;;  %13701 = vmatpush3.bf16.msra.mxu0 %v14272_v33 }
 0x1b2   : > { %v16563_v47 = vpop.f32.mrf.mxu1 }
 0x1b3   : > { %v13362_v43 = vpop.f32.mrf.mxu0 }
 0x1b4   : > { %v2431_v9 = vadd.f32 %v13362_v43, %v16280_v62  ;;  %v16568_v17 = vpop.f32.mrf.mxu1 }
 0x1b5   : > { %v2386_v54 = vpop.f32.mrf.mxu0  ;;  %19765 = vst [vmem:[#allocation37_spill] sm:$0xff] %v16568_v17  ;;  %13649 = vmatmul.mubr.bf16.gmra.mxu0 %v12175_v11  ;;  %v5792_v11 = vld [vmem:[#allocation3 + $0x18] sm:$0x1] }
 0x1b6   : > { %v2429_v29 = vadd.f32 %v2386_v54, %v16288_v23  ;;  %v16566_v48 = vadd.f32 %v13410_v26, %v2431_v9  ;;  %v16573_v50 = vpop.f32.mrf.mxu1  ;;  %v14271_v23 = vld [vmem:[%s19623_s3 + $0x68] sm:$0xff]   ;;  %v5793_v54 = vsel %vm14575_vm5, 0, %v5792_v11 }
 0x1b7   : > { %v13363_v12 = vpop.f32.mrf.mxu0  ;;  %19766 = vst [vmem:[#allocation35_spill] sm:$0xff] %v16573_v50  ;;  %13656 = vmatprep.subr.bf16.mxu1 %v14271_v23  ;;  %5794 = vst [vmem:[#allocation3 + $0x18] sm:$0x1] %v5793_v54 }
 0x1b8   : > { %v2432_v46 = vadd.f32 %v13363_v12, %v16301_v28  ;;  %v16571_v1 = vadd.f32 %v2772_v55, %v2429_v29  ;;  %v16579_v10 = vpop.f32.mrf.mxu1  ;;  %13657 = vmatpush3.bf16.msra.mxu1 %v14271_v23  ;;  %v14275_v23 = vld [vmem:[%s19623_s3 + $0x28] sm:$0xff]  }
 0x1b9   : > { %v16575_v53 = vpop.f32.mrf.mxu0  ;;  %19767 = vst [vmem:[#allocation41_spill] sm:$0xff] %v16579_v10  ;;  %v5852_v10 = vld [vmem:[#allocation3 + $0x50] sm:$0x1] }
 0x1ba   : > { %v16577_v62 = vadd.f32 %v13411_v56, %v2432_v46  ;;  %v16587_v45 = vpop.f32.mrf.mxu1 }
 0x1bb   : > { %v13430_v26 = vpop.f32.mrf.mxu0  ;;  %19768 = vst [vmem:[#allocation21_spill] sm:$0xff] %v16587_v45 }
 0x1bc   : > { %v16585_v36 = vadd.f32 %v13430_v26, %v16329_v7  ;;  %v13483_v56 = vpop.f32.mrf.mxu1 }
 0x1bd   : > { %v3414_v28 = vpop.f32.mrf.mxu0 }
 0x1be   : > { %v16590_v55 = vadd.f32 %v3414_v28, %v16340_v16  ;;  %v16598_v60 = vpop.f32.mrf.mxu1  ;;  %v14274_v16 = vld [vmem:[%s19623_s3 + $0x30] sm:$0xff]   ;;  %v5789_v28 = vld [vmem:[#allocation3 + $0xc] sm:$0x1] }
 0x1bf   : > { %v13431_v18 = vpop.f32.mrf.mxu0  ;;  %19770 = vst [vmem:[#allocation42_spill] sm:$0xff] %v16598_v60  ;;  %13702 = vmatprep.subr.bf16.mxu0 %v14274_v16  ;;  %v5790_v33 = vsel %vm14575_vm5, 0, %v5789_v28  ;;  %v5838_v28 = vsel %vm14583_vm7, 0, %v5837_v20 }
 0x1c0   : > { %v16596_v61 = vadd.f32 %v13431_v18, %v16354_v2  ;;  %v13486_v21 = vpop.f32.mrf.mxu1  ;;  %13703 = vmatpush3.bf16.msra.mxu0 %v14274_v16  ;;  %5791 = vst [vmem:[#allocation3 + $0xc] sm:$0x1] %v5790_v33  ;;  %v5840_v16 = vld [vmem:[#allocation3 + $0x20] sm:$0x1]  ;;  %5839 = vst [vmem:[#allocation3 + $0x14] sm:$0x1] %v5838_v28 }
 0x1c1   : > { %v16600_v7 = vpop.f32.mrf.mxu0  ;;  %13704 = vmatprep.subr.bf16.mxu0 %v14275_v23  ;;  %v5841_v54 = vsel %vm14583_vm7, 0, %v5840_v16  ;;  %v5798_v16 = vld [vmem:[#allocation3 + $0x30] sm:$0x1] }
 0x1c2   : > { %19769 = vst [vmem:[#allocation38_spill] sm:$0xff] %v16596_v61  ;;  %v3944_v43 = vpop.f32.mrf.mxu1  ;;  %5842 = vst [vmem:[#allocation3 + $0x20] sm:$0x1] %v5841_v54 }
 0x1c3   : > { %v13434_v15 = vpop.f32.mrf.mxu0 }
 0x1c4   : > { %v16606_v5 = vadd.f32 %v13434_v15, %v16372_v31  ;;  %v13487_v12 = vpop.f32.mrf.mxu1  ;;  %13705 = vmatpush3.bf16.msra.mxu0 %v14275_v23 }
 0x1c5   : > { %v3430_v9 = vpop.f32.mrf.mxu0 }
 0x1c6   : > { %19771 = vst [vmem:[#allocation23_spill] sm:$0xff] %v16606_v5  ;;  %v16611_v29 = vadd.f32 %v3430_v9, %v16382_v22  ;;  %v16617_v26 = vpop.f32.mrf.mxu1 }
 0x1c7   : > { %v13435_v46 = vpop.f32.mrf.mxu0  ;;  %19774 = vst [vmem:[#allocation19_spill] sm:$0xff] %v16617_v26 }
 0x1c8   : > { %19773 = vst [vmem:[#allocation20_spill] sm:$0xff] %v16611_v29  ;;  %v3548_v31 = vadd.f32 %v13435_v46, %v16394_v51  ;;  %v13490_v15 = vpop.f32.mrf.mxu1 }
 0x1c9   : > { %v16619_v18 = vpop.f32.mrf.mxu0 }
 0x1ca   : > { %v16623_v22 = vadd.f32 %v13483_v56, %v3548_v31  ;;  %v3960_v46 = vpop.f32.mrf.mxu1  ;;  %v14277_v56 = vld [vmem:[%s19623_s3 + $0x20] sm:$0xff]  }
 0x1cb   : > { %v13438_v11 = vpop.f32.mrf.mxu0  ;;  %13706 = vmatprep.subr.bf16.mxu0 %v14277_v56 }
 0x1cc   : > { %v3551_v51 = vadd.f32 %v13438_v11, %v16414_v40  ;;  %v13491_v33 = vpop.f32.mrf.mxu1  ;;  %v14273_v40 = vld [vmem:[%s19623_s3 + $0x60] sm:$0xff]   ;;  %v5799_v11 = vsel %vm14575_vm5, 0, %v5798_v16  ;;  %13707 = vmatpush3.bf16.msra.mxu0 %v14277_v56  ;;  %v5846_v56 = vld [vmem:[#allocation3 + $0x38] sm:$0x1] }
 0x1cd   : > { %v3446_v26 = vpop.f32.mrf.mxu0  ;;  %5800 = vst [vmem:[#allocation3 + $0x30] sm:$0x1] %v5799_v11  ;;  %13658 = vmatprep.subr.bf16.mxu1 %v14273_v40  ;;  %v5847_v11 = vsel %vm14583_vm7, 0, %v5846_v56 }
 0x1ce   : > { %v3549_v31 = vadd.f32 %v3446_v26, %v16429_v34  ;;  %v16634_v23 = vadd.f32 %v13486_v21, %v3551_v51  ;;  %v16644_v45 = vpop.f32.mrf.mxu1  ;;  %v5795_v34 = vld [vmem:[#allocation3 + $0x24] sm:$0x1]  ;;  %13659 = vmatpush3.bf16.msra.mxu1 %v14273_v40  ;;  %5848 = vst [vmem:[#allocation3 + $0x38] sm:$0x1] %v5847_v11  ;;  %v5801_v11 = vld [vmem:[#allocation3 + $0x3c] sm:$0x1] }
 0x1cf   : > { %v13439_v60 = vpop.f32.mrf.mxu0  ;;  %19776 = vst [vmem:[#allocation24_spill] sm:$0xff] %v16644_v45  ;;  %v5796_v26 = vsel %vm14575_vm5, 0, %v5795_v34  ;;  %v5843_v34 = vld [vmem:[#allocation3 + $0x2c] sm:$0x1] }
 0x1d0   : > { %v3552_v20 = vadd.f32 %v13439_v60, %v16444_v4  ;;  %v16642_v54 = vadd.f32 %v3944_v43, %v3549_v31  ;;  %v13494_v28 = vpop.f32.mrf.mxu1  ;;  %5797 = vst [vmem:[#allocation3 + $0x24] sm:$0x1] %v5796_v26  ;;  %v14278_v4 = vld [vmem:[%s19623_s3 + $0x18] sm:$0xff]   ;;  %v5844_v45 = vsel %vm14583_vm7, 0, %v5843_v34 }
 0x1d1   : > { %v16646_v21 = vpop.f32.mrf.mxu0  ;;  %13708 = vmatprep.subr.bf16.mxu0 %v14278_v4  ;;  %5845 = vst [vmem:[#allocation3 + $0x2c] sm:$0x1] %v5844_v45  ;;  %v5802_v45 = vsel %vm14575_vm5, 0, %v5801_v11 }
 0x1d2   : > { %v16650_v51 = vadd.f32 %v13487_v12, %v3552_v20  ;;  %v3976_v31 = vpop.f32.mrf.mxu1  ;;  %13709 = vmatpush3.bf16.msra.mxu0 %v14278_v4  ;;  %5803 = vst [vmem:[#allocation3 + $0x3c] sm:$0x1] %v5802_v45 }
 0x1d3   : > { %v13442_v60 = vpop.f32.mrf.mxu0 }
 0x1d4   : > { %v3555_v43 = vadd.f32 %v13442_v60, %v16460_v52  ;;  %v13495_v40 = vpop.f32.mrf.mxu1  ;;  %v14280_v52 = vld [vmem:[%s19623_s3 + $0x10] sm:$0xff]  }
 0x1d5   : > { %v3462_v16 = vpop.f32.mrf.mxu0  ;;  %13710 = vmatprep.subr.bf16.mxu0 %v14280_v52 }
 0x1d6   : > { %v3553_v12 = vadd.f32 %v3462_v16, %v16471_v0  ;;  %v16659_v20 = vadd.f32 %v13490_v15, %v3555_v43  ;;  %v16669_v4 = vpop.f32.mrf.mxu1  ;;  %v14276_v0 = vld [vmem:[%s19623_s3 + $0x58] sm:$0xff]   ;;  %v5804_v43 = vld [vmem:[#allocation3 + $0x48] sm:$0x1]  ;;  %13711 = vmatpush3.bf16.msra.mxu0 %v14280_v52  ;;  %v14281_v52 = vld [vmem:[%s19623_s3 + $0x8] sm:$0xff]  }
 0x1d7   : > { %v13443_v26 = vpop.f32.mrf.mxu0  ;;  %19777 = vst [vmem:[#allocation26_spill] sm:$0xff] %v16669_v4  ;;  %13660 = vmatprep.subr.bf16.mxu1 %v14276_v0  ;;  %13712 = vmatprep.subr.bf16.mxu0 %v14281_v52 }
 0x1d8   : > { %v3556_v60 = vadd.f32 %v13443_v26, %v16481_v8  ;;  %v16667_v29 = vadd.f32 %v3960_v46, %v3553_v12  ;;  %v13498_v16 = vpop.f32.mrf.mxu1  ;;  %v5805_v8 = vsel %vm14575_vm5, 0, %v5804_v43  ;;  %13661 = vmatpush3.bf16.msra.mxu1 %v14276_v0  ;;  %v5853_v43 = vsel %vm14583_vm7, 0, %v5852_v10 }
 0x1d9   : > { %v16674_v15 = vpop.f32.mrf.mxu0  ;;  %5806 = vst [vmem:[#allocation3 + $0x48] sm:$0x1] %v5805_v8  ;;  %5854 = vst [vmem:[#allocation3 + $0x50] sm:$0x1] %v5853_v43  ;;  %v6588_v43 = vld [vmem:[#allocation3] sm:$0xf] }
 0x1da   : > { %19778 = vst [vmem:[#allocation27_spill] sm:$0xff] %v16674_v15  ;;  %v16676_v56 = vadd.f32 %v13491_v33, %v3556_v60  ;;  %v3992_v34 = vpop.f32.mrf.mxu1  ;;  %13713 = vmatpush3.bf16.msra.mxu0 %v14281_v52 }
 0x1db   : > { %v13446_v46 = vpop.f32.mrf.mxu0 }
 0x1dc   : > { %v3559_v12 = vadd.f32 %v13446_v46, %v16485_v30  ;;  %v13499_v4 = vpop.f32.mrf.mxu1  ;;  %v14279_v30 = vld [vmem:[%s19623_s3 + $0x50] sm:$0xff]  }
 0x1dd   : > { %v3478_v26 = vpop.f32.mrf.mxu0  ;;  %13662 = vmatprep.subr.bf16.mxu1 %v14279_v30 }
 0x1de   : > { %v3557_v33 = vadd.f32 %v3478_v26, %v16491_v39  ;;  %v16684_v60 = vadd.f32 %v13494_v28, %v3559_v12  ;;  %v5849_v39 = vld [vmem:[#allocation3 + $0x44] sm:$0x1]  ;;  %v16699_v11 = vpop.f32.mrf.mxu1  ;;  %13663 = vmatpush3.bf16.msra.mxu1 %v14279_v30 }
 0x1df   : > { %v13447_v0 = vpop.f32.mrf.mxu0  ;;  %19780 = vst [vmem:[#allocation31_spill] sm:$0xff] %v16699_v11  ;;  %v5850_v12 = vsel %vm14583_vm7, 0, %v5849_v39  ;;  %v6589_v11 = vld [vmem:[#allocation3 + $0x4] sm:$0xf]  ;;  %v5807_v39 = vld [vmem:[#allocation3 + $0x54] sm:$0x1] }
 0x1e0   : > { %v3560_v8 = vadd.f32 %v13447_v0, %v16503_v25  ;;  %v16695_v46 = vadd.f32 %v3976_v31, %v3557_v33  ;;  %5851 = vst [vmem:[#allocation3 + $0x44] sm:$0x1] %v5850_v12  ;;  %v14283_v25 = vld [vmem:[%s19623_s3] sm:$0xff]   ;;  %v13502_v33 = vpop.f32.mrf.mxu1  ;;  %v5810_v0 = vld [vmem:[#allocation3 + $0x60] sm:$0x1]  ;;  %v12265_v12 = vcombine.low %v6588_v43, %v6589_v11 }
 0x1e1   : > { %v16697_v28 = vpop.f32.mrf.mxu0  ;;  %13714 = vmatprep.subr.bf16.mxu0 %v14283_v25  ;;  %v5811_v30 = vsel %vm14575_vm5, 0, %v5810_v0 }
 0x1e2   : > { %19779 = vst [vmem:[#allocation28_spill] sm:$0xff] %v16697_v28  ;;  %v16703_v45 = vadd.f32 %v13495_v40, %v3560_v8  ;;  %13715 = vmatpush3.bf16.msra.mxu0 %v14283_v25  ;;  %5812 = vst [vmem:[#allocation3 + $0x60] sm:$0x1] %v5811_v30  ;;  %13716 = vmatprep.mubr.bf16.mxu0 %v12265_v12 }
 0x1e3   : > { %v13450_v10 = vpop.f32.mrf.mxu0 }
 0x1e4   : > { %v3563_v31 = vadd.f32 %v13450_v10, %v16507_v44  ;;  %v14282_v44 = vld [vmem:[%s19623_s3 + $0x48] sm:$0xff]  }
 0x1e5   : > { %v3494_v26 = vpop.f32.mrf.mxu0  ;;  %13664 = vmatprep.subr.bf16.mxu1 %v14282_v44 }
 0x1e6   : > { %v3561_v52 = vadd.f32 %v3494_v26, %v16517_v13  ;;  %v16710_v40 = vadd.f32 %v13498_v16, %v3563_v31  ;;  %v5808_v13 = vsel %vm14575_vm5, 0, %v5807_v39  ;;  %v4008_v31 = vpop.f32.mrf.mxu1  ;;  %v5858_v26 = vld [vmem:[#allocation3 + $0x68] sm:$0x1]  ;;  %13665 = vmatpush3.bf16.msra.mxu1 %v14282_v44 }
 0x1e7   : > { %v13451_v8 = vpop.f32.mrf.mxu0  ;;  %5809 = vst [vmem:[#allocation3 + $0x54] sm:$0x1] %v5808_v13  ;;  %v5859_v30 = vsel %vm14583_vm7, 0, %v5858_v26 }
 0x1e8   : > { %v3564_v10 = vadd.f32 %v13451_v8, %v16535_v32  ;;  %v16718_v25 = vadd.f32 %v3992_v34, %v3561_v52  ;;  %5860 = vst [vmem:[#allocation3 + $0x68] sm:$0x1] %v5859_v30  ;;  %v5855_v34 = vld [vmem:[#allocation3 + $0x5c] sm:$0x1]  ;;  %v13503_v8 = vpop.f32.mrf.mxu1 }
 0x1e9   : > { %v16722_v16 = vpop.f32.mrf.mxu0  ;;  %v5856_v39 = vsel %vm14583_vm7, 0, %v5855_v34 }
 0x1ea   : > { %19781 = vst [vmem:[#allocation32_spill] sm:$0xff] %v16722_v16  ;;  %v16724_v0 = vadd.f32 %v13499_v4, %v3564_v10  ;;  %5857 = vst [vmem:[#allocation3 + $0x5c] sm:$0x1] %v5856_v39  ;;  %v5816_v4 = vld [vmem:[#allocation3 + $0x78] sm:$0x1] }
 0x1eb   : > { %v13454_v28 = vpop.f32.mrf.mxu0  ;;  %v5817_v12 = vsel %vm14575_vm5, 0, %v5816_v4  ;;  %v6665_v4 = vshll.u32 %v6589_v11, 16 }
 0x1ec   : > { %v3567_v32 = vadd.f32 %v13454_v28, %v16540_v3  ;;  %5818 = vst [vmem:[#allocation3 + $0x78] sm:$0x1] %v5817_v12  ;;  %v16739_v3 = vpop.f32.mrf.mxu1 }
 0x1ed   : > { %v3510_v52 = vpop.f32.mrf.mxu0  ;;  %19782 = vst [vmem:[#allocation34_spill] sm:$0xff] %v16739_v3  ;;  %v6667_v3 = vrot.slane %v6665_v4, 5 }
 0x1ee   : > { %v3565_v13 = vadd.f32 %v3510_v52, %v16543_v59  ;;  %v16732_v16 = vadd.f32 %v13502_v33, %v3567_v32  ;;  %v6656_v59 = vshrl.u32 %v6588_v43, 16  ;;  %v6659_v33 = vshll.u32 %v6588_v43, 16  ;;  %v14286_v32 = vld [vmem:[%s19623_s3 + $0x40] sm:$0xff]  }
 0x1ef   : > { %v13455_v44 = vpop.f32.mrf.mxu0  ;;  %v6669_v52 = vshrl.u32 %v6589_v11, 16  ;;  %13666 = vmatprep.subr.bf16.mxu1 %v14286_v32 }
 0x1f0   : > { %v3568_v10 = vadd.f32 %v13455_v44, %v16558_v63  ;;  %v16737_v26 = vadd.f32 %v4008_v31, %v3565_v13  ;;  %13667 = vmatpush3.bf16.msra.mxu1 %v14286_v32  ;;  %v6658_v39 = vrot.slane %v6656_v59, 4  ;;  %v6661_v13 = vrot.slane %v6659_v33, 5  ;;  %v5813_v44 = vld [vmem:[#allocation3 + $0x6c] sm:$0x1]  ;;  %v6636_v32 = vld [vmem:[#allocation3 + $0x8] sm:$0x1] }
 0x1f1   : > { %v16743_v30 = vpop.f32.mrf.mxu0  ;;  %v5814_v43 = vsel %vm14575_vm5, 0, %v5813_v44 }
 0x1f2   : > { %v16741_v28 = vadd.f32 %v13503_v8, %v3568_v10  ;;  %19783 = vst [vmem:[#allocation36_spill] sm:$0xff] %v16743_v30  ;;  %v6671_v30 = vrot.slane %v6669_v52, 4  ;;  %5815 = vst [vmem:[#allocation3 + $0x6c] sm:$0x1] %v5814_v43  ;;  %v6662_v11 = vor.u32 %v6661_v13, %v6658_v39  ;;  %v5864_v39 = vld [vmem:[#allocation3 + $0x80] sm:$0x1] }
 0x1f3   : > { %v13506_v34 = vpop.f32.mrf.mxu1  ;;  %v5865_v43 = vsel %vm14583_vm7, 0, %v5864_v39 }
 0x1f4   : > { %v6672_v33 = vor.u32 %v6671_v30, %v6667_v3  ;;  %v6663_v52 = vrot.slane %v6662_v11, 4  ;;  %5866 = vst [vmem:[#allocation3 + $0x80] sm:$0x1] %v5865_v43  ;;  %v5822_v11 = vld [vmem:[#allocation3 + $0x90] sm:$0x1] }
 0x1f5   : > { %v13458_v63 = vpop.f32.mrf.mxu0  ;;  %v4024_v31 = vpop.f32.mrf.mxu1 }
 0x1f6   : > { %v3571_v8 = vadd.f32 %v13458_v63, %v16566_v48  ;;  %v6675_v48 = vshll.u32 %v6636_v32, 16  ;;  %v6668_v30 = vsel %vm14596_vm8, %v6663_v52, %v6667_v3  ;;  %v5861_v32 = vld [vmem:[#allocation3 + $0x74] sm:$0x1] }
 0x1f7   : > { %v3526_v12 = vpop.f32.mrf.mxu0  ;;  %v13507_v10 = vpop.f32.mrf.mxu1  ;;  %v5862_v3 = vsel %vm14583_vm7, 0, %v5861_v32 }
 0x1f8   : > { %v3569_v5 = vadd.f32 %v3526_v12, %v16571_v1  ;;  %v16752_v50 = vadd.f32 %v13506_v34, %v3571_v8  ;;  %v6673_v1 = vrot.slane %v6672_v33, 4  ;;  %v6677_v34 = vrot.slane %v6675_v48, 5  ;;  %5863 = vst [vmem:[#allocation3 + $0x74] sm:$0x1] %v5862_v3 }
 0x1f9   : > { %v13459_v17 = vpop.f32.mrf.mxu0  ;;  %v16754_v59 = vpop.f32.mrf.mxu1 }
 0x1fa   : > { %v3572_v63 = vadd.f32 %v13459_v17, %v16577_v62  ;;  %v16757_v61 = vadd.f32 %v4024_v31, %v3569_v5  ;;  %v6678_v17 = vsel %vm14596_vm8, %v6673_v1, %v6677_v34  ;;  %v14290_v34 = vld [vmem:[%s19623_s3 + $0xb8] sm:$0xff]  }
 0x1fb   : > { %v16759_v15 = vpop.f32.mrf.mxu0  ;;  %v16761_v4 = vpop.f32.mrf.mxu1  ;;  %v12241_v62 = vcombine.low %v6668_v30, %v6678_v17  ;;  %13748 = vmatprep.subr.bf16.mxu1 %v14290_v34 }
 0x1fc   : > { %v16763_v8 = vadd.f32 %v13507_v10, %v3572_v63  ;;  %v5823_v63 = vsel %vm14575_vm5, 0, %v5822_v11 }
 0x1fd   : > { %v16765_v44 = vpop.f32.mrf.mxu0  ;;  %v16767_v12 = vpop.f32.mrf.mxu1  ;;  %13668 = vmatprep.mubr.bf16.mxu1 %v12241_v62  ;;  %5824 = vst [vmem:[#allocation3 + $0x90] sm:$0x1] %v5823_v63  ;;  %v5819_v62 = vld [vmem:[#allocation3 + $0x84] sm:$0x1] }
 0x1fe   : > { %v5820_v39 = vsel %vm14575_vm5, 0, %v5819_v62 }
 0x1ff   : > { %v16773_v5 = vpop.f32.mrf.mxu0  ;;  %v16775_v31 = vpop.f32.mrf.mxu1  ;;  %5821 = vst [vmem:[#allocation3 + $0x84] sm:$0x1] %v5820_v39 }
 0x201   : > { %v16777_v13 = vpop.f32.mrf.mxu0  ;;  %v16779_v10 = vpop.f32.mrf.mxu1 }
 0x203   : > { %v16785_v33 = vpop.f32.mrf.mxu0  ;;  %v16787_v48 = vpop.f32.mrf.mxu1 }
 0x204   : > { %19784 = vst [vmem:[#allocation44_spill] sm:$0xff] %v16787_v48 }
 0x205   : > { %v16791_v52 = vpop.f32.mrf.mxu0  ;;  %v16793_v1 = vpop.f32.mrf.mxu1 }
 0x206   : > { %19785 = vst [vmem:[#allocation39_spill] sm:$0xff] %v16793_v1 }
 0x207   : > { %v16798_v30 = vpop.f32.mrf.mxu0  ;;  %v16800_v17 = vpop.f32.mrf.mxu1 }
 0x208   : > { %19786 = vst [vmem:[#allocation43_spill] sm:$0xff] %v16800_v17 }
 0x209   : > { %v13531_v43 = vpop.f32.mrf.mxu0  ;;  %v16804_v32 = vpop.f32.mrf.mxu1 }
 0x20a   : > { %19787 = vst [vmem:[#allocation7_spill] sm:$0xff] %v16804_v32  ;;  %v16807_v3 = vadd.f32 %v13531_v43, %v16623_v22  ;;  %v5870_v43 = vld [vmem:[#allocation3 + $0x98] sm:$0x1] }
 0x20b   : > { %v16809_v11 = vpop.f32.mrf.mxu0  ;;  %v16811_v63 = vpop.f32.mrf.mxu1 }
 0x20c   : > { %19788 = vst [vmem:[#allocation8_spill] sm:$0xff] %v16811_v63 }
 0x20d   : > { %v13534_v38 = vpop.f32.mrf.mxu0  ;;  %v16813_v1 = vpop.f32.mrf.mxu1 }
 0x20e   : > { %19789 = vst [vmem:[#allocation51_spill] sm:$0xff] %v16813_v1  ;;  %v16816_v17 = vadd.f32 %v13534_v38, %v16634_v23  ;;  %v5871_v1 = vsel %vm14583_vm7, 0, %v5870_v43 }
 0x20f   : > { %v4331_v34 = vpop.f32.mrf.mxu0  ;;  %v16818_v48 = vpop.f32.mrf.mxu1  ;;  %5872 = vst [vmem:[#allocation3 + $0x98] sm:$0x1] %v5871_v1 }
 0x210   : > { %19790 = vst [vmem:[#allocation52_spill] sm:$0xff] %v16816_v17  ;;  %19791 = vst [vmem:[#allocation53_spill] sm:$0xff] %v16818_v48  ;;  %v16821_v62 = vadd.f32 %v4331_v34, %v16642_v54  ;;  %v5867_v48 = vld [vmem:[#allocation3 + $0x8c] sm:$0x1]  ;;  %v5828_v17 = vld [vmem:[#allocation3 + $0xa8] sm:$0x1] }
 0x211   : > { %v13535_v39 = vpop.f32.mrf.mxu0  ;;  %v16823_v32 = vpop.f32.mrf.mxu1 }
 0x212   : > { %19792 = vst [vmem:[#allocation54_spill] sm:$0xff] %v16823_v32  ;;  %v16826_v22 = vadd.f32 %v13535_v39, %v16650_v51  ;;  %v5868_v51 = vsel %vm14583_vm7, 0, %v5867_v48  ;;  %v5829_v39 = vsel %vm14575_vm5, 0, %v5828_v17 }
 0x213   : > { %v16828_v63 = vpop.f32.mrf.mxu0  ;;  %v16832_v38 = vpop.f32.mrf.mxu1  ;;  %5869 = vst [vmem:[#allocation3 + $0x8c] sm:$0x1] %v5868_v51  ;;  %5830 = vst [vmem:[#allocation3 + $0xa8] sm:$0x1] %v5829_v39 }
 0x214   : > { %19793 = vst [vmem:[#allocation55_spill] sm:$0xff] %v16826_v22  ;;  %19794 = vst [vmem:[#allocation56_spill] sm:$0xff] %v16832_v38 }
 0x215   : > { %v13538_v23 = vpop.f32.mrf.mxu0  ;;  %v16837_v34 = vpop.f32.mrf.mxu1 }
 0x216   : > { %v16835_v54 = vadd.f32 %v13538_v23, %v16659_v20  ;;  %19796 = vst [vmem:[#allocation58_spill] sm:$0xff] %v16837_v34  ;;  %v5825_v34 = vld [vmem:[#allocation3 + $0x9c] sm:$0x1] }
 0x217   : > { %v4347_v32 = vpop.f32.mrf.mxu0  ;;  %v16846_v1 = vpop.f32.mrf.mxu1  ;;  %v5826_v48 = vsel %vm14575_vm5, 0, %v5825_v34 }
 0x218   : > { %19795 = vst [vmem:[#allocation57_spill] sm:$0xff] %v16835_v54  ;;  %v16844_v43 = vadd.f32 %v4347_v32, %v16667_v29  ;;  %19798 = vst [vmem:[#allocation60_spill] sm:$0xff] %v16846_v1 }
 0x219   : > { %v13539_v38 = vpop.f32.mrf.mxu0  ;;  %v16851_v23 = vpop.f32.mrf.mxu1  ;;  %5827 = vst [vmem:[#allocation3 + $0x9c] sm:$0x1] %v5826_v48 }
 0x21a   : > { %19797 = vst [vmem:[#allocation59_spill] sm:$0xff] %v16844_v43  ;;  %v16849_v20 = vadd.f32 %v13539_v38, %v16676_v56  ;;  %19800 = vst [vmem:[#allocation62_spill] sm:$0xff] %v16851_v23 }
 0x21b   : > { %v16853_v54 = vpop.f32.mrf.mxu0 }
 0x21c   : > { %19799 = vst [vmem:[#allocation61_spill] sm:$0xff] %v16849_v20  ;;  %v16857_v51 = vpop.f32.mrf.mxu1  ;;  %v5876_v20 = vld [vmem:[#allocation3 + $0xb0] sm:$0x1] }
 0x21d   : > { %v13542_v17 = vpop.f32.mrf.mxu0  ;;  %19801 = vst [vmem:[#allocation63_spill] sm:$0xff] %v16857_v51 }
 0x21e   : > { %v16860_v29 = vadd.f32 %v13542_v17, %v16684_v60  ;;  %v16862_v39 = vpop.f32.mrf.mxu1  ;;  %v5877_v17 = vsel %vm14583_vm7, 0, %v5876_v20 }
 0x21f   : > { %v4363_v32 = vpop.f32.mrf.mxu0  ;;  %19803 = vst [vmem:[#allocation65_spill] sm:$0xff] %v16862_v39  ;;  %5878 = vst [vmem:[#allocation3 + $0xb0] sm:$0x1] %v5877_v17  ;;  %v19812_v39 = vld [vmem:[#allocation13_spill] sm:$0xff] }
 0x220   : > { %19802 = vst [vmem:[#allocation64_spill] sm:$0xff] %v16860_v29  ;;  %v16865_v56 = vadd.f32 %v4363_v32, %v16695_v46  ;;  %v16867_v23 = vpop.f32.mrf.mxu1 }
 0x221   : > { %v13543_v38 = vpop.f32.mrf.mxu0  ;;  %19805 = vst [vmem:[#allocation67_spill] sm:$0xff] %v16867_v23  ;;  %v19811_v23 = vld [vmem:[#allocation14_spill] sm:$0xff] }
 0x222   : > { %19804 = vst [vmem:[#allocation66_spill] sm:$0xff] %v16865_v56  ;;  %v16870_v1 = vadd.f32 %v13543_v38, %v16703_v45  ;;  %v16874_v48 = vpop.f32.mrf.mxu1  ;;  %v1825_v45 = vadd.f32 %v19812_v39, %v19811_v23  ;;  %v19815_v56 = vld [vmem:[#allocation15_spill] sm:$0xff]  ;;  %v19819_v39 = vld [vmem:[#allocation25_spill] sm:$0xff] }
 0x223   : > { %v16872_v34 = vpop.f32.mrf.mxu0  ;;  %19808 = vst [vmem:[#allocation70_spill] sm:$0xff] %v16874_v48  ;;  %v19814_v48 = vld [vmem:[#allocation16_spill] sm:$0xff]  ;;  %v19864_v9 = vld [vmem:[#allocation61_spill] sm:$0xff] }
 0x224   : > { %19806 = vst [vmem:[#allocation68_spill] sm:$0xff] %v16870_v1  ;;  %19807 = vst [vmem:[#allocation69_spill] sm:$0xff] %v16872_v34  ;;  %v5873_v1 = vld [vmem:[#allocation3 + $0xa4] sm:$0x1]  ;;  %v1841_v29 = vadd.f32 %v19815_v56, %v19814_v48  ;;  %v2402_v22 = vadd.f32 %v16349_v41, %v1825_v45  ;;  %v19820_v56 = vld [vmem:[#allocation22_spill] sm:$0xff] }
 0x225   : > { %v13546_v51 = vpop.f32.mrf.mxu0  ;;  %v16881_v32 = vpop.f32.mrf.mxu1  ;;  %v5874_v20 = vsel %vm14583_vm7, 0, %v5873_v1  ;;  %v1889_v48 = vadd.f32 %v19820_v56, %v19819_v39  ;;  %v19825_v41 = vld [vmem:[#allocation40_spill] sm:$0xff]  ;;  %v19826_v45 = vld [vmem:[#allocation46_spill] sm:$0xff] }
 0x226   : > { %v16877_v60 = vadd.f32 %v13546_v51, %v16710_v40  ;;  %19810 = vst [vmem:[#allocation72_spill] sm:$0xff] %v16881_v32  ;;  %v5834_v51 = vld [vmem:[#allocation3 + $0xc0] sm:$0x1]  ;;  %v19818_v32 = vld [vmem:[#allocation17_spill] sm:$0xff]  ;;  %5875 = vst [vmem:[#allocation3 + $0xa4] sm:$0x1] %v5874_v20  ;;  %v1937_v20 = vadd.f32 %v19826_v45, %v16310_v57 }
 0x227   : > { %v4379_v46 = vpop.f32.mrf.mxu0  ;;  %v16890_v40 = vpop.f32.mrf.mxu1 }
 0x228   : > { %19809 = vst [vmem:[#allocation71_spill] sm:$0xff] %v16877_v60  ;;  %v16886_v38 = vadd.f32 %v4379_v46, %v16718_v25  ;;  %19816 = vst [vmem:[#allocation13_spill] sm:$0xff] %v16890_v40  ;;  %v19817_v60 = vld [vmem:[#allocation18_spill] sm:$0xff]  ;;  %v5835_v25 = vsel %vm14575_vm5, 0, %v5834_v51  ;;  %v19821_v46 = vld [vmem:[#allocation33_spill] sm:$0xff]  ;;  %v2418_v51 = vadd.f32 %v16495_v24, %v1889_v48 }
 0x229   : > { %v13547_v43 = vpop.f32.mrf.mxu0  ;;  %v1857_v17 = vadd.f32 %v19818_v32, %v19817_v60  ;;  %v19822_v40 = vld [vmem:[#allocation29_spill] sm:$0xff]  ;;  %v16908_v34 = vpop.f32.mrf.mxu1  ;;  %5836 = vst [vmem:[#allocation3 + $0xc0] sm:$0x1] %v5835_v25  ;;  %v19828_v24 = vld [vmem:[#allocation48_spill] sm:$0xff] }
 0x22a   : > { %19813 = vst [vmem:[#allocation14_spill] sm:$0xff] %v16886_v38  ;;  %v16898_v23 = vadd.f32 %v13547_v43, %v16724_v0  ;;  %v1905_v38 = vadd.f32 %v19822_v40, %v19821_v46  ;;  %19823 = vst [vmem:[#allocation16_spill] sm:$0xff] %v16908_v34  ;;  %v19824_v60 = vld [vmem:[#allocation45_spill] sm:$0xff]  ;;  %v2406_v0 = vadd.f32 %v16388_v19, %v1841_v29  ;;  %v19827_v46 = vld [vmem:[#allocation47_spill] sm:$0xff] }
 0x22b   : > { %v16906_v1 = vpop.f32.mrf.mxu0  ;;  %v1921_v32 = vadd.f32 %v19825_v41, %v19824_v60  ;;  %v2410_v43 = vadd.f32 %v16439_v35, %v1857_v17  ;;  %v16918_v56 = vpop.f32.mrf.mxu1  ;;  %v2788_v34 = vadd.f32 %v19827_v46, %v2402_v22  ;;  %v5831_v19 = vld [vmem:[#allocation3 + $0xb4] sm:$0x1]  ;;  %v2430_v35 = vadd.f32 %v16575_v53, %v1937_v20  ;;  %v19834_v46 = vld [vmem:[#allocation37_spill] sm:$0xff] }
 0x22c   : > { %v2422_v39 = vadd.f32 %v16527_v6, %v1905_v38  ;;  %v5832_v57 = vsel %vm14575_vm5, 0, %v5831_v19  ;;  %v2792_v17 = vadd.f32 %v19828_v24, %v2406_v0  ;;  %v19829_v6 = vld [vmem:[#allocation49_spill] sm:$0xff]  ;;  %v19831_v41 = vld [vmem:[#allocation30_spill] sm:$0xff]  ;;  %v19836_v19 = vld [vmem:[#allocation23_spill] sm:$0xff] }
 0x22d   : > { %v13550_v40 = vpop.f32.mrf.mxu0  ;;  %v2426_v25 = vadd.f32 %v16556_v49, %v1921_v32  ;;  %v2796_v38 = vadd.f32 %v19829_v6, %v2410_v43  ;;  %v3542_v48 = vadd.f32 %v16600_v7, %v2788_v34  ;;  %5833 = vst [vmem:[#allocation3 + $0xb4] sm:$0x1] %v5832_v57  ;;  %v19830_v49 = vld [vmem:[#allocation50_spill] sm:$0xff]  ;;  %v2804_v32 = vadd.f32 %v19831_v41, %v2418_v51  ;;  %v19832_v51 = vld [vmem:[#allocation27_spill] sm:$0xff]  ;;  %v19839_v57 = vld [vmem:[#allocation21_spill] sm:$0xff] }
 0x22e   : > { %v16923_v60 = vadd.f32 %v13550_v40, %v16732_v16  ;;  %v2800_v16 = vadd.f32 %v19830_v49, %v16479_v58  ;;  %v2808_v53 = vadd.f32 %v16493_v27, %v2422_v39  ;;  %v3546_v43 = vadd.f32 %v16619_v18, %v2792_v17  ;;  %v19833_v18 = vld [vmem:[#allocation38_spill] sm:$0xff]  ;;  %v19842_v17 = vld [vmem:[#allocation36_spill] sm:$0xff] }
 0x22f   : > { %v4395_v29 = vpop.f32.mrf.mxu0  ;;  %v16938_v45 = vpop.f32.mrf.mxu1  ;;  %v2812_v0 = vadd.f32 %v16521_v37, %v2426_v25  ;;  %v3550_v7 = vadd.f32 %v16646_v21, %v2796_v38  ;;  %v2816_v34 = vadd.f32 %v16551_v42, %v2430_v35  ;;  %v4041_v58 = vadd.f32 %v16560_v14, %v16585_v36  ;;  %v19835_v25 = vld [vmem:[#allocation35_spill] sm:$0xff]  ;;  %v19838_v35 = vld [vmem:[#allocation20_spill] sm:$0xff]  ;;  %v19843_v41 = vld [vmem:[#allocation42_spill] sm:$0xff] }
 0x230   : > { %v16932_v22 = vadd.f32 %v4395_v29, %v16737_v26  ;;  %v4039_v27 = vadd.f32 %v16563_v47, %v16590_v55  ;;  %v3554_v39 = vadd.f32 %v19832_v51, %v2800_v16  ;;  %v4042_v21 = vadd.f32 %v19834_v46, %v19833_v18  ;;  %v19837_v29 = vld [vmem:[#allocation41_spill] sm:$0xff]  ;;  %v19840_v36 = vld [vmem:[#allocation28_spill] sm:$0xff] }
 0x231   : > { %v13551_v20 = vpop.f32.mrf.mxu0  ;;  %v16952_v40 = vpop.f32.mrf.mxu1  ;;  %v4045_v42 = vadd.f32 %v19837_v29, %v19836_v19  ;;  %v4043_v14 = vadd.f32 %v19839_v57, %v19838_v35  ;;  %v3558_v24 = vadd.f32 %v19840_v36, %v2804_v32  ;;  %v19841_v47 = vld [vmem:[#allocation32_spill] sm:$0xff]  ;;  %v3566_v6 = vadd.f32 %v19842_v17, %v2812_v0  ;;  %v19847_v29 = vld [vmem:[#allocation31_spill] sm:$0xff]  ;;  %v5882_v35 = vld [vmem:[#allocation3 + $0xc8] sm:$0x1] }
 0x232   : > { %v16944_v26 = vadd.f32 %v13551_v20, %v16741_v28  ;;  %v4040_v28 = vadd.f32 %v19835_v25, %v3542_v48  ;;  %v3562_v55 = vadd.f32 %v19841_v47, %v2808_v53  ;;  %v3570_v38 = vadd.f32 %v16759_v15, %v2816_v34  ;;  %v19844_v48 = vld [vmem:[#allocation19_spill] sm:$0xff]  ;;  %v19845_v25 = vld [vmem:[#allocation24_spill] sm:$0xff] }
 0x233   : > { %v16954_v37 = vpop.f32.mrf.mxu0  ;;  %v16967_v49 = vpop.f32.mrf.mxu1  ;;  %v4044_v20 = vadd.f32 %v19843_v41, %v3546_v43  ;;  %v4048_v51 = vadd.f32 %v19844_v48, %v3550_v7  ;;  %v4428_v18 = vadd.f32 %v16765_v44, %v4041_v58  ;;  %v4052_v32 = vadd.f32 %v19845_v25, %v3554_v39  ;;  %v19846_v58 = vld [vmem:[#allocation26_spill] sm:$0xff]  ;;  %v19850_v47 = vld [vmem:[#allocation39_spill] sm:$0xff] }
 0x234   : > { %v4426_v53 = vadd.f32 %v16773_v5, %v4039_v27  ;;  %v4429_v0 = vadd.f32 %v16777_v13, %v4042_v21  ;;  %v4427_v15 = vadd.f32 %v16785_v33, %v4040_v28  ;;  %v4432_v43 = vadd.f32 %v16791_v52, %v4045_v42  ;;  %v19848_v27 = vld [vmem:[#allocation34_spill] sm:$0xff]  ;;  %v19852_v17 = vld [vmem:[#allocation7_spill] sm:$0xff] }
 0x235   : > { %v13554_v16 = vpop.f32.mrf.mxu0  ;;  %v16979_v34 = vpop.f32.mrf.mxu1  ;;  %v4430_v7 = vadd.f32 %v16798_v30, %v4043_v14  ;;  %v4431_v44 = vadd.f32 %v16809_v11, %v4044_v20  ;;  %v4056_v39 = vadd.f32 %v19846_v58, %v3558_v24  ;;  %v4060_v5 = vadd.f32 %v19847_v29, %v3562_v55  ;;  %v19849_v24 = vld [vmem:[#allocation44_spill] sm:$0xff]  ;;  %v19855_v41 = vld [vmem:[#allocation51_spill] sm:$0xff] }
 0x236   : > { %v16973_v46 = vadd.f32 %v13554_v16, %v16752_v50  ;;  %v4064_v13 = vadd.f32 %v19848_v27, %v3566_v6  ;;  %v4068_v33 = vadd.f32 %v16754_v59, %v3570_v38  ;;  %v5182_v52 = vadd.f32 %v16761_v4, %v4428_v18  ;;  %v19854_v38 = vld [vmem:[#allocation8_spill] sm:$0xff]  ;;  %v17032_v18 = vld [vmem:[%s19622_s2] ss:$0 sm:$0xff]  ;;  %v19862_v58 = vld [vmem:[#allocation59_spill] sm:$0xff] }
 0x237   : > { %v4411_v19 = vpop.f32.mrf.mxu0  ;;  %v16991_v21 = vpop.f32.mrf.mxu1  ;;  %v4435_v30 = vadd.f32 %v16828_v63, %v4048_v51  ;;  %v5180_v42 = vadd.f32 %v16767_v12, %v4426_v53  ;;  %v5183_v57 = vadd.f32 %v16775_v31, %v4429_v0  ;;  %v5181_v59 = vadd.f32 %v16779_v10, %v4427_v15  ;;  %v5879_v31 = vld [vmem:[#allocation3 + $0xbc] sm:$0x1]  ;;  %v17018_v10 = vld [vmem:[%s19623_s3 + $0xf8] sm:$0xff]   ;;  %v19858_v53 = vld [vmem:[#allocation53_spill] sm:$0xff] }
 0x238   : > { %v16985_v50 = vadd.f32 %v4411_v19, %v16757_v61  ;;  %v5883_v61 = vsel %vm14583_vm7, 0, %v5882_v35  ;;  %v4439_v14 = vadd.f32 %v16853_v54, %v4052_v32  ;;  %v5186_v4 = vadd.f32 %v19849_v24, %v4432_v43  ;;  %v19853_v54 = vld [vmem:[#allocation52_spill] sm:$0xff]  ;;  %v19857_v32 = vld [vmem:[#allocation55_spill] sm:$0xff]  ;;  %v19859_v15 = vld [vmem:[#allocation54_spill] sm:$0xff]  ;;  %13796 = vmatprep.subr.bf16.mxu0 %v17018_v10 }
 0x239   : > { %v13555_v28 = vpop.f32.mrf.mxu0  ;;  %5884 = vst [vmem:[#allocation3 + $0xc8] sm:$0x1] %v5883_v61  ;;  %v17006_v63 = vadd.f32 %v19850_v47, %v4430_v7  ;;  %v17013_v6 = vadd.f32 %v19852_v17, %v4431_v44  ;;  %v5165_v12 = vpop.f32.mrf.mxu1  ;;  %v17022_v16 = vadd.f32 %v19854_v38, %v19853_v54  ;;  %v17026_v20 = vadd.f32 %v19855_v41, %v16821_v62  ;;  %v19860_v62 = vld [vmem:[#allocation57_spill] sm:$0xff]  ;;  %v19861_v43 = vld [vmem:[#allocation56_spill] sm:$0xff]  ;;  %v19866_v35 = vld [vmem:[#allocation62_spill] sm:$0xff] }
 0x23a   : > { %v16996_v11 = vadd.f32 %v13555_v28, %v16763_v8  ;;  %v19851_v8 = vld [vmem:[#allocation43_spill] sm:$0xff]  ;;  %v5880_v25 = vsel %vm14583_vm7, 0, %v5879_v31  ;;  %v17038_v0 = vadd.f32 %v19858_v53, %v19857_v32  ;;  %v17041_v19 = vadd.f32 %v19859_v15, %v4435_v30  ;;  %v19865_v27 = vld [vmem:[#allocation60_spill] sm:$0xff]  ;;  %v19869_v17 = vld [vmem:[#allocation66_spill] sm:$0xff] }
 0x23b   : > { %v4414_v36 = vpop.f32.mrf.mxu0  ;;  %v17010_v55 = vadd.f32 %v19851_v8, %v16807_v3  ;;  %v19856_v3 = vld [vmem:[#allocation69_spill] sm:$0xff]  ;;  %v17045_v7 = vadd.f32 %v19861_v43, %v19860_v62  ;;  %5881 = vst [vmem:[#allocation3 + $0xbc] sm:$0x1] %v5880_v25  ;;  %v17054_v28 = vadd.f32 %v19865_v27, %v19864_v9  ;;  %v17057_v61 = vadd.f32 %v19866_v35, %v4439_v14  ;;  %v19867_v47 = vld [vmem:[#allocation64_spill] sm:$0xff]  ;;  %v19868_v8 = vld [vmem:[#allocation63_spill] sm:$0xff]  ;;  %v13603_v38 = vpop.f32.mrf.mxu1 }
 0x23c   : > { %v4443_v48 = vadd.f32 %v19856_v3, %v4056_v39  ;;  %v19863_v39 = vld [vmem:[#allocation58_spill] sm:$0xff]  ;;  %v4447_v30 = vadd.f32 %v16906_v1, %v4060_v5  ;;  %v19870_v31 = vld [vmem:[#allocation65_spill] sm:$0xff]  ;;  %v19872_v25 = vld [vmem:[#allocation67_spill] sm:$0xff]  ;;  %v4451_v62 = vadd.f32 %v16954_v37, %v4064_v13  ;;  %v4455_v37 = vadd.f32 %v4414_v36, %v4068_v33 }
 0x23d   : > { %v13622_v51 = vpop.f32.mrf.mxu0  ;;  %v17050_v29 = vadd.f32 %v19863_v39, %v19862_v58  ;;  %v17066_v54 = vadd.f32 %v19870_v31, %v19869_v17  ;;  %v19873_v14 = vld [vmem:[#allocation70_spill] sm:$0xff]  ;;  %v19874_v1 = vld [vmem:[#allocation71_spill] sm:$0xff]  ;;  %v19875_v5 = vld [vmem:[#allocation72_spill] sm:$0xff]  ;;  %v17114_v33 = vadd.f32 %v5165_v12, %v16985_v50 }
 0x23e   : > { %v5680_v44 = vadd.f32 %v13622_v51, %v5182_v52  ;;  %v17062_v52 = vadd.f32 %v19868_v8, %v19867_v47  ;;  %v19871_v51 = vld [vmem:[#allocation68_spill] sm:$0xff]  ;;  %v17074_v53 = vadd.f32 %v19873_v14, %v4443_v48  ;;  %v17078_v15 = vadd.f32 %v19875_v5, %v19874_v1  ;;  %v19876_v58 = vld [vmem:[#allocation14_spill] sm:$0xff]  ;;  %v19877_v39 = vld [vmem:[#allocation13_spill] sm:$0xff]  ;;  %v5168_v8 = vpop.f32.mrf.mxu1 }
 0x23f   : > { %v5551_v24 = vpop.f32.mrf.mxu0  ;;  %v17071_v32 = vadd.f32 %v19872_v25, %v19871_v51  ;;  %v17083_v9 = vadd.f32 %v19877_v39, %v19876_v58  ;;  %v19878_v35 = vld [vmem:[#allocation16_spill] sm:$0xff]  ;;  %v17091_v48 = vadd.f32 %v16918_v56, %v4447_v30  ;;  %v17095_v47 = vadd.f32 %v16938_v45, %v16923_v60  ;;  %v6308_v14 = vld [vmem:[#allocation3 + $0x18] sm:$0xf]  ;;  %v6301_v39 = vld [vmem:[#allocation3 + $0xc] sm:$0xf] }
 0x240   : > { %v5719_v41 = vadd.f32 %v17032_v18, %v5680_v44  ;;  %v5678_v3 = vadd.f32 %v5551_v24, %v5180_v42  ;;  %v17088_v24 = vadd.f32 %v19878_v35, %v16898_v23  ;;  %v17104_v23 = vadd.f32 %v16967_v49, %v16944_v26 }
 0x241   : > { %v13623_v43 = vpop.f32.mrf.mxu0  ;;  %v17107_v56 = vadd.f32 %v16979_v34, %v4451_v62  ;;  %v17111_v60 = vadd.f32 %v16991_v21, %v16973_v46 }
 0x242   : > { %v5751_v44 = vmax.f32 %v5719_v41, 0.0  ;;  %v5717_v42 = vadd.f32 %v17032_v18, %v5678_v3  ;;  %v5681_v27 = vadd.f32 %v13623_v43, %v5183_v57  ;;  %v17100_v57 = vadd.f32 %v16952_v40, %v16932_v22 }
 0x243   : > { %v5554_v13 = vpop.f32.mrf.mxu0  ;;  %v17117_v22 = vadd.f32 %v13603_v38, %v16996_v11  ;;  %v17119_v40 = vadd.f32 %v5168_v8, %v4455_v37 }
 0x244   : > { %v12636_v17 = vpack.c.bf16 %v5751_v44, %v5751_v44  ;;  %v5749_v31 = vmax.f32 %v5717_v42, 0.0  ;;  %v5720_v41 = vadd.f32 %v17032_v18, %v5681_v27  ;;  %v5679_v3 = vadd.f32 %v5554_v13, %v5181_v59 }
 0x245   : > { %v13626_v45 = vpop.f32.mrf.mxu0 }
 0x246   : > { %v5999_v59 = vshrl.u32 %v12636_v17, 16  ;;  %v12634_v36 = vpack.c.bf16 %v5749_v31, %v5749_v31  ;;  %v5752_v30 = vmax.f32 %v5720_v41, 0.0  ;;  %v5718_v26 = vadd.f32 %v17032_v18, %v5679_v3 }
 0x247   : > { %v5684_v49 = vadd.f32 %v13626_v45, %v5186_v4  ;;  %v5567_v34 = vpop.f32.mrf.mxu0  ;;  %v6002_v25 = vshll.u32 %v12636_v17, 16 }
 0x248   : > { %v6001_v51 = vrot.slane %v5999_v59, 7  ;;  %v5982_v46 = vshrl.u32 %v12634_v36, 16  ;;  %v12637_v21 = vpack.c.bf16 %v5752_v30, %v5752_v30  ;;  %v5985_v1 = vshll.u32 %v12634_v36, 16 }
 0x249   : > { %v5750_v50 = vmax.f32 %v5718_v26, 0.0  ;;  %v5723_v12 = vadd.f32 %v17032_v18, %v5684_v49  ;;  %v5682_v5 = vadd.f32 %v5567_v34, %v17006_v63  ;;  %v13627_v62 = vpop.f32.mrf.mxu0  ;;  %v6312_v63 = vld [vmem:[#allocation3 + $0x20] sm:$0x1] }
 0x24a   : > { %v6004_v11 = vor.u32 %v6002_v25, %v6001_v51  ;;  %v6005_v38 = vrot.slane %v6001_v51, 4  ;;  %v5984_v43 = vrot.slane %v5982_v46, 7  ;;  %v6007_v58 = vshrl.u32 %v12637_v21, 16 }
 0x24b   : > { %v6010_v44 = vshll.u32 %v12637_v21, 16  ;;  %v12635_v4 = vpack.c.bf16 %v5750_v50, %v5750_v50  ;;  %v5755_v42 = vmax.f32 %v5723_v12, 0.0  ;;  %v5721_v27 = vadd.f32 %v17032_v18, %v5682_v5  ;;  %v5570_v35 = vpop.f32.mrf.mxu0  ;;  %v6305_v5 = vld [vmem:[#allocation3 + $0x14] sm:$0x1] }
 0x24c   : > { %v6309_v13 = vsel %vm14628_vm11, %v6004_v11, %v6308_v14  ;;  %v5987_v8 = vor.u32 %v5985_v1, %v5984_v43  ;;  %v5988_v17 = vrot.slane %v5984_v43, 4  ;;  %v6009_v31 = vrot.slane %v6007_v58, 7 }
 0x24d   : > { %6310 = vst [vmem:[#allocation3 + $0x18] sm:$0xf] %v6309_v13  ;;  %v5990_v41 = vshrl.u32 %v12635_v4, 16  ;;  %v5993_v3 = vshll.u32 %v12635_v4, 16  ;;  %v12640_v45 = vpack.c.bf16 %v5755_v42, %v5755_v42  ;;  %v5753_v59 = vmax.f32 %v5721_v27, 0.0  ;;  %v13630_v36 = vpop.f32.mrf.mxu0 }
 0x24e   : > { %v6302_v30 = vsel %vm14628_vm11, %v5987_v8, %v6301_v39  ;;  %v6012_v26 = vor.u32 %v6010_v44, %v6009_v31  ;;  %v6014_v49 = vrot.slane %v6009_v31, 4  ;;  %v5685_v34 = vadd.f32 %v13627_v62, %v17010_v55  ;;  %v6322_v4 = vld [vmem:[#allocation3 + $0x30] sm:$0xf] }
 0x24f   : > { %6303 = vst [vmem:[#allocation3 + $0xc] sm:$0xf] %v6302_v30  ;;  %v5992_v51 = vrot.slane %v5990_v41, 7  ;;  %v6033_v25 = vshrl.u32 %v12640_v45, 16  ;;  %v6036_v46 = vshll.u32 %v12640_v45, 16  ;;  %v12638_v21 = vpack.c.bf16 %v5753_v59, %v5753_v59  ;;  %v5583_v14 = vpop.f32.mrf.mxu0 }
 0x250   : > { %v6013_v50 = vsel %vm14616_vm10, %v6005_v38, %v6012_v26  ;;  %v6313_v12 = vsel %vm14575_vm5, %v6014_v49, %v6312_v63  ;;  %v5724_v11 = vadd.f32 %v17032_v18, %v5685_v34  ;;  %v5683_v43 = vadd.f32 %v5570_v35, %v17013_v6 }
 0x251   : > { %6311 = vst [vmem:[#allocation3 + $0x1c] sm:$0xf] %v6013_v50  ;;  %6314 = vst [vmem:[#allocation3 + $0x20] sm:$0x1] %v6313_v12  ;;  %v5995_v55 = vor.u32 %v5993_v3, %v5992_v51  ;;  %v5997_v62 = vrot.slane %v5992_v51, 4  ;;  %v6035_v58 = vrot.slane %v6033_v25, 7  ;;  %v13631_v44 = vpop.f32.mrf.mxu0  ;;  %v5688_v13 = vadd.f32 %v13630_v36, %v17022_v16 }
 0x252   : > { %v6016_v39 = vshrl.u32 %v12638_v21, 16  ;;  %v6019_v42 = vshll.u32 %v12638_v21, 16  ;;  %v5756_v27 = vmax.f32 %v5724_v11, 0.0  ;;  %v5722_v38 = vadd.f32 %v17032_v18, %v5683_v43  ;;  %v6315_v16 = vld [vmem:[#allocation3 + $0x24] sm:$0xf] }
 0x253   : > { %v5996_v8 = vsel %vm14616_vm10, %v5988_v17, %v5995_v55  ;;  %v6306_v6 = vsel %vm14575_vm5, %v5997_v62, %v6305_v5  ;;  %v6038_v35 = vor.u32 %v6036_v46, %v6035_v58  ;;  %v6039_v31 = vrot.slane %v6035_v58, 4  ;;  %v5586_v63 = vpop.f32.mrf.mxu0  ;;  %v6326_v43 = vld [vmem:[#allocation3 + $0x38] sm:$0x1] }
 0x254   : > { %6304 = vst [vmem:[#allocation3 + $0x10] sm:$0xf] %v5996_v8  ;;  %6307 = vst [vmem:[#allocation3 + $0x14] sm:$0x1] %v6306_v6  ;;  %v6018_v41 = vrot.slane %v6016_v39, 7  ;;  %v12641_v3 = vpack.c.bf16 %v5756_v27, %v5756_v27  ;;  %v5754_v45 = vmax.f32 %v5722_v38, 0.0  ;;  %v5727_v59 = vadd.f32 %v17032_v18, %v5688_v13 }
 0x255   : > { %v6323_v30 = vsel %vm14628_vm11, %v6038_v35, %v6322_v4  ;;  %v5686_v36 = vadd.f32 %v5583_v14, %v17026_v20  ;;  %v5689_v17 = vadd.f32 %v13631_v44, %v17038_v0  ;;  %v5687_v26 = vadd.f32 %v5586_v63, %v17041_v19  ;;  %v13634_v49 = vpop.f32.mrf.mxu0 }
 0x256   : > { %6324 = vst [vmem:[#allocation3 + $0x30] sm:$0xf] %v6323_v30  ;;  %v6021_v34 = vor.u32 %v6019_v42, %v6018_v41  ;;  %v6022_v51 = vrot.slane %v6018_v41, 4  ;;  %v6041_v25 = vshrl.u32 %v12641_v3, 16  ;;  %v6044_v46 = vshll.u32 %v12641_v3, 16 }
 0x257   : > { %v12639_v21 = vpack.c.bf16 %v5754_v45, %v5754_v45  ;;  %v5759_v50 = vmax.f32 %v5727_v59, 0.0  ;;  %v5725_v12 = vadd.f32 %v17032_v18, %v5686_v36  ;;  %v5728_v5 = vadd.f32 %v17032_v18, %v5689_v17  ;;  %v5599_v11 = vpop.f32.mrf.mxu0  ;;  %v6319_v41 = vld [vmem:[#allocation3 + $0x2c] sm:$0x1]  ;;  %v6336_v36 = vld [vmem:[#allocation3 + $0x48] sm:$0xf] }
 0x258   : > { %v6316_v20 = vsel %vm14628_vm11, %v6021_v34, %v6315_v16  ;;  %v6043_v14 = vrot.slane %v6041_v25, 7  ;;  %v5726_v0 = vadd.f32 %v17032_v18, %v5687_v26  ;;  %v5692_v19 = vadd.f32 %v13634_v49, %v17045_v7 }
 0x259   : > { %6317 = vst [vmem:[#allocation3 + $0x24] sm:$0xf] %v6316_v20  ;;  %v6024_v55 = vshrl.u32 %v12639_v21, 16  ;;  %v6027_v62 = vshll.u32 %v12639_v21, 16  ;;  %v12644_v58 = vpack.c.bf16 %v5759_v50, %v5759_v50  ;;  %v5757_v39 = vmax.f32 %v5725_v12, 0.0  ;;  %v13635_v44 = vpop.f32.mrf.mxu0 }
 0x25a   : > { %v6046_v4 = vor.u32 %v6044_v46, %v6043_v14  ;;  %v6048_v42 = vrot.slane %v6043_v14, 4  ;;  %v5760_v27 = vmax.f32 %v5728_v5, 0.0  ;;  %v5758_v38 = vmax.f32 %v5726_v0, 0.0  ;;  %v6329_v20 = vld [vmem:[#allocation3 + $0x3c] sm:$0xf] }
 0x25b   : > { %v6026_v13 = vrot.slane %v6024_v55, 7  ;;  %v6067_v8 = vshrl.u32 %v12644_v58, 16  ;;  %v6070_v6 = vshll.u32 %v12644_v58, 16  ;;  %v12642_v35 = vpack.c.bf16 %v5757_v39, %v5757_v39  ;;  %v5602_v26 = vpop.f32.mrf.mxu0  ;;  %v6333_v58 = vld [vmem:[#allocation3 + $0x44] sm:$0x1] }
 0x25c   : > { %v6047_v63 = vsel %vm14616_vm10, %v6039_v31, %v6046_v4  ;;  %v6327_v7 = vsel %vm14575_vm5, %v6048_v42, %v6326_v43  ;;  %v12645_v3 = vpack.c.bf16 %v5760_v27, %v5760_v27  ;;  %v12643_v45 = vpack.c.bf16 %v5758_v38, %v5758_v38 }
 0x25d   : > { %6325 = vst [vmem:[#allocation3 + $0x34] sm:$0xf] %v6047_v63  ;;  %6328 = vst [vmem:[#allocation3 + $0x38] sm:$0x1] %v6327_v7  ;;  %v6029_v59 = vor.u32 %v6027_v62, %v6026_v13  ;;  %v6031_v30 = vrot.slane %v6026_v13, 4  ;;  %v6069_v16 = vrot.slane %v6067_v8, 7  ;;  %v5731_v39 = vadd.f32 %v17032_v18, %v5692_v19  ;;  %v13638_v42 = vpop.f32.mrf.mxu0 }
 0x25e   : > { %v6050_v17 = vshrl.u32 %v12642_v35, 16  ;;  %v6053_v49 = vshll.u32 %v12642_v35, 16  ;;  %v6075_v34 = vshrl.u32 %v12645_v3, 16  ;;  %v6078_v25 = vshll.u32 %v12645_v3, 16  ;;  %v6340_v62 = vld [vmem:[#allocation3 + $0x50] sm:$0x1] }
 0x25f   : > { %v6058_v46 = vshrl.u32 %v12643_v45, 16  ;;  %v6030_v31 = vsel %vm14616_vm10, %v6022_v51, %v6029_v59  ;;  %v6320_v21 = vsel %vm14575_vm5, %v6031_v30, %v6319_v41  ;;  %v6072_v50 = vor.u32 %v6070_v6, %v6069_v16  ;;  %v6590_v41 = vld [vmem:[#allocation3 + $0xc] sm:$0xf]  ;;  %v17179_v30 = vpop.f32.mrf.mxu0 }
 0x260   : > { %v6073_v12 = vrot.slane %v6069_v16, 4  ;;  %6318 = vst [vmem:[#allocation3 + $0x28] sm:$0xf] %v6030_v31  ;;  %6321 = vst [vmem:[#allocation3 + $0x2c] sm:$0x1] %v6320_v21  ;;  %v6052_v5 = vrot.slane %v6050_v17, 7  ;;  %v5690_v51 = vadd.f32 %v5599_v11, %v17050_v29  ;;  %v5693_v4 = vadd.f32 %v13635_v44, %v17054_v28 }
 0x261   : > { %v6077_v14 = vrot.slane %v6075_v34, 7  ;;  %v6060_v0 = vrot.slane %v6058_v46, 7  ;;  %v6061_v43 = vshll.u32 %v12643_v45, 16  ;;  %v6337_v55 = vsel %vm14628_vm11, %v6072_v50, %v6336_v36  ;;  %v6350_v21 = vld [vmem:[#allocation3 + $0x60] sm:$0xf] }
 0x262   : > { %6338 = vst [vmem:[#allocation3 + $0x48] sm:$0xf] %v6337_v55  ;;  %v6055_v27 = vor.u32 %v6053_v49, %v6052_v5  ;;  %v6056_v38 = vrot.slane %v6052_v5, 4  ;;  %v5763_v63 = vmax.f32 %v5731_v39, 0.0  ;;  %v5729_v7 = vadd.f32 %v17032_v18, %v5690_v51  ;;  %v13639_v55 = vpop.f32.mrf.mxu0 }
 0x263   : > { %v6080_v13 = vor.u32 %v6078_v25, %v6077_v14  ;;  %v6082_v8 = vrot.slane %v6077_v14, 4  ;;  %v6063_v6 = vor.u32 %v6061_v43, %v6060_v0  ;;  %v6065_v35 = vrot.slane %v6060_v0, 4 }
 0x264   : > { %v6330_v3 = vsel %vm14628_vm11, %v6055_v27, %v6329_v20  ;;  %v5732_v11 = vadd.f32 %v17032_v18, %v5693_v4  ;;  %v12648_v45 = vpack.c.bf16 %v5763_v63, %v5763_v63  ;;  %v5761_v59 = vmax.f32 %v5729_v7, 0.0  ;;  %v17185_v20 = vld [vmem:[#allocation3 + $0x10] sm:$0xf]  ;;  %v14301_v7 = vld [vmem:[%s19623_s3 + $0xf0] sm:$0xff]  }
 0x265   : > { %v6081_v29 = vsel %vm14616_vm10, %v6073_v12, %v6080_v13  ;;  %v6341_v28 = vsel %vm14575_vm5, %v6082_v8, %v6340_v62  ;;  %6331 = vst [vmem:[#allocation3 + $0x3c] sm:$0xf] %v6330_v3  ;;  %v6064_v19 = vsel %vm14616_vm10, %v6056_v38, %v6063_v6  ;;  %v6334_v44 = vsel %vm14575_vm5, %v6065_v35, %v6333_v58  ;;  %v6343_v13 = vld [vmem:[#allocation3 + $0x54] sm:$0xf] }
 0x266   : > { %6339 = vst [vmem:[#allocation3 + $0x4c] sm:$0xf] %v6081_v29  ;;  %6342 = vst [vmem:[#allocation3 + $0x50] sm:$0x1] %v6341_v28  ;;  %v5764_v16 = vmax.f32 %v5732_v11, 0.0  ;;  %v5691_v36 = vadd.f32 %v5602_v26, %v17057_v61  ;;  %v5696_v17 = vadd.f32 %v13638_v42, %v17062_v52  ;;  %v6680_v49 = vshrl.u32 %v6590_v41, 16 }
 0x267   : > { %6332 = vst [vmem:[#allocation3 + $0x40] sm:$0xf] %v6064_v19  ;;  %6335 = vst [vmem:[#allocation3 + $0x44] sm:$0x1] %v6334_v44  ;;  %v6101_v34 = vshrl.u32 %v12648_v45, 16  ;;  %v6104_v25 = vshll.u32 %v12648_v45, 16  ;;  %v12646_v46 = vpack.c.bf16 %v5761_v59, %v5761_v59  ;;  %v12266_v63 = vcombine.low %v6590_v41, %v17185_v20  ;;  %v5618_v44 = vpop.f32.mrf.mxu0 }
 0x268   : > { %v6683_v31 = vshll.u32 %v6590_v41, 16  ;;  %v12649_v50 = vpack.c.bf16 %v5764_v16, %v5764_v16  ;;  %v5730_v12 = vadd.f32 %v17032_v18, %v5691_v36  ;;  %v5735_v5 = vadd.f32 %v17032_v18, %v5696_v17  ;;  %v6592_v52 = vld [vmem:[#allocation3 + $0x18] sm:$0xf]  ;;  %v6354_v11 = vld [vmem:[#allocation3 + $0x68] sm:$0x1] }
 0x269   : > { %v17187_v14 = vrot.slane %v6680_v49, 4  ;;  %v6103_v0 = vrot.slane %v6101_v34, 7  ;;  %v6084_v43 = vshrl.u32 %v12646_v46, 16  ;;  %v6087_v61 = vshll.u32 %v12646_v46, 16  ;;  %13717 = vmatmul.mubr.bf16.vlgmr.msra.gmra.mxu0 %v12266_v63  ;;  %v17198_v17 = vld [vmem:[#allocation3 + $0x1c] sm:$0xf] }
 0x26a   : > { %v17189_v26 = vrot.slane %v6683_v31, 5  ;;  %v6109_v62 = vshrl.u32 %v12649_v50, 16  ;;  %v6112_v58 = vshll.u32 %v12649_v50, 16  ;;  %v5762_v39 = vmax.f32 %v5730_v12, 0.0  ;;  %v6347_v49 = vld [vmem:[#allocation3 + $0x5c] sm:$0x1]  ;;  %13797 = vmatpush3.bf16.msra.mxu0 %v17018_v10 }
 0x26b   : > { %v5767_v51 = vmax.f32 %v5735_v5, 0.0  ;;  %v6106_v4 = vor.u32 %v6104_v25, %v6103_v0  ;;  %v6107_v42 = vrot.slane %v6103_v0, 4  ;;  %v6086_v27 = vrot.slane %v6084_v43, 7  ;;  %v14303_v31 = vld [vmem:[%s19623_s3 + $0xe8] sm:$0xff]   ;;  %13798 = vmatprep.subr.bf16.mxu0 %v14301_v7  ;;  %v6364_v43 = vld [vmem:[#allocation3 + $0x78] sm:$0xf] }
 0x26c   : > { %v6693_v38 = vshrl.u32 %v17185_v20, 16  ;;  %v6111_v8 = vrot.slane %v6109_v62, 7  ;;  %v12647_v6 = vpack.c.bf16 %v5762_v39, %v5762_v39  ;;  %v6704_v19 = vshrl.u32 %v6592_v52, 16  ;;  %v6594_v39 = vld [vmem:[#allocation3 + $0x24] sm:$0xf]  ;;  %v14306_v63 = vld [vmem:[%s19623_s3 + $0xe0] sm:$0xff]  }
 0x26d   : > { %v12652_v35 = vpack.c.bf16 %v5767_v51, %v5767_v51  ;;  %v6351_v3 = vsel %vm14628_vm11, %v6106_v4, %v6350_v21  ;;  %v6089_v29 = vor.u32 %v6087_v61, %v6086_v27  ;;  %v6090_v28 = vrot.slane %v6086_v27, 4 }
 0x26e   : > { %6352 = vst [vmem:[#allocation3 + $0x60] sm:$0xf] %v6351_v3  ;;  %v6114_v45 = vor.u32 %v6112_v58, %v6111_v8  ;;  %v6116_v59 = vrot.slane %v6111_v8, 4  ;;  %v6092_v16 = vshrl.u32 %v12647_v6, 16  ;;  %v6095_v36 = vshll.u32 %v12647_v6, 16  ;;  %v13642_v58 = vpop.f32.mrf.mxu0  ;;  %13799 = vmatpush3.bf16.msra.mxu0 %v14301_v7 }
 0x26f   : > { %v6344_v41 = vsel %vm14628_vm11, %v6089_v29, %v6343_v13  ;;  %v6135_v34 = vshrl.u32 %v12652_v35, 16  ;;  %v6138_v25 = vshll.u32 %v12652_v35, 16  ;;  %v17202_v46 = vrot.slane %v6704_v19, 4  ;;  %v17225_v35 = vld [vmem:[#allocation3 + $0x28] sm:$0xf]  ;;  %13800 = vmatprep.subr.bf16.mxu0 %v14303_v31 }
 0x270   : > { %6345 = vst [vmem:[#allocation3 + $0x54] sm:$0xf] %v6344_v41  ;;  %v6115_v21 = vsel %vm14616_vm10, %v6107_v42, %v6114_v45  ;;  %v6355_v50 = vsel %vm14575_vm5, %v6116_v59, %v6354_v11  ;;  %v6094_v12 = vrot.slane %v6092_v16, 7  ;;  %v6707_v5 = vshll.u32 %v6592_v52, 16 }
 0x271   : > { %6353 = vst [vmem:[#allocation3 + $0x64] sm:$0xf] %v6115_v21  ;;  %6356 = vst [vmem:[#allocation3 + $0x68] sm:$0x1] %v6355_v50  ;;  %v17212_v0 = vrot.slane %v6135_v34, 7  ;;  %v6717_v10 = vshrl.u32 %v17198_v17, 16  ;;  %v12267_v61 = vcombine.low %v6592_v52, %v17198_v17  ;;  %v5694_v62 = vadd.f32 %v17179_v30, %v17066_v54 }
 0x272   : > { %v6097_v51 = vor.u32 %v6095_v36, %v6094_v12  ;;  %v6099_v4 = vrot.slane %v6094_v12, 4  ;;  %v17218_v42 = vrot.slane %v6707_v5, 5  ;;  %v5697_v27 = vadd.f32 %v13639_v55, %v17071_v32  ;;  %v17244_v36 = vpop.f32.mrf.mxu0  ;;  %13801 = vmatpush3.bf16.msra.mxu0 %v14303_v31  ;;  %v14308_v21 = vld [vmem:[%s19623_s3 + $0xd8] sm:$0xff]  }
 0x273   : > { %v6140_v13 = vor.u32 %v6138_v25, %v17212_v0  ;;  %v6141_v8 = vrot.slane %v17212_v0, 4  ;;  %13720 = vmatprep.mubr.bf16.mxu0 %v12267_v61  ;;  %v5733_v6 = vadd.f32 %v17032_v18, %v5694_v62  ;;  %v5695_v52 = vadd.f32 %v5618_v44, %v17074_v53  ;;  %13802 = vmatprep.subr.bf16.mxu0 %v14306_v63  ;;  %v6357_v61 = vld [vmem:[#allocation3 + $0x6c] sm:$0xf] }
 0x274   : > { %v6098_v54 = vsel %vm14616_vm10, %v6090_v28, %v6097_v51  ;;  %v6348_v30 = vsel %vm14575_vm5, %v6099_v4, %v6347_v49  ;;  %v5736_v32 = vadd.f32 %v17032_v18, %v5697_v27  ;;  %v5700_v55 = vadd.f32 %v13642_v58, %v17078_v15  ;;  %v6368_v4 = vld [vmem:[#allocation3 + $0x80] sm:$0x1] }
 0x275   : > { %6346 = vst [vmem:[#allocation3 + $0x58] sm:$0xf] %v6098_v54  ;;  %6349 = vst [vmem:[#allocation3 + $0x5c] sm:$0x1] %v6348_v30  ;;  %v6365_v53 = vsel %vm14628_vm11, %v6140_v13, %v6364_v43  ;;  %v5765_v7 = vmax.f32 %v5733_v6, 0.0  ;;  %v5734_v3 = vadd.f32 %v17032_v18, %v5695_v52  ;;  %v6728_v29 = vshrl.u32 %v6594_v39, 16  ;;  %v17254_v13 = vpop.f32.mrf.mxu0 }
 0x276   : > { %6366 = vst [vmem:[#allocation3 + $0x78] sm:$0xf] %v6365_v53  ;;  %v5768_v28 = vmax.f32 %v5736_v32, 0.0  ;;  %v5739_v11 = vadd.f32 %v17032_v18, %v5700_v55  ;;  %v6731_v19 = vshll.u32 %v6594_v39, 16  ;;  %v6741_v15 = vshrl.u32 %v17225_v35, 16  ;;  %13803 = vmatpush3.bf16.msra.mxu0 %v14306_v63  ;;  %v14311_v6 = vld [vmem:[%s19623_s3 + $0xd0] sm:$0xff]  }
 0x277   : > { %v12650_v44 = vpack.c.bf16 %v5765_v7, %v5765_v7  ;;  %v5766_v45 = vmax.f32 %v5734_v3, 0.0  ;;  %v17241_v59 = vrot.slane %v6728_v29, 4  ;;  %v12268_v16 = vcombine.low %v6594_v39, %v17225_v35  ;;  %v6637_v32 = vld [vmem:[#allocation3 + $0x14] sm:$0x1]  ;;  %13804 = vmatprep.subr.bf16.mxu0 %v14308_v21 }
 0x278   : > { %v12653_v41 = vpack.c.bf16 %v5768_v28, %v5768_v28  ;;  %v5771_v49 = vmax.f32 %v5739_v11, 0.0  ;;  %v17246_v34 = vrot.slane %v6731_v19, 5  ;;  %v6686_v25 = vor.u32 %v17189_v26, %v17187_v14  ;;  %v6361_v29 = vld [vmem:[#allocation3 + $0x74] sm:$0x1]  ;;  %v6378_v28 = vld [vmem:[#allocation3 + $0x90] sm:$0xf] }
 0x279   : > { %v6118_v50 = vshrl.u32 %v12650_v44, 16  ;;  %v6121_v12 = vshll.u32 %v12650_v44, 16  ;;  %v12651_v5 = vpack.c.bf16 %v5766_v45, %v5766_v45  ;;  %13721 = vmatmul.mubr.bf16.gmra.mxu0 %v12268_v16  ;;  %v6689_v43 = vshll.u32 %v17185_v20, 16 }
 0x27a   : > { %v6143_v31 = vshrl.u32 %v12653_v41, 16  ;;  %v6146_v62 = vshll.u32 %v12653_v41, 16  ;;  %v12656_v58 = vpack.c.bf16 %v5771_v49, %v5771_v49  ;;  %v6687_v39 = vrot.slane %v6686_v25, 4  ;;  %v6596_v41 = vld [vmem:[#allocation3 + $0x30] sm:$0xf]  ;;  %13805 = vmatpush3.bf16.msra.mxu0 %v14308_v21 }
 0x27b   : > { %v6120_v51 = vrot.slane %v6118_v50, 7  ;;  %v6126_v27 = vshrl.u32 %v12651_v5, 16  ;;  %v6129_v14 = vshll.u32 %v12651_v5, 16  ;;  %v6691_v26 = vrot.slane %v6689_v43, 5  ;;  %v17267_v50 = vld [vmem:[#allocation3 + $0x34] sm:$0xf]  ;;  %13806 = vmatprep.subr.bf16.mxu0 %v14311_v6 }
 0x27c   : > { %v6145_v52 = vrot.slane %v6143_v31, 7  ;;  %v6169_v54 = vshrl.u32 %v12656_v58, 16  ;;  %v6172_v30 = vshll.u32 %v12656_v58, 16  ;;  %v6695_v55 = vrot.slane %v6693_v38, 4 }
 0x27d   : > { %v6123_v53 = vor.u32 %v6121_v12, %v6120_v51  ;;  %v6124_v7 = vrot.slane %v6120_v51, 4  ;;  %v6128_v3 = vrot.slane %v6126_v27, 7  ;;  %v6692_v63 = vsel %vm14596_vm8, %v6687_v39, %v6691_v26  ;;  %v5634_v12 = vpop.f32.mrf.mxu0  ;;  %v6638_v39 = vld [vmem:[#allocation3 + $0x20] sm:$0x1] }
 0x27e   : > { %v6148_v19 = vor.u32 %v6146_v62, %v6145_v52  ;;  %v6150_v44 = vrot.slane %v6145_v52, 4  ;;  %v17263_v45 = vrot.slane %v6169_v54, 7  ;;  %v6696_v16 = vor.u32 %v6695_v55, %v6691_v26  ;;  %v14313_v62 = vld [vmem:[%s19623_s3 + $0xc8] sm:$0xff]   ;;  %v6598_v55 = vld [vmem:[#allocation3 + $0x3c] sm:$0xf]  ;;  %13807 = vmatpush3.bf16.msra.mxu0 %v14311_v6  ;;  %v14316_v6 = vld [vmem:[%s19623_s3 + $0xc0] sm:$0xff]  }
 0x27f   : > { %v6358_v49 = vsel %vm14628_vm11, %v6123_v53, %v6357_v61  ;;  %v6131_v20 = vor.u32 %v6129_v14, %v6128_v3  ;;  %v6133_v38 = vrot.slane %v6128_v3, 4  ;;  %v6699_v25 = vshll.u32 %v6637_v32, 16  ;;  %v13646_v32 = vpop.f32.mrf.mxu0  ;;  %13808 = vmatprep.subr.bf16.mxu0 %v14313_v62 }
 0x280   : > { %6359 = vst [vmem:[#allocation3 + $0x6c] sm:$0xf] %v6358_v49  ;;  %v6149_v5 = vsel %vm14616_vm10, %v6141_v8, %v6148_v19  ;;  %v6369_v43 = vsel %vm14575_vm5, %v6150_v44, %v6368_v4  ;;  %v6174_v31 = vor.u32 %v6172_v30, %v17263_v45  ;;  %v6175_v61 = vrot.slane %v17263_v45, 4 }
 0x281   : > { %6367 = vst [vmem:[#allocation3 + $0x7c] sm:$0xf] %v6149_v5  ;;  %6370 = vst [vmem:[#allocation3 + $0x80] sm:$0x1] %v6369_v43  ;;  %v6132_v0 = vsel %vm14616_vm10, %v6124_v7, %v6131_v20  ;;  %v6362_v8 = vsel %vm14575_vm5, %v6133_v38, %v6361_v29  ;;  %v6697_v21 = vrot.slane %v6696_v16, 4  ;;  %v6701_v58 = vrot.slane %v6699_v25, 5 }
 0x282   : > { %6360 = vst [vmem:[#allocation3 + $0x70] sm:$0xf] %v6132_v0  ;;  %6363 = vst [vmem:[#allocation3 + $0x74] sm:$0x1] %v6362_v8  ;;  %v6379_v51 = vsel %vm14628_vm11, %v6174_v31, %v6378_v28  ;;  %v6752_v4 = vshrl.u32 %v6596_v41, 16  ;;  %v6755_v27 = vshll.u32 %v6596_v41, 16  ;;  %v12269_v52 = vcombine.low %v6596_v41, %v17267_v50  ;;  %13809 = vmatpush3.bf16.msra.mxu0 %v14313_v62 }
 0x283   : > { %v6765_v14 = vshrl.u32 %v17267_v50, 16  ;;  %6380 = vst [vmem:[#allocation3 + $0x90] sm:$0xf] %v6379_v51  ;;  %v6702_v26 = vsel %vm14596_vm8, %v6697_v21, %v6701_v58  ;;  %v5698_v54 = vadd.f32 %v17244_v36, %v17083_v9  ;;  %v6710_v30 = vor.u32 %v17218_v42, %v17202_v46  ;;  %v14293_v28 = vld [vmem:[%s19623_s3 + $0xb0] sm:$0xff]   ;;  %13810 = vmatprep.subr.bf16.mxu0 %v14316_v6  ;;  %v17332_v62 = vld [vmem:[%s19623_s3 + $0x178] sm:$0xff]  }
 0x284   : > { %v12242_v53 = vcombine.low %v6692_v63, %v6702_v26  ;;  %v17294_v7 = vrot.slane %v6752_v4, 4  ;;  %v17296_v3 = vrot.slane %v6755_v27, 5  ;;  %v6713_v29 = vshll.u32 %v17198_v17, 16  ;;  %13724 = vmatprep.mubr.bf16.mxu0 %v12269_v52  ;;  %v14421_v17 = vld [vmem:[%s19623_s3 + $0xb8] sm:$0xff]   ;;  %v17336_v27 = vpop.f32.mrf.mxu0 }
 0x285   : > { %v5737_v9 = vadd.f32 %v17032_v18, %v5698_v54  ;;  %v6711_v36 = vrot.slane %v6710_v30, 4  ;;  %v6719_v46 = vrot.slane %v6717_v10, 4  ;;  %v6723_v42 = vshll.u32 %v6638_v39, 16  ;;  %v17315_v10 = vld [vmem:[#allocation3 + $0x40] sm:$0xf] }
 0x286   : > { %13669 = vmatmul.mubr.bf16.vlgmr.msra.gmra.mxu1 %v12242_v53  ;;  %v6715_v63 = vrot.slane %v6713_v29, 5  ;;  %v5701_v19 = vadd.f32 %v17254_v13, %v17088_v24  ;;  %v5699_v44 = vadd.f32 %v5634_v12, %v17091_v48  ;;  %v5704_v16 = vadd.f32 %v13646_v32, %v17095_v47  ;;  %v14296_v13 = vld [vmem:[%s19623_s3 + $0xa8] sm:$0xff]   ;;  %13811 = vmatpush3.bf16.msra.mxu0 %v14316_v6  ;;  %v14300_v32 = vld [vmem:[%s19623_s3 + $0xa0] sm:$0xff]   ;;  %v6371_v29 = vld [vmem:[#allocation3 + $0x84] sm:$0xf] }
 0x287   : > { %v5769_v41 = vmax.f32 %v5737_v9, 0.0  ;;  %v6725_v49 = vrot.slane %v6723_v42, 5  ;;  %13749 = vmatpush3.bf16.msra.mxu1 %v14421_v17  ;;  %v6776_v20 = vshrl.u32 %v6598_v55, 16  ;;  %v6779_v38 = vshll.u32 %v6598_v55, 16  ;;  %13892 = vmatprep.subr.bf16.mxu0 %v17332_v62 }
 0x288   : > { %v6716_v25 = vsel %vm14596_vm8, %v6711_v36, %v6715_v63  ;;  %v6720_v24 = vor.u32 %v6719_v46, %v6715_v63  ;;  %v5740_v48 = vadd.f32 %v17032_v18, %v5701_v19  ;;  %v5738_v47 = vadd.f32 %v17032_v18, %v5699_v44  ;;  %13750 = vmatprep.subr.bf16.mxu1 %v14293_v28  ;;  %v17347_v63 = vld [vmem:[#allocation3 + $0x2c] sm:$0x1]  ;;  %v6382_v19 = vld [vmem:[#allocation3 + $0x98] sm:$0x1] }
 0x289   : > { %v12654_v12 = vpack.c.bf16 %v5769_v41, %v5769_v41  ;;  %v5743_v5 = vadd.f32 %v17032_v18, %v5704_v16  ;;  %v17325_v43 = vrot.slane %v6776_v20, 4  ;;  %v17327_v31 = vrot.slane %v6779_v38, 5  ;;  %v17349_v41 = vpop.f32.mrf.mxu0 }
 0x28a   : > { %v6721_v0 = vrot.slane %v6720_v24, 4  ;;  %v5772_v8 = vmax.f32 %v5740_v48, 0.0  ;;  %v5770_v21 = vmax.f32 %v5738_v47, 0.0  ;;  %v6789_v58 = vshrl.u32 %v17315_v10, 16  ;;  %v6375_v48 = vld [vmem:[#allocation3 + $0x8c] sm:$0x1] }
 0x28b   : > { %v6152_v39 = vshrl.u32 %v12654_v12, 16  ;;  %v6155_v51 = vshll.u32 %v12654_v12, 16  ;;  %v5775_v4 = vmax.f32 %v5743_v5, 0.0  ;;  %v12270_v18 = vcombine.low %v6598_v55, %v17315_v10  ;;  %13751 = vmatpush3.bf16.msra.mxu1 %v14293_v28  ;;  %v6612_v1 = vld [vmem:[#allocation3 + $0x90] sm:$0xf] }
 0x28c   : > { %v6726_v26 = vsel %vm14596_vm8, %v6721_v0, %v6725_v49  ;;  %v12657_v52 = vpack.c.bf16 %v5772_v8, %v5772_v8  ;;  %v12655_v54 = vpack.c.bf16 %v5770_v21, %v5770_v21  ;;  %v6734_v30 = vor.u32 %v17246_v34, %v17241_v59  ;;  %13752 = vmatprep.subr.bf16.mxu1 %v14296_v13 }
 0x28d   : > { %v6154_v53 = vrot.slane %v6152_v39, 7  ;;  %v12243_v55 = vcombine.low %v6716_v25, %v6726_v26  ;;  %v12660_v9 = vpack.c.bf16 %v5775_v4, %v5775_v4  ;;  %13725 = vmatmul.mubr.bf16.gmra.mxu0 %v12270_v18  ;;  %v6737_v28 = vshll.u32 %v17225_v35, 16  ;;  %v14305_v25 = vld [vmem:[%s19623_s3 + $0x98] sm:$0xff]   ;;  %v6392_v39 = vld [vmem:[#allocation3 + $0xa8] sm:$0xf]  ;;  %v5650_v35 = vpop.f32.mrf.mxu0 }
 0x28e   : > { %v6177_v36 = vshrl.u32 %v12657_v52, 16  ;;  %v6180_v46 = vshll.u32 %v12657_v52, 16  ;;  %v6160_v42 = vshrl.u32 %v12655_v54, 16  ;;  %v6163_v6 = vshll.u32 %v12655_v54, 16  ;;  %v17365_v54 = vld [vmem:[#allocation3 + $0x4c] sm:$0xf] }
 0x28f   : > { %v6157_v59 = vor.u32 %v6155_v51, %v6154_v53  ;;  %v6158_v34 = vrot.slane %v6154_v53, 4  ;;  %13672 = vmatprep.mubr.bf16.mxu1 %v12243_v55  ;;  %v6203_v44 = vshrl.u32 %v12660_v9, 16  ;;  %v6206_v16 = vshll.u32 %v12660_v9, 16  ;;  %13753 = vmatpush3.bf16.msra.mxu1 %v14296_v13  ;;  %v6600_v51 = vld [vmem:[#allocation3 + $0x48] sm:$0xf]  ;;  %v14310_v55 = vld [vmem:[%s19623_s3 + $0x90] sm:$0xff]  }
 0x290   : > { %v6179_v49 = vrot.slane %v6177_v36, 7  ;;  %v6162_v17 = vrot.slane %v6160_v42, 7  ;;  %v6735_v20 = vrot.slane %v6734_v30, 4  ;;  %v6739_v38 = vrot.slane %v6737_v28, 5  ;;  %13754 = vmatprep.subr.bf16.mxu1 %v14300_v32 }
 0x291   : > { %v6372_v24 = vsel %vm14628_vm11, %v6157_v59, %v6371_v29  ;;  %v17356_v47 = vrot.slane %v6203_v44, 7  ;;  %v6743_v12 = vrot.slane %v6741_v15, 4  ;;  %v6747_v13 = vshll.u32 %v17347_v63, 16 }
 0x292   : > { %6373 = vst [vmem:[#allocation3 + $0x84] sm:$0xf] %v6372_v24  ;;  %v6182_v5 = vor.u32 %v6180_v46, %v6179_v49  ;;  %v6184_v0 = vrot.slane %v6179_v49, 4  ;;  %v6165_v8 = vor.u32 %v6163_v6, %v6162_v17  ;;  %v6167_v21 = vrot.slane %v6162_v17, 4  ;;  %v17386_v6 = vld [vmem:[#allocation3 + $0x38] sm:$0x1] }
 0x293   : > { %v6208_v4 = vor.u32 %v6206_v16, %v17356_v47  ;;  %v6209_v18 = vrot.slane %v17356_v47, 4  ;;  %v6740_v26 = vsel %vm14596_vm8, %v6735_v20, %v6739_v38  ;;  %v6744_v52 = vor.u32 %v6743_v12, %v6739_v38  ;;  %13755 = vmatpush3.bf16.msra.mxu1 %v14300_v32  ;;  %v13650_v16 = vpop.f32.mrf.mxu0  ;;  %v6602_v49 = vld [vmem:[#allocation3 + $0x54] sm:$0xf] }
 0x294   : > { %v6183_v15 = vsel %vm14616_vm10, %v6175_v61, %v6182_v5  ;;  %v6383_v30 = vsel %vm14575_vm5, %v6184_v0, %v6382_v19  ;;  %v6166_v53 = vsel %vm14616_vm10, %v6158_v34, %v6165_v8  ;;  %v6376_v29 = vsel %vm14575_vm5, %v6167_v21, %v6375_v48  ;;  %13756 = vmatprep.subr.bf16.mxu1 %v14305_v25 }
 0x295   : > { %6381 = vst [vmem:[#allocation3 + $0x94] sm:$0xf] %v6183_v15  ;;  %6384 = vst [vmem:[#allocation3 + $0x98] sm:$0x1] %v6383_v30  ;;  %v6393_v45 = vsel %vm14628_vm11, %v6208_v4, %v6392_v39  ;;  %v6745_v61 = vrot.slane %v6744_v52, 4  ;;  %v6749_v32 = vrot.slane %v6747_v13, 5  ;;  %v12271_v46 = vcombine.low %v6600_v51, %v17365_v54 }
 0x296   : > { %6374 = vst [vmem:[#allocation3 + $0x88] sm:$0xf] %v6166_v53  ;;  %6377 = vst [vmem:[#allocation3 + $0x8c] sm:$0x1] %v6376_v29  ;;  %v6800_v9 = vshrl.u32 %v6600_v51, 16  ;;  %v6803_v28 = vshll.u32 %v6600_v51, 16  ;;  %v5702_v42 = vadd.f32 %v17336_v27, %v17100_v57  ;;  %v6758_v19 = vor.u32 %v17296_v3, %v17294_v7 }
 0x297   : > { %6394 = vst [vmem:[#allocation3 + $0xa8] sm:$0xf] %v6393_v45  ;;  %v6813_v36 = vshrl.u32 %v17365_v54, 16  ;;  %v6750_v59 = vsel %vm14596_vm8, %v6745_v61, %v6749_v32  ;;  %v6761_v44 = vshll.u32 %v17267_v50, 16  ;;  %13757 = vmatpush3.bf16.msra.mxu1 %v14305_v25  ;;  %13728 = vmatprep.mubr.bf16.mxu0 %v12271_v46  ;;  %v17400_v57 = vld [vmem:[%s19622_s2] ss:$0 sm:$0xff]  ;;  %v5705_v48 = vadd.f32 %v17349_v41, %v17104_v23 }
 0x298   : > { %v17390_v34 = vrot.slane %v6800_v9, 4  ;;  %v12244_v17 = vcombine.low %v6740_v26, %v6750_v59  ;;  %v17395_v20 = vrot.slane %v6803_v28, 5  ;;  %v5741_v27 = vadd.f32 %v17400_v57, %v5702_v42  ;;  %13758 = vmatprep.subr.bf16.mxu1 %v14310_v55  ;;  %v14314_v7 = vld [vmem:[%s19623_s3 + $0x88] sm:$0xff]   ;;  %v17413_v50 = vld [vmem:[#allocation3 + $0x58] sm:$0xf]  ;;  %v17434_v59 = vld [vmem:[%s19623_s3 + $0x138] sm:$0xff]  }
 0x299   : > { %v6767_v38 = vrot.slane %v6765_v14, 4  ;;  %v6759_v3 = vrot.slane %v6758_v19, 4  ;;  %v6763_v25 = vrot.slane %v6761_v44, 5  ;;  %v6771_v24 = vshll.u32 %v17386_v6, 16  ;;  %v6385_v19 = vld [vmem:[#allocation3 + $0x9c] sm:$0xf] }
 0x29a   : > { %13673 = vmatmul.mubr.bf16.gmra.mxu1 %v12244_v17  ;;  %v5773_v12 = vmax.f32 %v5741_v27, 0.0  ;;  %v5703_v13 = vadd.f32 %v5650_v35, %v17107_v56  ;;  %v5708_v5 = vadd.f32 %v13650_v16, %v17111_v60  ;;  %v6824_v14 = vshrl.u32 %v6602_v49, 16  ;;  %v14318_v56 = vld [vmem:[%s19623_s3 + $0x80] sm:$0xff]  }
 0x29b   : > { %v6764_v0 = vsel %vm14596_vm8, %v6759_v3, %v6763_v25  ;;  %v6768_v8 = vor.u32 %v6767_v38, %v6763_v25  ;;  %v6773_v21 = vrot.slane %v6771_v24, 5  ;;  %v5744_v39 = vadd.f32 %v17400_v57, %v5705_v48  ;;  %13759 = vmatpush3.bf16.msra.mxu1 %v14310_v55  ;;  %v17439_v25 = vld [vmem:[#allocation3 + $0x44] sm:$0x1]  ;;  %v5663_v24 = vpop.f32.mrf.mxu0 }
 0x29c   : > { %v12658_v51 = vpack.c.bf16 %v5773_v12, %v5773_v12  ;;  %v5742_v23 = vadd.f32 %v17400_v57, %v5703_v13  ;;  %v5747_v41 = vadd.f32 %v17400_v57, %v5708_v5  ;;  %v17420_v4 = vrot.slane %v6824_v14, 4  ;;  %13760 = vmatprep.subr.bf16.mxu1 %v14314_v7  ;;  %v6396_v12 = vld [vmem:[#allocation3 + $0xb0] sm:$0x1] }
 0x29d   : > { %v6769_v60 = vrot.slane %v6768_v8, 4  ;;  %v5776_v26 = vmax.f32 %v5744_v39, 0.0  ;;  %v6827_v52 = vshll.u32 %v6602_v49, 16  ;;  %v6837_v35 = vshrl.u32 %v17413_v50, 16 }
 0x29e   : > { %v6186_v15 = vshrl.u32 %v12658_v51, 16  ;;  %v6189_v30 = vshll.u32 %v12658_v51, 16  ;;  %v5774_v53 = vmax.f32 %v5742_v23, 0.0  ;;  %v5779_v29 = vmax.f32 %v5747_v41, 0.0  ;;  %v6406_v41 = vld [vmem:[#allocation3 + $0xc0] sm:$0xf] }
 0x29f   : > { %v6774_v55 = vsel %vm14596_vm8, %v6769_v60, %v6773_v21  ;;  %v12661_v45 = vpack.c.bf16 %v5776_v26, %v5776_v26  ;;  %v17428_v61 = vrot.slane %v6827_v52, 5  ;;  %v12272_v32 = vcombine.low %v6602_v49, %v17413_v50  ;;  %13761 = vmatpush3.bf16.msra.mxu1 %v14314_v7 }
 0x2a0   : > { %v6188_v9 = vrot.slane %v6186_v15, 7  ;;  %v12245_v28 = vcombine.low %v6764_v0, %v6774_v55  ;;  %v12659_v46 = vpack.c.bf16 %v5774_v53, %v5774_v53  ;;  %v12664_v42 = vpack.c.bf16 %v5779_v29, %v5779_v29  ;;  %13762 = vmatprep.subr.bf16.mxu1 %v14318_v56  ;;  %v17451_v53 = vld [vmem:[#allocation3 + $0x64] sm:$0xf] }
 0x2a1   : > { %v6211_v44 = vshrl.u32 %v12661_v45, 16  ;;  %v6214_v16 = vshll.u32 %v12661_v45, 16  ;;  %13729 = vmatmul.mubr.bf16.gmra.mxu0 %v12272_v32  ;;  %v6782_v17 = vor.u32 %v17327_v31, %v17325_v43  ;;  %v6785_v49 = vshll.u32 %v17315_v10, 16  ;;  %v6389_v31 = vld [vmem:[#allocation3 + $0xa4] sm:$0x1]  ;;  %v13651_v10 = vpop.f32.mrf.mxu0 }
 0x2a2   : > { %v6191_v27 = vor.u32 %v6189_v30, %v6188_v9  ;;  %v6192_v38 = vrot.slane %v6188_v9, 4  ;;  %13676 = vmatprep.mubr.bf16.mxu1 %v12245_v28  ;;  %v6194_v7 = vshrl.u32 %v12659_v46, 16  ;;  %v6197_v3 = vshll.u32 %v12659_v46, 16  ;;  %v6604_v30 = vld [vmem:[#allocation3 + $0x60] sm:$0xf] }
 0x2a3   : > { %v6213_v48 = vrot.slane %v6211_v44, 7  ;;  %v6237_v13 = vshrl.u32 %v12664_v42, 16  ;;  %v6240_v5 = vshll.u32 %v12664_v42, 16  ;;  %v6783_v14 = vrot.slane %v6782_v17, 4  ;;  %13763 = vmatpush3.bf16.msra.mxu1 %v14318_v56  ;;  %v17465_v46 = vld [vmem:[#allocation3 + $0x50] sm:$0x1] }
 0x2a4   : > { %v6386_v0 = vsel %vm14628_vm11, %v6191_v27, %v6385_v19  ;;  %v6196_v43 = vrot.slane %v6194_v7, 7  ;;  %v6787_v8 = vrot.slane %v6785_v49, 5  ;;  %v6791_v21 = vrot.slane %v6789_v58, 4  ;;  %13844 = vmatprep.subr.bf16.mxu1 %v17434_v59  ;;  %v5666_v7 = vpop.f32.mrf.mxu0 }
 0x2a5   : > { %6387 = vst [vmem:[#allocation3 + $0x9c] sm:$0xf] %v6386_v0  ;;  %v6216_v39 = vor.u32 %v6214_v16, %v6213_v48  ;;  %v6218_v51 = vrot.slane %v6213_v48, 4  ;;  %v17446_v23 = vrot.slane %v6237_v13, 7  ;;  %v6795_v60 = vshll.u32 %v17439_v25, 16 }
 0x2a6   : > { %v6199_v56 = vor.u32 %v6197_v3, %v6196_v43  ;;  %v6201_v26 = vrot.slane %v6196_v43, 4  ;;  %v6788_v52 = vsel %vm14596_vm8, %v6783_v14, %v6787_v8  ;;  %v6792_v15 = vor.u32 %v6791_v21, %v6787_v8  ;;  %v6606_v16 = vld [vmem:[#allocation3 + $0x6c] sm:$0xf]  ;;  %v17476_v3 = vld [vmem:[#allocation3 + $0x70] sm:$0xf] }
 0x2a7   : > { %v6217_v58 = vsel %vm14616_vm10, %v6209_v18, %v6216_v39  ;;  %v6397_v29 = vsel %vm14575_vm5, %v6218_v51, %v6396_v12  ;;  %v6242_v55 = vor.u32 %v6240_v5, %v17446_v23  ;;  %v6243_v45 = vrot.slane %v17446_v23, 4 }
 0x2a8   : > { %6395 = vst [vmem:[#allocation3 + $0xac] sm:$0xf] %v6217_v58  ;;  %6398 = vst [vmem:[#allocation3 + $0xb0] sm:$0x1] %v6397_v29  ;;  %v6200_v32 = vsel %vm14616_vm10, %v6192_v38, %v6199_v56  ;;  %v6390_v9 = vsel %vm14575_vm5, %v6201_v26, %v6389_v31  ;;  %v6793_v28 = vrot.slane %v6792_v15, 4  ;;  %v6797_v47 = vrot.slane %v6795_v60, 5 }
 0x2a9   : > { %6388 = vst [vmem:[#allocation3 + $0xa0] sm:$0xf] %v6200_v32  ;;  %6391 = vst [vmem:[#allocation3 + $0xa4] sm:$0x1] %v6390_v9  ;;  %v6407_v18 = vsel %vm14628_vm11, %v6242_v55, %v6406_v41  ;;  %v6848_v42 = vshrl.u32 %v6604_v30, 16  ;;  %v6851_v19 = vshll.u32 %v6604_v30, 16  ;;  %v12273_v49 = vcombine.low %v6604_v30, %v17451_v53 }
 0x2aa   : > { %v6861_v44 = vshrl.u32 %v17451_v53, 16  ;;  %6408 = vst [vmem:[#allocation3 + $0xc0] sm:$0xf] %v6407_v18  ;;  %v6798_v17 = vsel %vm14596_vm8, %v6793_v28, %v6797_v47  ;;  %v5706_v27 = vadd.f32 %v5663_v24, %v17114_v33  ;;  %v6806_v38 = vor.u32 %v17395_v20, %v17390_v34  ;;  %v17499_v15 = vld [vmem:[#allocation3 + $0x5c] sm:$0x1] }
 0x2ab   : > { %v12246_v48 = vcombine.low %v6788_v52, %v6798_v17  ;;  %v17478_v12 = vrot.slane %v6848_v42, 4  ;;  %v17480_v13 = vrot.slane %v6851_v19, 5  ;;  %v6809_v5 = vshll.u32 %v17365_v54, 16  ;;  %13732 = vmatprep.mubr.bf16.mxu0 %v12273_v49  ;;  %v6399_v28 = vld [vmem:[#allocation3 + $0xb4] sm:$0xf] }
 0x2ac   : > { %v5745_v14 = vadd.f32 %v17400_v57, %v5706_v27  ;;  %v6807_v0 = vrot.slane %v6806_v38, 4  ;;  %v6815_v33 = vrot.slane %v6813_v36, 4  ;;  %v6819_v24 = vshll.u32 %v17465_v46, 16 }
 0x2ad   : > { %13677 = vmatmul.mubr.bf16.gmra.mxu1 %v12246_v48  ;;  %v6811_v34 = vrot.slane %v6809_v5, 5  ;;  %v5709_v20 = vadd.f32 %v13651_v10, %v17117_v22  ;;  %v5707_v43 = vadd.f32 %v5666_v7, %v17119_v40  ;;  %v6872_v31 = vshrl.u32 %v6606_v16, 16  ;;  %v17509_v5 = vld [vmem:[#allocation3 + $0x7c] sm:$0xf] }
 0x2ae   : > { %v5777_v8 = vmax.f32 %v5745_v14, 0.0  ;;  %v6821_v21 = vrot.slane %v6819_v24, 5  ;;  %v6875_v39 = vshll.u32 %v6606_v16, 16  ;;  %v6885_v51 = vshrl.u32 %v17476_v3, 16 }
 0x2af   : > { %v6812_v41 = vsel %vm14596_vm8, %v6807_v0, %v6811_v34  ;;  %v6816_v60 = vor.u32 %v6815_v33, %v6811_v34  ;;  %v5748_v36 = vadd.f32 %v17400_v57, %v5709_v20  ;;  %v5746_v56 = vadd.f32 %v17400_v57, %v5707_v43  ;;  %v6410_v34 = vld [vmem:[#allocation3 + $0xc8] sm:$0x1] }
 0x2b0   : > { %v12662_v26 = vpack.c.bf16 %v5777_v8, %v5777_v8  ;;  %v17494_v52 = vrot.slane %v6872_v31, 4  ;;  %v17496_v22 = vrot.slane %v6875_v39, 5  ;;  %v12274_v40 = vcombine.low %v6606_v16, %v17476_v3 }
 0x2b1   : > { %v6817_v30 = vrot.slane %v6816_v60, 4  ;;  %v5780_v10 = vmax.f32 %v5748_v36, 0.0  ;;  %v5778_v58 = vmax.f32 %v5746_v56, 0.0  ;;  %v6830_v29 = vor.u32 %v17428_v61, %v17420_v4  ;;  %v6608_v61 = vld [vmem:[#allocation3 + $0x78] sm:$0xf] }
 0x2b2   : > { %v6220_v55 = vshrl.u32 %v12662_v26, 16  ;;  %v6223_v32 = vshll.u32 %v12662_v26, 16  ;;  %13733 = vmatmul.mubr.bf16.gmra.mxu0 %v12274_v40  ;;  %v6833_v57 = vshll.u32 %v17413_v50, 16  ;;  %v6839_v9 = vrot.slane %v6837_v35, 4 }
 0x2b3   : > { %v6822_v47 = vsel %vm14596_vm8, %v6817_v30, %v6821_v21  ;;  %v12665_v18 = vpack.c.bf16 %v5780_v10, %v5780_v10  ;;  %v12663_v42 = vpack.c.bf16 %v5778_v58, %v5778_v58  ;;  %v6831_v19 = vrot.slane %v6830_v29, 4  ;;  %v6403_v21 = vld [vmem:[#allocation3 + $0xbc] sm:$0x1]  ;;  %v17516_v30 = vld [vmem:[#allocation3 + $0x68] sm:$0x1] }
 0x2b4   : > { %v6222_v16 = vrot.slane %v6220_v55, 7  ;;  %v12247_v17 = vcombine.low %v6812_v41, %v6822_v47  ;;  %v6835_v49 = vrot.slane %v6833_v57, 5  ;;  %v6843_v4 = vshll.u32 %v17499_v15, 16  ;;  %v6610_v55 = vld [vmem:[#allocation3 + $0x84] sm:$0xf] }
 0x2b5   : > { %v6245_v27 = vshrl.u32 %v12665_v18, 16  ;;  %v6248_v38 = vshll.u32 %v12665_v18, 16  ;;  %v6228_v7 = vshrl.u32 %v12663_v42, 16  ;;  %v6231_v48 = vshll.u32 %v12663_v42, 16 }
 0x2b6   : > { %v6225_v35 = vor.u32 %v6223_v32, %v6222_v16  ;;  %v6226_v14 = vrot.slane %v6222_v16, 4  ;;  %13680 = vmatprep.mubr.bf16.mxu1 %v12247_v17  ;;  %v6836_v0 = vsel %vm14596_vm8, %v6831_v19, %v6835_v49  ;;  %v6840_v33 = vor.u32 %v6839_v9, %v6835_v49  ;;  %v17521_v32 = vld [vmem:[#allocation3 + $0x88] sm:$0xf]  ;;  %v17538_v19 = vld [vmem:[#allocation3 + $0x74] sm:$0x1] }
 0x2b7   : > { %v6247_v24 = vrot.slane %v6245_v27, 7  ;;  %v6230_v20 = vrot.slane %v6228_v7, 7  ;;  %v6845_v43 = vrot.slane %v6843_v4, 5  ;;  %v6896_v31 = vshrl.u32 %v6608_v61, 16  ;;  %v17542_v4 = vld [vmem:[#allocation3 + $0x94] sm:$0xf] }
 0x2b8   : > { %v6400_v8 = vsel %vm14628_vm11, %v6225_v35, %v6399_v28  ;;  %v6841_v39 = vrot.slane %v6840_v33, 4  ;;  %v6899_v41 = vshll.u32 %v6608_v61, 16  ;;  %v6909_v60 = vshrl.u32 %v17509_v5, 16 }
 0x2b9   : > { %6401 = vst [vmem:[#allocation3 + $0xb4] sm:$0xf] %v6400_v8  ;;  %v6250_v36 = vor.u32 %v6248_v38, %v6247_v24  ;;  %v6252_v56 = vrot.slane %v6247_v24, 4  ;;  %v6233_v26 = vor.u32 %v6231_v48, %v6230_v20  ;;  %v6235_v40 = vrot.slane %v6230_v20, 4  ;;  %v17555_v8 = vld [vmem:[#allocation3 + $0x80] sm:$0x1] }
 0x2ba   : > { %v6846_v10 = vsel %vm14596_vm8, %v6841_v39, %v6845_v43  ;;  %v6898_v58 = vrot.slane %v6896_v31, 4  ;;  %v6901_v29 = vrot.slane %v6899_v41, 5  ;;  %v12275_v37 = vcombine.low %v6608_v61, %v17509_v5 }
 0x2bb   : > { %v6251_v57 = vsel %vm14616_vm10, %v6243_v45, %v6250_v36  ;;  %v6411_v9 = vsel %vm14575_vm5, %v6252_v56, %v6410_v34  ;;  %v6234_v28 = vsel %vm14616_vm10, %v6226_v14, %v6233_v26  ;;  %v6404_v47 = vsel %vm14575_vm5, %v6235_v40, %v6403_v21  ;;  %v17559_v26 = vld [vmem:[#allocation3 + $0xa0] sm:$0xf] }
 0x2bc   : > { %6409 = vst [vmem:[#allocation3 + $0xc4] sm:$0xf] %v6251_v57  ;;  %6412 = vst [vmem:[#allocation3 + $0xc8] sm:$0x1] %v6411_v9  ;;  %v12248_v18 = vcombine.low %v6836_v0, %v6846_v10  ;;  %13736 = vmatprep.mubr.bf16.mxu0 %v12275_v37  ;;  %v6854_v23 = vor.u32 %v17480_v13, %v17478_v12  ;;  %v6857_v45 = vshll.u32 %v17451_v53, 16  ;;  %v6863_v42 = vrot.slane %v6861_v44, 4 }
 0x2bd   : > { %6402 = vst [vmem:[#allocation3 + $0xb8] sm:$0xf] %v6234_v28  ;;  %6405 = vst [vmem:[#allocation3 + $0xbc] sm:$0x1] %v6404_v47  ;;  %v6867_v2 = vshll.u32 %v17516_v30, 16  ;;  %v6920_v16 = vshrl.u32 %v6610_v55, 16  ;;  %v12276_v12 = vcombine.low %v6610_v55, %v17521_v32  ;;  %v6878_v13 = vor.u32 %v17496_v22, %v17494_v52 }
 0x2be   : > { %v6923_v17 = vshll.u32 %v6610_v55, 16  ;;  %v6933_v49 = vshrl.u32 %v17521_v32, 16  ;;  %13681 = vmatmul.mubr.bf16.gmra.mxu1 %v12248_v18  ;;  %v6855_v61 = vrot.slane %v6854_v23, 4  ;;  %v6859_v27 = vrot.slane %v6857_v45, 5 }
 0x2bf   : > { %v6869_v44 = vrot.slane %v6867_v2, 5  ;;  %v6922_v38 = vrot.slane %v6920_v16, 4  ;;  %v6881_v48 = vshll.u32 %v17476_v3, 16  ;;  %13737 = vmatmul.mubr.bf16.gmra.mxu0 %v12276_v12  ;;  %v6879_v0 = vrot.slane %v6878_v13, 4  ;;  %v17571_v2 = vld [vmem:[#allocation3 + $0x8c] sm:$0x1] }
 0x2c0   : > { %v6925_v7 = vrot.slane %v6923_v17, 5  ;;  %v6860_v35 = vsel %vm14596_vm8, %v6855_v61, %v6859_v27  ;;  %v6864_v14 = vor.u32 %v6863_v42, %v6859_v27  ;;  %v6887_v33 = vrot.slane %v6885_v51, 4  ;;  %v6614_v51 = vld [vmem:[#allocation3 + $0x9c] sm:$0xf]  ;;  %v6616_v17 = vld [vmem:[#allocation3 + $0xa8] sm:$0xf] }
 0x2c1   : > { %v6883_v24 = vrot.slane %v6881_v48, 5  ;;  %v6891_v34 = vshll.u32 %v17538_v19, 16  ;;  %v6944_v20 = vshrl.u32 %v6612_v1, 16  ;;  %v6947_v43 = vshll.u32 %v6612_v1, 16  ;;  %v17575_v13 = vld [vmem:[#allocation3 + $0xac] sm:$0xf] }
 0x2c2   : > { %v6865_v52 = vrot.slane %v6864_v14, 4  ;;  %v6957_v22 = vshrl.u32 %v17542_v4, 16  ;;  %v12277_v31 = vcombine.low %v6612_v1, %v17542_v4  ;;  %v6902_v21 = vor.u32 %v6901_v29, %v6898_v58 }
 0x2c3   : > { %v6884_v39 = vsel %vm14596_vm8, %v6879_v0, %v6883_v24  ;;  %v6888_v41 = vor.u32 %v6887_v33, %v6883_v24  ;;  %v6893_v36 = vrot.slane %v6891_v34, 5  ;;  %v6946_v56 = vrot.slane %v6944_v20, 4  ;;  %v17578_v0 = vld [vmem:[#allocation3 + $0x98] sm:$0x1]  ;;  %v6618_v34 = vld [vmem:[#allocation3 + $0xb4] sm:$0xf] }
 0x2c4   : > { %v6870_v40 = vsel %vm14596_vm8, %v6865_v52, %v6869_v44  ;;  %v6949_v10 = vrot.slane %v6947_v43, 5  ;;  %13740 = vmatprep.mubr.bf16.mxu0 %v12277_v31  ;;  %v6903_v37 = vrot.slane %v6902_v21, 4  ;;  %v6905_v55 = vshll.u32 %v17509_v5, 16 }
 0x2c5   : > { %v12249_v57 = vcombine.low %v6860_v35, %v6870_v40  ;;  %v6889_v9 = vrot.slane %v6888_v41, 4  ;;  %v6911_v58 = vrot.slane %v6909_v60, 4  ;;  %v6915_v29 = vshll.u32 %v17555_v8, 16 }
 0x2c6   : > { %v6907_v28 = vrot.slane %v6905_v55, 5  ;;  %v6968_v47 = vshrl.u32 %v6614_v51, 16  ;;  %v6971_v18 = vshll.u32 %v6614_v51, 16  ;;  %v6981_v23 = vshrl.u32 %v17559_v26, 16 }
 0x2c7   : > { %13684 = vmatprep.mubr.bf16.mxu1 %v12249_v57  ;;  %v6894_v45 = vsel %vm14596_vm8, %v6889_v9, %v6893_v36  ;;  %v6917_v42 = vrot.slane %v6915_v29, 5  ;;  %v12278_v1 = vcombine.low %v6614_v51, %v17559_v26  ;;  %v6926_v16 = vor.u32 %v6925_v7, %v6922_v38  ;;  %v17585_v36 = vld [vmem:[#allocation3 + $0xb8] sm:$0xf] }
 0x2c8   : > { %v12250_v61 = vcombine.low %v6884_v39, %v6894_v45  ;;  %v6908_v60 = vsel %vm14596_vm8, %v6903_v37, %v6907_v28  ;;  %v6912_v27 = vor.u32 %v6911_v58, %v6907_v28  ;;  %v6970_v12 = vrot.slane %v6968_v47, 4 }
 0x2c9   : > { %v6973_v44 = vrot.slane %v6971_v18, 5  ;;  %13741 = vmatmul.mubr.bf16.gmra.mxu0 %v12278_v1  ;;  %v6927_v48 = vrot.slane %v6926_v16, 4  ;;  %v6929_v35 = vshll.u32 %v17521_v32, 16  ;;  %v6935_v14 = vrot.slane %v6933_v49, 4  ;;  %v17593_v1 = vld [vmem:[#allocation3 + $0xa4] sm:$0x1] }
 0x2ca   : > { %13685 = vmatmul.mubr.bf16.gmra.mxu1 %v12250_v61  ;;  %v6913_v33 = vrot.slane %v6912_v27, 4  ;;  %v6939_v38 = vshll.u32 %v17571_v2, 16  ;;  %v6992_v7 = vshrl.u32 %v6616_v17, 16  ;;  %v6995_v24 = vshll.u32 %v6616_v17, 16 }
 0x2cb   : > { %v6931_v20 = vrot.slane %v6929_v35, 5  ;;  %v7005_v43 = vshrl.u32 %v17575_v13, 16  ;;  %v12279_v52 = vcombine.low %v6616_v17, %v17575_v13  ;;  %v6950_v31 = vor.u32 %v6949_v10, %v6946_v56  ;;  %v14315_v17 = vld [vmem:[#allocation3 + $0xc] sm:$0xff]  }
 0x2cc   : > { %v6918_v21 = vsel %vm14596_vm8, %v6913_v33, %v6917_v42  ;;  %v6941_v39 = vrot.slane %v6939_v38, 5  ;;  %v6994_v49 = vrot.slane %v6992_v7, 4  ;;  %v6997_v41 = vrot.slane %v6995_v24, 5 }
 0x2cd   : > { %v12251_v51 = vcombine.low %v6908_v60, %v6918_v21  ;;  %v6932_v40 = vsel %vm14596_vm8, %v6927_v48, %v6931_v20  ;;  %v6936_v37 = vor.u32 %v6935_v14, %v6931_v20  ;;  %13744 = vmatprep.mubr.bf16.mxu0 %v12279_v52  ;;  %v6951_v55 = vrot.slane %v6950_v31, 4  ;;  %v17598_v48 = vld [vmem:[#allocation3 + $0xb0] sm:$0x1] }
 0x2ce   : > { %v6953_v57 = vshll.u32 %v17542_v4, 16  ;;  %v6959_v9 = vrot.slane %v6957_v22, 4  ;;  %v6963_v56 = vshll.u32 %v17578_v0, 16  ;;  %v7016_v10 = vshrl.u32 %v6618_v34, 16 }
 0x2cf   : > { %13688 = vmatprep.mubr.bf16.mxu1 %v12251_v51  ;;  %v6937_v58 = vrot.slane %v6936_v37, 4  ;;  %v7019_v29 = vshll.u32 %v6618_v34, 16  ;;  %v7029_v28 = vshrl.u32 %v17585_v36, 16  ;;  %v12280_v47 = vcombine.low %v6618_v34, %v17585_v36  ;;  %v7634_v37 = vld [vmem:[#allocation3] sm:$0xe] }
 0x2d0   : > { %v6955_v18 = vrot.slane %v6953_v57, 5  ;;  %v6965_v45 = vrot.slane %v6963_v56, 5  ;;  %v7018_v42 = vrot.slane %v7016_v10, 4  ;;  %v6974_v16 = vor.u32 %v6973_v44, %v6970_v12  ;;  %v14317_v10 = vld [vmem:[#allocation3 + $0x18] sm:$0xff]  }
 0x2d1   : > { %v6942_v22 = vsel %vm14596_vm8, %v6937_v58, %v6941_v39  ;;  %v7021_v61 = vrot.slane %v7019_v29, 5  ;;  %13745 = vmatmul.mubr.bf16.gmra.mxu0 %v12280_v47  ;;  %v6977_v60 = vshll.u32 %v17559_v26, 16  ;;  %v6983_v27 = vrot.slane %v6981_v23, 4  ;;  %v14333_v47 = vld [vmem:[%s19623_s3 + $0x170] sm:$0xff]  }
 0x2d2   : > { %v12252_v35 = vcombine.low %v6932_v40, %v6942_v22  ;;  %v6956_v14 = vsel %vm14596_vm8, %v6951_v55, %v6955_v18  ;;  %v6960_v33 = vor.u32 %v6959_v9, %v6955_v18  ;;  %v6975_v38 = vrot.slane %v6974_v16, 4  ;;  %13812 = vmatprep.mubr.bf16.mxu0 %v14315_v17  ;;  %v17607_v40 = vld [vmem:[#allocation3 + $0xbc] sm:$0x1]  ;;  %v14319_v16 = vld [vmem:[#allocation3 + $0x24] sm:$0xff]  }
 0x2d3   : > { %v6979_v7 = vrot.slane %v6977_v60, 5  ;;  %v6987_v12 = vshll.u32 %v17593_v1, 16  ;;  %v6998_v44 = vor.u32 %v6997_v41, %v6994_v49  ;;  %v7001_v24 = vshll.u32 %v17575_v13, 16  ;;  %v14423_v60 = vld [vmem:[#allocation3 + $0x4] sm:$0xf] }
 0x2d4   : > { %13689 = vmatmul.mubr.bf16.gmra.mxu1 %v12252_v35  ;;  %v6961_v34 = vrot.slane %v6960_v33, 4  ;;  %v7007_v20 = vrot.slane %v7005_v43, 4  ;;  %v7011_v23 = vshll.u32 %v17598_v48, 16  ;;  %v7022_v52 = vor.u32 %v7021_v61, %v7018_v42  ;;  %v7635_v43 = vld [vmem:[#allocation3 + $0xc] sm:$0xe] }
 0x2d5   : > { %v6980_v31 = vsel %vm14596_vm8, %v6975_v38, %v6979_v7  ;;  %v6984_v21 = vor.u32 %v6983_v27, %v6979_v7  ;;  %v6989_v39 = vrot.slane %v6987_v12, 5  ;;  %v6999_v51 = vrot.slane %v6998_v44, 4  ;;  %v14424_v27 = vld [vmem:[#allocation3 + $0x8] sm:$0x1] }
 0x2d6   : > { %v6966_v49 = vsel %vm14596_vm8, %v6961_v34, %v6965_v45  ;;  %v7003_v41 = vrot.slane %v7001_v24, 5  ;;  %v7013_v55 = vrot.slane %v7011_v23, 5  ;;  %v17611_v57 = vrot.slane %v7022_v52, 4  ;;  %v14335_v52 = vld [vmem:[%s19623_s3 + $0x168] sm:$0xff]  }
 0x2d7   : > { %v12253_v9 = vcombine.low %v6956_v14, %v6966_v49  ;;  %v6985_v56 = vrot.slane %v6984_v21, 4  ;;  %v7025_v58 = vshll.u32 %v17585_v36, 16  ;;  %v7031_v29 = vrot.slane %v7029_v28, 4  ;;  %v7636_v14 = vld [vmem:[#allocation3 + $0x18] sm:$0xe] }
 0x2d8   : > { %v7004_v18 = vsel %vm14596_vm8, %v6999_v51, %v7003_v41  ;;  %v7008_v42 = vor.u32 %v7007_v20, %v7003_v41  ;;  %v7035_v45 = vshll.u32 %v17607_v40, 16  ;;  %v12289_v17 = vrot.slane %v7634_v37, 9  ;;  %v7637_v49 = vld [vmem:[#allocation3 + $0x24] sm:$0xe] }
 0x2d9   : > { %13692 = vmatprep.mubr.bf16.mxu1 %v12253_v9  ;;  %v6990_v22 = vsel %vm14596_vm8, %v6985_v56, %v6989_v39  ;;  %13813 = vmatmul.mubr.bf16.vlgmr.msra.gmra.mxu0 %v14317_v10  ;;  %v7027_v61 = vrot.slane %v7025_v58, 5  ;;  %v7687_v28 = vrot.slane %v14423_v60, 5  ;;  %v7690_v35 = vrot.slane %v14424_v27, 5  ;;  %v14426_v39 = vld [vmem:[#allocation3 + $0x14] sm:$0x1]  ;;  %v14338_v60 = vld [vmem:[%s19623_s3 + $0x160] sm:$0xff]  }
 0x2da   : > { %v12254_v33 = vcombine.low %v6980_v31, %v6990_v22  ;;  %v7009_v38 = vrot.slane %v7008_v42, 4  ;;  %v7037_v7 = vrot.slane %v7035_v45, 5  ;;  %13816 = vmatprep.mubr.bf16.mxu0 %v14319_v16  ;;  %v12290_v12 = vrot.slane %v7635_v43, 9  ;;  %13893 = vmatpush3.bf16.msra.mxu0 %v17332_v62  ;;  %v14425_v62 = vld [vmem:[#allocation3 + $0x10] sm:$0xf]  ;;  %v14321_v27 = vld [vmem:[#allocation3 + $0x3c] sm:$0xff]  }
 0x2db   : > { %v7028_v44 = vsel %vm14596_vm8, %v17611_v57, %v7027_v61  ;;  %v7032_v24 = vor.u32 %v7031_v29, %v7027_v61  ;;  %v17628_v20 = vsel %vm15037_vm14, %v12289_v17, %v7687_v28  ;;  %v7689_v23 = vrot.slane %v7687_v28, 4  ;;  %13894 = vmatprep.subr.bf16.mxu0 %v14333_v47  ;;  %v14427_v9 = vld [vmem:[#allocation3 + $0x1c] sm:$0xf]  ;;  %v14428_v29 = vld [vmem:[#allocation3 + $0x20] sm:$0x1]  ;;  %v14320_v16 = vld [vmem:[#allocation3 + $0x30] sm:$0xff]  }
 0x2dc   : > { %13693 = vmatmul.mubr.bf16.gmra.mxu1 %v12254_v33  ;;  %v7014_v31 = vsel %vm14596_vm8, %v7009_v38, %v7013_v55  ;;  %v7694_v21 = vrot.slane %v14425_v62, 5  ;;  %v7697_v51 = vrot.slane %v14426_v39, 5  ;;  %v12291_v37 = vrot.slane %v7636_v14, 9  ;;  %v7638_v45 = vld [vmem:[#allocation3 + $0x30] sm:$0xe] }
 0x2dd   : > { %v12255_v41 = vcombine.low %v7004_v18, %v7014_v31  ;;  %v7033_v57 = vrot.slane %v7032_v24, 4  ;;  %v7691_v43 = vsel %vm15037_vm14, %v7689_v23, %v7690_v35  ;;  %v7701_v56 = vrot.slane %v14427_v9, 5  ;;  %v14429_v35 = vld [vmem:[#allocation3 + $0x28] sm:$0xf]  ;;  %v7639_v38 = vld [vmem:[#allocation3 + $0x3c] sm:$0xe] }
 0x2de   : > { %v12321_v10 = vcombine.low %v17628_v20, %v7691_v43  ;;  %v17640_v58 = vsel %vm15037_vm14, %v12290_v12, %v7694_v21  ;;  %v7696_v55 = vrot.slane %v7694_v21, 4  ;;  %v7704_v42 = vrot.slane %v14428_v29, 5  ;;  %13895 = vmatpush3.bf16.msra.mxu0 %v14333_v47  ;;  %v7640_v23 = vld [vmem:[#allocation3 + $0x48] sm:$0xe] }
 0x2df   : > { %13696 = vmatprep.mubr.bf16.mxu1 %v12255_v41  ;;  %v7038_v18 = vsel %vm14596_vm8, %v7033_v57, %v7037_v7  ;;  %v17646_v17 = vsel %vm15037_vm14, %v12291_v37, %v7701_v56  ;;  %v7703_v22 = vrot.slane %v7701_v56, 4  ;;  %v12292_v61 = vrot.slane %v7637_v49, 9  ;;  %13896 = vmatprep.subr.bf16.mxu0 %v14335_v52  ;;  %v14431_v49 = vld [vmem:[#allocation3 + $0x40] sm:$0xf]  ;;  %v7641_v56 = vld [vmem:[#allocation3 + $0x54] sm:$0xe] }
 0x2e0   : > { %v12256_v28 = vcombine.low %v7028_v44, %v7038_v18  ;;  %v17653_v47 = vsel %vm15037_vm14, %v7696_v55, %v7697_v51  ;;  %v7708_v14 = vrot.slane %v14429_v35, 5  ;;  %v7711_v33 = vrot.slane %v17347_v63, 5  ;;  %v14430_v44 = vld [vmem:[#allocation3 + $0x34] sm:$0xf]  ;;  %v14340_v57 = vld [vmem:[%s19623_s3 + $0x158] sm:$0xff]  }
 0x2e1   : > { %13817 = vmatmul.mubr.bf16.gmra.mxu0 %v14320_v16  ;;  %v12322_v7 = vcombine.low %v17640_v58, %v17653_v47  ;;  %v17660_v12 = vsel %vm15037_vm14, %v7703_v22, %v7704_v42  ;;  %v12293_v24 = vrot.slane %v7638_v45, 9  ;;  %v7715_v20 = vrot.slane %v14430_v44, 5  ;;  %v7642_v18 = vld [vmem:[#allocation3 + $0x60] sm:$0xe]  ;;  %v14323_v16 = vld [vmem:[#allocation3 + $0x48] sm:$0xff]  }
 0x2e2   : > { %13820 = vmatprep.mubr.bf16.mxu0 %v14321_v27  ;;  %v12323_v31 = vcombine.low %v17646_v17, %v17660_v12  ;;  %v17666_v63 = vsel %vm15037_vm14, %v12292_v61, %v7708_v14  ;;  %v7710_v62 = vrot.slane %v7708_v14, 4  ;;  %v7718_v21 = vrot.slane %v17386_v6, 5  ;;  %13897 = vmatpush3.bf16.msra.mxu0 %v14335_v52  ;;  %v7643_v14 = vld [vmem:[#allocation3 + $0x6c] sm:$0xe] }
 0x2e3   : > { %v17671_v39 = vsel %vm15037_vm14, %v12293_v24, %v7715_v20  ;;  %v7717_v51 = vrot.slane %v7715_v20, 4  ;;  %v12294_v37 = vrot.slane %v7639_v38, 9  ;;  %v7722_v41 = vrot.slane %v14431_v49, 5  ;;  %13898 = vmatprep.subr.bf16.mxu0 %v14338_v60  ;;  %v14324_v38 = vld [vmem:[#allocation3 + $0x54] sm:$0xff]  }
 0x2e4   : > { %13697 = vmatmul.mubr.bf16.gmra.mxu1 %v12256_v28  ;;  %v17678_v43 = vsel %vm15037_vm14, %v7710_v62, %v7711_v33  ;;  %v7725_v6 = vrot.slane %v17439_v25, 5  ;;  %v12295_v52 = vrot.slane %v7640_v23, 9  ;;  %v7729_v9 = vrot.slane %v17365_v54, 5  ;;  %v14343_v33 = vld [vmem:[%s19623_s3 + $0x150] sm:$0xff]  }
 0x2e5   : > { %13764 = vmatprep.mubr.bf16.mxu1 %v12321_v10  ;;  %v12324_v55 = vcombine.low %v17666_v63, %v17678_v43  ;;  %v17686_v29 = vsel %vm15037_vm14, %v7717_v51, %v7718_v21  ;;  %v17690_v42 = vsel %vm15037_vm14, %v12294_v37, %v7722_v41  ;;  %v7724_v45 = vrot.slane %v7722_v41, 4  ;;  %v14325_v21 = vld [vmem:[%s19623_s3 + $0x130] sm:$0xff]  }
 0x2e6   : > { %v12325_v25 = vcombine.low %v17671_v39, %v17686_v29  ;;  %v17696_v54 = vsel %vm15037_vm14, %v12295_v52, %v7729_v9  ;;  %v7731_v10 = vrot.slane %v7729_v9, 4  ;;  %v7732_v22 = vrot.slane %v17465_v46, 5  ;;  %13899 = vmatpush3.bf16.msra.mxu0 %v14338_v60  ;;  %v7645_v9 = vld [vmem:[#allocation3 + $0x84] sm:$0xe] }
 0x2e7   : > { %v17701_v61 = vsel %vm15037_vm14, %v7724_v45, %v7725_v6  ;;  %v12296_v28 = vrot.slane %v7641_v56, 9  ;;  %v7736_v27 = vrot.slane %v17413_v50, 5  ;;  %v7739_v35 = vrot.slane %v17499_v15, 5  ;;  %13900 = vmatprep.subr.bf16.mxu0 %v14340_v57  ;;  %v7644_v50 = vld [vmem:[#allocation3 + $0x78] sm:$0xe]  ;;  %v14345_v56 = vld [vmem:[%s19623_s3 + $0x148] sm:$0xff]  }
 0x2e8   : > { %v12326_v46 = vcombine.low %v17690_v42, %v17701_v61  ;;  %v17712_v60 = vsel %vm15037_vm14, %v7731_v10, %v7732_v22  ;;  %v12297_v24 = vrot.slane %v7642_v18, 9  ;;  %v7743_v44 = vrot.slane %v17451_v53, 5  ;;  %v7646_v45 = vld [vmem:[#allocation3 + $0x90] sm:$0xe]  ;;  %v7647_v22 = vld [vmem:[#allocation3 + $0x9c] sm:$0xe] }
 0x2e9   : > { %13821 = vmatmul.mubr.bf16.gmra.mxu0 %v14323_v16  ;;  %v12327_v15 = vcombine.low %v17696_v54, %v17712_v60  ;;  %v17719_v20 = vsel %vm15037_vm14, %v12296_v28, %v7736_v27  ;;  %v7738_v23 = vrot.slane %v7736_v27, 4  ;;  %v7746_v62 = vrot.slane %v17516_v30, 5  ;;  %v9260_v16 = vld [vmem:[#allocation3 + $0xc] sm:$0xe]  ;;  %v14328_v10 = vld [vmem:[%s19623_s3 + $0x128] sm:$0xff]   ;;  %v14326_v28 = vld [vmem:[#allocation3 + $0x60] sm:$0xff]  }
 0x2ea   : > { %13824 = vmatprep.mubr.bf16.mxu0 %v14324_v38  ;;  %v17727_v53 = vsel %vm15037_vm14, %v12297_v24, %v7743_v44  ;;  %v7745_v51 = vrot.slane %v7743_v44, 4  ;;  %v12298_v37 = vrot.slane %v7643_v14, 9  ;;  %v7750_v49 = vrot.slane %v17476_v3, 5  ;;  %13901 = vmatpush3.bf16.msra.mxu0 %v14340_v57  ;;  %v17779_v38 = vld [vmem:[#allocation3 + $0x10] sm:$0xf] }
 0x2eb   : > { %v17732_v41 = vsel %vm15037_vm14, %v7738_v23, %v7739_v35  ;;  %v7753_v30 = vrot.slane %v17538_v19, 5  ;;  %v12299_v6 = vrot.slane %v7644_v50, 9  ;;  %v7757_v52 = vrot.slane %v17509_v5, 5  ;;  %13902 = vmatprep.subr.bf16.mxu0 %v14343_v33  ;;  %v14327_v24 = vld [vmem:[#allocation3 + $0x6c] sm:$0xff]   ;;  %v17788_v50 = vld [vmem:[#allocation3 + $0x14] sm:$0x1] }
 0x2ec   : > { %13765 = vmatmul.mubr.bf16.vlgmr.msra.gmra.mxu1 %v12322_v7  ;;  %v12328_v3 = vcombine.low %v17719_v20, %v17732_v41  ;;  %v17746_v57 = vsel %vm15037_vm14, %v7745_v51, %v7746_v62  ;;  %v17750_v5 = vsel %vm15037_vm14, %v12298_v37, %v7750_v49  ;;  %v7752_v19 = vrot.slane %v7750_v49, 4  ;;  %v9261_v49 = vld [vmem:[#allocation3 + $0x18] sm:$0xe]  ;;  %v14346_v54 = vld [vmem:[%s19623_s3 + $0x108] sm:$0xff]   ;;  %v17944_v60 = vld [vmem:[#allocation3 + $0x44] sm:$0x1] }
 0x2ed   : > { %13768 = vmatprep.mubr.bf16.mxu1 %v12323_v31  ;;  %13845 = vmatpush3.bf16.msra.mxu1 %v17434_v59  ;;  %v12329_v58 = vcombine.low %v17727_v53, %v17746_v57  ;;  %v17760_v47 = vsel %vm15037_vm14, %v12299_v6, %v7757_v52  ;;  %v7759_v7 = vrot.slane %v7757_v52, 4  ;;  %v7760_v18 = vrot.slane %v17555_v8, 5  ;;  %v17965_v53 = vld [vmem:[%s19623_s3 + $0x1b8] sm:$0xff]   ;;  %v9265_v57 = vld [vmem:[#allocation3 + $0x48] sm:$0xe] }
 0x2ee   : > { %13846 = vmatprep.subr.bf16.mxu1 %v14325_v21  ;;  %v17768_v17 = vsel %vm15037_vm14, %v7752_v19, %v7753_v30  ;;  %v12300_v59 = vrot.slane %v7645_v9, 9  ;;  %v7764_v12 = vrot.slane %v17521_v32, 5  ;;  %v7767_v31 = vrot.slane %v17571_v2, 5  ;;  %13903 = vmatpush3.bf16.msra.mxu0 %v14343_v33  ;;  %v7648_v9 = vld [vmem:[#allocation3 + $0xa8] sm:$0xe] }
 0x2ef   : > { %v12330_v8 = vcombine.low %v17750_v5, %v17768_v17  ;;  %v17776_v27 = vsel %vm15037_vm14, %v7759_v7, %v7760_v18  ;;  %v12301_v35 = vrot.slane %v7646_v45, 9  ;;  %v7771_v14 = vrot.slane %v17542_v4, 5  ;;  %13904 = vmatprep.subr.bf16.mxu0 %v14345_v56  ;;  %v14347_v4 = vld [vmem:[%s19623_s3 + $0x140] sm:$0xff]   ;;  %v17817_v18 = vld [vmem:[#allocation3 + $0x1c] sm:$0xf] }
 0x2f0   : > { %v12331_v32 = vcombine.low %v17760_v47, %v17776_v27  ;;  %v17785_v2 = vsel %vm15037_vm14, %v12300_v59, %v7764_v12  ;;  %v7766_v33 = vrot.slane %v7764_v12, 4  ;;  %v7774_v44 = vrot.slane %v17578_v0, 5  ;;  %v14332_v0 = vld [vmem:[%s19623_s3 + $0x120] sm:$0xff]  }
 0x2f1   : > { %13847 = vmatpush3.bf16.msra.mxu1 %v14325_v21  ;;  %13825 = vmatmul.mubr.bf16.gmra.mxu0 %v14326_v28  ;;  %v17795_v23 = vsel %vm15037_vm14, %v12301_v35, %v7771_v14  ;;  %v7773_v62 = vrot.slane %v7771_v14, 4  ;;  %v12302_v51 = vrot.slane %v7647_v22, 9  ;;  %v7778_v37 = vrot.slane %v17559_v26, 5  ;;  %v17834_v22 = vld [vmem:[%s19623_s3 + $0x1f8] sm:$0xff]   ;;  %v7649_v35 = vld [vmem:[#allocation3 + $0xb4] sm:$0xe] }
 0x2f2   : > { %13828 = vmatprep.mubr.bf16.mxu0 %v14327_v24  ;;  %13848 = vmatprep.subr.bf16.mxu1 %v14328_v10  ;;  %v17803_v30 = vsel %vm15037_vm14, %v7766_v33, %v7767_v31  ;;  %v7781_v21 = vrot.slane %v17593_v1, 5  ;;  %v12425_v6 = vrot.slane %v9260_v16, 9  ;;  %v9326_v52 = vrot.slane %v17779_v38, 5  ;;  %v17819_v1 = vld [vmem:[#allocation3 + $0x20] sm:$0x1] }
 0x2f3   : > { %v12332_v26 = vcombine.low %v17785_v2, %v17803_v30  ;;  %v17811_v19 = vsel %vm15037_vm14, %v7773_v62, %v7774_v44  ;;  %v17815_v45 = vsel %vm15037_vm14, %v12302_v51, %v7778_v37  ;;  %v7780_v7 = vrot.slane %v7778_v37, 4  ;;  %13905 = vmatpush3.bf16.msra.mxu0 %v14345_v56  ;;  %v9262_v56 = vld [vmem:[#allocation3 + $0x24] sm:$0xe]  ;;  %v17855_v24 = vld [vmem:[#allocation3 + $0x28] sm:$0xf] }
 0x2f4   : > { %13769 = vmatmul.mubr.bf16.gmra.mxu1 %v12324_v55  ;;  %v12333_v16 = vcombine.low %v17795_v23, %v17811_v19  ;;  %v17828_v59 = vsel %vm15037_vm14, %v12425_v6, %v9326_v52  ;;  %v9328_v12 = vrot.slane %v9326_v52, 4  ;;  %v9329_v31 = vrot.slane %v17788_v50, 5  ;;  %13906 = vmatprep.subr.bf16.mxu0 %v14347_v4  ;;  %v14337_v14 = vld [vmem:[%s19623_s3 + $0x118] sm:$0xff]   ;;  %v17869_v52 = vld [vmem:[#allocation3 + $0x2c] sm:$0x1] }
 0x2f5   : > { %13772 = vmatprep.mubr.bf16.mxu1 %v12325_v25  ;;  %13849 = vmatpush3.bf16.msra.mxu1 %v14328_v10  ;;  %v17841_v63 = vsel %vm15037_vm14, %v7780_v7, %v7781_v21  ;;  %v12303_v43 = vrot.slane %v7648_v9, 9  ;;  %v7785_v55 = vrot.slane %v17575_v13, 5  ;;  %v7788_v28 = vrot.slane %v17598_v48, 5  ;;  %v14329_v13 = vld [vmem:[#allocation3 + $0x78] sm:$0xff]   ;;  %v14331_v51 = vld [vmem:[#allocation3 + $0x84] sm:$0xff]  }
 0x2f6   : > { %13850 = vmatprep.subr.bf16.mxu1 %v14332_v0  ;;  %v17852_v29 = vsel %vm15037_vm14, %v9328_v12, %v9329_v31  ;;  %v12426_v25 = vrot.slane %v9261_v49, 9  ;;  %v9333_v10 = vrot.slane %v17817_v18, 5  ;;  %v9336_v62 = vrot.slane %v17819_v1, 5  ;;  %v8506_v31 = vld [vmem:[#allocation3 + $0xc] sm:$0xf] }
 0x2f7   : > { %v12457_v48 = vcombine.low %v17828_v59, %v17852_v29  ;;  %v17861_v33 = vsel %vm15037_vm14, %v12303_v43, %v7785_v55  ;;  %v7787_v44 = vrot.slane %v7785_v55, 4  ;;  %13907 = vmatpush3.bf16.msra.mxu0 %v14347_v4  ;;  %v12304_v21 = vrot.slane %v7649_v35, 9 }
 0x2f8   : > { %v17866_v37 = vsel %vm15037_vm14, %v12426_v25, %v9333_v10  ;;  %v9335_v49 = vrot.slane %v9333_v10, 4  ;;  %v7792_v6 = vrot.slane %v17585_v36, 5  ;;  %13988 = vmatprep.subr.bf16.mxu0 %v17834_v22  ;;  %v7795_v9 = vrot.slane %v17607_v40, 5  ;;  %v14342_v36 = vld [vmem:[%s19623_s3 + $0x110] sm:$0xff]   ;;  %v9263_v10 = vld [vmem:[#allocation3 + $0x30] sm:$0xe] }
 0x2f9   : > { %13829 = vmatmul.mubr.bf16.gmra.mxu0 %v14329_v13  ;;  %13851 = vmatpush3.bf16.msra.mxu1 %v14332_v0  ;;  %v17874_v4 = vsel %vm15037_vm14, %v7787_v44, %v7788_v28  ;;  %v12427_v7 = vrot.slane %v9262_v56, 9  ;;  %v9340_v12 = vrot.slane %v17855_v24, 5  ;;  %v9343_v25 = vrot.slane %v17869_v52, 5 }
 0x2fa   : > { %13832 = vmatprep.mubr.bf16.mxu0 %v14331_v51  ;;  %13852 = vmatprep.subr.bf16.mxu1 %v14337_v14  ;;  %v17885_v0 = vsel %vm15037_vm14, %v9335_v49, %v9336_v62  ;;  %v17889_v40 = vsel %vm15037_vm14, %v12304_v21, %v7792_v6  ;;  %v7794_v56 = vrot.slane %v7792_v6, 4  ;;  %v8555_v44 = vshrl.u32 %v8506_v31, 16  ;;  %v17906_v49 = vld [vmem:[#allocation3 + $0x34] sm:$0xf]  ;;  %v17919_v6 = vld [vmem:[#allocation3 + $0x38] sm:$0x1] }
 0x2fb   : > { %v17895_v28 = vsel %vm15037_vm14, %v12427_v7, %v9340_v12  ;;  %v9342_v35 = vrot.slane %v9340_v12, 4  ;;  %v8558_v62 = vshll.u32 %v8506_v31, 16  ;;  %v8564_v51 = vshll.u32 %v17779_v38, 16  ;;  %v14334_v12 = vld [vmem:[#allocation3 + $0x90] sm:$0xff]  }
 0x2fc   : > { %13773 = vmatmul.mubr.bf16.gmra.mxu1 %v12326_v46  ;;  %v17903_v13 = vsel %vm15037_vm14, %v7794_v56, %v7795_v9  ;;  %v8568_v61 = vshrl.u32 %v17779_v38, 16  ;;  %v8574_v46 = vshll.u32 %v17788_v50, 16  ;;  %v8509_v9 = vld [vmem:[#allocation3 + $0x18] sm:$0xf]  ;;  %v12428_v38 = vrot.slane %v9263_v10, 9 }
 0x2fd   : > { %13776 = vmatprep.mubr.bf16.mxu1 %v12327_v15  ;;  %13853 = vmatpush3.bf16.msra.mxu1 %v14337_v14  ;;  %v17915_v42 = vsel %vm15037_vm14, %v9342_v35, %v9343_v25  ;;  %v8557_v15 = vrot.slane %v8555_v44, 4  ;;  %v8560_v14 = vrot.slane %v8558_v62, 5  ;;  %v8566_v7 = vrot.slane %v8564_v51, 5  ;;  %v14336_v35 = vld [vmem:[#allocation3 + $0x9c] sm:$0xff]  }
 0x2fe   : > { %13854 = vmatprep.subr.bf16.mxu1 %v14342_v36  ;;  %v8570_v31 = vrot.slane %v8568_v61, 4  ;;  %v8576_v56 = vrot.slane %v8574_v46, 5  ;;  %v9347_v50 = vrot.slane %v17906_v49, 5  ;;  %v9350_v21 = vrot.slane %v17919_v6, 5  ;;  %v17933_v61 = vld [vmem:[#allocation3 + $0x40] sm:$0xf] }
 0x2ff   : > { %v8561_v25 = vor.u32 %v8560_v14, %v8557_v15  ;;  %v8579_v43 = vshrl.u32 %v8509_v9, 16  ;;  %v8582_v39 = vshll.u32 %v8509_v9, 16  ;;  %v8588_v51 = vshll.u32 %v17817_v18, 16  ;;  %v9264_v10 = vld [vmem:[#allocation3 + $0x3c] sm:$0xe]  ;;  %v14348_v46 = vld [vmem:[%s19623_s3 + $0x100] sm:$0xff]  }
 0x300   : > { %v8571_v55 = vor.u32 %v8570_v31, %v8566_v7  ;;  %v17930_v44 = vsel %vm15037_vm14, %v12428_v38, %v9347_v50  ;;  %v9349_v62 = vrot.slane %v9347_v50, 4  ;;  %v8592_v14 = vshrl.u32 %v17817_v18, 16 }
 0x301   : > { %13833 = vmatmul.mubr.bf16.gmra.mxu0 %v14334_v12  ;;  %13855 = vmatpush3.bf16.msra.mxu1 %v14342_v36  ;;  %v8562_v9 = vrot.slane %v8561_v25, 4  ;;  %v8581_v15 = vrot.slane %v8579_v43, 4  ;;  %v8584_v36 = vrot.slane %v8582_v39, 5  ;;  %v8590_v38 = vrot.slane %v8588_v51, 5 }
 0x302   : > { %13836 = vmatprep.mubr.bf16.mxu0 %v14336_v35  ;;  %13856 = vmatprep.subr.bf16.mxu1 %v14346_v54  ;;  %v8572_v12 = vrot.slane %v8571_v55, 4  ;;  %v17941_v31 = vsel %vm15037_vm14, %v9349_v62, %v9350_v21  ;;  %v8598_v50 = vshll.u32 %v17819_v1, 16  ;;  %v8594_v55 = vrot.slane %v8592_v14, 4  ;;  %v8512_v35 = vld [vmem:[#allocation3 + $0x24] sm:$0xf] }
 0x303   : > { %v8567_v43 = vsel %vm14596_vm8, %v8562_v9, %v8566_v7  ;;  %v12460_v18 = vcombine.low %v17930_v44, %v17941_v31  ;;  %v8585_v39 = vor.u32 %v8584_v36, %v8581_v15  ;;  %v12429_v20 = vrot.slane %v9264_v10, 9  ;;  %v8515_v9 = vld [vmem:[#allocation3 + $0x30] sm:$0xf]  ;;  %v14341_v15 = vld [vmem:[#allocation3 + $0xb4] sm:$0xff]  }
 0x304   : > { %13777 = vmatmul.mubr.bf16.gmra.mxu1 %v12328_v3  ;;  %v8577_v1 = vsel %vm14596_vm8, %v8572_v12, %v8576_v56  ;;  %v8600_v21 = vrot.slane %v8598_v50, 5  ;;  %v9354_v41 = vrot.slane %v17933_v61, 5  ;;  %v8595_v25 = vor.u32 %v8594_v55, %v8590_v38 }
 0x305   : > { %13780 = vmatprep.mubr.bf16.mxu1 %v12329_v58  ;;  %13857 = vmatpush3.bf16.msra.mxu1 %v14346_v54  ;;  %v17959_v3 = vcombine.low %v8567_v43, %v8577_v1  ;;  %v8586_v7 = vrot.slane %v8585_v39, 4  ;;  %v9357_v62 = vrot.slane %v17944_v60, 5  ;;  %v14339_v58 = vld [vmem:[#allocation3 + $0xa8] sm:$0xff]   ;;  %v8603_v51 = vshrl.u32 %v8512_v35, 16 }
 0x306   : > { %13858 = vmatprep.subr.bf16.mxu1 %v14348_v46  ;;  %v17969_v54 = vsel %vm15037_vm14, %v12429_v20, %v9354_v41  ;;  %v9356_v56 = vrot.slane %v9354_v41, 4  ;;  %v8606_v10 = vshll.u32 %v8512_v35, 16  ;;  %v8596_v14 = vrot.slane %v8595_v25, 4  ;;  %v17975_v43 = vld [vmem:[#allocation3 + $0x4c] sm:$0xf] }
 0x307   : > { %v8591_v36 = vsel %vm14596_vm8, %v8586_v7, %v8590_v38  ;;  %v8612_v12 = vshll.u32 %v17855_v24, 16  ;;  %v8616_v50 = vshrl.u32 %v17855_v24, 16  ;;  %v8605_v55 = vrot.slane %v8603_v51, 4  ;;  %v17982_v20 = vld [vmem:[#allocation3 + $0x50] sm:$0x1] }
 0x308   : > { %v17979_v39 = vsel %vm15037_vm14, %v9356_v56, %v9357_v62  ;;  %v8608_v35 = vrot.slane %v8606_v10, 5  ;;  %v8622_v1 = vshll.u32 %v17869_v52, 16  ;;  %v8601_v38 = vsel %vm14596_vm8, %v8596_v14, %v8600_v21  ;;  %v9266_v14 = vld [vmem:[#allocation3 + $0x54] sm:$0xe] }
 0x309   : > { %13837 = vmatmul.mubr.bf16.gmra.mxu0 %v14339_v58  ;;  %13859 = vmatpush3.bf16.msra.mxu1 %v14348_v46  ;;  %v12461_v24 = vcombine.low %v17969_v54, %v17979_v39  ;;  %v8614_v46 = vrot.slane %v8612_v12, 5  ;;  %v8618_v41 = vrot.slane %v8616_v50, 4  ;;  %v17989_v7 = vcombine.low %v8591_v36, %v8601_v38  ;;  %v8518_v12 = vld [vmem:[#allocation3 + $0x3c] sm:$0xf]  ;;  %v14358_v54 = vld [vmem:[%s19623_s3 + $0x1d8] sm:$0xff]  }
 0x30a   : > { %13840 = vmatprep.mubr.bf16.mxu0 %v14341_v15  ;;  %13940 = vmatprep.subr.bf16.mxu1 %v17965_v53  ;;  %v8609_v25 = vor.u32 %v8608_v35, %v8605_v55  ;;  %v8624_v62 = vrot.slane %v8622_v1, 5  ;;  %v12430_v58 = vrot.slane %v9265_v57, 9  ;;  %v9361_v56 = vrot.slane %v17975_v43, 5  ;;  %v18005_v55 = vld [vmem:[#allocation3 + $0x58] sm:$0xf]  ;;  %v14344_v35 = vld [vmem:[#allocation3 + $0xc0] sm:$0xff]  }
 0x30b   : > { %v8619_v52 = vor.u32 %v8618_v41, %v8614_v46  ;;  %v9364_v21 = vrot.slane %v17982_v20, 5  ;;  %v8627_v51 = vshrl.u32 %v8515_v9, 16  ;;  %v8630_v15 = vshll.u32 %v8515_v9, 16  ;;  %v18009_v1 = vld [vmem:[#allocation3 + $0x5c] sm:$0x1] }
 0x30c   : > { %13781 = vmatmul.mubr.bf16.gmra.mxu1 %v12330_v8  ;;  %v8610_v10 = vrot.slane %v8609_v25, 4  ;;  %v8636_v36 = vshll.u32 %v17906_v49, 16  ;;  %v8640_v57 = vshrl.u32 %v17906_v49, 16  ;;  %v18003_v17 = vsel %vm15037_vm14, %v12430_v58, %v9361_v56 }
 0x30d   : > { %13784 = vmatprep.mubr.bf16.mxu1 %v12331_v32  ;;  %v8620_v5 = vrot.slane %v8619_v52, 4  ;;  %v9363_v8 = vrot.slane %v9361_v56, 4  ;;  %v8629_v50 = vrot.slane %v8627_v51, 4  ;;  %v8632_v27 = vrot.slane %v8630_v15, 5 }
 0x30e   : > { %v8615_v47 = vsel %vm14596_vm8, %v8610_v10, %v8614_v46  ;;  %v8638_v32 = vrot.slane %v8636_v36, 5  ;;  %v8642_v9 = vrot.slane %v8640_v57, 4  ;;  %v8646_v41 = vshll.u32 %v17919_v6, 16 }
 0x30f   : > { %v8625_v49 = vsel %vm14596_vm8, %v8620_v5, %v8624_v62  ;;  %v18015_v38 = vsel %vm15037_vm14, %v9363_v8, %v9364_v21  ;;  %v12431_v25 = vrot.slane %v9266_v14, 9  ;;  %v8633_v52 = vor.u32 %v8632_v27, %v8629_v50  ;;  %v18028_v14 = vld [vmem:[#allocation3 + $0x64] sm:$0xf]  ;;  %v9267_v8 = vld [vmem:[#allocation3 + $0x60] sm:$0xe] }
 0x310   : > { %v18018_v58 = vcombine.low %v8615_v47, %v8625_v49  ;;  %v12462_v46 = vcombine.low %v18003_v17, %v18015_v38  ;;  %v8643_v56 = vor.u32 %v8642_v9, %v8638_v32  ;;  %v8648_v62 = vrot.slane %v8646_v41, 5  ;;  %v18045_v50 = vld [vmem:[#allocation3 + $0x68] sm:$0x1]  ;;  %v14354_v49 = vld [vmem:[%s19623_s3 + $0x1f0] sm:$0xff]  }
 0x311   : > { %13841 = vmatmul.mubr.bf16.gmra.mxu0 %v14344_v35  ;;  %v9368_v51 = vrot.slane %v18005_v55, 5  ;;  %v9371_v21 = vrot.slane %v18009_v1, 5  ;;  %v8651_v10 = vshrl.u32 %v8518_v12, 16  ;;  %v8634_v6 = vrot.slane %v8633_v52, 4  ;;  %v8521_v35 = vld [vmem:[#allocation3 + $0x48] sm:$0xf] }
 0x312   : > { %13908 = vmatprep.mubr.bf16.mxu0 %v12457_v48  ;;  %v8644_v15 = vrot.slane %v8643_v56, 4  ;;  %v8654_v36 = vshll.u32 %v8518_v12, 16  ;;  %v8660_v57 = vshll.u32 %v17933_v61, 16  ;;  %v8664_v5 = vshrl.u32 %v17933_v61, 16 }
 0x313   : > { %v18035_v59 = vsel %vm15037_vm14, %v12431_v25, %v9368_v51  ;;  %v9370_v29 = vrot.slane %v9368_v51, 4  ;;  %v8653_v48 = vrot.slane %v8651_v10, 4  ;;  %v8639_v12 = vsel %vm14596_vm8, %v8634_v6, %v8638_v32  ;;  %v9268_v6 = vld [vmem:[#allocation3 + $0x6c] sm:$0xe] }
 0x314   : > { %13785 = vmatmul.mubr.bf16.gmra.mxu1 %v12332_v26  ;;  %v8649_v2 = vsel %vm14596_vm8, %v8644_v15, %v8648_v62  ;;  %v8656_v30 = vrot.slane %v8654_v36, 5  ;;  %v8662_v26 = vrot.slane %v8660_v57, 5  ;;  %v8666_v27 = vrot.slane %v8664_v5, 4  ;;  %v8524_v15 = vld [vmem:[#allocation3 + $0x54] sm:$0xf] }
 0x315   : > { %13788 = vmatprep.mubr.bf16.mxu1 %v12333_v16  ;;  %v18047_v47 = vcombine.low %v8639_v12, %v8649_v2  ;;  %v18051_v61 = vsel %vm15037_vm14, %v9370_v29, %v9371_v21  ;;  %v8670_v23 = vshll.u32 %v17944_v60, 16  ;;  %v12432_v32 = vrot.slane %v9267_v8, 9 }
 0x316   : > { %v12463_v19 = vcombine.low %v18035_v59, %v18051_v61  ;;  %v8657_v16 = vor.u32 %v8656_v30, %v8653_v48  ;;  %v9375_v9 = vrot.slane %v18028_v14, 5  ;;  %v8667_v41 = vor.u32 %v8666_v27, %v8662_v26  ;;  %v14361_v59 = vld [vmem:[%s19623_s3 + $0x1c8] sm:$0xff]  }
 0x317   : > { %v8672_v25 = vrot.slane %v8670_v23, 5  ;;  %v9378_v52 = vrot.slane %v18045_v50, 5  ;;  %v8675_v56 = vshrl.u32 %v8521_v35, 16  ;;  %v19883_v62 = vcombine.low %v17866_v37, %v17885_v0  ;;  %v18073_v0 = vld [vmem:[#allocation3 + $0x70] sm:$0xf] }
 0x318   : > { %v8658_v60 = vrot.slane %v8657_v16, 4  ;;  %v18066_v51 = vsel %vm15037_vm14, %v12432_v32, %v9375_v9  ;;  %v9377_v21 = vrot.slane %v9375_v9, 4  ;;  %v8678_v10 = vshll.u32 %v8521_v35, 16 }
 0x319   : > { %13909 = vmatmul.mubr.bf16.vlgmr.msra.gmra.mxu0 %v19883_v62  ;;  %v19884_v36 = vcombine.low %v17895_v28, %v17915_v42  ;;  %v8668_v57 = vrot.slane %v8667_v41, 4  ;;  %v8677_v29 = vrot.slane %v8675_v56, 4  ;;  %v8684_v48 = vshll.u32 %v17975_v43, 16  ;;  %v18083_v42 = vld [vmem:[#allocation3 + $0x74] sm:$0x1] }
 0x31a   : > { %v8688_v37 = vshrl.u32 %v17975_v43, 16  ;;  %13989 = vmatpush3.bf16.msra.mxu0 %v17834_v22  ;;  %v8663_v5 = vsel %vm14596_vm8, %v8658_v60, %v8662_v26  ;;  %v18080_v8 = vsel %vm15037_vm14, %v9377_v21, %v9378_v52  ;;  %v8680_v12 = vrot.slane %v8678_v10, 5  ;;  %v14355_v43 = vld [vmem:[%s19623_s3 + $0x1e8] sm:$0xff]   ;;  %v14357_v60 = vld [vmem:[%s19623_s3 + $0x1e0] sm:$0xff]  }
 0x31b   : > { %13912 = vmatprep.mubr.bf16.mxu0 %v19884_v36  ;;  %v8694_v28 = vshll.u32 %v17982_v20, 16  ;;  %13990 = vmatprep.subr.bf16.mxu0 %v14354_v49  ;;  %v19885_v22 = vcombine.low %v17815_v45, %v17841_v63  ;;  %v8673_v2 = vsel %vm14596_vm8, %v8668_v57, %v8672_v25  ;;  %v12464_v30 = vcombine.low %v18066_v51, %v18080_v8  ;;  %v9269_v25 = vld [vmem:[#allocation3 + $0x78] sm:$0xe] }
 0x31c   : > { %v8686_v26 = vrot.slane %v8684_v48, 5  ;;  %v8690_v35 = vrot.slane %v8688_v37, 4  ;;  %v19886_v20 = vcombine.low %v17861_v33, %v17874_v4  ;;  %v18098_v27 = vcombine.low %v8663_v5, %v8673_v2  ;;  %v8527_v4 = vld [vmem:[#allocation3 + $0x60] sm:$0xf] }
 0x31d   : > { %13789 = vmatmul.mubr.bf16.gmra.mxu1 %v19885_v22  ;;  %v8681_v23 = vor.u32 %v8680_v12, %v8677_v29  ;;  %v8696_v16 = vrot.slane %v8694_v28, 5  ;;  %v12433_v32 = vrot.slane %v9268_v6, 9  ;;  %v9382_v45 = vrot.slane %v18073_v0, 5  ;;  %v18118_v48 = vld [vmem:[#allocation3 + $0x80] sm:$0x1] }
 0x31e   : > { %13792 = vmatprep.mubr.bf16.mxu1 %v19886_v20  ;;  %v8691_v9 = vor.u32 %v8690_v35, %v8686_v26  ;;  %v9385_v63 = vrot.slane %v18083_v42, 5  ;;  %v8699_v41 = vshrl.u32 %v8524_v15, 16  ;;  %13991 = vmatpush3.bf16.msra.mxu0 %v14354_v49  ;;  %v8702_v56 = vshll.u32 %v8524_v15, 16  ;;  %v18111_v49 = vld [vmem:[#allocation3 + $0x7c] sm:$0xf] }
 0x31f   : > { %v8682_v52 = vrot.slane %v8681_v23, 4  ;;  %v8708_v62 = vshll.u32 %v18005_v55, 16  ;;  %v8712_v33 = vshrl.u32 %v18005_v55, 16  ;;  %13992 = vmatprep.subr.bf16.mxu0 %v14355_v43  ;;  %v18109_v10 = vsel %vm15037_vm14, %v12433_v32, %v9382_v45  ;;  %v8530_v32 = vld [vmem:[#allocation3 + $0x6c] sm:$0xf] }
 0x320   : > { %v8692_v21 = vrot.slane %v8691_v9, 4  ;;  %v9384_v6 = vrot.slane %v9382_v45, 4  ;;  %v8701_v36 = vrot.slane %v8699_v41, 4  ;;  %v8704_v15 = vrot.slane %v8702_v56, 5  ;;  %v18155_v56 = vld [vmem:[#allocation3 + $0x8c] sm:$0x1] }
 0x321   : > { %13913 = vmatmul.mubr.bf16.gmra.mxu0 %v12460_v18  ;;  %v8687_v55 = vsel %vm14596_vm8, %v8682_v52, %v8686_v26  ;;  %v8710_v57 = vrot.slane %v8708_v62, 5  ;;  %v8714_v29 = vrot.slane %v8712_v33, 4  ;;  %v8718_v44 = vshll.u32 %v18009_v1, 16  ;;  %v9270_v26 = vld [vmem:[#allocation3 + $0x84] sm:$0xe]  ;;  %v14360_v62 = vld [vmem:[%s19623_s3 + $0x1d0] sm:$0xff]  }
 0x322   : > { %13916 = vmatprep.mubr.bf16.mxu0 %v12461_v24  ;;  %v8697_v37 = vsel %vm14596_vm8, %v8692_v21, %v8696_v16  ;;  %v18127_v5 = vsel %vm15037_vm14, %v9384_v6, %v9385_v63  ;;  %v12434_v31 = vrot.slane %v9269_v25, 9  ;;  %13993 = vmatpush3.bf16.msra.mxu0 %v14355_v43  ;;  %v8705_v28 = vor.u32 %v8704_v15, %v8701_v36  ;;  %v18149_v63 = vld [vmem:[#allocation3 + $0x88] sm:$0xf]  ;;  %v14350_v15 = vld [vmem:[%s19623_s3 + $0x1b0] sm:$0xff]  }
 0x323   : > { %v18130_v18 = vcombine.low %v8687_v55, %v8697_v37  ;;  %v12465_v12 = vcombine.low %v18109_v10, %v18127_v5  ;;  %v8715_v22 = vor.u32 %v8714_v29, %v8710_v57  ;;  %13994 = vmatprep.subr.bf16.mxu0 %v14357_v60  ;;  %v19887_v39 = vcombine.low %v17889_v40, %v17903_v13 }
 0x324   : > { %v8720_v24 = vrot.slane %v8718_v44, 5  ;;  %v9389_v1 = vrot.slane %v18111_v49, 5  ;;  %v9392_v43 = vrot.slane %v18118_v48, 5  ;;  %v8723_v2 = vshrl.u32 %v8527_v4, 16 }
 0x325   : > { %13793 = vmatmul.mubr.bf16.gmra.mxu1 %v19887_v39  ;;  %v8706_v35 = vrot.slane %v8705_v28, 4  ;;  %v8716_v20 = vrot.slane %v8715_v22, 4  ;;  %v8726_v23 = vshll.u32 %v8527_v4, 16  ;;  %v8732_v16 = vshll.u32 %v18028_v14, 16 }
 0x326   : > { %13860 = vmatprep.mubr.bf16.mxu1 %v17959_v3  ;;  %v18146_v9 = vsel %vm15037_vm14, %v12434_v31, %v9389_v1  ;;  %v9391_v40 = vrot.slane %v9389_v1, 4  ;;  %v8725_v13 = vrot.slane %v8723_v2, 4  ;;  %v8736_v45 = vshrl.u32 %v18028_v14, 16  ;;  %13995 = vmatpush3.bf16.msra.mxu0 %v14357_v60  ;;  %v9271_v31 = vld [vmem:[#allocation3 + $0x90] sm:$0xe] }
 0x327   : > { %v8711_v3 = vsel %vm14596_vm8, %v8706_v35, %v8710_v57  ;;  %v8721_v41 = vsel %vm14596_vm8, %v8716_v20, %v8720_v24  ;;  %v8728_v25 = vrot.slane %v8726_v23, 5  ;;  %v8734_v52 = vrot.slane %v8732_v16, 5  ;;  %13996 = vmatprep.subr.bf16.mxu0 %v14358_v54  ;;  %v8533_v2 = vld [vmem:[#allocation3 + $0x78] sm:$0xf] }
 0x328   : > { %v18160_v33 = vcombine.low %v8711_v3, %v8721_v41  ;;  %v18164_v14 = vsel %vm15037_vm14, %v9391_v40, %v9392_v43  ;;  %v8738_v4 = vrot.slane %v8736_v45, 4  ;;  %v8742_v60 = vshll.u32 %v18045_v50, 16  ;;  %v18201_v43 = vld [vmem:[#allocation3 + $0x98] sm:$0x1]  ;;  %v14363_v3 = vld [vmem:[%s19623_s3 + $0x1c0] sm:$0xff]  }
 0x329   : > { %13917 = vmatmul.mubr.bf16.gmra.mxu0 %v12462_v46  ;;  %v12466_v21 = vcombine.low %v18146_v9, %v18164_v14  ;;  %v8729_v6 = vor.u32 %v8728_v25, %v8725_v13  ;;  %v12435_v36 = vrot.slane %v9270_v26, 9  ;;  %v9396_v55 = vrot.slane %v18149_v63, 5 }
 0x32a   : > { %13920 = vmatprep.mubr.bf16.mxu0 %v12463_v19  ;;  %v8739_v50 = vor.u32 %v8738_v4, %v8734_v52  ;;  %v8744_v57 = vrot.slane %v8742_v60, 5  ;;  %v9399_v17 = vrot.slane %v18155_v56, 5  ;;  %v8747_v38 = vshrl.u32 %v8530_v32, 16  ;;  %13997 = vmatpush3.bf16.msra.mxu0 %v14358_v54  ;;  %v18190_v54 = vld [vmem:[#allocation3 + $0x94] sm:$0xf] }
 0x32b   : > { %v8730_v46 = vrot.slane %v8729_v6, 4  ;;  %v18182_v29 = vsel %vm15037_vm14, %v12435_v36, %v9396_v55  ;;  %v9398_v37 = vrot.slane %v9396_v55, 4  ;;  %v8750_v44 = vshll.u32 %v8530_v32, 16  ;;  %13998 = vmatprep.subr.bf16.mxu0 %v14360_v62  ;;  %v9272_v4 = vld [vmem:[#allocation3 + $0x9c] sm:$0xe]  ;;  %v14353_v6 = vld [vmem:[%s19623_s3 + $0x1a0] sm:$0xff]  }
 0x32c   : > { %v8740_v61 = vrot.slane %v8739_v50, 4  ;;  %v8749_v19 = vrot.slane %v8747_v38, 4  ;;  %v8756_v28 = vshll.u32 %v18073_v0, 16  ;;  %v8760_v22 = vshrl.u32 %v18073_v0, 16  ;;  %v8536_v60 = vld [vmem:[#allocation3 + $0x84] sm:$0xf] }
 0x32d   : > { %13861 = vmatmul.mubr.bf16.vlgmr.msra.gmra.mxu1 %v17989_v7  ;;  %v8735_v39 = vsel %vm14596_vm8, %v8730_v46, %v8734_v52  ;;  %v18198_v24 = vsel %vm15037_vm14, %v9398_v37, %v9399_v17  ;;  %v8752_v7 = vrot.slane %v8750_v44, 5  ;;  %v8766_v1 = vshll.u32 %v18083_v42, 16  ;;  %v18232_v55 = vld [vmem:[#allocation3 + $0xa0] sm:$0xf]  ;;  %v18238_v50 = vld [vmem:[#allocation3 + $0xa4] sm:$0x1] }
 0x32e   : > { %13864 = vmatprep.mubr.bf16.mxu1 %v18018_v58  ;;  %13941 = vmatpush3.bf16.msra.mxu1 %v17965_v53  ;;  %v14351_v58 = vld [vmem:[%s19623_s3 + $0x1a8] sm:$0xff]   ;;  %v8745_v53 = vsel %vm14596_vm8, %v8740_v61, %v8744_v57  ;;  %v12467_v0 = vcombine.low %v18182_v29, %v18198_v24  ;;  %v8758_v26 = vrot.slane %v8756_v28, 5  ;;  %v8762_v35 = vrot.slane %v8760_v22, 4  ;;  %v18251_v37 = vld [vmem:[%s19624_s4 + $0x38] sm:$0xff]  }
 0x32f   : > { %13942 = vmatprep.subr.bf16.mxu1 %v14350_v15  ;;  %13999 = vmatpush3.bf16.msra.mxu0 %v14360_v62  ;;  %v18210_v20 = vcombine.low %v8735_v39, %v8745_v53  ;;  %v8753_v42 = vor.u32 %v8752_v7, %v8749_v19  ;;  %v8768_v23 = vrot.slane %v8766_v1, 5  ;;  %v12436_v16 = vrot.slane %v9271_v31, 9  ;;  %v14356_v28 = vld [vmem:[%s19623_s3 + $0x198] sm:$0xff]  }
 0x330   : > { %14000 = vmatprep.subr.bf16.mxu0 %v14361_v59  ;;  %v8763_v32 = vor.u32 %v8762_v35, %v8758_v26  ;;  %v9403_v40 = vrot.slane %v18190_v54, 5  ;;  %v9406_v13 = vrot.slane %v18201_v43, 5  ;;  %v8771_v45 = vshrl.u32 %v8533_v2, 16 }
 0x331   : > { %13921 = vmatmul.mubr.bf16.gmra.mxu0 %v12464_v30  ;;  %v8754_v41 = vrot.slane %v8753_v42, 4  ;;  %v8774_v25 = vshll.u32 %v8533_v2, 16  ;;  %v8780_v52 = vshll.u32 %v18111_v49, 16  ;;  %v8784_v62 = vshrl.u32 %v18111_v49, 16  ;;  %v18234_v49 = vpop.f32.mrf.mxu0 }
 0x332   : > { %13943 = vmatpush3.bf16.msra.mxu1 %v14350_v15  ;;  %13924 = vmatprep.mubr.bf16.mxu0 %v12465_v12  ;;  %v8764_v36 = vrot.slane %v8763_v32, 4  ;;  %v18230_v51 = vsel %vm15037_vm14, %v12436_v16, %v9403_v40  ;;  %v9405_v8 = vrot.slane %v9403_v40, 4  ;;  %v8773_v30 = vrot.slane %v8771_v45, 4  ;;  %v18280_v45 = vld [vmem:[#allocation3 + $0xac] sm:$0xf] }
 0x333   : > { %13944 = vmatprep.subr.bf16.mxu1 %v14351_v58  ;;  %v8759_v10 = vsel %vm14596_vm8, %v8754_v41, %v8758_v26  ;;  %v8776_v5 = vrot.slane %v8774_v25, 5  ;;  %v8782_v12 = vrot.slane %v8780_v52, 5  ;;  %v8786_v15 = vrot.slane %v8784_v62, 4  ;;  %14001 = vmatpush3.bf16.msra.mxu0 %v14361_v59 }
 0x334   : > { %v8769_v57 = vsel %vm14596_vm8, %v8764_v36, %v8768_v23  ;;  %v18245_v17 = vsel %vm15037_vm14, %v9405_v8, %v9406_v13  ;;  %v8790_v38 = vshll.u32 %v18118_v48, 16  ;;  %v12437_v46 = vrot.slane %v9272_v4, 9  ;;  %14002 = vmatprep.subr.bf16.mxu0 %v14363_v3  ;;  %v9273_v23 = vld [vmem:[#allocation3 + $0xa8] sm:$0xe] }
 0x335   : > { %13865 = vmatmul.mubr.bf16.gmra.mxu1 %v18047_v47  ;;  %v18254_v47 = vcombine.low %v8759_v10, %v8769_v57  ;;  %v12468_v44 = vcombine.low %v18230_v51, %v18245_v17  ;;  %v8777_v31 = vor.u32 %v8776_v5, %v8773_v30  ;;  %v9410_v59 = vrot.slane %v18232_v55, 5  ;;  %v9274_v10 = vld [vmem:[#allocation3 + $0xb4] sm:$0xe]  ;;  %v8542_v5 = vld [vmem:[#allocation3 + $0x9c] sm:$0xf] }
 0x336   : > { %13868 = vmatprep.mubr.bf16.mxu1 %v18098_v27  ;;  %13945 = vmatpush3.bf16.msra.mxu1 %v14351_v58  ;;  %v8787_v48 = vor.u32 %v8786_v15, %v8782_v12  ;;  %v8792_v61 = vrot.slane %v8790_v38, 5  ;;  %v9413_v19 = vrot.slane %v18238_v50, 5  ;;  %v8795_v22 = vshrl.u32 %v8536_v60, 16  ;;  %v18263_v27 = vpop.f32.mrf.mxu0  ;;  %v8539_v58 = vld [vmem:[#allocation3 + $0x90] sm:$0xf] }
 0x337   : > { %13946 = vmatprep.subr.bf16.mxu1 %v14353_v6  ;;  %v8778_v39 = vrot.slane %v8777_v31, 4  ;;  %v18267_v7 = vsel %vm15037_vm14, %v12437_v46, %v9410_v59  ;;  %v9412_v1 = vrot.slane %v9410_v59, 4  ;;  %v8798_v2 = vshll.u32 %v8536_v60, 16  ;;  %14003 = vmatpush3.bf16.msra.mxu0 %v14363_v3  ;;  %v18307_v38 = vld [vmem:[#allocation3 + $0xb8] sm:$0xf] }
 0x338   : > { %v8788_v53 = vrot.slane %v8787_v48, 4  ;;  %v8797_v26 = vrot.slane %v8795_v22, 4  ;;  %v8804_v35 = vshll.u32 %v18149_v63, 16  ;;  %v8808_v42 = vshrl.u32 %v18149_v63, 16  ;;  %14084 = vmatprep.subr.bf16.mxu0 %v18251_v37  ;;  %v18282_v63 = vld [vmem:[#allocation3 + $0xb0] sm:$0x1]  ;;  %v18293_v41 = vpop.f32.mrf.mxu0 }
 0x339   : > { %13925 = vmatmul.mubr.bf16.gmra.mxu0 %v12466_v21  ;;  %v8783_v16 = vsel %vm14596_vm8, %v8778_v39, %v8782_v12  ;;  %v9414_v32 = vsel %vm15037_vm14, %v9412_v1, %v9413_v19  ;;  %v8800_v40 = vrot.slane %v8798_v2, 5  ;;  %v8814_v13 = vshll.u32 %v18155_v56, 16  ;;  %v14359_v56 = vld [vmem:[%s19623_s3 + $0x190] sm:$0xff]  }
 0x33a   : > { %13947 = vmatpush3.bf16.msra.mxu1 %v14353_v6  ;;  %13928 = vmatprep.mubr.bf16.mxu0 %v12467_v0  ;;  %v8793_v9 = vsel %vm14596_vm8, %v8788_v53, %v8792_v61  ;;  %v12469_v14 = vcombine.low %v18267_v7, %v9414_v32  ;;  %v8806_v21 = vrot.slane %v8804_v35, 5  ;;  %v8810_v3 = vrot.slane %v8808_v42, 4  ;;  %v18313_v48 = vld [vmem:[#allocation3 + $0xbc] sm:$0x1]  ;;  %v14362_v61 = vld [vmem:[%s19623_s3 + $0x188] sm:$0xff]   ;;  %v14364_v32 = vld [vmem:[%s19623_s3 + $0x180] sm:$0xff]  }
 0x33b   : > { %13948 = vmatprep.subr.bf16.mxu1 %v14356_v28  ;;  %v18295_v25 = vcombine.low %v8783_v16, %v8793_v9  ;;  %v8801_v52 = vor.u32 %v8800_v40, %v8797_v26  ;;  %v8816_v62 = vrot.slane %v8814_v13, 5  ;;  %v12438_v29 = vrot.slane %v9273_v23, 9 }
 0x33c   : > { %v8811_v24 = vor.u32 %v8810_v3, %v8806_v21  ;;  %v9417_v0 = vrot.slane %v18280_v45, 5  ;;  %v9420_v4 = vrot.slane %v18282_v63, 5  ;;  %v8819_v60 = vshrl.u32 %v8539_v58, 16 }
 0x33d   : > { %13869 = vmatmul.mubr.bf16.gmra.mxu1 %v18130_v18  ;;  %v8802_v6 = vrot.slane %v8801_v52, 4  ;;  %v8822_v36 = vshll.u32 %v8539_v58, 16  ;;  %v8828_v8 = vshll.u32 %v18190_v54, 16  ;;  %v8832_v30 = vshrl.u32 %v18190_v54, 16 }
 0x33e   : > { %13872 = vmatprep.mubr.bf16.mxu1 %v18160_v33  ;;  %13949 = vmatpush3.bf16.msra.mxu1 %v14356_v28  ;;  %v8812_v12 = vrot.slane %v8811_v24, 4  ;;  %v18305_v18 = vsel %vm15037_vm14, %v12438_v29, %v9417_v0  ;;  %v9419_v15 = vrot.slane %v9417_v0, 4  ;;  %v8821_v57 = vrot.slane %v8819_v60, 4  ;;  %v18309_v33 = vpop.f32.mrf.mxu0  ;;  %v8545_v29 = vld [vmem:[#allocation3 + $0xa8] sm:$0xf] }
 0x33f   : > { %13950 = vmatprep.subr.bf16.mxu1 %v14359_v56  ;;  %v8807_v46 = vsel %vm14596_vm8, %v8802_v6, %v8806_v21  ;;  %v8824_v31 = vrot.slane %v8822_v36, 5  ;;  %v8830_v59 = vrot.slane %v8828_v8, 5  ;;  %v8834_v54 = vrot.slane %v8832_v30, 4  ;;  %v18341_v21 = vld [vmem:[#allocation3 + $0xc4] sm:$0xf] }
 0x340   : > { %v8817_v19 = vsel %vm14596_vm8, %v8812_v12, %v8816_v62  ;;  %v9421_v28 = vsel %vm15037_vm14, %v9419_v15, %v9420_v4  ;;  %v8838_v22 = vshll.u32 %v18201_v43, 16  ;;  %v12439_v39 = vrot.slane %v9274_v10, 9  ;;  %v9275_v43 = vld [vmem:[#allocation3 + $0xc0] sm:$0xe]  ;;  %v18331_v23 = vpop.f32.mrf.mxu0 }
 0x341   : > { %13929 = vmatmul.mubr.bf16.gmra.mxu0 %v12468_v44  ;;  %v18326_v7 = vcombine.low %v8807_v46, %v8817_v19  ;;  %v12470_v1 = vcombine.low %v18305_v18, %v9421_v28  ;;  %v8825_v2 = vor.u32 %v8824_v31, %v8821_v57  ;;  %v8835_v58 = vor.u32 %v8834_v54, %v8830_v59  ;;  %v18361_v30 = vld [vmem:[%s19623_s3 + $0x238] sm:$0xff]   ;;  %v10145_v19 = vld [vmem:[#allocation3 + $0x18] sm:$0xf] }
 0x342   : > { %13932 = vmatprep.mubr.bf16.mxu0 %v12469_v14  ;;  %v8840_v53 = vrot.slane %v8838_v22, 5  ;;  %v9424_v26 = vrot.slane %v18307_v38, 5  ;;  %v9427_v35 = vrot.slane %v18313_v48, 5  ;;  %v8843_v42 = vshrl.u32 %v8542_v5, 16  ;;  %13951 = vmatpush3.bf16.msra.mxu1 %v14359_v56 }
 0x343   : > { %v8826_v16 = vrot.slane %v8825_v2, 4  ;;  %v8836_v51 = vrot.slane %v8835_v58, 4  ;;  %v8846_v17 = vshll.u32 %v8542_v5, 16  ;;  %v8852_v44 = vshll.u32 %v18232_v55, 16  ;;  %13952 = vmatprep.subr.bf16.mxu1 %v14362_v61  ;;  %v10146_v58 = vld [vmem:[#allocation3 + $0x1c] sm:$0xf] }
 0x344   : > { %v9425_v40 = vsel %vm15037_vm14, %v12439_v39, %v9424_v26  ;;  %v9426_v13 = vrot.slane %v9424_v26, 4  ;;  %v8845_v9 = vrot.slane %v8843_v42, 4  ;;  %v8856_v14 = vshrl.u32 %v18232_v55, 16  ;;  %v18379_v42 = vld [vmem:[#allocation3 + $0x20] sm:$0x1] }
 0x345   : > { %13873 = vmatmul.mubr.bf16.gmra.mxu1 %v18210_v20  ;;  %v8831_v3 = vsel %vm14596_vm8, %v8826_v16, %v8830_v59  ;;  %v8841_v56 = vsel %vm14596_vm8, %v8836_v51, %v8840_v53  ;;  %v8848_v52 = vrot.slane %v8846_v17, 5  ;;  %v8854_v62 = vrot.slane %v8852_v44, 5  ;;  %v18348_v20 = vld [vmem:[#allocation3 + $0xc8] sm:$0x1] }
 0x346   : > { %13876 = vmatprep.mubr.bf16.mxu1 %v18254_v47  ;;  %v18350_v24 = vcombine.low %v8831_v3, %v8841_v56  ;;  %v9428_v55 = vsel %vm15037_vm14, %v9426_v13, %v9427_v35  ;;  %v8858_v0 = vrot.slane %v8856_v14, 4  ;;  %v8862_v4 = vshll.u32 %v18238_v50, 16  ;;  %13953 = vmatpush3.bf16.msra.mxu1 %v14362_v61  ;;  %v18355_v47 = vpop.f32.mrf.mxu0 }
 0x347   : > { %v12471_v60 = vcombine.low %v9425_v40, %v9428_v55  ;;  %v8849_v6 = vor.u32 %v8848_v52, %v8845_v9  ;;  %v12440_v36 = vrot.slane %v9275_v43, 9  ;;  %v9431_v8 = vrot.slane %v18341_v21, 5  ;;  %13954 = vmatprep.subr.bf16.mxu1 %v14364_v32  ;;  %v8548_v43 = vld [vmem:[#allocation3 + $0xb4] sm:$0xf] }
 0x348   : > { %v8859_v10 = vor.u32 %v8858_v0, %v8854_v62  ;;  %v8864_v5 = vrot.slane %v8862_v4, 5  ;;  %v9434_v12 = vrot.slane %v18348_v20, 5  ;;  %v8867_v18 = vshrl.u32 %v8545_v29, 16  ;;  %v18368_v28 = vpop.f32.mrf.mxu0 }
 0x349   : > { %13933 = vmatmul.mubr.bf16.gmra.mxu0 %v12470_v1  ;;  %v8850_v50 = vrot.slane %v8849_v6, 4  ;;  %v9432_v15 = vsel %vm15037_vm14, %v12440_v36, %v9431_v8  ;;  %v9433_v57 = vrot.slane %v9431_v8, 4  ;;  %v8870_v46 = vshll.u32 %v8545_v29, 16  ;;  %v10148_v36 = vld [vmem:[#allocation3 + $0x24] sm:$0xf] }
 0x34a   : > { %13936 = vmatprep.mubr.bf16.mxu0 %v12471_v60  ;;  %v8860_v31 = vrot.slane %v8859_v10, 4  ;;  %v8869_v59 = vrot.slane %v8867_v18, 4  ;;  %v8876_v54 = vshll.u32 %v18280_v45, 16  ;;  %v8880_v61 = vshrl.u32 %v18280_v45, 16  ;;  %13955 = vmatpush3.bf16.msra.mxu1 %v14364_v32  ;;  %v18384_v9 = vpop.f32.mrf.mxu0 }
 0x34b   : > { %v8855_v22 = vsel %vm14596_vm8, %v8850_v50, %v8854_v62  ;;  %v9435_v39 = vsel %vm15037_vm14, %v9433_v57, %v9434_v12  ;;  %v8872_v1 = vrot.slane %v8870_v46, 5  ;;  %v8886_v2 = vshll.u32 %v18282_v63, 16  ;;  %14036 = vmatprep.subr.bf16.mxu1 %v18361_v30  ;;  %19888 = vst [vmem:[#allocation15_spill] sm:$0xff] %v18384_v9  ;;  %v10172_v9 = vld [vmem:[#allocation3 + $0x84] sm:$0xf] }
 0x34c   : > { %v8865_v45 = vsel %vm14596_vm8, %v8860_v31, %v8864_v5  ;;  %v12472_v53 = vcombine.low %v9432_v15, %v9435_v39  ;;  %v8878_v26 = vrot.slane %v8876_v54, 5  ;;  %v8882_v35 = vrot.slane %v8880_v61, 4 }
 0x34d   : > { %13877 = vmatmul.mubr.bf16.gmra.mxu1 %v18295_v25  ;;  %v12413_v16 = vcombine.low %v8855_v22, %v8865_v45  ;;  %v8873_v51 = vor.u32 %v8872_v1, %v8869_v59  ;;  %v8888_v17 = vrot.slane %v8886_v2, 5  ;;  %v10194_v63 = vshrl.u32 %v10145_v19, 16  ;;  %v18382_v25 = vpop.f32.mrf.mxu1  ;;  %v18394_v50 = vpop.f32.mrf.mxu0  ;;  %v18398_v59 = vld [vmem:[#allocation3 + $0x28] sm:$0xf]  ;;  %v18401_v22 = vld [vmem:[#allocation3 + $0x2c] sm:$0x1] }
 0x34e   : > { %13880 = vmatprep.mubr.bf16.mxu1 %v18326_v7  ;;  %v8883_v44 = vor.u32 %v8882_v35, %v8878_v26  ;;  %v10197_v32 = vshll.u32 %v10145_v19, 16  ;;  %v10203_v40 = vshll.u32 %v10146_v58, 16  ;;  %v10207_v13 = vshrl.u32 %v10146_v58, 16 }
 0x34f   : > { %v8874_v14 = vrot.slane %v8873_v51, 4  ;;  %v10196_v3 = vrot.slane %v10194_v63, 4  ;;  %v10213_v56 = vshll.u32 %v18379_v42, 16  ;;  %v8891_v52 = vshrl.u32 %v8548_v43, 16  ;;  %v18392_v18 = vpop.f32.mrf.mxu1 }
 0x350   : > { %v8884_v62 = vrot.slane %v8883_v44, 4  ;;  %v10199_v29 = vrot.slane %v10197_v32, 5  ;;  %v10205_v7 = vrot.slane %v10203_v40, 5  ;;  %v10209_v55 = vrot.slane %v10207_v13, 4 }
 0x351   : > { %13937 = vmatmul.mubr.bf16.gmra.mxu0 %v12472_v53  ;;  %v8879_v0 = vsel %vm14596_vm8, %v8874_v14, %v8878_v26  ;;  %v10215_v4 = vrot.slane %v10213_v56, 5  ;;  %v8893_v60 = vrot.slane %v8891_v52, 4  ;;  %v8894_v6 = vshll.u32 %v8548_v43, 16  ;;  %v8551_v53 = vld [vmem:[#allocation3 + $0xc0] sm:$0xf]  ;;  %v18408_v35 = vpop.f32.mrf.mxu1  ;;  %v18410_v43 = vpop.f32.mrf.mxu0 }
 0x352   : > { %v8889_v8 = vsel %vm14596_vm8, %v8884_v62, %v8888_v17  ;;  %v10200_v10 = vor.u32 %v10199_v29, %v10196_v3  ;;  %v10210_v5 = vor.u32 %v10209_v55, %v10205_v7  ;;  %v8900_v12 = vshll.u32 %v18307_v38, 16 }
 0x353   : > { %v12414_v15 = vcombine.low %v8879_v0, %v8889_v8  ;;  %v8896_v57 = vrot.slane %v8894_v6, 5  ;;  %v8904_v46 = vshrl.u32 %v18307_v38, 16  ;;  %v8910_v31 = vshll.u32 %v18313_v48, 16  ;;  %v10151_v0 = vld [vmem:[#allocation3 + $0x30] sm:$0xf] }
 0x354   : > { %v10201_v54 = vrot.slane %v10200_v10, 4  ;;  %v10211_v61 = vrot.slane %v10210_v5, 4  ;;  %v8902_v19 = vrot.slane %v8900_v12, 5  ;;  %v10218_v39 = vshrl.u32 %v10148_v36, 16  ;;  %v18424_v5 = vld [vmem:[#allocation3 + $0x34] sm:$0xf] }
 0x355   : > { %13881 = vmatmul.mubr.bf16.gmra.mxu1 %v18350_v24  ;;  %v8897_v1 = vor.u32 %v8896_v57, %v8893_v60  ;;  %v8906_v2 = vrot.slane %v8904_v46, 4  ;;  %v8912_v58 = vrot.slane %v8910_v31, 5  ;;  %v10221_v45 = vshll.u32 %v10148_v36, 16  ;;  %v18419_v60 = vpop.f32.mrf.mxu0 }
 0x356   : > { %13884 = vmatprep.mubr.bf16.mxu1 %v12413_v16  ;;  %v10206_v38 = vsel %vm14596_vm8, %v10201_v54, %v10205_v7  ;;  %v10216_v48 = vsel %vm14596_vm8, %v10211_v61, %v10215_v4  ;;  %v10220_v26 = vrot.slane %v10218_v39, 4  ;;  %v10227_v24 = vshll.u32 %v18398_v59, 16  ;;  %v18417_v4 = vpop.f32.mrf.mxu1  ;;  %v18429_v39 = vld [vmem:[#allocation3 + $0x38] sm:$0x1] }
 0x357   : > { %v12537_v51 = vcombine.low %v10206_v38, %v10216_v48  ;;  %v8898_v16 = vrot.slane %v8897_v1, 4  ;;  %v8907_v17 = vor.u32 %v8906_v2, %v8902_v19  ;;  %v10223_v63 = vrot.slane %v10221_v45, 5 }
 0x358   : > { %v10229_v44 = vrot.slane %v10227_v24, 5  ;;  %v10231_v32 = vshrl.u32 %v18398_v59, 16  ;;  %v10237_v40 = vshll.u32 %v18401_v22, 16  ;;  %v8915_v13 = vshrl.u32 %v8551_v53, 16  ;;  %v10154_v24 = vld [vmem:[#allocation3 + $0x3c] sm:$0xf] }
 0x359   : > { %14004 = vmatprep.mubr.bf16.mxu0 %v12537_v51  ;;  %v8903_v14 = vsel %vm14596_vm8, %v8898_v16, %v8902_v19  ;;  %v8908_v3 = vrot.slane %v8907_v17, 4  ;;  %v10224_v56 = vor.u32 %v10223_v63, %v10220_v26  ;;  %v8918_v52 = vshll.u32 %v8551_v53, 16  ;;  %v18434_v53 = vpop.f32.mrf.mxu0 }
 0x35a   : > { %v10233_v62 = vrot.slane %v10231_v32, 4  ;;  %v10239_v29 = vrot.slane %v10237_v40, 5  ;;  %v8917_v7 = vrot.slane %v8915_v13, 4  ;;  %v8924_v55 = vshll.u32 %v18341_v21, 16 }
 0x35b   : > { %v8913_v6 = vsel %vm14596_vm8, %v8908_v3, %v8912_v58  ;;  %v10225_v36 = vrot.slane %v10224_v56, 4  ;;  %v8920_v8 = vrot.slane %v8918_v52, 5  ;;  %v8928_v10 = vshrl.u32 %v18341_v21, 16  ;;  %v14388_v3 = vld [vmem:[%s19624_s4 + $0x30] sm:$0xff]  }
 0x35c   : > { %v12415_v12 = vcombine.low %v8903_v14, %v8913_v6  ;;  %v10234_v57 = vor.u32 %v10233_v62, %v10229_v44  ;;  %v8926_v46 = vrot.slane %v8924_v55, 5  ;;  %v8934_v31 = vshll.u32 %v18348_v20, 16  ;;  %v18447_v62 = vld [vmem:[#allocation3 + $0x44] sm:$0x1] }
 0x35d   : > { %13885 = vmatmul.mubr.bf16.gmra.mxu1 %v12414_v15  ;;  %v10230_v54 = vsel %vm14596_vm8, %v10225_v36, %v10229_v44  ;;  %v8921_v61 = vor.u32 %v8920_v8, %v8917_v7  ;;  %v8930_v19 = vrot.slane %v8928_v10, 4  ;;  %v10242_v1 = vshrl.u32 %v10151_v0, 16  ;;  %v18432_v15 = vpop.f32.mrf.mxu1  ;;  %v18440_v44 = vld [vmem:[#allocation3 + $0x40] sm:$0xf] }
 0x35e   : > { %13888 = vmatprep.mubr.bf16.mxu1 %v12415_v12  ;;  %v10235_v2 = vrot.slane %v10234_v57, 4  ;;  %v8936_v58 = vrot.slane %v8934_v31, 5  ;;  %v10245_v21 = vshll.u32 %v10151_v0, 16  ;;  %v10251_v45 = vshll.u32 %v18424_v5, 16  ;;  %v10157_v12 = vld [vmem:[#allocation3 + $0x48] sm:$0xf] }
 0x35f   : > { %v8922_v38 = vrot.slane %v8921_v61, 4  ;;  %v8931_v20 = vor.u32 %v8930_v19, %v8926_v46  ;;  %v10244_v48 = vrot.slane %v10242_v1, 4  ;;  %v10255_v26 = vshrl.u32 %v18424_v5, 16  ;;  %v18449_v55 = vpop.f32.mrf.mxu1  ;;  %v18457_v61 = vld [vmem:[#allocation3 + $0x4c] sm:$0xf]  ;;  %v14365_v1 = vld [vmem:[#allocation3 + $0x18] sm:$0xff]  }
 0x360   : > { %v10240_v51 = vsel %vm14596_vm8, %v10235_v2, %v10239_v29  ;;  %v10247_v16 = vrot.slane %v10245_v21, 5  ;;  %v10253_v17 = vrot.slane %v10251_v45, 5  ;;  %v10261_v63 = vshll.u32 %v18429_v39, 16  ;;  %v14391_v45 = vld [vmem:[%s19624_s4 + $0x28] sm:$0xff]  }
 0x361   : > { %v12538_v32 = vcombine.low %v10230_v54, %v10240_v51  ;;  %v8927_v40 = vsel %vm14596_vm8, %v8922_v38, %v8926_v46  ;;  %v8932_v13 = vrot.slane %v8931_v20, 4  ;;  %v10257_v14 = vrot.slane %v10255_v26, 4  ;;  %v18451_v0 = vpop.f32.mrf.mxu0 }
 0x362   : > { %v10248_v56 = vor.u32 %v10247_v16, %v10244_v48  ;;  %v10263_v52 = vrot.slane %v10261_v63, 5  ;;  %v10266_v29 = vshrl.u32 %v10154_v24, 16  ;;  %v10269_v7 = vshll.u32 %v10154_v24, 16  ;;  %v18472_v24 = vpop.f32.mrf.mxu1 }
 0x363   : > { %14005 = vmatmul.mubr.bf16.vlgmr.msra.gmra.mxu0 %v12538_v32  ;;  %v8937_v6 = vsel %vm14596_vm8, %v8932_v13, %v8936_v58  ;;  %v10258_v36 = vor.u32 %v10257_v14, %v10253_v17  ;;  %v10275_v8 = vshll.u32 %v18440_v44, 16  ;;  %v10279_v10 = vshrl.u32 %v18440_v44, 16  ;;  %v18474_v51 = vpop.f32.mrf.mxu0 }
 0x364   : > { %v12416_v57 = vcombine.low %v8927_v40, %v8937_v6  ;;  %v10249_v46 = vrot.slane %v10248_v56, 4  ;;  %v10268_v31 = vrot.slane %v10266_v29, 4  ;;  %v10271_v54 = vrot.slane %v10269_v7, 5  ;;  %14085 = vmatpush3.bf16.msra.mxu0 %v18251_v37  ;;  %v18470_v37 = vld [vmem:[#allocation3 + $0x50] sm:$0x1] }
 0x365   : > { %v10259_v19 = vrot.slane %v10258_v36, 4  ;;  %v10277_v2 = vrot.slane %v10275_v8, 5  ;;  %v10281_v21 = vrot.slane %v10279_v10, 4  ;;  %v10285_v58 = vshll.u32 %v18447_v62, 16  ;;  %14086 = vmatprep.subr.bf16.mxu0 %v14388_v3  ;;  %v18492_v10 = vld [vmem:[#allocation3 + $0x58] sm:$0xf] }
 0x366   : > { %13889 = vmatmul.mubr.bf16.gmra.mxu1 %v12416_v57  ;;  %v10254_v38 = vsel %vm14596_vm8, %v10249_v46, %v10253_v17  ;;  %v10272_v20 = vor.u32 %v10271_v54, %v10268_v31  ;;  %v18468_v48 = vadd.f32 %v18234_v49, %v18382_v25  ;;  %v10290_v26 = vshrl.u32 %v10157_v12, 16  ;;  %v10160_v25 = vld [vmem:[#allocation3 + $0x54] sm:$0xf]  ;;  %v18496_v57 = vpop.f32.mrf.mxu0 }
 0x367   : > { %v10264_v16 = vsel %vm14596_vm8, %v10259_v19, %v10263_v52  ;;  %13956 = vmatprep.mubr.bf16.mxu1 %v14365_v1  ;;  %v10282_v63 = vor.u32 %v10281_v21, %v10277_v2  ;;  %v10287_v32 = vrot.slane %v10285_v58, 5  ;;  %v10293_v40 = vshll.u32 %v10157_v12, 16  ;;  %v14392_v52 = vld [vmem:[%s19624_s4 + $0x20] sm:$0xff]   ;;  %v18494_v12 = vpop.f32.mrf.mxu1 }
 0x368   : > { %v12539_v17 = vcombine.low %v10254_v38, %v10264_v16  ;;  %v10273_v13 = vrot.slane %v10272_v20, 4  ;;  %v10292_v14 = vrot.slane %v10290_v26, 4  ;;  %v10299_v49 = vshll.u32 %v18457_v61, 16  ;;  %14087 = vmatpush3.bf16.msra.mxu0 %v14388_v3  ;;  %v14366_v1 = vld [vmem:[#allocation3 + $0x24] sm:$0xff]   ;;  %v14370_v38 = vld [vmem:[%s19623_s3 + $0x230] sm:$0xff]  }
 0x369   : > { %v10283_v56 = vrot.slane %v10282_v63, 4  ;;  %v10295_v29 = vrot.slane %v10293_v40, 5  ;;  %v10303_v7 = vshrl.u32 %v18457_v61, 16  ;;  %v10309_v6 = vshll.u32 %v18470_v37, 16  ;;  %14088 = vmatprep.subr.bf16.mxu0 %v14391_v45  ;;  %v10163_v63 = vld [vmem:[#allocation3 + $0x60] sm:$0xf] }
 0x36a   : > { %14008 = vmatprep.mubr.bf16.mxu0 %v12539_v17  ;;  %v10301_v36 = vrot.slane %v10299_v49, 5  ;;  %v18486_v8 = vadd.f32 %v18263_v27, %v18392_v18  ;;  %v18490_v3 = vadd.f32 %v18293_v41, %v18408_v35  ;;  %v10278_v46 = vsel %vm14596_vm8, %v10273_v13, %v10277_v2  ;;  %v18502_v27 = vld [vmem:[#allocation3 + $0x5c] sm:$0x1]  ;;  %v14368_v35 = vld [vmem:[#allocation3 + $0x30] sm:$0xff]  }
 0x36b   : > { %v10288_v31 = vsel %vm14596_vm8, %v10283_v56, %v10287_v32  ;;  %v10296_v54 = vor.u32 %v10295_v29, %v10292_v14  ;;  %v10305_v19 = vrot.slane %v10303_v7, 4  ;;  %v10311_v41 = vrot.slane %v10309_v6, 5  ;;  %v14393_v32 = vld [vmem:[%s19624_s4 + $0x18] sm:$0xff]  }
 0x36c   : > { %v12540_v18 = vcombine.low %v10278_v46, %v10288_v31  ;;  %v10314_v21 = vshrl.u32 %v10160_v25, 16  ;;  %v10317_v58 = vshll.u32 %v10160_v25, 16  ;;  %14089 = vmatpush3.bf16.msra.mxu0 %v14391_v45  ;;  %v10323_v26 = vshll.u32 %v18492_v10, 16  ;;  %v18517_v14 = vld [vmem:[#allocation3 + $0x64] sm:$0xf]  ;;  %v18521_v25 = vpop.f32.mrf.mxu0 }
 0x36d   : > { %v10297_v20 = vrot.slane %v10296_v54, 4  ;;  %v10306_v2 = vor.u32 %v10305_v19, %v10301_v36  ;;  %v10327_v16 = vshrl.u32 %v18492_v10, 16  ;;  %14090 = vmatprep.subr.bf16.mxu0 %v14392_v52  ;;  %v10333_v13 = vshll.u32 %v18502_v27, 16  ;;  %v18519_v49 = vpop.f32.mrf.mxu1  ;;  %v18526_v54 = vld [vmem:[#allocation3 + $0x68] sm:$0x1] }
 0x36e   : > { %14009 = vmatmul.mubr.bf16.gmra.mxu0 %v12540_v18  ;;  %13957 = vmatmul.mubr.bf16.vlgmr.msra.gmra.mxu1 %v14366_v1  ;;  %v10316_v40 = vrot.slane %v10314_v21, 4  ;;  %v10319_v17 = vrot.slane %v10317_v58, 5  ;;  %v18515_v45 = vadd.f32 %v18331_v23, %v18432_v15  ;;  %v10325_v7 = vrot.slane %v10323_v26, 5  ;;  %v14369_v58 = vld [vmem:[#allocation3 + $0x3c] sm:$0xff]  }
 0x36f   : > { %v10302_v56 = vsel %vm14596_vm8, %v10297_v20, %v10301_v36  ;;  %v10307_v29 = vrot.slane %v10306_v2, 4  ;;  %13960 = vmatprep.mubr.bf16.mxu1 %v14368_v35  ;;  %14037 = vmatpush3.bf16.msra.mxu1 %v18361_v30  ;;  %v10329_v6 = vrot.slane %v10327_v16, 4  ;;  %v10335_v31 = vrot.slane %v10333_v13, 5  ;;  %v14373_v30 = vld [vmem:[%s19623_s3 + $0x228] sm:$0xff]   ;;  %v18535_v26 = vpop.f32.mrf.mxu1  ;;  %v10166_v13 = vld [vmem:[#allocation3 + $0x6c] sm:$0xf] }
 0x370   : > { %v10320_v46 = vor.u32 %v10319_v17, %v10316_v40  ;;  %v10338_v23 = vshrl.u32 %v10163_v63, 16  ;;  %v10341_v15 = vshll.u32 %v10163_v63, 16  ;;  %14038 = vmatprep.subr.bf16.mxu1 %v14370_v38  ;;  %14091 = vmatpush3.bf16.msra.mxu0 %v14392_v52  ;;  %v10347_v36 = vshll.u32 %v18517_v14, 16 }
 0x371   : > { %v10312_v19 = vsel %vm14596_vm8, %v10307_v29, %v10311_v41  ;;  %v10330_v18 = vor.u32 %v10329_v6, %v10325_v7  ;;  %v10351_v1 = vshrl.u32 %v18517_v14, 16  ;;  %14092 = vmatprep.subr.bf16.mxu0 %v14393_v32  ;;  %v14394_v41 = vld [vmem:[%s19624_s4 + $0x10] sm:$0xff]   ;;  %v10357_v17 = vshll.u32 %v18526_v54, 16 }
 0x372   : > { %v12541_v35 = vcombine.low %v10302_v56, %v10312_v19  ;;  %v10321_v21 = vrot.slane %v10320_v46, 4  ;;  %v10340_v20 = vrot.slane %v10338_v23, 4  ;;  %v10343_v2 = vrot.slane %v10341_v15, 5  ;;  %v18537_v52 = vpop.f32.mrf.mxu0  ;;  %v18551_v46 = vld [vmem:[#allocation3 + $0x70] sm:$0xf]  ;;  %v14376_v15 = vld [vmem:[%s19623_s3 + $0x220] sm:$0xff]  }
 0x373   : > { %v10331_v16 = vrot.slane %v10330_v18, 4  ;;  %v10349_v63 = vrot.slane %v10347_v36, 5  ;;  %v10353_v40 = vrot.slane %v10351_v1, 4  ;;  %14039 = vmatpush3.bf16.msra.mxu1 %v14370_v38  ;;  %v18545_v29 = vadd.f32 %v18355_v47, %v18449_v55  ;;  %19891 = vst [vmem:[#allocation25_spill] sm:$0xff] %v18551_v46  ;;  %v18553_v23 = vld [vmem:[#allocation3 + $0x74] sm:$0x1] }
 0x374   : > { %14012 = vmatprep.mubr.bf16.mxu0 %v12541_v35  ;;  %v10344_v56 = vor.u32 %v10343_v2, %v10340_v20  ;;  %v18549_v6 = vadd.f32 %v18368_v28, %v18472_v24  ;;  %19892 = vst [vmem:[#allocation22_spill] sm:$0xff] %v18553_v23  ;;  %v18558_v38 = vpop.f32.mrf.mxu0  ;;  %v10326_v19 = vsel %vm14596_vm8, %v10321_v21, %v10325_v7  ;;  %v10359_v18 = vrot.slane %v10357_v17, 5  ;;  %v14371_v28 = vld [vmem:[#allocation3 + $0x48] sm:$0xff]   ;;  %v10169_v20 = vld [vmem:[#allocation3 + $0x78] sm:$0xf]  ;;  %v13679_v2 = vpop.f32.mrf.mxu1  ;;  %v14395_v7 = vld [vmem:[%s19624_s4 + $0x8] sm:$0xff]  }
 0x375   : > { %19889 = vst [vmem:[#allocation18_spill] sm:$0xff] %v18545_v29  ;;  %v10336_v47 = vsel %vm14596_vm8, %v10331_v16, %v10335_v31  ;;  %v10354_v55 = vor.u32 %v10353_v40, %v10349_v63  ;;  %14040 = vmatprep.subr.bf16.mxu1 %v14373_v30  ;;  %14093 = vmatpush3.bf16.msra.mxu0 %v14393_v32  ;;  %v10362_v1 = vshrl.u32 %v10166_v13, 16  ;;  %v10365_v35 = vshll.u32 %v10166_v13, 16  ;;  %v18570_v40 = vld [vmem:[#allocation3 + $0x7c] sm:$0xf] }
 0x376   : > { %19890 = vst [vmem:[#allocation17_spill] sm:$0xff] %v18549_v6  ;;  %v12542_v24 = vcombine.low %v10326_v19, %v10336_v47  ;;  %13961 = vmatmul.mubr.bf16.gmra.mxu1 %v14369_v58  ;;  %v10345_v36 = vrot.slane %v10344_v56, 4  ;;  %14094 = vmatprep.subr.bf16.mxu0 %v14394_v41  ;;  %v10371_v31 = vshll.u32 %v18551_v46, 16  ;;  %v10375_v16 = vshrl.u32 %v18551_v46, 16  ;;  %v18578_v19 = vld [vmem:[#allocation3 + $0x80] sm:$0x1]  ;;  %v18580_v47 = vpop.f32.mrf.mxu0 }
 0x377   : > { %v10355_v21 = vrot.slane %v10354_v55, 4  ;;  %13964 = vmatprep.mubr.bf16.mxu1 %v14371_v28  ;;  %v10381_v32 = vshll.u32 %v18553_v23, 16  ;;  %14041 = vmatpush3.bf16.msra.mxu1 %v14373_v30  ;;  %v10364_v17 = vrot.slane %v10362_v1, 4  ;;  %v10367_v13 = vrot.slane %v10365_v35, 5  ;;  %v14379_v55 = vld [vmem:[%s19623_s3 + $0x218] sm:$0xff]   ;;  %v7237_v35 = vpop.f32.mrf.mxu1  ;;  %v14372_v6 = vld [vmem:[#allocation3 + $0x54] sm:$0xff]  }
 0x378   : > { %14013 = vmatmul.mubr.bf16.gmra.mxu0 %v12542_v24  ;;  %v10350_v58 = vsel %vm14596_vm8, %v10345_v36, %v10349_v63  ;;  %v18576_v56 = vadd.f32 %v18394_v50, %v18519_v49  ;;  %14042 = vmatprep.subr.bf16.mxu1 %v14376_v15  ;;  %v10373_v28 = vrot.slane %v10371_v31, 5  ;;  %v10377_v63 = vrot.slane %v10375_v16, 4  ;;  %v14374_v31 = vld [vmem:[#allocation3 + $0x60] sm:$0xff]   ;;  %v18594_v16 = vpop.f32.mrf.mxu0 }
 0x379   : > { %v10360_v30 = vsel %vm14596_vm8, %v10355_v21, %v10359_v18  ;;  %v10383_v24 = vrot.slane %v10381_v32, 5  ;;  %14095 = vmatpush3.bf16.msra.mxu0 %v14394_v41  ;;  %v10368_v1 = vor.u32 %v10367_v13, %v10364_v17  ;;  %v10386_v50 = vshrl.u32 %v10169_v20, 16  ;;  %19895 = vst [vmem:[#allocation45_spill] sm:$0xff] %v18594_v16  ;;  %v14382_v32 = vld [vmem:[%s19623_s3 + $0x210] sm:$0xff]  }
 0x37a   : > { %19893 = vst [vmem:[#allocation33_spill] sm:$0xff] %v18576_v56  ;;  %v12543_v36 = vcombine.low %v10350_v58, %v10360_v30  ;;  %v10389_v49 = vshll.u32 %v10169_v20, 16  ;;  %14096 = vmatprep.subr.bf16.mxu0 %v14395_v7  ;;  %v10378_v56 = vor.u32 %v10377_v63, %v10373_v28  ;;  %v10395_v23 = vshll.u32 %v18570_v40, 16  ;;  %v18604_v63 = vld [vmem:[#allocation3 + $0x88] sm:$0xf] }
 0x37b   : > { %v10399_v46 = vshrl.u32 %v18570_v40, 16  ;;  %v10405_v29 = vshll.u32 %v18578_v19, 16  ;;  %14043 = vmatpush3.bf16.msra.mxu1 %v14376_v15  ;;  %v10369_v18 = vrot.slane %v10368_v1, 4  ;;  %v10388_v21 = vrot.slane %v10386_v50, 4  ;;  %v18602_v15 = vld [vmem:[%s19624_s4] sm:$0xff]  }
 0x37c   : > { %14016 = vmatprep.mubr.bf16.mxu0 %v12543_v36  ;;  %v10391_v41 = vrot.slane %v10389_v49, 5  ;;  %v18592_v20 = vadd.f32 %v18410_v43, %v18535_v26  ;;  %14044 = vmatprep.subr.bf16.mxu1 %v14379_v55  ;;  %19896 = vst [vmem:[#allocation40_spill] sm:$0xff] %v18602_v15  ;;  %v10379_v58 = vrot.slane %v10378_v56, 4  ;;  %v10397_v17 = vrot.slane %v10395_v23, 5  ;;  %v18614_v50 = vld [vmem:[#allocation3 + $0x8c] sm:$0x1] }
 0x37d   : > { %v10401_v13 = vrot.slane %v10399_v46, 4  ;;  %v10407_v30 = vrot.slane %v10405_v29, 5  ;;  %14097 = vmatpush3.bf16.msra.mxu0 %v14395_v7  ;;  %v10374_v43 = vsel %vm14596_vm8, %v10369_v18, %v10373_v28  ;;  %v18609_v36 = vadd.f32 %v18419_v60, %v13679_v2  ;;  %v10175_v2 = vld [vmem:[#allocation3 + $0x90] sm:$0xf] }
 0x37e   : > { %19894 = vst [vmem:[#allocation29_spill] sm:$0xff] %v18592_v20  ;;  %13965 = vmatmul.mubr.bf16.gmra.mxu1 %v14372_v6  ;;  %v10392_v26 = vor.u32 %v10391_v41, %v10388_v21  ;;  %v18612_v1 = vadd.f32 %v18434_v53, %v7237_v35  ;;  %v13682_v56 = vpop.f32.mrf.mxu1  ;;  %v10384_v29 = vsel %vm14596_vm8, %v10379_v58, %v10383_v24  ;;  %v10410_v23 = vshrl.u32 %v10172_v9, 16  ;;  %v14385_v24 = vld [vmem:[%s19623_s3 + $0x208] sm:$0xff]  }
 0x37f   : > { %19897 = vst [vmem:[#allocation46_spill] sm:$0xff] %v18609_v36  ;;  %v10402_v46 = vor.u32 %v10401_v13, %v10397_v17  ;;  %13968 = vmatprep.mubr.bf16.mxu1 %v14374_v31  ;;  %v10413_v7 = vshll.u32 %v10172_v9, 16  ;;  %14045 = vmatpush3.bf16.msra.mxu1 %v14379_v55  ;;  %v12544_v28 = vcombine.low %v10374_v43, %v10384_v29  ;;  %v10419_v49 = vshll.u32 %v18604_v63, 16  ;;  %v18620_v35 = vpop.f32.mrf.mxu0  ;;  %v18627_v41 = vld [vmem:[#allocation3 + $0x94] sm:$0xf] }
 0x380   : > { %19898 = vst [vmem:[#allocation47_spill] sm:$0xff] %v18612_v1  ;;  %v10393_v6 = vrot.slane %v10392_v26, 4  ;;  %v10423_v60 = vshrl.u32 %v18604_v63, 16  ;;  %v7250_v53 = vpop.f32.mrf.mxu1  ;;  %14046 = vmatprep.subr.bf16.mxu1 %v14382_v32  ;;  %14098 = vmatprep.subr.bf16.mxu0 %v18602_v15  ;;  %v10412_v9 = vrot.slane %v10410_v23, 4  ;;  %v10429_v21 = vshll.u32 %v18614_v50, 16  ;;  %19899 = vst [vmem:[#allocation48_spill] sm:$0xff] %v18627_v41 }
 0x381   : > { %v10403_v18 = vrot.slane %v10402_v46, 4  ;;  %v10415_v55 = vrot.slane %v10413_v7, 5  ;;  %14099 = vmatpush3.bf16.msra.mxu0 %v18602_v15  ;;  %v10421_v58 = vrot.slane %v10419_v49, 5  ;;  %v18633_v43 = vadd.f32 %v18451_v0, %v13682_v56  ;;  %v18635_v26 = vld [vmem:[#allocation3 + $0x98] sm:$0x1]  ;;  %v18637_v46 = vpop.f32.mrf.mxu0 }
 0x382   : > { %14017 = vmatmul.mubr.bf16.gmra.mxu0 %v12544_v28  ;;  %v10398_v31 = vsel %vm14596_vm8, %v10393_v6, %v10397_v17  ;;  %v10425_v13 = vrot.slane %v10423_v60, 4  ;;  %19901 = vst [vmem:[#allocation50_spill] sm:$0xff] %v18635_v26  ;;  %v13683_v29 = vpop.f32.mrf.mxu1  ;;  %v10431_v16 = vrot.slane %v10429_v21, 5  ;;  %v10434_v15 = vshrl.u32 %v10175_v2, 16  ;;  %v14375_v17 = vld [vmem:[#allocation3 + $0x6c] sm:$0xff]   ;;  %v14377_v0 = vld [vmem:[#allocation3 + $0x78] sm:$0xff]  }
 0x383   : > { %19900 = vst [vmem:[#allocation49_spill] sm:$0xff] %v18633_v43  ;;  %v10408_v23 = vsel %vm14596_vm8, %v10403_v18, %v10407_v30  ;;  %v10416_v7 = vor.u32 %v10415_v55, %v10412_v9  ;;  %14047 = vmatpush3.bf16.msra.mxu1 %v14382_v32  ;;  %v10437_v6 = vshll.u32 %v10175_v2, 16  ;;  %v10443_v49 = vshll.u32 %v18627_v41, 16  ;;  %v18642_v56 = vpop.f32.mrf.mxu0  ;;  %v14390_v60 = vld [vmem:[%s19623_s3 + $0x200] sm:$0xff]   ;;  %v10178_v55 = vld [vmem:[#allocation3 + $0x9c] sm:$0xf] }
 0x384   : > { %v12545_v28 = vcombine.low %v10398_v31, %v10408_v23  ;;  %v10426_v1 = vor.u32 %v10425_v13, %v10421_v58  ;;  %14048 = vmatprep.subr.bf16.mxu1 %v14385_v24  ;;  %v10436_v30 = vrot.slane %v10434_v15, 4  ;;  %v10447_v18 = vshrl.u32 %v18627_v41, 16  ;;  %v7253_v9 = vpop.f32.mrf.mxu1  ;;  %v18652_v23 = vld [vmem:[#allocation3 + $0xa0] sm:$0xf] }
 0x385   : > { %v10417_v43 = vrot.slane %v10416_v7, 4  ;;  %v10453_v32 = vshll.u32 %v18635_v26, 16  ;;  %v10439_v21 = vrot.slane %v10437_v6, 5  ;;  %v10445_v31 = vrot.slane %v10443_v49, 5  ;;  %19903 = vst [vmem:[#allocation27_spill] sm:$0xff] %v18652_v23  ;;  %v18654_v36 = vpop.f32.mrf.mxu0 }
 0x386   : > { %14020 = vmatprep.mubr.bf16.mxu0 %v12545_v28  ;;  %v10427_v2 = vrot.slane %v10426_v1, 4  ;;  %13969 = vmatmul.mubr.bf16.gmra.mxu1 %v14375_v17  ;;  %v18650_v13 = vadd.f32 %v18474_v51, %v7250_v53  ;;  %v10449_v7 = vrot.slane %v10447_v18, 4  ;;  %v18659_v26 = vadd.f32 %v18496_v57, %v13683_v29  ;;  %v18661_v1 = vld [vmem:[#allocation3 + $0xa4] sm:$0x1] }
 0x387   : > { %v10422_v15 = vsel %vm14596_vm8, %v10417_v43, %v10421_v58  ;;  %v10455_v20 = vrot.slane %v10453_v32, 5  ;;  %13972 = vmatprep.mubr.bf16.mxu1 %v14377_v0  ;;  %19905 = vst [vmem:[#allocation37_spill] sm:$0xff] %v18661_v1  ;;  %14049 = vmatpush3.bf16.msra.mxu1 %v14385_v24  ;;  %v10440_v53 = vor.u32 %v10439_v21, %v10436_v30  ;;  %v10458_v17 = vshrl.u32 %v10178_v55, 16  ;;  %v10181_v0 = vld [vmem:[#allocation3 + $0xa8] sm:$0xf] }
 0x388   : > { %19902 = vst [vmem:[#allocation30_spill] sm:$0xff] %v18650_v13  ;;  %19904 = vst [vmem:[#allocation38_spill] sm:$0xff] %v18659_v26  ;;  %v10432_v51 = vsel %vm14596_vm8, %v10427_v2, %v10431_v16  ;;  %v18666_v28 = vadd.f32 %v18521_v25, %v7253_v9  ;;  %14050 = vmatprep.subr.bf16.mxu1 %v14390_v60  ;;  %v10450_v58 = vor.u32 %v10449_v7, %v10445_v31  ;;  %v18673_v32 = vld [vmem:[#allocation3 + $0xac] sm:$0xf] }
 0x389   : > { %v12546_v6 = vcombine.low %v10422_v15, %v10432_v51  ;;  %v10461_v43 = vshll.u32 %v10178_v55, 16  ;;  %v10467_v49 = vshll.u32 %v18652_v23, 16  ;;  %v18669_v57 = vpop.f32.mrf.mxu0  ;;  %v10441_v29 = vrot.slane %v10440_v53, 4  ;;  %v14378_v53 = vld [vmem:[#allocation3 + $0x84] sm:$0xff]  }
 0x38a   : > { %19906 = vst [vmem:[#allocation35_spill] sm:$0xff] %v18666_v28  ;;  %v10460_v18 = vrot.slane %v10458_v17, 4  ;;  %v10471_v24 = vshrl.u32 %v18652_v23, 16  ;;  %v10477_v16 = vshll.u32 %v18661_v1, 16  ;;  %v13686_v30 = vpop.f32.mrf.mxu1  ;;  %v10451_v25 = vrot.slane %v10450_v58, 4 }
 0x38b   : > { %14021 = vmatmul.mubr.bf16.gmra.mxu0 %v12546_v6  ;;  %v10463_v9 = vrot.slane %v10461_v43, 5  ;;  %v10469_v2 = vrot.slane %v10467_v49, 5  ;;  %v18676_v55 = vadd.f32 %v18537_v52, %v13686_v30  ;;  %v18678_v21 = vpop.f32.mrf.mxu0  ;;  %14051 = vmatpush3.bf16.msra.mxu1 %v14390_v60  ;;  %v10446_v15 = vsel %vm14596_vm8, %v10441_v29, %v10445_v31  ;;  %v18682_v17 = vld [vmem:[#allocation3 + $0xb0] sm:$0x1]  ;;  %v18687_v6 = vld [vmem:[%s19624_s4 + $0x38] sm:$0xff]  }
 0x38c   : > { %v10473_v7 = vrot.slane %v10471_v24, 4  ;;  %v10479_v51 = vrot.slane %v10477_v16, 5  ;;  %19908 = vst [vmem:[#allocation41_spill] sm:$0xff] %v18682_v17  ;;  %v10482_v28 = vshrl.u32 %v10181_v0, 16  ;;  %v7266_v26 = vpop.f32.mrf.mxu1  ;;  %14108 = vmatprep.subr.bf16.mxu1 %v18687_v6  ;;  %v10456_v52 = vsel %vm14596_vm8, %v10451_v25, %v10455_v20  ;;  %v14380_v43 = vld [vmem:[#allocation3 + $0x90] sm:$0xff]  }
 0x38d   : > { %19907 = vst [vmem:[#allocation23_spill] sm:$0xff] %v18676_v55  ;;  %v10464_v60 = vor.u32 %v10463_v9, %v10460_v18  ;;  %v10485_v58 = vshll.u32 %v10181_v0, 16  ;;  %v10491_v31 = vshll.u32 %v18673_v32, 16  ;;  %v18693_v49 = vpop.f32.mrf.mxu0  ;;  %v12547_v29 = vcombine.low %v10446_v15, %v10456_v52  ;;  %v10184_v20 = vld [vmem:[#allocation3 + $0xb4] sm:$0xf] }
 0x38e   : > { %v10474_v24 = vor.u32 %v10473_v7, %v10469_v2  ;;  %13973 = vmatmul.mubr.bf16.gmra.mxu1 %v14378_v53  ;;  %v10484_v16 = vrot.slane %v10482_v28, 4  ;;  %v10495_v30 = vshrl.u32 %v18673_v32, 16  ;;  %v13687_v55 = vpop.f32.mrf.mxu1  ;;  %v10501_v41 = vshll.u32 %v18682_v17, 16  ;;  %v18707_v7 = vld [vmem:[#allocation3 + $0xb8] sm:$0xf] }
 0x38f   : > { %v10465_v13 = vrot.slane %v10464_v60, 4  ;;  %v10487_v1 = vrot.slane %v10485_v58, 5  ;;  %v10493_v23 = vrot.slane %v10491_v31, 5  ;;  %13976 = vmatprep.mubr.bf16.mxu1 %v14380_v43  ;;  %v18697_v0 = vpop.f32.mrf.mxu0  ;;  %14024 = vmatprep.mubr.bf16.mxu0 %v12547_v29  ;;  %v18700_v9 = vadd.f32 %v18558_v38, %v7266_v26  ;;  %19912 = vst [vmem:[#allocation32_spill] sm:$0xff] %v18707_v7  ;;  %v18715_v31 = vld [vmem:[#allocation3 + $0xbc] sm:$0x1] }
 0x390   : > { %v10475_v18 = vrot.slane %v10474_v24, 4  ;;  %v10497_v25 = vrot.slane %v10495_v30, 4  ;;  %v18703_v28 = vadd.f32 %v18580_v47, %v13687_v55  ;;  %v18705_v15 = vpop.f32.mrf.mxu1  ;;  %v18711_v53 = vadd.f32 %v18309_v33, %v18417_v4  ;;  %19913 = vst [vmem:[#allocation36_spill] sm:$0xff] %v18715_v31  ;;  %v14381_v30 = vld [vmem:[#allocation3 + $0x9c] sm:$0xff]  }
 0x391   : > { %19909 = vst [vmem:[#allocation20_spill] sm:$0xff] %v18700_v9  ;;  %19911 = vst [vmem:[#allocation28_spill] sm:$0xff] %v18705_v15  ;;  %v10470_v52 = vsel %vm14596_vm8, %v10465_v13, %v10469_v2  ;;  %v10488_v60 = vor.u32 %v10487_v1, %v10484_v16  ;;  %v10503_v58 = vrot.slane %v10501_v41, 5  ;;  %v18717_v38 = vpop.f32.mrf.mxu0  ;;  %v10506_v55 = vshrl.u32 %v10184_v20, 16  ;;  %v10187_v13 = vld [vmem:[#allocation3 + $0xc0] sm:$0xf] }
 0x392   : > { %19910 = vst [vmem:[#allocation21_spill] sm:$0xff] %v18703_v28  ;;  %v10480_v47 = vsel %vm14596_vm8, %v10475_v18, %v10479_v51  ;;  %v10498_v26 = vor.u32 %v10497_v25, %v10493_v23  ;;  %v10509_v43 = vshll.u32 %v10184_v20, 16  ;;  %v10515_v33 = vshll.u32 %v18707_v7, 16  ;;  %v18726_v51 = vld [vmem:[#allocation3 + $0xc4] sm:$0xf] }
 0x393   : > { %v12548_v29 = vcombine.low %v10470_v52, %v10480_v47  ;;  %v10489_v24 = vrot.slane %v10488_v60, 4  ;;  %v10519_v4 = vshrl.u32 %v18707_v7, 16  ;;  %v18723_v1 = vpop.f32.mrf.mxu0  ;;  %v10508_v2 = vrot.slane %v10506_v55, 4  ;;  %19914 = vst [vmem:[#allocation42_spill] sm:$0xff] %v18726_v51  ;;  %v18733_v60 = vld [vmem:[#allocation3 + $0xc8] sm:$0x1] }
 0x394   : > { %v10499_v41 = vrot.slane %v10498_v26, 4  ;;  %v10511_v16 = vrot.slane %v10509_v43, 5  ;;  %v10525_v28 = vshll.u32 %v18715_v31, 16  ;;  %v13690_v9 = vpop.f32.mrf.mxu1  ;;  %v10517_v18 = vrot.slane %v10515_v33, 5  ;;  %19916 = vst [vmem:[#allocation24_spill] sm:$0xff] %v18733_v60  ;;  %v14383_v47 = vld [vmem:[#allocation3 + $0xa8] sm:$0xff]  }
 0x395   : > { %14025 = vmatmul.mubr.bf16.gmra.mxu0 %v12548_v29  ;;  %v10494_v20 = vsel %vm14596_vm8, %v10489_v24, %v10493_v23  ;;  %v10521_v25 = vrot.slane %v10519_v4, 4  ;;  %v18731_v52 = vadd.f32 %v18620_v35, %v13690_v9  ;;  %v18735_v26 = vpop.f32.mrf.mxu0  ;;  %v10530_v29 = vshrl.u32 %v10187_v13, 16 }
 0x396   : > { %v10504_v55 = vsel %vm14596_vm8, %v10499_v41, %v10503_v58  ;;  %v10512_v43 = vor.u32 %v10511_v16, %v10508_v2  ;;  %v10527_v15 = vrot.slane %v10525_v28, 5  ;;  %13977 = vmatmul.mubr.bf16.gmra.mxu1 %v14381_v30  ;;  %v7282_v31 = vpop.f32.mrf.mxu1  ;;  %v10533_v24 = vshll.u32 %v10187_v13, 16  ;;  %v10899_v41 = vld [vmem:[#allocation3 + $0x18] sm:$0xe] }
 0x397   : > { %19915 = vst [vmem:[#allocation19_spill] sm:$0xff] %v18731_v52  ;;  %v12549_v7 = vcombine.low %v10494_v20, %v10504_v55  ;;  %v10522_v23 = vor.u32 %v10521_v25, %v10517_v18  ;;  %v10539_v33 = vshll.u32 %v18726_v51, 16  ;;  %13980 = vmatprep.mubr.bf16.mxu1 %v14383_v47  ;;  %v18740_v35 = vpop.f32.mrf.mxu0  ;;  %v10532_v4 = vrot.slane %v10530_v29, 4  ;;  %v10190_v29 = vld [vmem:[#allocation3 + $0xcc] sm:$0xf] }
 0x398   : > { %v10513_v9 = vrot.slane %v10512_v43, 4  ;;  %v10543_v52 = vshrl.u32 %v18726_v51, 16  ;;  %v10549_v17 = vshll.u32 %v18733_v60, 16  ;;  %v13691_v58 = vpop.f32.mrf.mxu1  ;;  %v10535_v30 = vrot.slane %v10533_v24, 5 }
 0x399   : > { %14028 = vmatprep.mubr.bf16.mxu0 %v12549_v7  ;;  %v10523_v28 = vrot.slane %v10522_v23, 4  ;;  %v10541_v2 = vrot.slane %v10539_v33, 5  ;;  %v18745_v16 = vadd.f32 %v18637_v46, %v7282_v31  ;;  %v18747_v13 = vpop.f32.mrf.mxu0  ;;  %v18752_v55 = vadd.f32 %v18642_v56, %v13691_v58  ;;  %v18761_v33 = vld [vmem:[#allocation3 + $0xd0] sm:$0xf]  ;;  %v14433_v56 = vld [vmem:[#allocation3 + $0x1c] sm:$0xf] }
 0x39a   : > { %v10518_v20 = vsel %vm14596_vm8, %v10513_v9, %v10517_v18  ;;  %v10545_v25 = vrot.slane %v10543_v52, 4  ;;  %v10551_v47 = vrot.slane %v10549_v17, 5  ;;  %v7285_v43 = vpop.f32.mrf.mxu1  ;;  %v10536_v23 = vor.u32 %v10535_v30, %v10532_v4  ;;  %v14384_v9 = vld [vmem:[#allocation3 + $0xb4] sm:$0xff]   ;;  %v14386_v4 = vld [vmem:[#allocation3 + $0xc0] sm:$0xff]  }
 0x39b   : > { %19917 = vst [vmem:[#allocation26_spill] sm:$0xff] %v18745_v16  ;;  %19918 = vst [vmem:[#allocation31_spill] sm:$0xff] %v18752_v55  ;;  %v10528_v7 = vsel %vm14596_vm8, %v10523_v28, %v10527_v15  ;;  %v18757_v24 = vadd.f32 %v18654_v36, %v7285_v43  ;;  %v18759_v46 = vpop.f32.mrf.mxu0  ;;  %v12561_v31 = vrot.slane %v10899_v41, 9  ;;  %v10965_v58 = vrot.slane %v14433_v56, 5 }
 0x39c   : > { %v12550_v18 = vcombine.low %v10518_v20, %v10528_v7  ;;  %v10546_v52 = vor.u32 %v10545_v25, %v10541_v2  ;;  %v13694_v17 = vpop.f32.mrf.mxu1  ;;  %v10968_v55 = vrot.slane %v18379_v42, 5  ;;  %v10537_v60 = vrot.slane %v10536_v23, 4 }
 0x39d   : > { %19919 = vst [vmem:[#allocation34_spill] sm:$0xff] %v18757_v24  ;;  %v18765_v15 = vadd.f32 %v18669_v57, %v13694_v17  ;;  %v10554_v36 = vshrl.u32 %v10190_v29, 16  ;;  %v10557_v28 = vshll.u32 %v10190_v29, 16  ;;  %v18767_v30 = vpop.f32.mrf.mxu0  ;;  %v10966_v25 = vsel %vm15037_vm14, %v12561_v31, %v10965_v58  ;;  %v18777_v29 = vld [vmem:[#allocation3 + $0xd4] sm:$0x1] }
 0x39e   : > { %14029 = vmatmul.mubr.bf16.gmra.mxu0 %v12550_v18  ;;  %v10547_v41 = vrot.slane %v10546_v52, 4  ;;  %13981 = vmatmul.mubr.bf16.gmra.mxu1 %v14384_v9  ;;  %v7298_v20 = vpop.f32.mrf.mxu1  ;;  %v10967_v43 = vrot.slane %v10965_v58, 4  ;;  %v10563_v7 = vshll.u32 %v18761_v33, 16  ;;  %v10542_v42 = vsel %vm14596_vm8, %v10537_v60, %v10541_v2  ;;  %19922 = vst [vmem:[#allocation43_spill] sm:$0xff] %v18777_v29  ;;  %v10900_v17 = vld [vmem:[#allocation3 + $0x24] sm:$0xe] }
 0x39f   : > { %19920 = vst [vmem:[#allocation44_spill] sm:$0xff] %v18765_v15  ;;  %13984 = vmatprep.mubr.bf16.mxu1 %v14386_v4  ;;  %v18775_v57 = vadd.f32 %v18678_v21, %v7298_v20  ;;  %v10556_v23 = vrot.slane %v10554_v36, 4  ;;  %v10559_v18 = vrot.slane %v10557_v28, 5  ;;  %v18779_v52 = vpop.f32.mrf.mxu0  ;;  %v10567_v60 = vshrl.u32 %v18761_v33, 16  ;;  %v10901_v2 = vld [vmem:[#allocation3 + $0x30] sm:$0xe] }
 0x3a0   : > { %v10552_v31 = vsel %vm14596_vm8, %v10547_v41, %v10551_v47  ;;  %v13695_v9 = vpop.f32.mrf.mxu1  ;;  %v10969_v56 = vsel %vm15037_vm14, %v10967_v43, %v10968_v55  ;;  %v10565_v58 = vrot.slane %v10563_v7, 5  ;;  %v14389_v15 = vld [vmem:[#allocation3 + $0xcc] sm:$0xff]   ;;  %v10573_v47 = vshll.u32 %v18777_v29, 16 }
 0x3a1   : > { %19921 = vst [vmem:[#allocation39_spill] sm:$0xff] %v18775_v57  ;;  %v12551_v21 = vcombine.low %v10542_v42, %v10552_v31  ;;  %v18787_v4 = vadd.f32 %v18693_v49, %v13695_v9  ;;  %v12593_v36 = vcombine.low %v10966_v25, %v10969_v56  ;;  %v10560_v28 = vor.u32 %v10559_v18, %v10556_v23  ;;  %v18789_v20 = vpop.f32.mrf.mxu0  ;;  %v10902_v23 = vld [vmem:[#allocation3 + $0x3c] sm:$0xe] }
 0x3a2   : > { %v7301_v57 = vpop.f32.mrf.mxu1  ;;  %v10569_v24 = vrot.slane %v10567_v60, 4  ;;  %v12562_v41 = vrot.slane %v10900_v17, 9  ;;  %v10972_v55 = vrot.slane %v18398_v59, 5  ;;  %v10975_v49 = vrot.slane %v18401_v22, 5 }
 0x3a3   : > { %19923 = vst [vmem:[#allocation7_spill] sm:$0xff] %v18787_v4  ;;  %14032 = vmatprep.mubr.bf16.mxu0 %v12551_v21  ;;  %v18794_v43 = vadd.f32 %v18697_v0, %v7301_v57  ;;  %v10561_v7 = vrot.slane %v10560_v28, 4  ;;  %v18797_v42 = vpop.f32.mrf.mxu0  ;;  %v12563_v25 = vrot.slane %v10901_v2, 9  ;;  %v10575_v9 = vrot.slane %v10573_v47, 5  ;;  %v10908_v4 = vld [vmem:[#allocation3 + $0x84] sm:$0xe] }
 0x3a4   : > { %v13698_v18 = vpop.f32.mrf.mxu1  ;;  %v10570_v31 = vor.u32 %v10569_v24, %v10565_v58  ;;  %v10973_v56 = vsel %vm15037_vm14, %v12562_v41, %v10972_v55  ;;  %v10974_v17 = vrot.slane %v10972_v55, 4  ;;  %v10979_v57 = vrot.slane %v18424_v5, 5 }
 0x3a5   : > { %19924 = vst [vmem:[#allocation52_spill] sm:$0xff] %v18794_v43  ;;  %v18802_v59 = vadd.f32 %v18717_v38, %v13698_v18  ;;  %v10566_v0 = vsel %vm14596_vm8, %v10561_v7, %v10565_v58  ;;  %v10982_v22 = vrot.slane %v18429_v39, 5  ;;  %v18808_v60 = vpop.f32.mrf.mxu0  ;;  %v12564_v28 = vrot.slane %v10902_v23, 9  ;;  %v10903_v38 = vld [vmem:[#allocation3 + $0x48] sm:$0xe] }
 0x3a6   : > { %13985 = vmatmul.mubr.bf16.gmra.mxu1 %v14389_v15  ;;  %v7314_v2 = vpop.f32.mrf.mxu1  ;;  %v10571_v24 = vrot.slane %v10570_v31, 4  ;;  %v10976_v21 = vsel %vm15037_vm14, %v10974_v17, %v10975_v49  ;;  %v10986_v47 = vrot.slane %v18440_v44, 5  ;;  %v10980_v5 = vsel %vm15037_vm14, %v12563_v25, %v10979_v57 }
 0x3a7   : > { %19925 = vst [vmem:[#allocation8_spill] sm:$0xff] %v18802_v59  ;;  %14052 = vmatprep.mubr.bf16.mxu1 %v12593_v36  ;;  %v18814_v41 = vadd.f32 %v18723_v1, %v7314_v2  ;;  %v12594_v58 = vcombine.low %v10973_v56, %v10976_v21  ;;  %v10981_v39 = vrot.slane %v10979_v57, 4  ;;  %v18818_v55 = vpop.f32.mrf.mxu0  ;;  %v10989_v36 = vrot.slane %v18447_v62, 5  ;;  %v10904_v1 = vld [vmem:[#allocation3 + $0x54] sm:$0xe] }
 0x3a8   : > { %v10576_v15 = vsel %vm14596_vm8, %v10571_v24, %v10575_v9  ;;  %v13699_v7 = vpop.f32.mrf.mxu1  ;;  %v18824_v49 = vsel %vm15037_vm14, %v12564_v28, %v10986_v47  ;;  %v10988_v44 = vrot.slane %v10986_v47, 4  ;;  %v12565_v11 = vrot.slane %v10903_v38, 9  ;;  %v10905_v9 = vld [vmem:[#allocation3 + $0x60] sm:$0xe]  ;;  %v12675_v28 = vld [vmem:[%s14565_s8] sm:$0xff]  }
 0x3a9   : > { %19926 = vst [vmem:[#allocation51_spill] sm:$0xff] %v18814_v41  ;;  %v12552_v23 = vcombine.low %v10566_v0, %v10576_v15  ;;  %v18828_v18 = vadd.f32 %v18735_v26, %v13699_v7  ;;  %v10983_v25 = vsel %vm15037_vm14, %v10981_v39, %v10982_v22  ;;  %v18832_v31 = vpop.f32.mrf.mxu0  ;;  %v10993_v62 = vrot.slane %v18457_v61, 5  ;;  %v12764_v22 = vld [vmem:[%s14565_s8 + $0x38] sm:$0xff]  }
 0x3aa   : > { %v7317_v56 = vpop.f32.mrf.mxu1  ;;  %v12595_v17 = vcombine.low %v10980_v5, %v10983_v25  ;;  %v18836_v57 = vsel %vm15037_vm14, %v10988_v44, %v10989_v36  ;;  %v10996_v0 = vrot.slane %v18470_v37, 5  ;;  %v12566_v24 = vrot.slane %v10904_v1, 9  ;;  %v12758_v44 = vld [vmem:[%s14565_s8 + $0x8] sm:$0xff]   ;;  %v12759_v25 = vld [vmem:[%s14565_s8 + $0x10] sm:$0xff]  }
 0x3ab   : > { %19927 = vst [vmem:[#allocation69_spill] sm:$0xff] %v18828_v18  ;;  %14033 = vmatmul.mubr.bf16.gmra.mxu0 %v12552_v23  ;;  %v18841_v26 = vadd.f32 %v18740_v35, %v7317_v56  ;;  %v18845_v2 = vpop.f32.mrf.mxu0  ;;  %v11000_v21 = vrot.slane %v18492_v10, 5  ;;  %v18851_v61 = vsel %vm15037_vm14, %v12565_v11, %v10993_v62  ;;  %v10995_v37 = vrot.slane %v10993_v62, 4  ;;  %v12760_v56 = vld [vmem:[%s14565_s8 + $0x18] sm:$0xff]  }
 0x3ac   : > { %v13766_v47 = vpop.f32.mrf.mxu1  ;;  %v11003_v35 = vrot.slane %v18502_v27, 5  ;;  %v12567_v38 = vrot.slane %v10905_v9, 9  ;;  %v11007_v7 = vrot.slane %v18517_v14, 5  ;;  %v12676_v1 = vunpack.c.l.bf16 %v12675_v28 }
 0x3ad   : > { %19928 = vst [vmem:[#allocation55_spill] sm:$0xff] %v18841_v26  ;;  %v18855_v5 = vadd.f32 %v13766_v47, %v18468_v48  ;;  %v18857_v39 = vpop.f32.mrf.mxu0  ;;  %v18861_v15 = vsel %vm15037_vm14, %v12566_v24, %v11000_v21  ;;  %v11002_v10 = vrot.slane %v11000_v21, 4  ;;  %v18867_v27 = vsel %vm15037_vm14, %v10995_v37, %v10996_v0  ;;  %v12761_v21 = vld [vmem:[%s14565_s8 + $0x20] sm:$0xff]  }
 0x3ae   : > { %14053 = vmatmul.mubr.bf16.vlgmr.msra.gmra.mxu1 %v12594_v58  ;;  %v7960_v36 = vpop.f32.mrf.mxu1  ;;  %v11010_v48 = vrot.slane %v18526_v54, 5  ;;  %v12677_v23 = vunpack.c.h.bf16 %v12675_v28  ;;  %v12597_v14 = vcombine.low %v18851_v61, %v18867_v27  ;;  %v11009_v54 = vrot.slane %v11007_v7, 4 }
 0x3af   : > { %14056 = vmatprep.mubr.bf16.mxu1 %v12595_v17  ;;  %v18872_v11 = vadd.f32 %v7960_v36, %v18486_v8  ;;  %14116 = vmatpush3.bf16.msra.mxu1 %v18687_v6  ;;  %v18877_v58 = vpop.f32.mrf.mxu0  ;;  %v18881_v9 = vsel %vm15037_vm14, %v11002_v10, %v11003_v35  ;;  %v14434_v8 = vld [vmem:[%s19624_s4 + $0x30] sm:$0xff]   ;;  %v18891_v17 = vsel %vm15037_vm14, %v12567_v38, %v11007_v7  ;;  %v12680_v0 = vunpack.c.l.bf16 %v12758_v44  ;;  %v12762_v10 = vld [vmem:[%s14565_s8 + $0x28] sm:$0xff]  }
 0x3b0   : > { %v13767_v62 = vpop.f32.mrf.mxu1  ;;  %14109 = vmatprep.subr.bf16.mxu1 %v14434_v8  ;;  %v12681_v24 = vunpack.c.h.bf16 %v12758_v44  ;;  %v18901_v61 = vsel %vm15037_vm14, %v11009_v54, %v11010_v48  ;;  %v12684_v37 = vunpack.c.l.bf16 %v12759_v25  ;;  %v12685_v35 = vunpack.c.h.bf16 %v12759_v25  ;;  %v12763_v6 = vld [vmem:[%s14565_s8 + $0x30] sm:$0xff]  }
 0x3b1   : > { %v18895_v28 = vadd.f32 %v13767_v62, %v18490_v3  ;;  %v18897_v47 = vpop.f32.mrf.mxu0  ;;  %v12688_v7 = vunpack.c.l.bf16 %v12760_v56  ;;  %v12689_v27 = vunpack.c.h.bf16 %v12760_v56  ;;  %v6477_v44 = vadd.f32 %v12680_v0, %v12676_v1  ;;  %v14435_v1 = vld [vmem:[%s19624_s4 + $0x28] sm:$0xff]   ;;  %v10906_v56 = vld [vmem:[#allocation3 + $0x6c] sm:$0xe] }
 0x3b2   : > { %v7963_v36 = vpop.f32.mrf.mxu1  ;;  %v6478_v48 = vadd.f32 %v12681_v24, %v12677_v23  ;;  %v12692_v54 = vunpack.c.l.bf16 %v12761_v21  ;;  %v12693_v26 = vunpack.c.h.bf16 %v12761_v21  ;;  %v12696_v59 = vunpack.c.l.bf16 %v12762_v10  ;;  %v10907_v21 = vld [vmem:[#allocation3 + $0x78] sm:$0xe] }
 0x3b3   : > { %v18909_v3 = vadd.f32 %v7963_v36, %v18711_v53  ;;  %14117 = vmatpush3.bf16.msra.mxu1 %v14434_v8  ;;  %v18911_v62 = vpop.f32.mrf.mxu0  ;;  %v6479_v18 = vadd.f32 %v12688_v7, %v12684_v37  ;;  %v6480_v41 = vadd.f32 %v12689_v27, %v12685_v35  ;;  %6493 = vst [vmem:[#allocation6] sm:$0xff] %v6477_v44  ;;  %v12697_v38 = vunpack.c.h.bf16 %v12762_v10  ;;  %v19929_v37 = vld [vmem:[#allocation15_spill] sm:$0xff]  ;;  %v19931_v44 = vld [vmem:[#allocation18_spill] sm:$0xff] }
 0x3b4   : > { %v13770_v25 = vpop.f32.mrf.mxu1  ;;  %14110 = vmatprep.subr.bf16.mxu1 %v14435_v1  ;;  %6494 = vst [vmem:[#allocation6 + $0x8] sm:$0xff] %v6478_v48  ;;  %v12700_v8 = vunpack.c.l.bf16 %v12763_v6  ;;  %v12701_v23 = vunpack.c.h.bf16 %v12763_v6  ;;  %v12704_v0 = vunpack.c.l.bf16 %v12764_v22  ;;  %v7527_v35 = vadd.f32 %v19929_v37, %v18494_v12  ;;  %v19933_v12 = vld [vmem:[#allocation25_spill] sm:$0xff] }
 0x3b5   : > { %v18917_v53 = vadd.f32 %v13770_v25, %v18515_v45  ;;  %v18919_v24 = vpop.f32.mrf.mxu0  ;;  %v19930_v10 = vcombine.low %v18824_v49, %v18836_v57  ;;  %6495 = vst [vmem:[#allocation6 + $0x10] sm:$0xff] %v6479_v18  ;;  %6496 = vst [vmem:[#allocation6 + $0x18] sm:$0xff] %v6480_v41  ;;  %v12705_v7 = vunpack.c.h.bf16 %v12764_v22  ;;  %v6481_v45 = vadd.f32 %v12696_v59, %v12692_v54  ;;  %v19934_v41 = vld [vmem:[#allocation22_spill] sm:$0xff]  ;;  %v14436_v22 = vld [vmem:[%s19624_s4 + $0x20] sm:$0xff]  }
 0x3b6   : > { %v7976_v36 = vpop.f32.mrf.mxu1  ;;  %v6482_v27 = vadd.f32 %v12697_v38, %v12693_v26  ;;  %v6483_v48 = vadd.f32 %v12704_v0, %v12700_v8  ;;  %v12568_v43 = vrot.slane %v10906_v56, 9  ;;  %v11014_v37 = vrot.slane %v19933_v12, 5 }
 0x3b7   : > { %14057 = vmatmul.mubr.bf16.gmra.mxu1 %v19930_v10  ;;  %v18927_v6 = vadd.f32 %v7976_v36, %v19931_v44  ;;  %v18929_v25 = vpop.f32.mrf.mxu0  ;;  %v6484_v57 = vadd.f32 %v12705_v7, %v12701_v23  ;;  %6497 = vst [vmem:[#allocation6 + $0x20] sm:$0xff] %v6481_v45  ;;  %v11017_v18 = vrot.slane %v19934_v41, 5  ;;  %v12569_v59 = vrot.slane %v10907_v21, 9  ;;  %v10909_v23 = vld [vmem:[#allocation3 + $0x90] sm:$0xe] }
 0x3b8   : > { %14060 = vmatprep.mubr.bf16.mxu1 %v12597_v14  ;;  %19932 = vst [vmem:[#allocation53_spill] sm:$0xff] %v18929_v25  ;;  %14118 = vmatpush3.bf16.msra.mxu1 %v14435_v1  ;;  %v13771_v49 = vpop.f32.mrf.mxu1  ;;  %6498 = vst [vmem:[#allocation6 + $0x28] sm:$0xff] %v6482_v27  ;;  %v11021_v26 = vrot.slane %v18570_v40, 5  ;;  %v19935_v14 = vld [vmem:[#allocation17_spill] sm:$0xff]  ;;  %v18944_v1 = vsel %vm15037_vm14, %v12568_v43, %v11014_v37  ;;  %v11016_v56 = vrot.slane %v11014_v37, 4  ;;  %v11024_v8 = vrot.slane %v18578_v19, 5 }
 0x3b9   : > { %14111 = vmatprep.subr.bf16.mxu1 %v14436_v22  ;;  %v18938_v38 = vadd.f32 %v13771_v49, %v19935_v14  ;;  %6499 = vst [vmem:[#allocation6 + $0x30] sm:$0xff] %v6483_v48  ;;  %v18940_v54 = vpop.f32.mrf.mxu0  ;;  %6500 = vst [vmem:[#allocation6 + $0x38] sm:$0xff] %v6484_v57  ;;  %v12570_v10 = vrot.slane %v10908_v4, 9  ;;  %v11028_v36 = vrot.slane %v18604_v63, 5  ;;  %v11031_v19 = vrot.slane %v18614_v50, 5  ;;  %v19938_v27 = vld [vmem:[#allocation48_spill] sm:$0xff] }
 0x3ba   : > { %19936 = vst [vmem:[#allocation54_spill] sm:$0xff] %v18940_v54  ;;  %v7979_v40 = vpop.f32.mrf.mxu1  ;;  %v18949_v0 = vsel %vm15037_vm14, %v12569_v59, %v11021_v26  ;;  %v11023_v21 = vrot.slane %v11021_v26, 4  ;;  %v18956_v43 = vsel %vm15037_vm14, %v11016_v56, %v11017_v18  ;;  %v11035_v44 = vrot.slane %v19938_v27, 5  ;;  %v14437_v57 = vld [vmem:[%s19624_s4 + $0x18] sm:$0xff]   ;;  %v19939_v50 = vld [vmem:[#allocation33_spill] sm:$0xff] }
 0x3bb   : > { %v18952_v7 = vadd.f32 %v7979_v40, %v7527_v35  ;;  %v18958_v45 = vpop.f32.mrf.mxu0  ;;  %v6509_v12 = vld [vmem:[#allocation6] ss:$2 sm:$0xff]  ;;  %v6525_v37 = vld [vmem:[#allocation6 + $0x1] ss:$2 sm:$0xff]  ;;  %v11030_v35 = vrot.slane %v11028_v36, 4  ;;  %v12571_v49 = vrot.slane %v10909_v23, 9  ;;  %v18980_v56 = vsel %vm15037_vm14, %v12570_v10, %v11028_v36 }
 0x3bc   : > { %19937 = vst [vmem:[#allocation57_spill] sm:$0xff] %v18958_v45  ;;  %14119 = vmatpush3.bf16.msra.mxu1 %v14436_v22  ;;  %v13774_v48 = vpop.f32.mrf.mxu1  ;;  %v18966_v63 = vsel %vm15037_vm14, %v11023_v21, %v11024_v8  ;;  %v6511_v18 = vld [vmem:[#allocation6 + $0x10] ss:$2 sm:$0xff]  ;;  %v6527_v59 = vld [vmem:[#allocation6 + $0x11] ss:$2 sm:$0xff]  ;;  %v6540_v26 = vadd.f32 %v6525_v37, %v6509_v12  ;;  %v19941_v23 = vcombine.low %v18861_v15, %v18881_v9 }
 0x3bd   : > { %14112 = vmatprep.subr.bf16.mxu1 %v14437_v57  ;;  %v18972_v41 = vadd.f32 %v13774_v48, %v19939_v50  ;;  %v18976_v14 = vpop.f32.mrf.mxu0  ;;  %v10910_v8 = vld [vmem:[#allocation3 + $0x9c] sm:$0xe]  ;;  %v6541_v40 = vadd.f32 %v6527_v59, %v6511_v18  ;;  %v18987_v27 = vsel %vm15037_vm14, %v11030_v35, %v11031_v19  ;;  %v11037_v48 = vrot.slane %v11035_v44, 4  ;;  %v19942_v12 = vld [vmem:[#allocation50_spill] sm:$0xff]  ;;  %v10911_v50 = vld [vmem:[#allocation3 + $0xa8] sm:$0xe] }
 0x3be   : > { %19940 = vst [vmem:[#allocation56_spill] sm:$0xff] %v18976_v14  ;;  %v7992_v21 = vpop.f32.mrf.mxu1  ;;  %v11038_v37 = vrot.slane %v19942_v12, 5  ;;  %v19943_v22 = vcombine.low %v18891_v17, %v18901_v61  ;;  %v19944_v10 = vld [vmem:[#allocation29_spill] sm:$0xff]  ;;  %v19002_v19 = vsel %vm15037_vm14, %v12571_v49, %v11035_v44  ;;  %v19946_v35 = vld [vmem:[#allocation27_spill] sm:$0xff]  ;;  %v19947_v49 = vld [vmem:[#allocation46_spill] sm:$0xff]  ;;  %v12573_v29 = vrot.slane %v10911_v50, 9 }
 0x3bf   : > { %14061 = vmatmul.mubr.bf16.gmra.mxu1 %v19941_v23  ;;  %v18994_v36 = vadd.f32 %v7992_v21, %v19944_v10  ;;  %v6513_v4 = vld [vmem:[#allocation6 + $0x20] ss:$2 sm:$0xff]  ;;  %v6529_v15 = vld [vmem:[#allocation6 + $0x21] ss:$2 sm:$0xff]  ;;  %v18996_v9 = vpop.f32.mrf.mxu0  ;;  %v11042_v59 = vrot.slane %v19946_v35, 5  ;;  %v12741_v23 = vpack.c.bf16 %v6541_v40, %v6540_v26  ;;  %v12572_v21 = vrot.slane %v10910_v8, 9 }
 0x3c0   : > { %14064 = vmatprep.mubr.bf16.mxu1 %v19943_v22  ;;  %19945 = vst [vmem:[#allocation59_spill] sm:$0xff] %v18996_v9  ;;  %14120 = vmatpush3.bf16.msra.mxu1 %v14437_v57  ;;  %v6542_v17 = vadd.f32 %v6529_v15, %v6513_v4  ;;  %v13775_v61 = vpop.f32.mrf.mxu1  ;;  %v19007_v22 = vsel %vm15037_vm14, %v11037_v48, %v11038_v37  ;;  %v14438_v12 = vld [vmem:[%s19624_s4 + $0x10] sm:$0xff]   ;;  %v10912_v10 = vld [vmem:[#allocation3 + $0xb4] sm:$0xe]  ;;  %v19949_v40 = vld [vmem:[#allocation37_spill] sm:$0xff]  ;;  %v11049_v9 = vrot.slane %v18673_v32, 5 }
 0x3c1   : > { %14113 = vmatprep.subr.bf16.mxu1 %v14438_v12  ;;  %v6515_v18 = vld [vmem:[#allocation6 + $0x30] ss:$2 sm:$0xff]  ;;  %v6531_v44 = vld [vmem:[#allocation6 + $0x31] ss:$2 sm:$0xff]  ;;  %v19013_v57 = vadd.f32 %v13775_v61, %v19947_v49  ;;  %v19015_v35 = vpop.f32.mrf.mxu0  ;;  %v11044_v26 = vrot.slane %v11042_v59, 4  ;;  %v11045_v48 = vrot.slane %v19949_v40, 5  ;;  %v19022_v15 = vsel %vm15037_vm14, %v12572_v21, %v11042_v59 }
 0x3c2   : > { %19948 = vst [vmem:[#allocation58_spill] sm:$0xff] %v19015_v35  ;;  %12742 = vst [vmem:[#allocation4] sm:$0xff] %v12741_v23   ;;  %v6543_v8 = vadd.f32 %v6531_v44, %v6515_v18  ;;  %v7995_v37 = vpop.f32.mrf.mxu1  ;;  %v19950_v61 = vld [vmem:[#allocation47_spill] sm:$0xff]  ;;  %v19952_v40 = vld [vmem:[#allocation41_spill] sm:$0xff]  ;;  %v11051_v50 = vrot.slane %v11049_v9, 4  ;;  %v12574_v21 = vrot.slane %v10912_v10, 9 }
 0x3c3   : > { %v19026_v49 = vadd.f32 %v7995_v37, %v19950_v61  ;;  %v19028_v35 = vpop.f32.mrf.mxu0  ;;  %v19032_v4 = vsel %vm15037_vm14, %v11044_v26, %v11045_v48  ;;  %v11052_v23 = vrot.slane %v19952_v40, 5  ;;  %v19953_v18 = vld [vmem:[#allocation32_spill] sm:$0xff]  ;;  %v14439_v37 = vld [vmem:[%s19624_s4 + $0x8] sm:$0xff]   ;;  %v19954_v26 = vld [vmem:[#allocation49_spill] sm:$0xff]  ;;  %v19957_v40 = vcombine.low %v18944_v1, %v18956_v43 }
 0x3c4   : > { %19951 = vst [vmem:[#allocation61_spill] sm:$0xff] %v19028_v35  ;;  %14121 = vmatpush3.bf16.msra.mxu1 %v14438_v12  ;;  %v11056_v44 = vrot.slane %v19953_v18, 5  ;;  %v12746_v14 = vpack.c.bf16 %v6543_v8, %v6542_v17  ;;  %v13778_v59 = vpop.f32.mrf.mxu1  ;;  %v19956_v17 = vld [vmem:[#allocation36_spill] sm:$0xff]  ;;  %v19052_v18 = vsel %vm15037_vm14, %v12573_v29, %v11049_v9  ;;  %v19961_v1 = vcombine.low %v18949_v0, %v18966_v63  ;;  %v19962_v43 = vld [vmem:[#allocation30_spill] sm:$0xff] }
 0x3c5   : > { %14114 = vmatprep.subr.bf16.mxu1 %v14439_v37  ;;  %v19042_v48 = vadd.f32 %v13778_v59, %v19954_v26  ;;  %v19044_v61 = vpop.f32.mrf.mxu0  ;;  %v11059_v8 = vrot.slane %v19956_v17, 5  ;;  %19958 = vst [vmem:[#allocation62_spill] sm:$0xff] %v19052_v18  ;;  %v19056_v59 = vsel %vm15037_vm14, %v11051_v50, %v11052_v23  ;;  %v12766_v23 = vld [vmem:[%s14565_s8 + $0x48] sm:$0xff]   ;;  %v19965_v63 = vld [vmem:[#allocation40_spill] sm:$0xff]  ;;  %v19969_v50 = vld [vmem:[#allocation45_spill] sm:$0xff]  ;;  %v19973_v35 = vrot.slane %v18726_v51, 5 }
 0x3c6   : > { %19955 = vst [vmem:[#allocation60_spill] sm:$0xff] %v19044_v61  ;;  %v11058_v12 = vrot.slane %v11056_v44, 4  ;;  %12773 = vst [vmem:[#allocation4 + $0x8] sm:$0xff] %v12746_v14   ;;  %v8008_v10 = vpop.f32.mrf.mxu1  ;;  %v19060_v26 = vsel %vm15037_vm14, %v12574_v21, %v11056_v44  ;;  %v12765_v14 = vld [vmem:[%s14565_s8 + $0x40] sm:$0xff]   ;;  %v12767_v21 = vld [vmem:[%s14565_s8 + $0x50] sm:$0xff]  }
 0x3c7   : > { %14065 = vmatmul.mubr.bf16.gmra.mxu1 %v19957_v40  ;;  %19959 = vst [vmem:[#allocation64_spill] sm:$0xff] %v19056_v59  ;;  %19960 = vst [vmem:[#allocation63_spill] sm:$0xff] %v19060_v26  ;;  %v19067_v17 = vadd.f32 %v8008_v10, %v19962_v43  ;;  %v19069_v40 = vpop.f32.mrf.mxu0  ;;  %v12768_v10 = vld [vmem:[%s14565_s8 + $0x58] sm:$0xff]   ;;  %v19966_v43 = vld [vmem:[#allocation38_spill] sm:$0xff]  ;;  %v19102_v16 = vrot.slane %v19973_v35, 4  ;;  %v19976_v35 = vcombine.low %v18980_v56, %v18987_v27 }
 0x3c8   : > { %14068 = vmatprep.mubr.bf16.mxu1 %v19961_v1  ;;  %19963 = vst [vmem:[#allocation66_spill] sm:$0xff] %v19069_v40  ;;  %v19075_v9 = vsel %vm15037_vm14, %v11058_v12, %v11059_v8  ;;  %14122 = vmatpush3.bf16.msra.mxu1 %v14439_v37  ;;  %v13779_v44 = vpop.f32.mrf.mxu1  ;;  %v12708_v12 = vunpack.c.l.bf16 %v12765_v14  ;;  %v12709_v37 = vunpack.c.h.bf16 %v12765_v14  ;;  %v12712_v40 = vunpack.c.l.bf16 %v12766_v23  ;;  %v19968_v61 = vld [vmem:[#allocation28_spill] sm:$0xff]  ;;  %v19975_v18 = vld [vmem:[#allocation23_spill] sm:$0xff] }
 0x3c9   : > { %19964 = vst [vmem:[#allocation65_spill] sm:$0xff] %v19075_v9  ;;  %14115 = vmatprep.subr.bf16.mxu1 %v19965_v63  ;;  %v14397_v1 = vld [vmem:[#allocation4] sm:$0xff]   ;;  %v19085_v29 = vadd.f32 %v13779_v44, %v19966_v43  ;;  %v19087_v32 = vpop.f32.mrf.mxu0  ;;  %v7575_v0 = vadd.f32 %v19969_v50, %v19968_v61  ;;  %v14440_v44 = vld [vmem:[%s19624_s4] sm:$0xff]   ;;  %v12713_v14 = vunpack.c.h.bf16 %v12766_v23  ;;  %v12716_v43 = vunpack.c.l.bf16 %v12767_v21  ;;  %19974 = vst [vmem:[#allocation71_spill] sm:$0xff] %v19102_v16 }
 0x3ca   : > { %19967 = vst [vmem:[#allocation68_spill] sm:$0xff] %v19087_v32  ;;  %v8011_v8 = vpop.f32.mrf.mxu1  ;;  %14100 = vmatprep.mubr.bf16.mxu0 %v14397_v1  ;;  %v19970_v63 = vld [vmem:[#allocation35_spill] sm:$0xff]  ;;  %v12769_v32 = vld [vmem:[%s14565_s8 + $0x60] sm:$0xff]   ;;  %v12717_v61 = vunpack.c.h.bf16 %v12767_v21  ;;  %v12720_v50 = vunpack.c.l.bf16 %v12768_v10  ;;  %v12721_v1 = vunpack.c.h.bf16 %v12768_v10  ;;  %v12772_v59 = vld [vmem:[%s14565_s8 + $0x78] sm:$0xff]   ;;  %v11070_v23 = vrot.slane %v18761_v33, 5 }
 0x3cb   : > { %v19092_v9 = vadd.f32 %v8011_v8, %v19970_v63  ;;  %v19094_v26 = vpop.f32.mrf.mxu0  ;;  %v12770_v8 = vld [vmem:[%s14565_s8 + $0x68] sm:$0xff]   ;;  %v12771_v63 = vld [vmem:[%s14565_s8 + $0x70] sm:$0xff]   ;;  %v6486_v25 = vadd.f32 %v12713_v14, %v12709_v37  ;;  %v19118_v16 = vadd.f32 %v18747_v13, %v18855_v5  ;;  %v12725_v56 = vunpack.c.h.bf16 %v12769_v32  ;;  %s12633_s8 = sshll.u32 %s20090_s21, 6 }
 0x3cc   : > { %19972 = vst [vmem:[#allocation70_spill] sm:$0xff] %v19094_v26  ;;  %14123 = vmatpush3.bf16.msra.mxu1 %v14440_v44  ;;  %v13782_v34 = vpop.f32.mrf.mxu1  ;;  %v6485_v44 = vadd.f32 %v12712_v40, %v12708_v12  ;;  %v6487_v51 = vadd.f32 %v12720_v50, %v12716_v43  ;;  %v6488_v10 = vadd.f32 %v12721_v1, %v12717_v61  ;;  %v12728_v27 = vunpack.c.l.bf16 %v12770_v8  ;;  %v19979_v61 = vld [vmem:[#allocation21_spill] sm:$0xff]  ;;  %s19560_s14 = scalar_lea.vmem %s19626_s6, %s12633_s8 }
 0x3cd   : > { %19971 = vst [vmem:[#allocation67_spill] sm:$0xff] %v19092_v9  ;;  %v14398_v26 = vld [vmem:[#allocation4 + $0x8] sm:$0xff]   ;;  %v19108_v45 = vadd.f32 %v13782_v34, %v19975_v18  ;;  %v19110_v54 = vpop.f32.mrf.mxu0  ;;  %v12724_v9 = vunpack.c.l.bf16 %v12769_v32  ;;  %v19977_v34 = vcombine.low %v19002_v19, %v19007_v22  ;;  %6502 = vst [vmem:[#allocation6 + $0x48] sm:$0xff] %v6486_v25  ;;  %v12729_v37 = vunpack.c.h.bf16 %v12770_v8 }
 0x3ce   : > { %v8024_v21 = vpop.f32.mrf.mxu1  ;;  %14101 = vmatmul.mubr.bf16.vlgmr.msra.gmra.mxu0 %v14398_v26  ;;  %v19978_v18 = vld [vmem:[#allocation20_spill] sm:$0xff]  ;;  %6501 = vst [vmem:[#allocation6 + $0x40] sm:$0xff] %v6485_v44  ;;  %6503 = vst [vmem:[#allocation6 + $0x50] sm:$0xff] %v6487_v51  ;;  %v12732_v13 = vunpack.c.l.bf16 %v12771_v63  ;;  %v12733_v5 = vunpack.c.h.bf16 %v12771_v63  ;;  %v12736_v43 = vunpack.c.l.bf16 %v12772_v59  ;;  %v12737_v26 = vunpack.c.h.bf16 %v12772_v59 }
 0x3cf   : > { %14069 = vmatmul.mubr.bf16.gmra.mxu1 %v19976_v35  ;;  %v8103_v40 = vadd.f32 %v8024_v21, %v19978_v18  ;;  %v19124_v12 = vpop.f32.mrf.mxu0  ;;  %6504 = vst [vmem:[#allocation6 + $0x58] sm:$0xff] %v6488_v10  ;;  %v6489_v22 = vadd.f32 %v12728_v27, %v12724_v9  ;;  %v6490_v1 = vadd.f32 %v12729_v37, %v12725_v56  ;;  %v19989_v21 = vld [vmem:[#allocation26_spill] sm:$0xff]  ;;  %v19990_v27 = vld [vmem:[#allocation56_spill] sm:$0xff] }
 0x3d0   : > { %14072 = vmatprep.mubr.bf16.mxu1 %v19977_v34  ;;  %v13783_v14 = vpop.f32.mrf.mxu1  ;;  %v19131_v44 = vadd.f32 %v18759_v46, %v18872_v11  ;;  %v6491_v32 = vadd.f32 %v12736_v43, %v12732_v13  ;;  %v6492_v8 = vadd.f32 %v12737_v26, %v12733_v5  ;;  %v19135_v51 = vadd.f32 %v18767_v30, %v18895_v28  ;;  %v19992_v13 = vld [vmem:[#allocation24_spill] sm:$0xff]  ;;  %v19993_v26 = vld [vmem:[#allocation58_spill] sm:$0xff] }
 0x3d1   : > { %v8106_v50 = vadd.f32 %v13783_v14, %v19979_v61  ;;  %v19127_v19 = vpop.f32.mrf.mxu0  ;;  %v19139_v59 = vadd.f32 %v18779_v52, %v18909_v3  ;;  %6505 = vst [vmem:[#allocation6 + $0x60] sm:$0xff] %v6489_v22  ;;  %6506 = vst [vmem:[#allocation6 + $0x68] sm:$0xff] %v6490_v1  ;;  %v19145_v46 = vadd.f32 %v18789_v20, %v18917_v53  ;;  %v11066_v5 = vrot.slane %v19992_v13, 5  ;;  %v19994_v22 = vld [vmem:[#allocation31_spill] sm:$0xff] }
 0x3d2   : > { %v8027_v25 = vpop.f32.mrf.mxu1  ;;  %v19149_v11 = vadd.f32 %v18797_v42, %v18927_v6  ;;  %v19153_v30 = vadd.f32 %v18808_v60, %v18938_v38  ;;  %6507 = vst [vmem:[#allocation6 + $0x70] sm:$0xff] %v6491_v32  ;;  %6508 = vst [vmem:[#allocation6 + $0x78] sm:$0xff] %v6492_v8  ;;  %v19157_v52 = vadd.f32 %v18818_v55, %v18952_v7  ;;  %v19980_v60 = vld [vmem:[#allocation19_spill] sm:$0xff]  ;;  %v10913_v7 = vld [vmem:[#allocation3 + $0xc0] sm:$0xe] }
 0x3d3   : > { %v8104_v63 = vadd.f32 %v8027_v25, %v7575_v0  ;;  %v19141_v35 = vpop.f32.mrf.mxu0  ;;  %v19161_v3 = vadd.f32 %v18832_v31, %v18972_v41  ;;  %v19165_v20 = vadd.f32 %v18845_v2, %v18994_v36  ;;  %v19169_v42 = vadd.f32 %v18857_v39, %v19013_v57  ;;  %v19995_v8 = vld [vmem:[#allocation61_spill] sm:$0xff] }
 0x3d4   : > { %v13786_v28 = vpop.f32.mrf.mxu1  ;;  %v19176_v55 = vadd.f32 %v18877_v58, %v19026_v49  ;;  %v19180_v31 = vadd.f32 %v18897_v47, %v19042_v48  ;;  %v19184_v2 = vadd.f32 %v18911_v62, %v19067_v17  ;;  %v19981_v39 = vcombine.low %v19022_v15, %v19032_v4  ;;  %v19982_v57 = vld [vmem:[#allocation67_spill] sm:$0xff]  ;;  %v19983_v49 = vld [vmem:[#allocation53_spill] sm:$0xff]  ;;  %v19984_v48 = vld [vmem:[#allocation54_spill] sm:$0xff] }
 0x3d5   : > { %v8109_v53 = vadd.f32 %v13786_v28, %v19980_v60  ;;  %v19172_v6 = vpop.f32.mrf.mxu0  ;;  %v6517_v41 = vld [vmem:[#allocation6 + $0x40] ss:$2 sm:$0xff]  ;;  %v6533_v36 = vld [vmem:[#allocation6 + $0x41] ss:$2 sm:$0xff]  ;;  %v19191_v58 = vadd.f32 %v18919_v24, %v19085_v29  ;;  %v19195_v47 = vadd.f32 %v19983_v49, %v19982_v57  ;;  %v19199_v62 = vadd.f32 %v19984_v48, %v19108_v45  ;;  %v19985_v17 = vld [vmem:[#allocation57_spill] sm:$0xff] }
 0x3d6   : > { %v8040_v38 = vpop.f32.mrf.mxu1  ;;  %v19202_v9 = vadd.f32 %v19985_v17, %v8103_v40  ;;  %v19986_v4 = vld [vmem:[#allocation62_spill] sm:$0xff]  ;;  %v19987_v15 = vld [vmem:[#allocation64_spill] sm:$0xff]  ;;  %v10914_v24 = vld [vmem:[#allocation3 + $0xcc] sm:$0xe]  ;;  %v6544_v56 = vadd.f32 %v6533_v36, %v6517_v41  ;;  %v19211_v37 = vadd.f32 %v19990_v27, %v8106_v50  ;;  %v12575_v25 = vrot.slane %v10913_v7, 9 }
 0x3d7   : > { %14073 = vmatmul.mubr.bf16.gmra.mxu1 %v19981_v39  ;;  %v19988_v0 = vcombine.low %v19986_v4, %v19987_v15  ;;  %v8107_v10 = vadd.f32 %v8040_v38, %v19989_v21  ;;  %v19208_v34 = vpop.f32.mrf.mxu0  ;;  %v6519_v29 = vld [vmem:[#allocation6 + $0x50] ss:$2 sm:$0xff]  ;;  %v6535_v18 = vld [vmem:[#allocation6 + $0x51] ss:$2 sm:$0xff]  ;;  %v19991_v45 = vld [vmem:[#allocation59_spill] sm:$0xff]  ;;  %v19218_v61 = vadd.f32 %v19993_v26, %v8109_v53  ;;  %v12576_v38 = vrot.slane %v10914_v24, 9 }
 0x3d8   : > { %v19214_v14 = vadd.f32 %v19991_v45, %v8104_v63  ;;  %v13787_v40 = vpop.f32.mrf.mxu1  ;;  %v6545_v43 = vadd.f32 %v6535_v18, %v6519_v29  ;;  %v19996_v60 = vld [vmem:[#allocation71_spill] sm:$0xff]  ;;  %v19999_v48 = vld [vmem:[#allocation34_spill] sm:$0xff]  ;;  %v11072_v7 = vrot.slane %v11070_v23, 4 }
 0x3d9   : > { %14076 = vmatprep.mubr.bf16.mxu1 %v19988_v0  ;;  %v8110_v1 = vadd.f32 %v13787_v40, %v19994_v22  ;;  %v19221_v32 = vpop.f32.mrf.mxu0  ;;  %v19224_v28 = vadd.f32 %v19995_v8, %v8107_v10  ;;  %v11067_v63 = vsel %vm15037_vm14, %v19996_v60, %v11066_v5  ;;  %v19998_v41 = vld [vmem:[#allocation43_spill] sm:$0xff]  ;;  %v6523_v15 = vld [vmem:[#allocation6 + $0x70] ss:$2 sm:$0xff]  ;;  %v6539_v0 = vld [vmem:[#allocation6 + $0x71] ss:$2 sm:$0xff] }
 0x3da   : > { %v8043_v50 = vpop.f32.mrf.mxu1  ;;  %v11073_v36 = vrot.slane %v19998_v41, 5  ;;  %v12751_v57 = vpack.c.bf16 %v6545_v43, %v6544_v56  ;;  %v6521_v49 = vld [vmem:[#allocation6 + $0x60] ss:$2 sm:$0xff]  ;;  %v6537_v53 = vld [vmem:[#allocation6 + $0x61] ss:$2 sm:$0xff]  ;;  %v20001_v24 = vld [vmem:[#allocation42_spill] sm:$0xff]  ;;  %v6547_v45 = vadd.f32 %v6539_v0, %v6523_v15 }
 0x3db   : > { %v8108_v17 = vadd.f32 %v8043_v50, %v19999_v48  ;;  %v19233_v4 = vpop.f32.mrf.mxu0  ;;  %v6546_v21 = vadd.f32 %v6537_v53, %v6521_v49  ;;  %v20000_v10 = vld [vmem:[#allocation60_spill] sm:$0xff]  ;;  %v20002_v27 = vrot.slane %v20001_v24, 5  ;;  %v20004_v26 = vld [vmem:[#allocation66_spill] sm:$0xff]  ;;  %v20005_v8 = vld [vmem:[#allocation63_spill] sm:$0xff] }
 0x3dc   : > { %v19236_v29 = vadd.f32 %v20000_v10, %v8110_v1  ;;  %12774 = vst [vmem:[#allocation4 + $0x10] sm:$0xff] %v12751_v57   ;;  %v20003_v40 = vld [vmem:[#allocation44_spill] sm:$0xff]  ;;  %v20006_v50 = vld [vmem:[#allocation65_spill] sm:$0xff]  ;;  %v20008_v49 = vld [vmem:[#allocation39_spill] sm:$0xff] }
 0x3dd   : > { %v13790_v18 = vpop.f32.mrf.mxu1  ;;  %v11064_v56 = vsel %vm15037_vm14, %v12575_v25, %v20002_v27  ;;  %v13911_v43 = vpop.f32.mrf.mxu0  ;;  %v19244_v22 = vadd.f32 %v20004_v26, %v8108_v17  ;;  %v20007_v60 = vcombine.low %v20005_v8, %v20006_v50  ;;  %v12756_v41 = vpack.c.bf16 %v6547_v45, %v6546_v21  ;;  %v20009_v48 = vld [vmem:[#allocation68_spill] sm:$0xff]  ;;  %v20010_v0 = vld [vmem:[#allocation7_spill] sm:$0xff] }
 0x3de   : > { %v8113_v13 = vadd.f32 %v13790_v18, %v20003_v40  ;;  %v12607_v5 = vcombine.low %v11064_v56, %v11067_v63  ;;  %v11071_v25 = vsel %vm15037_vm14, %v12576_v38, %v11070_v23  ;;  %v11074_v63 = vsel %vm15037_vm14, %v11072_v7, %v11073_v36  ;;  %v20011_v18 = vld [vmem:[#allocation70_spill] sm:$0xff]  ;;  %v20012_v56 = vld [vmem:[#allocation52_spill] sm:$0xff]  ;;  %v20014_v8 = vld [vmem:[#allocation51_spill] sm:$0xff] }
 0x3df   : > { %14077 = vmatmul.mubr.bf16.gmra.mxu1 %v20007_v60  ;;  %v8056_v1 = vpop.f32.mrf.mxu1  ;;  %v9602_v57 = vpop.f32.mrf.mxu0  ;;  %12775 = vst [vmem:[#allocation4 + $0x18] sm:$0xff] %v12756_v41   ;;  %v12608_v33 = vcombine.low %v11071_v25, %v11074_v63  ;;  %v20013_v7 = vld [vmem:[#allocation8_spill] sm:$0xff] }
 0x3e0   : > { %14080 = vmatprep.mubr.bf16.mxu1 %v12607_v5  ;;  %v8111_v53 = vadd.f32 %v8056_v1, %v20008_v49  ;;  %v19257_v17 = vadd.f32 %v20009_v48, %v8113_v13  ;;  %v20015_v49 = vld [vmem:[#allocation69_spill] sm:$0xff] }
 0x3e1   : > { %v13791_v15 = vpop.f32.mrf.mxu1  ;;  %v13914_v21 = vpop.f32.mrf.mxu0 }
 0x3e2   : > { %v8114_v10 = vadd.f32 %v13791_v15, %v20010_v0  ;;  %v19261_v24 = vadd.f32 %v20011_v18, %v8111_v53 }
 0x3e3   : > { %v8059_v27 = vpop.f32.mrf.mxu1  ;;  %v14399_v23 = vld [vmem:[#allocation4 + $0x10] sm:$0xff]   ;;  %v9615_v38 = vpop.f32.mrf.mxu0 }
 0x3e4   : > { %v8112_v45 = vadd.f32 %v8059_v27, %v20012_v56  ;;  %v19265_v39 = vadd.f32 %v19110_v54, %v8114_v10 }
 0x3e5   : > { %v13794_v36 = vpop.f32.mrf.mxu1  ;;  %v13915_v13 = vpop.f32.mrf.mxu0 }
 0x3e6   : > { %v8117_v40 = vadd.f32 %v13794_v36, %v20013_v7  ;;  %v19269_v5 = vadd.f32 %v19124_v12, %v8112_v45  ;;  %v14400_v48 = vld [vmem:[#allocation4 + $0x18] sm:$0xff]   ;;  %v20016_v12 = vld [vmem:[#allocation55_spill] sm:$0xff] }
 0x3e7   : > { %14081 = vmatmul.mubr.bf16.gmra.mxu1 %v12608_v33  ;;  %v8072_v26 = vpop.f32.mrf.mxu1  ;;  %v9618_v60 = vpop.f32.mrf.mxu0 }
 0x3e8   : > { %v8115_v50 = vadd.f32 %v8072_v26, %v20014_v8  ;;  %14104 = vmatprep.mubr.bf16.mxu1 %v14399_v23  ;;  %v19273_v1 = vadd.f32 %v19127_v19, %v8117_v40 }
 0x3e9   : > { %v13795_v41 = vpop.f32.mrf.mxu1  ;;  %v13918_v53 = vpop.f32.mrf.mxu0 }
 0x3ea   : > { %v8118_v54 = vadd.f32 %v13795_v41, %v20015_v49  ;;  %v19277_v25 = vadd.f32 %v19141_v35, %v8115_v50 }
 0x3eb   : > { %v8075_v63 = vpop.f32.mrf.mxu1  ;;  %v9631_v0 = vpop.f32.mrf.mxu0 }
 0x3ec   : > { %v8116_v15 = vadd.f32 %v8075_v63, %v20016_v12  ;;  %v19281_v10 = vadd.f32 %v19172_v6, %v8118_v54 }
 0x3ed   : > { %v13862_v18 = vpop.f32.mrf.mxu1  ;;  %v13919_v19 = vpop.f32.mrf.mxu0 }
 0x3ee   : > { %v9230_v27 = vadd.f32 %v13862_v18, %v19118_v16  ;;  %v19285_v33 = vadd.f32 %v19208_v34, %v8116_v15 }
 0x3ef   : > { %14105 = vmatmul.mubr.bf16.vlgmr.msra.gmra.mxu1 %v14400_v48  ;;  %v9101_v56 = vpop.f32.mrf.mxu1  ;;  %v9634_v45 = vpop.f32.mrf.mxu0 }
 0x3f0   : > { %v9228_v35 = vadd.f32 %v9101_v56, %v19131_v44  ;;  %v19289_v23 = vadd.f32 %v19221_v32, %v9230_v27 }
 0x3f1   : > { %v13863_v36 = vpop.f32.mrf.mxu1  ;;  %v13922_v6 = vpop.f32.mrf.mxu0 }
 0x3f2   : > { %v9231_v7 = vadd.f32 %v13863_v36, %v19135_v51  ;;  %v19293_v40 = vadd.f32 %v19233_v4, %v9228_v35 }
 0x3f3   : > { %v9104_v16 = vpop.f32.mrf.mxu1  ;;  %v9647_v34 = vpop.f32.mrf.mxu0 }
 0x3f4   : > { %v9229_v26 = vadd.f32 %v9104_v16, %v19139_v59  ;;  %v19296_v8 = vadd.f32 %v13911_v43, %v9231_v7 }
 0x3f5   : > { %v13866_v50 = vpop.f32.mrf.mxu1  ;;  %v13923_v41 = vpop.f32.mrf.mxu0 }
 0x3f6   : > { %v9234_v44 = vadd.f32 %v13866_v50, %v19145_v46  ;;  %v19299_v49 = vadd.f32 %v9602_v57, %v9229_v26 }
 0x3f7   : > { %v9117_v32 = vpop.f32.mrf.mxu1  ;;  %v9650_v51 = vpop.f32.mrf.mxu0 }
 0x3f8   : > { %v9232_v54 = vadd.f32 %v9117_v32, %v19149_v11  ;;  %v19302_v63 = vadd.f32 %v13914_v21, %v9234_v44 }
 0x3f9   : > { %v13867_v4 = vpop.f32.mrf.mxu1  ;;  %v13926_v12 = vpop.f32.mrf.mxu0 }
 0x3fa   : > { %v9235_v48 = vadd.f32 %v13867_v4, %v19153_v30  ;;  %v19305_v59 = vadd.f32 %v9615_v38, %v9232_v54 }
 0x3fb   : > { %v9120_v43 = vpop.f32.mrf.mxu1  ;;  %v9663_v18 = vpop.f32.mrf.mxu0 }
 0x3fc   : > { %v9233_v15 = vadd.f32 %v9120_v43, %v19157_v52  ;;  %v19308_v46 = vadd.f32 %v13915_v13, %v9235_v48 }
 0x3fd   : > { %v13870_v57 = vpop.f32.mrf.mxu1  ;;  %v13927_v56 = vpop.f32.mrf.mxu0 }
 0x3fe   : > { %v9238_v27 = vadd.f32 %v13870_v57, %v19161_v3  ;;  %v19311_v11 = vadd.f32 %v9618_v60, %v9233_v15 }
 0x3ff   : > { %v9133_v21 = vpop.f32.mrf.mxu1  ;;  %v9666_v36 = vpop.f32.mrf.mxu0 }
 0x400   : > { %v9236_v35 = vadd.f32 %v9133_v21, %v19165_v20  ;;  %v19314_v30 = vadd.f32 %v13918_v53, %v9238_v27 }
 0x401   : > { %v13871_v38 = vpop.f32.mrf.mxu1  ;;  %v13930_v16 = vpop.f32.mrf.mxu0 }
 0x402   : > { %v9239_v7 = vadd.f32 %v13871_v38, %v19169_v42  ;;  %v19317_v52 = vadd.f32 %v9631_v0, %v9236_v35 }
 0x403   : > { %v9136_v13 = vpop.f32.mrf.mxu1  ;;  %v9679_v50 = vpop.f32.mrf.mxu0 }
 0x404   : > { %v9237_v26 = vadd.f32 %v9136_v13, %v19176_v55  ;;  %v19320_v3 = vadd.f32 %v13919_v19, %v9239_v7 }
 0x405   : > { %v13874_v60 = vpop.f32.mrf.mxu1  ;;  %v13931_v32 = vpop.f32.mrf.mxu0 }
 0x406   : > { %v9242_v44 = vadd.f32 %v13874_v60, %v19180_v31  ;;  %v19323_v20 = vadd.f32 %v9634_v45, %v9237_v26 }
 0x407   : > { %v9149_v53 = vpop.f32.mrf.mxu1  ;;  %v9682_v4 = vpop.f32.mrf.mxu0 }
 0x408   : > { %v9240_v54 = vadd.f32 %v9149_v53, %v19184_v2  ;;  %v19326_v42 = vadd.f32 %v13922_v6, %v9242_v44 }
 0x409   : > { %v13875_v0 = vpop.f32.mrf.mxu1  ;;  %v13934_v43 = vpop.f32.mrf.mxu0 }
 0x40a   : > { %v9243_v48 = vadd.f32 %v13875_v0, %v19191_v58  ;;  %v19329_v55 = vadd.f32 %v9647_v34, %v9240_v54 }
 0x40b   : > { %v9152_v19 = vpop.f32.mrf.mxu1  ;;  %v9695_v57 = vpop.f32.mrf.mxu0 }
 0x40c   : > { %v9241_v15 = vadd.f32 %v9152_v19, %v19195_v47  ;;  %v19332_v31 = vadd.f32 %v13923_v41, %v9243_v48 }
 0x40d   : > { %v13878_v45 = vpop.f32.mrf.mxu1  ;;  %v13935_v21 = vpop.f32.mrf.mxu0 }
 0x40e   : > { %v9246_v27 = vadd.f32 %v13878_v45, %v19199_v62  ;;  %v19335_v2 = vadd.f32 %v9650_v51, %v9241_v15 }
 0x40f   : > { %v9165_v6 = vpop.f32.mrf.mxu1  ;;  %v9698_v38 = vpop.f32.mrf.mxu0 }
 0x410   : > { %v9244_v35 = vadd.f32 %v9165_v6, %v19202_v9  ;;  %v19338_v58 = vadd.f32 %v13926_v12, %v9246_v27 }
 0x411   : > { %v13879_v34 = vpop.f32.mrf.mxu1  ;;  %v13938_v26 = vpop.f32.mrf.mxu0 }
 0x412   : > { %v9247_v7 = vadd.f32 %v13879_v34, %v19211_v37  ;;  %v19341_v13 = vadd.f32 %v9663_v18, %v9244_v35 }
 0x413   : > { %v9168_v47 = vpop.f32.mrf.mxu1  ;;  %v9711_v53 = vpop.f32.mrf.mxu0 }
 0x414   : > { %v9245_v41 = vadd.f32 %v9168_v47, %v19214_v14  ;;  %v19344_v60 = vadd.f32 %v13927_v56, %v9247_v7 }
 0x415   : > { %v13882_v62 = vpop.f32.mrf.mxu1  ;;  %v13939_v48 = vpop.f32.mrf.mxu0 }
 0x416   : > { %20017 = vst [vmem:[#allocation72_spill] sm:$0xff] %v19344_v60  ;;  %v9250_v51 = vadd.f32 %v13882_v62, %v19218_v61  ;;  %v19347_v44 = vadd.f32 %v9666_v36, %v9245_v41 }
 0x417   : > { %v9181_v9 = vpop.f32.mrf.mxu1  ;;  %v9714_v45 = vpop.f32.mrf.mxu0 }
 0x418   : > { %20018 = vst [vmem:[#allocation14_spill] sm:$0xff] %v19347_v44  ;;  %v9248_v12 = vadd.f32 %v9181_v9, %v19224_v28  ;;  %v19350_v54 = vadd.f32 %v13930_v16, %v9250_v51 }
 0x419   : > { %v13883_v37 = vpop.f32.mrf.mxu1 }
 0x41a   : > { %20019 = vst [vmem:[#allocation13_spill] sm:$0xff] %v19350_v54  ;;  %v9251_v18 = vadd.f32 %v13883_v37, %v19236_v29  ;;  %v19353_v0 = vadd.f32 %v9679_v50, %v9248_v12 }
 0x41b   : > { %v9184_v14 = vpop.f32.mrf.mxu1 }
 0x41c   : > { %20020 = vst [vmem:[#allocation16_spill] sm:$0xff] %v19353_v0  ;;  %v9249_v56 = vadd.f32 %v9184_v14, %v19244_v22  ;;  %v19356_v19 = vadd.f32 %v13931_v32, %v9251_v18 }
 0x41d   : > { %v13886_v61 = vpop.f32.mrf.mxu1 }
 0x41e   : > { %20021 = vst [vmem:[#allocation11_spill] sm:$0xff] %v19356_v19  ;;  %v9254_v36 = vadd.f32 %v13886_v61, %v19257_v17  ;;  %v19359_v15 = vadd.f32 %v9682_v4, %v9249_v56 }
 0x41f   : > { %v9197_v28 = vpop.f32.mrf.mxu1 }
 0x420   : > { %20022 = vst [vmem:[#allocation10_spill] sm:$0xff] %v19359_v15  ;;  %v9252_v16 = vadd.f32 %v9197_v28, %v19261_v24  ;;  %v19362_v27 = vadd.f32 %v13934_v43, %v9254_v36 }
 0x421   : > { %v13887_v29 = vpop.f32.mrf.mxu1 }
 0x422   : > { %20023 = vst [vmem:[#allocation9_spill] sm:$0xff] %v19362_v27  ;;  %v9255_v50 = vadd.f32 %v13887_v29, %v19265_v39  ;;  %v19365_v6 = vadd.f32 %v9695_v57, %v9252_v16 }
 0x423   : > { %v9200_v22 = vpop.f32.mrf.mxu1  ;;  %v19368_v35 = vpop.f32.mrf.mxu0 }
 0x424   : > { %20024 = vst [vmem:[#allocation15_spill] sm:$0xff] %v19365_v6  ;;  %v9253_v32 = vadd.f32 %v9200_v22, %v19269_v5  ;;  %v19370_v34 = vadd.f32 %v13935_v21, %v9255_v50 }
 0x425   : > { %v19372_v17 = vpop.f32.mrf.mxu0 }
 0x426   : > { %20025 = vst [vmem:[#allocation18_spill] sm:$0xff] %v19370_v34  ;;  %v19374_v4 = vadd.f32 %v9698_v38, %v9253_v32  ;;  %v13890_v24 = vpop.f32.mrf.mxu1 }
 0x427   : > { %v9258_v43 = vadd.f32 %v13890_v24, %v19273_v1  ;;  %v19377_v7 = vpop.f32.mrf.mxu0 }
 0x428   : > { %20026 = vst [vmem:[#allocation25_spill] sm:$0xff] %v19374_v4  ;;  %v9213_v47 = vpop.f32.mrf.mxu1 }
 0x429   : > { %v9256_v39 = vadd.f32 %v9213_v47, %v19277_v25  ;;  %v19380_v57 = vadd.f32 %v13938_v26, %v9258_v43  ;;  %v19382_v5 = vpop.f32.mrf.mxu0 }
 0x42a   : > { %v13891_v41 = vpop.f32.mrf.mxu1 }
 0x42b   : > { %20027 = vst [vmem:[#allocation22_spill] sm:$0xff] %v19380_v57  ;;  %v9259_v21 = vadd.f32 %v13891_v41, %v19281_v10  ;;  %v19385_v62 = vadd.f32 %v9711_v53, %v9256_v39 }
 0x42c   : > { %v9216_v51 = vpop.f32.mrf.mxu1 }
 0x42d   : > { %20028 = vst [vmem:[#allocation17_spill] sm:$0xff] %v19385_v62  ;;  %v9257_v38 = vadd.f32 %v9216_v51, %v19285_v33  ;;  %v19388_v9 = vadd.f32 %v13939_v48, %v9259_v21 }
 0x42e   : > { %v19390_v1 = vpop.f32.mrf.mxu0  ;;  %v13958_v12 = vpop.f32.mrf.mxu1 }
 0x42f   : > { %20029 = vst [vmem:[#allocation48_spill] sm:$0xff] %v19388_v9  ;;  %v19392_v37 = vadd.f32 %v9714_v45, %v9257_v38 }
 0x430   : > { %v19394_v25 = vpop.f32.mrf.mxu0  ;;  %v9986_v26 = vpop.f32.mrf.mxu1 }
 0x431   : > { %20030 = vst [vmem:[#allocation33_spill] sm:$0xff] %v19392_v37 }
 0x432   : > { %v19396_v18 = vpop.f32.mrf.mxu0  ;;  %v13959_v14 = vpop.f32.mrf.mxu1 }
 0x434   : > { %v19398_v56 = vpop.f32.mrf.mxu0  ;;  %v9989_v10 = vpop.f32.mrf.mxu1 }
 0x436   : > { %v13962_v53 = vpop.f32.mrf.mxu1 }
 0x438   : > { %v19400_v61 = vpop.f32.mrf.mxu0  ;;  %v10002_v33 = vpop.f32.mrf.mxu1 }
 0x43a   : > { %v19402_v48 = vpop.f32.mrf.mxu0  ;;  %v13963_v36 = vpop.f32.mrf.mxu1 }
 0x43c   : > { %v19404_v28 = vpop.f32.mrf.mxu0  ;;  %v10005_v16 = vpop.f32.mrf.mxu1 }
 0x43e   : > { %v19406_v45 = vpop.f32.mrf.mxu1  ;;  %v19408_v29 = vpop.f32.mrf.mxu0 }
 0x440   : > { %v19410_v50 = vpop.f32.mrf.mxu1 }
 0x442   : > { %v19412_v22 = vpop.f32.mrf.mxu1  ;;  %v19414_v32 = vpop.f32.mrf.mxu0 }
 0x444   : > { %v19416_v24 = vpop.f32.mrf.mxu1  ;;  %v19420_v47 = vpop.f32.mrf.mxu0 }
 0x446   : > { %v19418_v43 = vpop.f32.mrf.mxu1  ;;  %v19426_v21 = vpop.f32.mrf.mxu0 }
 0x448   : > { %v19422_v39 = vpop.f32.mrf.mxu1  ;;  %v19432_v37 = vpop.f32.mrf.mxu0 }
 0x44a   : > { %v19424_v41 = vpop.f32.mrf.mxu1 }
 0x44b   : > { %v19438_v57 = vpop.f32.mrf.mxu0 }
 0x44c   : > { %v19428_v51 = vpop.f32.mrf.mxu1  ;;  %20032 = vst [vmem:[#allocation29_spill] sm:$0xff] %v19438_v57 }
 0x44d   : > { %v19444_v6 = vpop.f32.mrf.mxu0 }
 0x44e   : > { %v19430_v38 = vpop.f32.mrf.mxu1  ;;  %20035 = vst [vmem:[#allocation37_spill] sm:$0xff] %v19444_v6 }
 0x44f   : > { %v19450_v19 = vpop.f32.mrf.mxu0 }
 0x450   : > { %v19434_v9 = vpop.f32.mrf.mxu1  ;;  %20038 = vst [vmem:[#allocation32_spill] sm:$0xff] %v19450_v19 }
 0x451   : > { %v19456_v44 = vpop.f32.mrf.mxu0 }
 0x452   : > { %v19436_v62 = vpop.f32.mrf.mxu1  ;;  %20041 = vst [vmem:[#allocation30_spill] sm:$0xff] %v19456_v44 }
 0x453   : > { %20031 = vst [vmem:[#allocation50_spill] sm:$0xff] %v19436_v62 }
 0x454   : > { %v19440_v4 = vpop.f32.mrf.mxu1 }
 0x455   : > { %20033 = vst [vmem:[#allocation27_spill] sm:$0xff] %v19440_v4  ;;  %v19462_v4 = vpop.f32.mrf.mxu0 }
 0x456   : > { %v19442_v34 = vpop.f32.mrf.mxu1  ;;  %20044 = vst [vmem:[#allocation28_spill] sm:$0xff] %v19462_v4 }
 0x457   : > { %20034 = vst [vmem:[#allocation46_spill] sm:$0xff] %v19442_v34 }
 0x458   : > { %v19446_v27 = vpop.f32.mrf.mxu1 }
 0x459   : > { %20036 = vst [vmem:[#allocation47_spill] sm:$0xff] %v19446_v27  ;;  %v19468_v27 = vpop.f32.mrf.mxu0 }
 0x45a   : > { %v19448_v15 = vpop.f32.mrf.mxu1  ;;  %20047 = vst [vmem:[#allocation23_spill] sm:$0xff] %v19468_v27 }
 0x45b   : > { %20037 = vst [vmem:[#allocation41_spill] sm:$0xff] %v19448_v15  ;;  %v19476_v44 = vpop.f32.mrf.mxu0 }
 0x45c   : > { %v19452_v0 = vpop.f32.mrf.mxu1 }
 0x45d   : > { %20039 = vst [vmem:[#allocation49_spill] sm:$0xff] %v19452_v0  ;;  %v10113_v0 = vadd.f32 %v9986_v26, %v19293_v40  ;;  %v10119_v26 = vadd.f32 %v13962_v53, %v19302_v63 }
 0x45e   : > { %v19454_v54 = vpop.f32.mrf.mxu1 }
 0x45f   : > { %20040 = vst [vmem:[#allocation36_spill] sm:$0xff] %v19454_v54  ;;  %v10115_v54 = vadd.f32 %v13958_v12, %v19289_v23  ;;  %v10873_v63 = vadd.f32 %v19390_v1, %v10119_v26 }
 0x460   : > { %v19458_v62 = vpop.f32.mrf.mxu1 }
 0x461   : > { %20042 = vst [vmem:[#allocation40_spill] sm:$0xff] %v19458_v62  ;;  %v10869_v27 = vadd.f32 %v19368_v35, %v10115_v54 }
 0x462   : > { %v19460_v57 = vpop.f32.mrf.mxu1 }
 0x463   : > { %20043 = vst [vmem:[#allocation38_spill] sm:$0xff] %v19460_v57  ;;  %v10116_v57 = vadd.f32 %v13959_v14, %v19296_v8 }
 0x464   : > { %v19464_v34 = vpop.f32.mrf.mxu1 }
 0x465   : > { %20045 = vst [vmem:[#allocation45_spill] sm:$0xff] %v19464_v34  ;;  %v10114_v34 = vadd.f32 %v9989_v10, %v19299_v49  ;;  %v10870_v40 = vadd.f32 %v19377_v7, %v10116_v57 }
 0x466   : > { %v19466_v6 = vpop.f32.mrf.mxu1 }
 0x467   : > { %20046 = vst [vmem:[#allocation35_spill] sm:$0xff] %v19466_v6  ;;  %v19482_v6 = vpop.f32.mrf.mxu0  ;;  %v10868_v49 = vadd.f32 %v19382_v5, %v10114_v34 }
 0x468   : > { %v19470_v15 = vpop.f32.mrf.mxu1 }
 0x469   : > { %20048 = vst [vmem:[#allocation20_spill] sm:$0xff] %v19470_v15  ;;  %v10867_v15 = vadd.f32 %v19372_v17, %v10113_v0  ;;  %v19489_v8 = vpop.f32.mrf.mxu0  ;;  %v10120_v0 = vadd.f32 %v13963_v36, %v19308_v46  ;;  %v10123_v46 = vadd.f32 %v19406_v45, %v19314_v30  ;;  %v10124_v36 = vadd.f32 %v19412_v22, %v19320_v3 }
 0x46a   : > { %v19472_v19 = vpop.f32.mrf.mxu1  ;;  %v10127_v22 = vadd.f32 %v19418_v43, %v19326_v42 }
 0x46b   : > { %20049 = vst [vmem:[#allocation21_spill] sm:$0xff] %v19472_v19  ;;  %v10874_v7 = vadd.f32 %v19396_v18, %v10120_v0  ;;  %v10878_v26 = vadd.f32 %v19404_v28, %v10124_v36 }
 0x46c   : > { %v19478_v62 = vpop.f32.mrf.mxu1  ;;  %v10881_v43 = vadd.f32 %v19414_v32, %v10127_v22 }
 0x46d   : > { %20050 = vst [vmem:[#allocation19_spill] sm:$0xff] %v19478_v62  ;;  %v10117_v62 = vadd.f32 %v10002_v33, %v19305_v59 }
 0x46e   : > { %v14054_v4 = vpop.f32.mrf.mxu1 }
 0x46f   : > { %v11367_v60 = vadd.f32 %v14054_v4, %v10869_v27  ;;  %v10871_v59 = vadd.f32 %v19394_v25, %v10117_v62 }
 0x470   : > { %v11238_v19 = vpop.f32.mrf.mxu1 }
 0x471   : > { %v11365_v23 = vadd.f32 %v11238_v19, %v10867_v15  ;;  %v10118_v19 = vadd.f32 %v10005_v16, %v19311_v11  ;;  %v19494_v15 = vpop.f32.mrf.mxu0  ;;  %v10121_v11 = vadd.f32 %v19410_v50, %v19317_v52  ;;  %v10122_v16 = vadd.f32 %v19416_v24, %v19323_v20 }
 0x472   : > { %v14055_v12 = vpop.f32.mrf.mxu1  ;;  %v10877_v52 = vadd.f32 %v19400_v61, %v10123_v46  ;;  %v10125_v20 = vadd.f32 %v19422_v39, %v19329_v55  ;;  %v20054_v46 = vld [vmem:[#allocation27_spill] sm:$0xff] }
 0x473   : > { %v11397_v14 = vadd.f32 %v11367_v60, %v11365_v23  ;;  %v11368_v54 = vadd.f32 %v14055_v12, %v10870_v40  ;;  %v19503_v5 = vpop.f32.mrf.mxu0  ;;  %v10872_v1 = vadd.f32 %v19398_v56, %v10118_v19  ;;  %v10875_v50 = vadd.f32 %v19402_v48, %v10121_v11 }
 0x474   : > { %v11241_v10 = vpop.f32.mrf.mxu1  ;;  %v10876_v61 = vadd.f32 %v19408_v29, %v10122_v16  ;;  %v10879_v55 = vadd.f32 %v19420_v47, %v10125_v20 }
 0x475   : > { %11413 = vst [vmem:[#allocation5] sm:$0xff] %v11397_v14  ;;  %v11366_v35 = vadd.f32 %v11241_v10, %v10868_v49  ;;  %v19510_v30 = vpop.f32.mrf.mxu0 }
 0x477   : > { %v14058_v27 = vpop.f32.mrf.mxu1  ;;  %v11398_v17 = vadd.f32 %v11368_v54, %v11366_v35  ;;  %v19514_v56 = vpop.f32.mrf.mxu0  ;;  %v10128_v54 = vadd.f32 %v19424_v41, %v19332_v31  ;;  %v10126_v35 = vadd.f32 %v19428_v51, %v19335_v2  ;;  %v10131_v31 = vadd.f32 %v19430_v38, %v19338_v58  ;;  %v20053_v38 = vld [vmem:[#allocation14_spill] sm:$0xff] }
 0x478   : > { %v11371_v60 = vadd.f32 %v14058_v27, %v10873_v63  ;;  %v10129_v2 = vadd.f32 %v19434_v9, %v19341_v13  ;;  %v10130_v13 = vadd.f32 %v20054_v46, %v20053_v38 }
 0x479   : > { %v11254_v4 = vpop.f32.mrf.mxu1  ;;  %11414 = vst [vmem:[#allocation5 + $0x8] sm:$0xff] %v11398_v17  ;;  %v19522_v48 = vpop.f32.mrf.mxu0  ;;  %v10882_v19 = vadd.f32 %v19426_v21, %v10128_v54  ;;  %v10880_v47 = vadd.f32 %v19432_v37, %v10126_v35  ;;  %v20051_v21 = vld [vmem:[#allocation72_spill] sm:$0xff]  ;;  %v20055_v37 = vld [vmem:[#allocation29_spill] sm:$0xff] }
 0x47a   : > { %v11369_v34 = vadd.f32 %v11254_v4, %v10871_v59 }
 0x47b   : > { %v14059_v57 = vpop.f32.mrf.mxu1  ;;  %v19530_v29 = vpop.f32.mrf.mxu0 }
 0x47c   : > { %v11399_v53 = vadd.f32 %v11371_v60, %v11369_v34  ;;  %v11372_v62 = vadd.f32 %v14059_v57, %v10874_v7  ;;  %v20052_v34 = vld [vmem:[#allocation50_spill] sm:$0xff] }
 0x47d   : > { %v11257_v33 = vpop.f32.mrf.mxu1  ;;  %v19538_v59 = vpop.f32.mrf.mxu0  ;;  %v10132_v7 = vadd.f32 %v20052_v34, %v20051_v21  ;;  %v20067_v34 = vld [vmem:[#allocation28_spill] sm:$0xff] }
 0x47e   : > { %11415 = vst [vmem:[#allocation5 + $0x10] sm:$0xff] %v11399_v53  ;;  %v11370_v25 = vadd.f32 %v11257_v33, %v10872_v1  ;;  %v10885_v33 = vadd.f32 %v20055_v37, %v10131_v31  ;;  %v20069_v37 = vld [vmem:[#allocation9_spill] sm:$0xff] }
 0x47f   : > { %v14062_v18 = vpop.f32.mrf.mxu1 }
 0x480   : > { %v11400_v45 = vadd.f32 %v11372_v62, %v11370_v25  ;;  %v11375_v40 = vadd.f32 %v14062_v18, %v10877_v52  ;;  %v11429_v41 = vld [vmem:[#allocation5] ss:$2 sm:$0xff]  ;;  %v11445_v51 = vld [vmem:[#allocation5 + $0x1] ss:$2 sm:$0xff]  ;;  %v20056_v62 = vld [vmem:[#allocation37_spill] sm:$0xff] }
 0x481   : > { %v11270_v23 = vpop.f32.mrf.mxu1  ;;  %v11460_v57 = vadd.f32 %v11445_v51, %v11429_v41  ;;  %v10883_v25 = vadd.f32 %v20056_v62, %v10129_v2  ;;  %v19550_v52 = vld [vmem:[%s19625_s5] ss:$0 sm:$0xff]  ;;  %v20063_v2 = vld [vmem:[#allocation11_spill] sm:$0xff] }
 0x482   : > { %11416 = vst [vmem:[#allocation5 + $0x18] sm:$0xff] %v11400_v45  ;;  %v11373_v12 = vadd.f32 %v11270_v23, %v10875_v50  ;;  %v20064_v41 = vld [vmem:[#allocation41_spill] sm:$0xff] }
 0x483   : > { %v14063_v3 = vpop.f32.mrf.mxu1  ;;  %v10136_v51 = vadd.f32 %v20064_v41, %v20063_v2 }
 0x484   : > { %v11401_v24 = vadd.f32 %v11375_v40, %v11373_v12  ;;  %v11376_v49 = vadd.f32 %v14063_v3, %v10878_v26  ;;  %v20057_v12 = vld [vmem:[#allocation13_spill] sm:$0xff]  ;;  %v20058_v26 = vld [vmem:[#allocation46_spill] sm:$0xff] }
 0x485   : > { %v11273_v14 = vpop.f32.mrf.mxu1  ;;  %v10135_v3 = vadd.f32 %v20058_v26, %v20057_v12 }
 0x486   : > { %11417 = vst [vmem:[#allocation5 + $0x20] sm:$0xff] %v11401_v24  ;;  %v11374_v10 = vadd.f32 %v11273_v14, %v10876_v61  ;;  %v20059_v24 = vld [vmem:[#allocation32_spill] sm:$0xff] }
 0x487   : > { %v14066_v28 = vpop.f32.mrf.mxu1  ;;  %v10886_v61 = vadd.f32 %v20059_v24, %v10132_v7  ;;  %v10889_v7 = vadd.f32 %v20067_v34, %v10135_v3  ;;  %v20074_v24 = vld [vmem:[#allocation38_spill] sm:$0xff]  ;;  %v20083_v34 = vld [vmem:[#allocation33_spill] sm:$0xff] }
 0x488   : > { %v11402_v42 = vadd.f32 %v11376_v49, %v11374_v10  ;;  %v11379_v0 = vadd.f32 %v14066_v28, %v10881_v43  ;;  %v20060_v49 = vld [vmem:[#allocation16_spill] sm:$0xff]  ;;  %v20061_v10 = vld [vmem:[#allocation47_spill] sm:$0xff]  ;;  %v20062_v43 = vld [vmem:[#allocation30_spill] sm:$0xff] }
 0x489   : > { %v11286_v39 = vpop.f32.mrf.mxu1  ;;  %v11431_v11 = vld [vmem:[#allocation5 + $0x10] ss:$2 sm:$0xff]  ;;  %v11447_v53 = vld [vmem:[#allocation5 + $0x11] ss:$2 sm:$0xff]  ;;  %v10133_v54 = vadd.f32 %v20061_v10, %v20060_v49 }
 0x48a   : > { %11418 = vst [vmem:[#allocation5 + $0x28] sm:$0xff] %v11402_v42  ;;  %v11377_v27 = vadd.f32 %v11286_v39, %v10879_v55  ;;  %v11461_v20 = vadd.f32 %v11447_v53, %v11431_v11  ;;  %v10884_v55 = vadd.f32 %v20062_v43, %v10130_v13  ;;  %v20075_v49 = vld [vmem:[#allocation25_spill] sm:$0xff] }
 0x48b   : > { %v14067_v17 = vpop.f32.mrf.mxu1 }
 0x48c   : > { %v11403_v32 = vadd.f32 %v11379_v0, %v11377_v27  ;;  %v11380_v4 = vadd.f32 %v14067_v17, %v10882_v19 }
 0x48d   : > { %v11289_v63 = vpop.f32.mrf.mxu1 }
 0x48e   : > { %11419 = vst [vmem:[#allocation5 + $0x30] sm:$0xff] %v11403_v32  ;;  %v11378_v60 = vadd.f32 %v11289_v63, %v10880_v47  ;;  %v14102_v9 = vpop.f32.mrf.mxu0  ;;  %v20065_v63 = vld [vmem:[#allocation10_spill] sm:$0xff] }
 0x48f   : > { %v14070_v58 = vpop.f32.mrf.mxu1 }
 0x490   : > { %v11404_v1 = vadd.f32 %v11380_v4, %v11378_v60  ;;  %v11598_v45 = vpop.f32.mrf.mxu0  ;;  %v11383_v23 = vadd.f32 %v14070_v58, %v10885_v33  ;;  %v20066_v4 = vld [vmem:[#allocation49_spill] sm:$0xff]  ;;  %v20070_v33 = vld [vmem:[#allocation36_spill] sm:$0xff] }
 0x491   : > { %v11433_v36 = vld [vmem:[#allocation5 + $0x20] ss:$2 sm:$0xff]  ;;  %v11449_v18 = vld [vmem:[#allocation5 + $0x21] ss:$2 sm:$0xff]  ;;  %v11302_v16 = vpop.f32.mrf.mxu1  ;;  %v11629_v22 = vadd.f32 %v11598_v45, %v11460_v57  ;;  %v10134_v60 = vadd.f32 %v20066_v4, %v20065_v63  ;;  %v10139_v62 = vadd.f32 %v20070_v33, %v20069_v37  ;;  %v20082_v63 = vld [vmem:[#allocation21_spill] sm:$0xff] }
 0x492   : > { %v11462_v50 = vadd.f32 %v11449_v18, %v11433_v36  ;;  %11420 = vst [vmem:[#allocation5 + $0x38] sm:$0xff] %v11404_v1  ;;  %v11381_v40 = vadd.f32 %v11302_v16, %v10883_v25  ;;  %v14103_v35 = vpop.f32.mrf.mxu0  ;;  %v20068_v57 = vld [vmem:[#allocation23_spill] sm:$0xff]  ;;  %v10890_v25 = vadd.f32 %v19476_v44, %v10136_v51  ;;  %v20072_v16 = vld [vmem:[#allocation40_spill] sm:$0xff]  ;;  %v20076_v44 = vld [vmem:[#allocation45_spill] sm:$0xff] }
 0x493   : > { %v14071_v14 = vpop.f32.mrf.mxu1  ;;  %v11644_v39 = vadd.f32 %v19550_v52, %v11629_v22  ;;  %v10887_v58 = vadd.f32 %v20068_v57, %v10133_v54  ;;  %v20071_v18 = vld [vmem:[#allocation15_spill] sm:$0xff]  ;;  %v10138_v10 = vadd.f32 %v20076_v44, %v20075_v49 }
 0x494   : > { %v11631_v28 = vadd.f32 %v14102_v9, %v11462_v50  ;;  %v11405_v42 = vadd.f32 %v11383_v23, %v11381_v40  ;;  %v11601_v19 = vpop.f32.mrf.mxu0  ;;  %v11384_v17 = vadd.f32 %v14071_v14, %v10886_v61  ;;  %v10137_v45 = vadd.f32 %v20072_v16, %v20071_v18 }
 0x495   : > { %v11305_v0 = vpop.f32.mrf.mxu1  ;;  %11652 = vst [vmem:[%s19560_s14] sm:$0xff] %v11644_v39  ;;  %v11630_v32 = vadd.f32 %v11601_v19, %v11461_v20  ;;  %v10888_v40 = vadd.f32 %v19482_v6, %v10134_v60  ;;  %v20073_v20 = vld [vmem:[#allocation18_spill] sm:$0xff]  ;;  %v10892_v51 = vadd.f32 %v19510_v30, %v10138_v10 }
 0x496   : > { %v11646_v27 = vadd.f32 %v19550_v52, %v11631_v28  ;;  %11421 = vst [vmem:[#allocation5 + $0x40] sm:$0xff] %v11405_v42  ;;  %v11382_v31 = vadd.f32 %v11305_v0, %v10884_v55  ;;  %v10140_v61 = vadd.f32 %v20074_v24, %v20073_v20  ;;  %v10893_v28 = vadd.f32 %v19489_v8, %v10139_v62  ;;  %v20077_v0 = vld [vmem:[#allocation22_spill] sm:$0xff] }
 0x497   : > { %v14074_v47 = vpop.f32.mrf.mxu1  ;;  %v11645_v38 = vadd.f32 %v19550_v52, %v11630_v32 }
 0x498   : > { %11654 = vst [vmem:[%s19560_s14 + $0x10] sm:$0xff] %v11646_v27  ;;  %v11406_v21 = vadd.f32 %v11384_v17, %v11382_v31  ;;  %v11387_v53 = vadd.f32 %v14074_v47, %v10889_v7  ;;  %v10894_v55 = vadd.f32 %v19503_v5, %v10140_v61  ;;  %v20078_v27 = vld [vmem:[#allocation35_spill] sm:$0xff]  ;;  %v20079_v17 = vld [vmem:[#allocation17_spill] sm:$0xff]  ;;  %v20080_v31 = vld [vmem:[#allocation20_spill] sm:$0xff] }
 0x499   : > { %v11435_v46 = vld [vmem:[#allocation5 + $0x30] ss:$2 sm:$0xff]  ;;  %v11451_v13 = vld [vmem:[#allocation5 + $0x31] ss:$2 sm:$0xff]  ;;  %v11318_v9 = vpop.f32.mrf.mxu1  ;;  %11653 = vst [vmem:[%s19560_s14 + $0x8] sm:$0xff] %v11645_v38  ;;  %v10143_v19 = vadd.f32 %v20078_v27, %v20077_v0  ;;  %v10141_v2 = vadd.f32 %v20080_v31, %v20079_v17  ;;  %v20081_v47 = vld [vmem:[#allocation48_spill] sm:$0xff] }
 0x49a   : > { %v11463_v11 = vadd.f32 %v11451_v13, %v11435_v46  ;;  %11422 = vst [vmem:[#allocation5 + $0x48] sm:$0xff] %v11406_v21  ;;  %v11385_v1 = vadd.f32 %v11318_v9, %v10887_v58  ;;  %v10144_v4 = vadd.f32 %v20082_v63, %v20081_v47  ;;  %v20084_v7 = vld [vmem:[#allocation19_spill] sm:$0xff] }
 0x49b   : > { %v14075_v36 = vpop.f32.mrf.mxu1  ;;  %v10897_v5 = vadd.f32 %v19514_v56, %v10143_v19  ;;  %v10895_v21 = vadd.f32 %v19522_v48, %v10141_v2  ;;  %v10142_v57 = vadd.f32 %v20084_v7, %v20083_v34 }
 0x49c   : > { %v11632_v50 = vadd.f32 %v14103_v35, %v11463_v11  ;;  %v11407_v23 = vadd.f32 %v11387_v53, %v11385_v1  ;;  %v11388_v3 = vadd.f32 %v14075_v36, %v10890_v25  ;;  %v10891_v35 = vadd.f32 %v19494_v15, %v10137_v45 }
 0x49d   : > { %v11321_v12 = vpop.f32.mrf.mxu1  ;;  %v10898_v9 = vadd.f32 %v19530_v29, %v10144_v4  ;;  %v10896_v11 = vadd.f32 %v19538_v59, %v10142_v57 }
 0x49e   : > { %v11647_v26 = vadd.f32 %v19550_v52, %v11632_v50  ;;  %11423 = vst [vmem:[#allocation5 + $0x50] sm:$0xff] %v11407_v23  ;;  %v11386_v22 = vadd.f32 %v11321_v12, %v10888_v40 }
 0x49f   : > { %v14078_v14 = vpop.f32.mrf.mxu1 }
 0x4a0   : > { %11655 = vst [vmem:[%s19560_s14 + $0x18] sm:$0xff] %v11647_v26  ;;  %v11408_v54 = vadd.f32 %v11388_v3, %v11386_v22  ;;  %v11391_v42 = vadd.f32 %v14078_v14, %v10893_v28 }
 0x4a1   : > { %v11334_v6 = vpop.f32.mrf.mxu1  ;;  %v11437_v37 = vld [vmem:[#allocation5 + $0x40] ss:$2 sm:$0xff]  ;;  %v11453_v33 = vld [vmem:[#allocation5 + $0x41] ss:$2 sm:$0xff] }
 0x4a2   : > { %11424 = vst [vmem:[#allocation5 + $0x58] sm:$0xff] %v11408_v54  ;;  %v11389_v43 = vadd.f32 %v11334_v6, %v10891_v35  ;;  %v11464_v36 = vadd.f32 %v11453_v33, %v11437_v37 }
 0x4a3   : > { %v14079_v39 = vpop.f32.mrf.mxu1 }
 0x4a4   : > { %v11409_v41 = vadd.f32 %v11391_v42, %v11389_v43  ;;  %v11392_v8 = vadd.f32 %v14079_v39, %v10894_v55 }
 0x4a5   : > { %v11337_v32 = vpop.f32.mrf.mxu1 }
 0x4a6   : > { %11425 = vst [vmem:[#allocation5 + $0x60] sm:$0xff] %v11409_v41  ;;  %v11390_v15 = vadd.f32 %v11337_v32, %v10892_v51 }
 0x4a7   : > { %v14082_v60 = vpop.f32.mrf.mxu1 }
 0x4a8   : > { %v11410_v58 = vadd.f32 %v11392_v8, %v11390_v15  ;;  %v11395_v46 = vadd.f32 %v14082_v60, %v10897_v5 }
 0x4a9   : > { %v11350_v38 = vpop.f32.mrf.mxu1  ;;  %v11439_v18 = vld [vmem:[#allocation5 + $0x50] ss:$2 sm:$0xff]  ;;  %v11455_v23 = vld [vmem:[#allocation5 + $0x51] ss:$2 sm:$0xff] }
 0x4aa   : > { %11426 = vst [vmem:[#allocation5 + $0x68] sm:$0xff] %v11410_v58  ;;  %v11393_v30 = vadd.f32 %v11350_v38, %v10895_v21  ;;  %v11465_v3 = vadd.f32 %v11455_v23, %v11439_v18 }
 0x4ab   : > { %v14083_v13 = vpop.f32.mrf.mxu1 }
 0x4ac   : > { %v11411_v53 = vadd.f32 %v11395_v46, %v11393_v30  ;;  %v11396_v56 = vadd.f32 %v14083_v13, %v10898_v9 }
 0x4ad   : > { %v11353_v1 = vpop.f32.mrf.mxu1 }
 0x4ae   : > { %11427 = vst [vmem:[#allocation5 + $0x70] sm:$0xff] %v11411_v53  ;;  %v11394_v48 = vadd.f32 %v11353_v1, %v10896_v11 }
 0x4af   : > { %v14106_v62 = vpop.f32.mrf.mxu1 }
 0x4b0   : > { %v11412_v25 = vadd.f32 %v11396_v56, %v11394_v48 }
 0x4b1   : > { %v11441_v16 = vld [vmem:[#allocation5 + $0x60] ss:$2 sm:$0xff]  ;;  %v11457_v45 = vld [vmem:[#allocation5 + $0x61] ss:$2 sm:$0xff]  ;;  %v11614_v50 = vpop.f32.mrf.mxu1 }
 0x4b2   : > { %11428 = vst [vmem:[#allocation5 + $0x78] sm:$0xff] %v11412_v25  ;;  %v11466_v29 = vadd.f32 %v11457_v45, %v11441_v16  ;;  %v11633_v59 = vadd.f32 %v11614_v50, %v11464_v36 }
 0x4b3   : > { %v14107_v40 = vpop.f32.mrf.mxu1 }
 0x4b4   : > { %v11635_v12 = vadd.f32 %v14106_v62, %v11466_v29  ;;  %v11648_v26 = vadd.f32 %v19550_v52, %v11633_v59 }
 0x4b5   : > { %v11617_v22 = vpop.f32.mrf.mxu1 }
 0x4b6   : > { %v11650_v20 = vadd.f32 %v19550_v52, %v11635_v12  ;;  %11656 = vst [vmem:[%s19560_s14 + $0x20] sm:$0xff] %v11648_v26  ;;  %v11634_v24 = vadd.f32 %v11617_v22, %v11465_v3 }
 0x4b8   : > { %11658 = vst [vmem:[%s19560_s14 + $0x30] sm:$0xff] %v11650_v20  ;;  %v11649_v61 = vadd.f32 %v19550_v52, %v11634_v24 }
 0x4b9   : > { %v11443_v14 = vld [vmem:[#allocation5 + $0x70] ss:$2 sm:$0xff]  ;;  %v11459_v49 = vld [vmem:[#allocation5 + $0x71] ss:$2 sm:$0xff] }
 0x4ba   : > { %v11467_v44 = vadd.f32 %v11459_v49, %v11443_v14  ;;  %11657 = vst [vmem:[%s19560_s14 + $0x28] sm:$0xff] %v11649_v61 }
 0x4bc   : > { %v11636_v10 = vadd.f32 %v14107_v40, %v11467_v44 }
 0x4be   : > { %v11651_v54 = vadd.f32 %v19550_v52, %v11636_v10 }
 0x4c0   : > { %11659 = vst [vmem:[%s19560_s14 + $0x38] sm:$0xff] %v11651_v54 }
 0x4c1 PF: > { %s16_s23 = sadd.s32 1, %s14463_s23   ;;  %s20085_s21 = smov %s14459_s22 }
 0x4c2   : > { %p13_p5 = scmp.ge.s32.totalorder %s16_s23, 4   ;;  %s20086_s22 = smov %s20088_s24 }
 0x4c4   :  { %15 = sbr.rel (!%p13_p5) target bundleno = 2 (0x2), region = 140 }

</bundles_post_ra>
